<compile_context>
chip_gen: v7x
topology: tpu7x:2x2x1
jax: 0.10.0
libtpu: 0.0.40
codegen_flags: <defaults>
</compile_context>

<pallas_src>
import functools

import numpy as np
import jax
import jax.numpy as jnp
from jax.experimental import pallas as pl
from jax.experimental.pallas import tpu as pltpu

EPS = 1e-5
PAD = 128          # lane-aligned base offset of the tap-shift scratch buffer


# ----------------------------------------------------------------------------
# Host-side geometry helpers (pure numpy, evaluated at trace time)
# ----------------------------------------------------------------------------
class _Grid:
    """A zero-padded 2-D spatial grid flattened to one 'position' axis."""

    def __init__(self, B, H, W, py, px):
        self.B, self.H, self.W, self.py, self.px = B, H, W, py, px
        self.Hp, self.Wp = H + 2 * py, W + 2 * px
        self.Np = B * self.Hp * self.Wp        # padded-flat length
        self.n = B * H * W                     # number of valid (interior) positions

    def idx(self, b, y, x):
        return b * self.Hp * self.Wp + (y + self.py) * self.Wp + (x + self.px)

    def interior_mask(self):
        m = np.zeros((1, self.Np), np.float32)
        for b in range(self.B):
            for y in range(self.H):
                for x in range(self.W):
                    m[0, self.idx(b, y, x)] = 1.0
        return m

    def tap_offsets(self, kh, kw):
        # conv padding == grid padding by construction
        return tuple((ky - self.py) * self.Wp + (kx - self.px)
                     for ky in range(kh) for kx in range(kw))


def _pool_matrix(gin, gout):
    """AdaptiveAvgPool2d as a (gin.Np, gout.Np) matrix (exact PyTorch bins)."""
    M = np.zeros((gin.Np, gout.Np), np.float32)
    H, W, oh, ow = gin.H, gin.W, gout.H, gout.W
    for b in range(gin.B):
        for i in range(oh):
            ys, ye = (i * H) // oh, -((-(i + 1) * H) // oh)
            for j in range(ow):
                xs, xe = (j * W) // ow, -((-(j + 1) * W) // ow)
                w = 1.0 / ((ye - ys) * (xe - xs))
                col = gout.idx(b, i, j)
                for y in range(ys, ye):
                    for x in range(xs, xe):
                        M[gin.idx(b, y, x), col] = w
    return M


def _upsample_matrix(gsmall, gfull):
    """F.interpolate(mode='nearest') as a (gsmall.Np, gfull.Np) 0/1 matrix."""
    U = np.zeros((gsmall.Np, gfull.Np), np.float32)
    H, W, ih, iw = gfull.H, gfull.W, gsmall.H, gsmall.W
    for b in range(gfull.B):
        for y in range(H):
            sy = (y * ih) // H
            for x in range(W):
                sx = (x * iw) // W
                U[gsmall.idx(b, sy, sx), gfull.idx(b, y, x)] = 1.0
    return U


# ----------------------------------------------------------------------------
# The fused StripPooling kernel
# ----------------------------------------------------------------------------
def _strip_pooling_kernel(
    x_ref,                                              # (C, Npf)  f32, zero halos
    mf_ref, m1_ref, m2_ref, m3_ref, m4_ref,             # interior masks (1, Np*)
    pm1_ref, pm2_ref, pm3_ref, pm4_ref,                 # pooling matrices (bf16)
    up1_ref, up2_ref, up3_ref, up4_ref,                 # nearest-upsample matrices (bf16)
    w12_ref, w20_ref, w21_ref, w22_ref, w23_ref, w24_ref, w25_ref, w26_ref, w3_ref,
    gb12_ref, gb20_ref, gb21_ref, gb22_ref, gb23_ref, gb24_ref, gb25_ref, gb26_ref, gb3_ref,
    o_ref,                                              # (C, Npf) f32
    buf_ref,                                            # (C, L)   bf16 scratch
    *, cfg):
    C = cfg["C"]
    pad = cfg["pad"]
    npf = cfg["npf"]
    f32, bf16 = jnp.float32, jnp.bfloat16

    # Scratch may hold stale (possibly NaN) VMEM; zero it once so values read at
    # masked (ignored) positions stay finite.
    buf_ref[...] = jnp.zeros(buf_ref.shape, bf16)

    def bn(y, gb_ref, mask, count, relu):
        """Training-mode BatchNorm (biased batch var, eps=1e-5) over interior only."""
        g, b = gb_ref[0], gb_ref[1]                     # (Cout, 1)
        inv_n = 1.0 / count
        mean = jnp.sum(y * mask, axis=1, keepdims=True) * inv_n
        cen = (y - mean) * mask
        var = jnp.sum(cen * cen, axis=1, keepdims=True) * inv_n
        out = (y - mean) * jax.lax.rsqrt(var + EPS) * g + b
        return jnp.maximum(out, 0.0) if relu else out

    def conv_taps(v, w_ref, offsets, n_grid):
        """k-tap conv: sum_t W[t] @ shift(v, off[t]); v has exact zero halos."""
        buf_ref[:, pl.ds(pad, n_grid)] = v.astype(bf16)          # lane-aligned store
        acc = None
        for t, off in enumerate(offsets):
            xs = buf_ref[:, pl.ds(pad + off, n_grid)]            # shifted tap view
            part = jnp.dot(w_ref[t], xs, preferred_element_type=f32)
            acc = part if acc is None else acc + part
        return acc

    x = x_ref[...]
    mf = mf_ref[...]

    # conv1_1 & conv1_2 fused into one MXU call (weights concatenated over Cout;
    # per-channel BN statistics are unchanged by the concat).
    y12 = jnp.dot(w12_ref[...], x.astype(bf16), preferred_element_type=f32)
    y12 = bn(y12, gb12_ref, mf, cfg["nf"], relu=True)
    x1, x2 = y12[:C], y12[C:]
    x1b, x2b = x1.astype(bf16), x2.astype(bf16)

    # conv2_0: 3x3 + BN on x1 (halos re-zeroed so they act as the conv zero padding)
    x2_1 = bn(conv_taps(x1 * mf, w20_ref, cfg["offs_f"], npf),
              gb20_ref, mf, cfg["nf"], relu=False)

    def pooled_branch(src_b, pm_ref, w_ref, gb_ref, m_ref, up_ref, offs, np_g, n_g):
        p = jnp.dot(src_b, pm_ref[...], preferred_element_type=f32)       # pool
        y = bn(conv_taps(p, w_ref, offs, np_g), gb_ref, m_ref[...], n_g, relu=False)
        # nearest upsample back to full resolution (zero at halo columns)
        return jnp.dot(y.astype(bf16), up_ref[...], preferred_element_type=f32)

    x2_2 = pooled_branch(x1b, pm1_ref, w21_ref, gb21_ref, m1_ref, up1_ref,
                         cfg["offs_1"], cfg["np1"], cfg["n1"])
    x2_3 = pooled_branch(x1b, pm2_ref, w22_ref, gb22_ref, m2_ref, up2_ref,
                         cfg["offs_2"], cfg["np2"], cfg["n2"])
    x2_4 = pooled_branch(x2b, pm3_ref, w23_ref, gb23_ref, m3_ref, up3_ref,
                         cfg["offs_3"], cfg["np3"], cfg["n3"])
    x2_5 = pooled_branch(x2b, pm4_ref, w24_ref, gb24_ref, m4_ref, up4_ref,
                         cfg["offs_4"], cfg["np4"], cfg["n4"])

    # merge adds (upsample already folded in) + conv2_5 / conv2_6 (3x3 + BN + ReLU)
    s1 = jnp.maximum(x2_1 + x2_2 + x2_3, 0.0) * mf
    x1n = bn(conv_taps(s1, w25_ref, cfg["offs_f"], npf), gb25_ref, mf, cfg["nf"], relu=True)
    s2 = jnp.maximum(x2_5 + x2_4, 0.0) * mf
    x2n = bn(conv_taps(s2, w26_ref, cfg["offs_f"], npf), gb26_ref, mf, cfg["nf"], relu=True)

    # conv3 on the channel concat (split into two matmuls -> no sublane concat needed)
    y3 = (jnp.dot(w3_ref[0], x1n.astype(bf16), preferred_element_type=f32) +
          jnp.dot(w3_ref[1], x2n.astype(bf16), preferred_element_type=f32))
    y3 = bn(y3, gb3_ref, mf, cfg["nf"], relu=False)

    # fused residual epilogue: relu(x + out)
    o_ref[...] = jnp.maximum(y3 + x, 0.0)


# ----------------------------------------------------------------------------
# Wrapper
# ----------------------------------------------------------------------------
def strip_pooling(x_nchw, params, pool_size=(3, 6)):
    B, C, H, W = x_nchw.shape
    gf = _Grid(B, H, W, 1, 1)
    g1 = _Grid(B, pool_size[0], pool_size[0], 1, 1)
    g2 = _Grid(B, pool_size[1], pool_size[1], 1, 1)
    g3 = _Grid(B, 1, W, 0, 1)   # AdaptiveAvgPool2d((1, None)) -> (1,3) conv, pad (0,1)
    g4 = _Grid(B, H, 1, 1, 0)   # AdaptiveAvgPool2d((None, 1)) -> (3,1) conv, pad (1,0)

    # NCHW -> (C, B*(H+2)*(W+2)) zero-padded flat; positions on the lane axis.
    xt = jnp.transpose(x_nchw.astype(jnp.float32), (1, 0, 2, 3))
    x2d = jnp.pad(xt, ((0, 0), (0, 0), (1, 1), (1, 1))).reshape(C, gf.Np)

    bf = jnp.bfloat16
    consts = [
        jnp.asarray(gf.interior_mask()),
        jnp.asarray(g1.interior_mask()), jnp.asarray(g2.interior_mask()),
        jnp.asarray(g3.interior_mask()), jnp.asarray(g4.interior_mask()),
        jnp.asarray(_pool_matrix(gf, g1), dtype=bf), jnp.asarray(_pool_matrix(gf, g2), dtype=bf),
        jnp.asarray(_pool_matrix(gf, g3), dtype=bf), jnp.asarray(_pool_matrix(gf, g4), dtype=bf),
        jnp.asarray(_upsample_matrix(g1, gf), dtype=bf), jnp.asarray(_upsample_matrix(g2, gf), dtype=bf),
        jnp.asarray(_upsample_matrix(g3, gf), dtype=bf), jnp.asarray(_upsample_matrix(g4, gf), dtype=bf),
    ]
    weights = [params[k].astype(bf) for k in
               ("w12", "w20", "w21", "w22", "w23", "w24", "w25", "w26", "w3")]
    gbs = [params[k].astype(jnp.float32) for k in
           ("gb12", "gb20", "gb21", "gb22", "gb23", "gb24", "gb25", "gb26", "gb3")]
    inputs = [x2d] + consts + weights + gbs

    cfg = dict(
        C=C, pad=PAD, npf=gf.Np, nf=gf.n,
        np1=g1.Np, n1=g1.n, np2=g2.Np, n2=g2.n,
        np3=g3.Np, n3=g3.n, np4=g4.Np, n4=g4.n,
        offs_f=gf.tap_offsets(3, 3),
        offs_1=g1.tap_offsets(3, 3), offs_2=g2.tap_offsets(3, 3),
        offs_3=g3.tap_offsets(1, 3), offs_4=g4.tap_offsets(3, 1),
    )
    scratch_len = PAD + gf.Np + PAD

    flops = 2 * C * gf.Np * (2 * C + 3 * 9 * C + 2 * C)                  # full-res convs
    flops += 2 * C * C * (9 * (g1.Np + g2.Np) + 3 * (g3.Np + g4.Np))     # pooled convs
    flops += 4 * C * gf.Np * (g1.Np + g2.Np + g3.Np + g4.Np)             # pool + upsample
    nbytes = sum(int(np.prod(a.shape)) * a.dtype.itemsize for a in inputs)
    nbytes += C * gf.Np * 4

    out2d = pl.pallas_call(
        functools.partial(_strip_pooling_kernel, cfg=cfg),
        out_shape=jax.ShapeDtypeStruct((C, gf.Np), jnp.float32),
        in_specs=[pl.BlockSpec(memory_space=pltpu.MemorySpace.VMEM)] * len(inputs),
        out_specs=pl.BlockSpec(memory_space=pltpu.MemorySpace.VMEM),
        scratch_shapes=[pltpu.VMEM((C, scratch_len), jnp.bfloat16)],
        compiler_params=pltpu.CompilerParams(vmem_limit_bytes=64 * 1024 * 1024),
        cost_estimate=pl.CostEstimate(flops=int(flops), transcendentals=0,
                                      bytes_accessed=int(nbytes)),
    )(*inputs)

    out = out2d.reshape(C, B, gf.Hp, gf.Wp)[:, :, 1:1 + H, 1:1 + W]
    return jnp.transpose(out, (1, 0, 2, 3))               # back to NCHW


# ----------------------------------------------------------------------------
# Deterministic in-script parameter init (shapes follow the module __init__)
# ----------------------------------------------------------------------------
def init_params(key, c):
    wspecs = {
        "w12": ((2 * c, c), c),          # conv1_1 + conv1_2 fused (1x1, Cout=2c)
        "w20": ((9, c, c), 9 * c),       # conv2_0 (3x3)
        "w21": ((9, c, c), 9 * c),       # conv2_1 (3x3)
        "w22": ((9, c, c), 9 * c),       # conv2_2 (3x3)
        "w23": ((3, c, c), 3 * c),       # conv2_3 (1x3)
        "w24": ((3, c, c), 3 * c),       # conv2_4 (3x1)
        "w25": ((9, c, c), 9 * c),       # conv2_5 (3x3)
        "w26": ((9, c, c), 9 * c),       # conv2_6 (3x3)
        "w3": ((2, c, c), 2 * c),        # conv3 (1x1, Cin=2c split into two blocks)
    }
    gb_cout = {"gb12": 2 * c, "gb20": c, "gb21": c, "gb22": c, "gb23": c,
               "gb24": c, "gb25": c, "gb26": c, "gb3": c}
    keys = jax.random.split(key, len(wspecs) + 2 * len(gb_cout))
    params, i = {}, 0
    for name, (shape, fan_in) in wspecs.items():
        params[name] = (jax.random.normal(keys[i], shape, jnp.float32)
                        / np.sqrt(float(fan_in)))
        i += 1
    for name, cout in gb_cout.items():
        gamma = 0.5 + jax.random.uniform(keys[i], (cout, 1), jnp.float32)
        beta = 0.1 * jax.random.normal(keys[i + 1], (cout, 1), jnp.float32)
        params[name] = jnp.stack([gamma, beta])            # (2, cout, 1)
        i += 2
    # NOTE: the module's `self.gamma = nn.Parameter(torch.zeros(1))` is unused in forward.
    return params


# ----------------------------------------------------------------------------
if __name__ == "__main__":
    key = jax.random.PRNGKey(0)
    kx, kp = jax.random.split(key)

    B, C, H, W = 2, 4, 16, 16
    x = jax.random.normal(kx, (B, C, H, W), jnp.float32)
    params = init_params(kp, C)

    fwd = jax.jit(functools.partial(strip_pooling, pool_size=(3, 6)))
    y = fwd(x, params)
    jax.block_until_ready(y)

    assert y.shape == (B, C, H, W)
    assert bool(jnp.all(jnp.isfinite(y)))
    assert bool(jnp.all(y >= 0.0))      # final op is ReLU
    print("KERNEL_OK")
</pallas_src>

<mosaic_0001>
module attributes {stable_mosaic.version = 11 : i64} {
  func.func @_strip_pooling_kernel(%arg0: memref<4x648xf32, #tpu.memory_space<vmem>>, %arg1: memref<1x648xf32, #tpu.memory_space<vmem>>, %arg2: memref<1x50xf32, #tpu.memory_space<vmem>>, %arg3: memref<1x128xf32, #tpu.memory_space<vmem>>, %arg4: memref<1x36xf32, #tpu.memory_space<vmem>>, %arg5: memref<1x36xf32, #tpu.memory_space<vmem>>, %arg6: memref<648x50xbf16, #tpu.memory_space<vmem>>, %arg7: memref<648x128xbf16, #tpu.memory_space<vmem>>, %arg8: memref<648x36xbf16, #tpu.memory_space<vmem>>, %arg9: memref<648x36xbf16, #tpu.memory_space<vmem>>, %arg10: memref<50x648xbf16, #tpu.memory_space<vmem>>, %arg11: memref<128x648xbf16, #tpu.memory_space<vmem>>, %arg12: memref<36x648xbf16, #tpu.memory_space<vmem>>, %arg13: memref<36x648xbf16, #tpu.memory_space<vmem>>, %arg14: memref<8x4xbf16, #tpu.memory_space<vmem>>, %arg15: memref<9x4x4xbf16, #tpu.memory_space<vmem>>, %arg16: memref<9x4x4xbf16, #tpu.memory_space<vmem>>, %arg17: memref<9x4x4xbf16, #tpu.memory_space<vmem>>, %arg18: memref<3x4x4xbf16, #tpu.memory_space<vmem>>, %arg19: memref<3x4x4xbf16, #tpu.memory_space<vmem>>, %arg20: memref<9x4x4xbf16, #tpu.memory_space<vmem>>, %arg21: memref<9x4x4xbf16, #tpu.memory_space<vmem>>, %arg22: memref<2x4x4xbf16, #tpu.memory_space<vmem>>, %arg23: memref<2x8x1xf32, #tpu.memory_space<vmem>>, %arg24: memref<2x4x1xf32, #tpu.memory_space<vmem>>, %arg25: memref<2x4x1xf32, #tpu.memory_space<vmem>>, %arg26: memref<2x4x1xf32, #tpu.memory_space<vmem>>, %arg27: memref<2x4x1xf32, #tpu.memory_space<vmem>>, %arg28: memref<2x4x1xf32, #tpu.memory_space<vmem>>, %arg29: memref<2x4x1xf32, #tpu.memory_space<vmem>>, %arg30: memref<2x4x1xf32, #tpu.memory_space<vmem>>, %arg31: memref<2x4x1xf32, #tpu.memory_space<vmem>>, %arg32: memref<4x648xf32, #tpu.memory_space<vmem>>, %arg33: memref<4x904xbf16, #tpu.memory_space<vmem>>) attributes {dimension_semantics = [], scalar_prefetch = 0 : i64, scratch_operands = 1 : i64, tpu.core_type = #tpu.core_type<tc>} {
    %cst = arith.constant 0.000000e+00 : bf16
    %0 = vector.broadcast %cst : bf16 to vector<4x904xbf16>
    %c0 = arith.constant 0 : index
    %c0_0 = arith.constant 0 : index
    %1 = vector.load %arg33[%c0, %c0_0] : memref<4x904xbf16, #tpu.memory_space<vmem>>, vector<4x904xbf16>
    tpu.vector_store %arg33[%c0, %c0_0], %0 {strides = array<i32>} : memref<4x904xbf16, #tpu.memory_space<vmem>>, vector<4x904xbf16>,
    %c0_1 = arith.constant 0 : index
    %c0_2 = arith.constant 0 : index
    %2 = vector.load %arg0[%c0_1, %c0_2] : memref<4x648xf32, #tpu.memory_space<vmem>>, vector<4x648xf32>
    %c0_3 = arith.constant 0 : index
    %c0_4 = arith.constant 0 : index
    %3 = vector.load %arg1[%c0_3, %c0_4] : memref<1x648xf32, #tpu.memory_space<vmem>>, vector<1x648xf32>
    %c0_5 = arith.constant 0 : index
    %c0_6 = arith.constant 0 : index
    %4 = vector.load %arg14[%c0_5, %c0_6] : memref<8x4xbf16, #tpu.memory_space<vmem>>, vector<8x4xbf16>
    %5 = arith.truncf %2 : vector<4x648xf32> to vector<4x648xbf16>
    %cst_7 = arith.constant dense<0.000000e+00> : vector<8x648xf32>
    %6 = tpu.matmul %4, %5, %cst_7 {dimension_numbers = #tpu.dot_dimension_numbers<[1], [0], [0], [1], [0, 0, 1, 1], [], []>} : vector<8x4xbf16>, vector<4x648xbf16>, vector<8x648xf32> -> vector<8x648xf32>
    %c0_8 = arith.constant 0 : index
    %c0_9 = arith.constant 0 : index
    %c0_10 = arith.constant 0 : index
    %7 = vector.load %arg23[%c0_8, %c0_9, %c0_10] : memref<2x8x1xf32, #tpu.memory_space<vmem>>, vector<1x8x1xf32>
    %8 = vector.shape_cast %7 : vector<1x8x1xf32> to vector<8x1xf32>
    %c1 = arith.constant 1 : index
    %c0_11 = arith.constant 0 : index
    %c0_12 = arith.constant 0 : index
    %9 = vector.load %arg23[%c1, %c0_11, %c0_12] : memref<2x8x1xf32, #tpu.memory_space<vmem>>, vector<1x8x1xf32>
    %10 = vector.shape_cast %9 : vector<1x8x1xf32> to vector<8x1xf32>
    %11 = vector.broadcast %3 : vector<1x648xf32> to vector<8x648xf32>
    %12 = arith.mulf %6, %11 : vector<8x648xf32>
    %cst_13 = arith.constant dense<0.000000e+00> : vector<8xf32>
    %13 = vector.multi_reduction <add>, %12, %cst_13 [1] : vector<8x648xf32> to vector<8xf32>
    %14 = vector.shape_cast %13 : vector<8xf32> to vector<8x1xf32>
    %cst_14 = arith.constant 0.001953125 : f32
    %15 = vector.broadcast %cst_14 : f32 to vector<8x1xf32>
    %16 = arith.mulf %14, %15 : vector<8x1xf32>
    %17 = vector.broadcast %16 : vector<8x1xf32> to vector<8x648xf32>
    %18 = arith.subf %6, %17 : vector<8x648xf32>
    %19 = vector.broadcast %3 : vector<1x648xf32> to vector<8x648xf32>
    %20 = arith.mulf %18, %19 : vector<8x648xf32>
    %21 = arith.mulf %20, %20 : vector<8x648xf32>
    %cst_15 = arith.constant dense<0.000000e+00> : vector<8xf32>
    %22 = vector.multi_reduction <add>, %21, %cst_15 [1] : vector<8x648xf32> to vector<8xf32>
    %23 = vector.shape_cast %22 : vector<8xf32> to vector<8x1xf32>
    %cst_16 = arith.constant 0.001953125 : f32
    %24 = vector.broadcast %cst_16 : f32 to vector<8x1xf32>
    %25 = arith.mulf %23, %24 : vector<8x1xf32>
    %26 = vector.broadcast %16 : vector<8x1xf32> to vector<8x648xf32>
    %27 = arith.subf %6, %26 : vector<8x648xf32>
    %cst_17 = arith.constant 9.99999974E-6 : f32
    %28 = vector.broadcast %cst_17 : f32 to vector<8x1xf32>
    %29 = arith.addf %25, %28 : vector<8x1xf32>
    %30 = math.rsqrt %29 : vector<8x1xf32>
    %31 = vector.broadcast %30 : vector<8x1xf32> to vector<8x648xf32>
    %32 = arith.mulf %27, %31 : vector<8x648xf32>
    %33 = vector.broadcast %8 : vector<8x1xf32> to vector<8x648xf32>
    %34 = arith.mulf %32, %33 : vector<8x648xf32>
    %35 = vector.broadcast %10 : vector<8x1xf32> to vector<8x648xf32>
    %36 = arith.addf %34, %35 : vector<8x648xf32>
    %cst_18 = arith.constant 0.000000e+00 : f32
    %37 = vector.broadcast %cst_18 : f32 to vector<8x648xf32>
    %38 = arith.maximumf %36, %37 : vector<8x648xf32>
    %39 = vector.extract_strided_slice %38 {offsets = [0, 0], sizes = [4, 648], strides = [1, 1]} : vector<8x648xf32> to vector<4x648xf32>
    %40 = vector.extract_strided_slice %38 {offsets = [4, 0], sizes = [4, 648], strides = [1, 1]} : vector<8x648xf32> to vector<4x648xf32>
    %41 = arith.truncf %39 : vector<4x648xf32> to vector<4x648xbf16>
    %42 = arith.truncf %40 : vector<4x648xf32> to vector<4x648xbf16>
    %43 = vector.broadcast %3 : vector<1x648xf32> to vector<4x648xf32>
    %44 = arith.mulf %39, %43 : vector<4x648xf32>
    %45 = arith.truncf %44 : vector<4x648xf32> to vector<4x648xbf16>
    %c0_19 = arith.constant 0 : index
    %c128 = arith.constant 128 : index
    %46 = vector.load %arg33[%c0_19, %c128] : memref<4x904xbf16, #tpu.memory_space<vmem>>, vector<4x648xbf16>
    tpu.vector_store %arg33[%c0_19, %c128], %45 {strides = array<i32>} : memref<4x904xbf16, #tpu.memory_space<vmem>>, vector<4x648xbf16>,
    %c0_20 = arith.constant 0 : index
    %c109 = arith.constant 109 : index
    %47 = vector.load %arg33[%c0_20, %c109] : memref<4x904xbf16, #tpu.memory_space<vmem>>, vector<4x648xbf16>
    %c0_21 = arith.constant 0 : index
    %c0_22 = arith.constant 0 : index
    %c0_23 = arith.constant 0 : index
    %48 = vector.load %arg15[%c0_21, %c0_22, %c0_23] : memref<9x4x4xbf16, #tpu.memory_space<vmem>>, vector<1x4x4xbf16>
    %49 = vector.shape_cast %48 : vector<1x4x4xbf16> to vector<4x4xbf16>
    %cst_24 = arith.constant dense<0.000000e+00> : vector<4x648xf32>
    %50 = tpu.matmul %49, %47, %cst_24 {dimension_numbers = #tpu.dot_dimension_numbers<[1], [0], [0], [1], [0, 0, 1, 1], [], []>} : vector<4x4xbf16>, vector<4x648xbf16>, vector<4x648xf32> -> vector<4x648xf32>
    %c0_25 = arith.constant 0 : index
    %c110 = arith.constant 110 : index
    %51 = vector.load %arg33[%c0_25, %c110] : memref<4x904xbf16, #tpu.memory_space<vmem>>, vector<4x648xbf16>
    %c1_26 = arith.constant 1 : index
    %c0_27 = arith.constant 0 : index
    %c0_28 = arith.constant 0 : index
    %52 = vector.load %arg15[%c1_26, %c0_27, %c0_28] : memref<9x4x4xbf16, #tpu.memory_space<vmem>>, vector<1x4x4xbf16>
    %53 = vector.shape_cast %52 : vector<1x4x4xbf16> to vector<4x4xbf16>
    %cst_29 = arith.constant dense<0.000000e+00> : vector<4x648xf32>
    %54 = tpu.matmul %53, %51, %cst_29 {dimension_numbers = #tpu.dot_dimension_numbers<[1], [0], [0], [1], [0, 0, 1, 1], [], []>} : vector<4x4xbf16>, vector<4x648xbf16>, vector<4x648xf32> -> vector<4x648xf32>
    %55 = arith.addf %50, %54 : vector<4x648xf32>
    %c0_30 = arith.constant 0 : index
    %c111 = arith.constant 111 : index
    %56 = vector.load %arg33[%c0_30, %c111] : memref<4x904xbf16, #tpu.memory_space<vmem>>, vector<4x648xbf16>
    %c2 = arith.constant 2 : index
    %c0_31 = arith.constant 0 : index
    %c0_32 = arith.constant 0 : index
    %57 = vector.load %arg15[%c2, %c0_31, %c0_32] : memref<9x4x4xbf16, #tpu.memory_space<vmem>>, vector<1x4x4xbf16>
    %58 = vector.shape_cast %57 : vector<1x4x4xbf16> to vector<4x4xbf16>
    %cst_33 = arith.constant dense<0.000000e+00> : vector<4x648xf32>
    %59 = tpu.matmul %58, %56, %cst_33 {dimension_numbers = #tpu.dot_dimension_numbers<[1], [0], [0], [1], [0, 0, 1, 1], [], []>} : vector<4x4xbf16>, vector<4x648xbf16>, vector<4x648xf32> -> vector<4x648xf32>
    %60 = arith.addf %55, %59 : vector<4x648xf32>
    %c0_34 = arith.constant 0 : index
    %c127 = arith.constant 127 : index
    %61 = vector.load %arg33[%c0_34, %c127] : memref<4x904xbf16, #tpu.memory_space<vmem>>, vector<4x648xbf16>
    %c3 = arith.constant 3 : index
    %c0_35 = arith.constant 0 : index
    %c0_36 = arith.constant 0 : index
    %62 = vector.load %arg15[%c3, %c0_35, %c0_36] : memref<9x4x4xbf16, #tpu.memory_space<vmem>>, vector<1x4x4xbf16>
    %63 = vector.shape_cast %62 : vector<1x4x4xbf16> to vector<4x4xbf16>
    %cst_37 = arith.constant dense<0.000000e+00> : vector<4x648xf32>
    %64 = tpu.matmul %63, %61, %cst_37 {dimension_numbers = #tpu.dot_dimension_numbers<[1], [0], [0], [1], [0, 0, 1, 1], [], []>} : vector<4x4xbf16>, vector<4x648xbf16>, vector<4x648xf32> -> vector<4x648xf32>
    %65 = arith.addf %60, %64 : vector<4x648xf32>
    %c0_38 = arith.constant 0 : index
    %c128_39 = arith.constant 128 : index
    %66 = vector.load %arg33[%c0_38, %c128_39] : memref<4x904xbf16, #tpu.memory_space<vmem>>, vector<4x648xbf16>
    %c4 = arith.constant 4 : index
    %c0_40 = arith.constant 0 : index
    %c0_41 = arith.constant 0 : index
    %67 = vector.load %arg15[%c4, %c0_40, %c0_41] : memref<9x4x4xbf16, #tpu.memory_space<vmem>>, vector<1x4x4xbf16>
    %68 = vector.shape_cast %67 : vector<1x4x4xbf16> to vector<4x4xbf16>
    %cst_42 = arith.constant dense<0.000000e+00> : vector<4x648xf32>
    %69 = tpu.matmul %68, %66, %cst_42 {dimension_numbers = #tpu.dot_dimension_numbers<[1], [0], [0], [1], [0, 0, 1, 1], [], []>} : vector<4x4xbf16>, vector<4x648xbf16>, vector<4x648xf32> -> vector<4x648xf32>
    %70 = arith.addf %65, %69 : vector<4x648xf32>
    %c0_43 = arith.constant 0 : index
    %c129 = arith.constant 129 : index
    %71 = vector.load %arg33[%c0_43, %c129] : memref<4x904xbf16, #tpu.memory_space<vmem>>, vector<4x648xbf16>
    %c5 = arith.constant 5 : index
    %c0_44 = arith.constant 0 : index
    %c0_45 = arith.constant 0 : index
    %72 = vector.load %arg15[%c5, %c0_44, %c0_45] : memref<9x4x4xbf16, #tpu.memory_space<vmem>>, vector<1x4x4xbf16>
    %73 = vector.shape_cast %72 : vector<1x4x4xbf16> to vector<4x4xbf16>
    %cst_46 = arith.constant dense<0.000000e+00> : vector<4x648xf32>
    %74 = tpu.matmul %73, %71, %cst_46 {dimension_numbers = #tpu.dot_dimension_numbers<[1], [0], [0], [1], [0, 0, 1, 1], [], []>} : vector<4x4xbf16>, vector<4x648xbf16>, vector<4x648xf32> -> vector<4x648xf32>
    %75 = arith.addf %70, %74 : vector<4x648xf32>
    %c0_47 = arith.constant 0 : index
    %c145 = arith.constant 145 : index
    %76 = vector.load %arg33[%c0_47, %c145] : memref<4x904xbf16, #tpu.memory_space<vmem>>, vector<4x648xbf16>
    %c6 = arith.constant 6 : index
    %c0_48 = arith.constant 0 : index
    %c0_49 = arith.constant 0 : index
    %77 = vector.load %arg15[%c6, %c0_48, %c0_49] : memref<9x4x4xbf16, #tpu.memory_space<vmem>>, vector<1x4x4xbf16>
    %78 = vector.shape_cast %77 : vector<1x4x4xbf16> to vector<4x4xbf16>
    %cst_50 = arith.constant dense<0.000000e+00> : vector<4x648xf32>
    %79 = tpu.matmul %78, %76, %cst_50 {dimension_numbers = #tpu.dot_dimension_numbers<[1], [0], [0], [1], [0, 0, 1, 1], [], []>} : vector<4x4xbf16>, vector<4x648xbf16>, vector<4x648xf32> -> vector<4x648xf32>
    %80 = arith.addf %75, %79 : vector<4x648xf32>
    %c0_51 = arith.constant 0 : index
    %c146 = arith.constant 146 : index
    %81 = vector.load %arg33[%c0_51, %c146] : memref<4x904xbf16, #tpu.memory_space<vmem>>, vector<4x648xbf16>
    %c7 = arith.constant 7 : index
    %c0_52 = arith.constant 0 : index
    %c0_53 = arith.constant 0 : index
    %82 = vector.load %arg15[%c7, %c0_52, %c0_53] : memref<9x4x4xbf16, #tpu.memory_space<vmem>>, vector<1x4x4xbf16>
    %83 = vector.shape_cast %82 : vector<1x4x4xbf16> to vector<4x4xbf16>
    %cst_54 = arith.constant dense<0.000000e+00> : vector<4x648xf32>
    %84 = tpu.matmul %83, %81, %cst_54 {dimension_numbers = #tpu.dot_dimension_numbers<[1], [0], [0], [1], [0, 0, 1, 1], [], []>} : vector<4x4xbf16>, vector<4x648xbf16>, vector<4x648xf32> -> vector<4x648xf32>
    %85 = arith.addf %80, %84 : vector<4x648xf32>
    %c0_55 = arith.constant 0 : index
    %c147 = arith.constant 147 : index
    %86 = vector.load %arg33[%c0_55, %c147] : memref<4x904xbf16, #tpu.memory_space<vmem>>, vector<4x648xbf16>
    %c8 = arith.constant 8 : index
    %c0_56 = arith.constant 0 : index
    %c0_57 = arith.constant 0 : index
    %87 = vector.load %arg15[%c8, %c0_56, %c0_57] : memref<9x4x4xbf16, #tpu.memory_space<vmem>>, vector<1x4x4xbf16>
    %88 = vector.shape_cast %87 : vector<1x4x4xbf16> to vector<4x4xbf16>
    %cst_58 = arith.constant dense<0.000000e+00> : vector<4x648xf32>
    %89 = tpu.matmul %88, %86, %cst_58 {dimension_numbers = #tpu.dot_dimension_numbers<[1], [0], [0], [1], [0, 0, 1, 1], [], []>} : vector<4x4xbf16>, vector<4x648xbf16>, vector<4x648xf32> -> vector<4x648xf32>
    %90 = arith.addf %85, %89 : vector<4x648xf32>
    %c0_59 = arith.constant 0 : index
    %c0_60 = arith.constant 0 : index
    %c0_61 = arith.constant 0 : index
    %91 = vector.load %arg24[%c0_59, %c0_60, %c0_61] : memref<2x4x1xf32, #tpu.memory_space<vmem>>, vector<1x4x1xf32>
    %92 = vector.shape_cast %91 : vector<1x4x1xf32> to vector<4x1xf32>
    %c1_62 = arith.constant 1 : index
    %c0_63 = arith.constant 0 : index
    %c0_64 = arith.constant 0 : index
    %93 = vector.load %arg24[%c1_62, %c0_63, %c0_64] : memref<2x4x1xf32, #tpu.memory_space<vmem>>, vector<1x4x1xf32>
    %94 = vector.shape_cast %93 : vector<1x4x1xf32> to vector<4x1xf32>
    %95 = vector.broadcast %3 : vector<1x648xf32> to vector<4x648xf32>
    %96 = arith.mulf %90, %95 : vector<4x648xf32>
    %cst_65 = arith.constant dense<0.000000e+00> : vector<4xf32>
    %97 = vector.multi_reduction <add>, %96, %cst_65 [1] : vector<4x648xf32> to vector<4xf32>
    %98 = vector.shape_cast %97 : vector<4xf32> to vector<4x1xf32>
    %cst_66 = arith.constant 0.001953125 : f32
    %99 = vector.broadcast %cst_66 : f32 to vector<4x1xf32>
    %100 = arith.mulf %98, %99 : vector<4x1xf32>
    %101 = vector.broadcast %100 : vector<4x1xf32> to vector<4x648xf32>
    %102 = arith.subf %90, %101 : vector<4x648xf32>
    %103 = vector.broadcast %3 : vector<1x648xf32> to vector<4x648xf32>
    %104 = arith.mulf %102, %103 : vector<4x648xf32>
    %105 = arith.mulf %104, %104 : vector<4x648xf32>
    %cst_67 = arith.constant dense<0.000000e+00> : vector<4xf32>
    %106 = vector.multi_reduction <add>, %105, %cst_67 [1] : vector<4x648xf32> to vector<4xf32>
    %107 = vector.shape_cast %106 : vector<4xf32> to vector<4x1xf32>
    %cst_68 = arith.constant 0.001953125 : f32
    %108 = vector.broadcast %cst_68 : f32 to vector<4x1xf32>
    %109 = arith.mulf %107, %108 : vector<4x1xf32>
    %110 = vector.broadcast %100 : vector<4x1xf32> to vector<4x648xf32>
    %111 = arith.subf %90, %110 : vector<4x648xf32>
    %cst_69 = arith.constant 9.99999974E-6 : f32
    %112 = vector.broadcast %cst_69 : f32 to vector<4x1xf32>
    %113 = arith.addf %109, %112 : vector<4x1xf32>
    %114 = math.rsqrt %113 : vector<4x1xf32>
    %115 = vector.broadcast %114 : vector<4x1xf32> to vector<4x648xf32>
    %116 = arith.mulf %111, %115 : vector<4x648xf32>
    %117 = vector.broadcast %92 : vector<4x1xf32> to vector<4x648xf32>
    %118 = arith.mulf %116, %117 : vector<4x648xf32>
    %119 = vector.broadcast %94 : vector<4x1xf32> to vector<4x648xf32>
    %120 = arith.addf %118, %119 : vector<4x648xf32>
    %c0_70 = arith.constant 0 : index
    %c0_71 = arith.constant 0 : index
    %121 = vector.load %arg6[%c0_70, %c0_71] : memref<648x50xbf16, #tpu.memory_space<vmem>>, vector<648x50xbf16>
    %cst_72 = arith.constant dense<0.000000e+00> : vector<4x50xf32>
    %122 = tpu.matmul %41, %121, %cst_72 {dimension_numbers = #tpu.dot_dimension_numbers<[1], [0], [0], [1], [0, 0, 1, 1], [], []>} : vector<4x648xbf16>, vector<648x50xbf16>, vector<4x50xf32> -> vector<4x50xf32>
    %123 = arith.truncf %122 : vector<4x50xf32> to vector<4x50xbf16>
    %c0_73 = arith.constant 0 : index
    %c128_74 = arith.constant 128 : index
    %124 = vector.load %arg33[%c0_73, %c128_74] : memref<4x904xbf16, #tpu.memory_space<vmem>>, vector<4x50xbf16>
    tpu.vector_store %arg33[%c0_73, %c128_74], %123 {strides = array<i32>} : memref<4x904xbf16, #tpu.memory_space<vmem>>, vector<4x50xbf16>,
    %c0_75 = arith.constant 0 : index
    %c122 = arith.constant 122 : index
    %125 = vector.load %arg33[%c0_75, %c122] : memref<4x904xbf16, #tpu.memory_space<vmem>>, vector<4x50xbf16>
    %c0_76 = arith.constant 0 : index
    %c0_77 = arith.constant 0 : index
    %c0_78 = arith.constant 0 : index
    %126 = vector.load %arg16[%c0_76, %c0_77, %c0_78] : memref<9x4x4xbf16, #tpu.memory_space<vmem>>, vector<1x4x4xbf16>
    %127 = vector.shape_cast %126 : vector<1x4x4xbf16> to vector<4x4xbf16>
    %cst_79 = arith.constant dense<0.000000e+00> : vector<4x50xf32>
    %128 = tpu.matmul %127, %125, %cst_79 {dimension_numbers = #tpu.dot_dimension_numbers<[1], [0], [0], [1], [0, 0, 1, 1], [], []>} : vector<4x4xbf16>, vector<4x50xbf16>, vector<4x50xf32> -> vector<4x50xf32>
    %c0_80 = arith.constant 0 : index
    %c123 = arith.constant 123 : index
    %129 = vector.load %arg33[%c0_80, %c123] : memref<4x904xbf16, #tpu.memory_space<vmem>>, vector<4x50xbf16>
    %c1_81 = arith.constant 1 : index
    %c0_82 = arith.constant 0 : index
    %c0_83 = arith.constant 0 : index
    %130 = vector.load %arg16[%c1_81, %c0_82, %c0_83] : memref<9x4x4xbf16, #tpu.memory_space<vmem>>, vector<1x4x4xbf16>
    %131 = vector.shape_cast %130 : vector<1x4x4xbf16> to vector<4x4xbf16>
    %cst_84 = arith.constant dense<0.000000e+00> : vector<4x50xf32>
    %132 = tpu.matmul %131, %129, %cst_84 {dimension_numbers = #tpu.dot_dimension_numbers<[1], [0], [0], [1], [0, 0, 1, 1], [], []>} : vector<4x4xbf16>, vector<4x50xbf16>, vector<4x50xf32> -> vector<4x50xf32>
    %133 = arith.addf %128, %132 : vector<4x50xf32>
    %c0_85 = arith.constant 0 : index
    %c124 = arith.constant 124 : index
    %134 = vector.load %arg33[%c0_85, %c124] : memref<4x904xbf16, #tpu.memory_space<vmem>>, vector<4x50xbf16>
    %c2_86 = arith.constant 2 : index
    %c0_87 = arith.constant 0 : index
    %c0_88 = arith.constant 0 : index
    %135 = vector.load %arg16[%c2_86, %c0_87, %c0_88] : memref<9x4x4xbf16, #tpu.memory_space<vmem>>, vector<1x4x4xbf16>
    %136 = vector.shape_cast %135 : vector<1x4x4xbf16> to vector<4x4xbf16>
    %cst_89 = arith.constant dense<0.000000e+00> : vector<4x50xf32>
    %137 = tpu.matmul %136, %134, %cst_89 {dimension_numbers = #tpu.dot_dimension_numbers<[1], [0], [0], [1], [0, 0, 1, 1], [], []>} : vector<4x4xbf16>, vector<4x50xbf16>, vector<4x50xf32> -> vector<4x50xf32>
    %138 = arith.addf %133, %137 : vector<4x50xf32>
    %c0_90 = arith.constant 0 : index
    %c127_91 = arith.constant 127 : index
    %139 = vector.load %arg33[%c0_90, %c127_91] : memref<4x904xbf16, #tpu.memory_space<vmem>>, vector<4x50xbf16>
    %c3_92 = arith.constant 3 : index
    %c0_93 = arith.constant 0 : index
    %c0_94 = arith.constant 0 : index
    %140 = vector.load %arg16[%c3_92, %c0_93, %c0_94] : memref<9x4x4xbf16, #tpu.memory_space<vmem>>, vector<1x4x4xbf16>
    %141 = vector.shape_cast %140 : vector<1x4x4xbf16> to vector<4x4xbf16>
    %cst_95 = arith.constant dense<0.000000e+00> : vector<4x50xf32>
    %142 = tpu.matmul %141, %139, %cst_95 {dimension_numbers = #tpu.dot_dimension_numbers<[1], [0], [0], [1], [0, 0, 1, 1], [], []>} : vector<4x4xbf16>, vector<4x50xbf16>, vector<4x50xf32> -> vector<4x50xf32>
    %143 = arith.addf %138, %142 : vector<4x50xf32>
    %c0_96 = arith.constant 0 : index
    %c128_97 = arith.constant 128 : index
    %144 = vector.load %arg33[%c0_96, %c128_97] : memref<4x904xbf16, #tpu.memory_space<vmem>>, vector<4x50xbf16>
    %c4_98 = arith.constant 4 : index
    %c0_99 = arith.constant 0 : index
    %c0_100 = arith.constant 0 : index
    %145 = vector.load %arg16[%c4_98, %c0_99, %c0_100] : memref<9x4x4xbf16, #tpu.memory_space<vmem>>, vector<1x4x4xbf16>
    %146 = vector.shape_cast %145 : vector<1x4x4xbf16> to vector<4x4xbf16>
    %cst_101 = arith.constant dense<0.000000e+00> : vector<4x50xf32>
    %147 = tpu.matmul %146, %144, %cst_101 {dimension_numbers = #tpu.dot_dimension_numbers<[1], [0], [0], [1], [0, 0, 1, 1], [], []>} : vector<4x4xbf16>, vector<4x50xbf16>, vector<4x50xf32> -> vector<4x50xf32>
    %148 = arith.addf %143, %147 : vector<4x50xf32>
    %c0_102 = arith.constant 0 : index
    %c129_103 = arith.constant 129 : index
    %149 = vector.load %arg33[%c0_102, %c129_103] : memref<4x904xbf16, #tpu.memory_space<vmem>>, vector<4x50xbf16>
    %c5_104 = arith.constant 5 : index
    %c0_105 = arith.constant 0 : index
    %c0_106 = arith.constant 0 : index
    %150 = vector.load %arg16[%c5_104, %c0_105, %c0_106] : memref<9x4x4xbf16, #tpu.memory_space<vmem>>, vector<1x4x4xbf16>
    %151 = vector.shape_cast %150 : vector<1x4x4xbf16> to vector<4x4xbf16>
    %cst_107 = arith.constant dense<0.000000e+00> : vector<4x50xf32>
    %152 = tpu.matmul %151, %149, %cst_107 {dimension_numbers = #tpu.dot_dimension_numbers<[1], [0], [0], [1], [0, 0, 1, 1], [], []>} : vector<4x4xbf16>, vector<4x50xbf16>, vector<4x50xf32> -> vector<4x50xf32>
    %153 = arith.addf %148, %152 : vector<4x50xf32>
    %c0_108 = arith.constant 0 : index
    %c132 = arith.constant 132 : index
    %154 = vector.load %arg33[%c0_108, %c132] : memref<4x904xbf16, #tpu.memory_space<vmem>>, vector<4x50xbf16>
    %c6_109 = arith.constant 6 : index
    %c0_110 = arith.constant 0 : index
    %c0_111 = arith.constant 0 : index
    %155 = vector.load %arg16[%c6_109, %c0_110, %c0_111] : memref<9x4x4xbf16, #tpu.memory_space<vmem>>, vector<1x4x4xbf16>
    %156 = vector.shape_cast %155 : vector<1x4x4xbf16> to vector<4x4xbf16>
    %cst_112 = arith.constant dense<0.000000e+00> : vector<4x50xf32>
    %157 = tpu.matmul %156, %154, %cst_112 {dimension_numbers = #tpu.dot_dimension_numbers<[1], [0], [0], [1], [0, 0, 1, 1], [], []>} : vector<4x4xbf16>, vector<4x50xbf16>, vector<4x50xf32> -> vector<4x50xf32>
    %158 = arith.addf %153, %157 : vector<4x50xf32>
    %c0_113 = arith.constant 0 : index
    %c133 = arith.constant 133 : index
    %159 = vector.load %arg33[%c0_113, %c133] : memref<4x904xbf16, #tpu.memory_space<vmem>>, vector<4x50xbf16>
    %c7_114 = arith.constant 7 : index
    %c0_115 = arith.constant 0 : index
    %c0_116 = arith.constant 0 : index
    %160 = vector.load %arg16[%c7_114, %c0_115, %c0_116] : memref<9x4x4xbf16, #tpu.memory_space<vmem>>, vector<1x4x4xbf16>
    %161 = vector.shape_cast %160 : vector<1x4x4xbf16> to vector<4x4xbf16>
    %cst_117 = arith.constant dense<0.000000e+00> : vector<4x50xf32>
    %162 = tpu.matmul %161, %159, %cst_117 {dimension_numbers = #tpu.dot_dimension_numbers<[1], [0], [0], [1], [0, 0, 1, 1], [], []>} : vector<4x4xbf16>, vector<4x50xbf16>, vector<4x50xf32> -> vector<4x50xf32>
    %163 = arith.addf %158, %162 : vector<4x50xf32>
    %c0_118 = arith.constant 0 : index
    %c134 = arith.constant 134 : index
    %164 = vector.load %arg33[%c0_118, %c134] : memref<4x904xbf16, #tpu.memory_space<vmem>>, vector<4x50xbf16>
    %c8_119 = arith.constant 8 : index
    %c0_120 = arith.constant 0 : index
    %c0_121 = arith.constant 0 : index
    %165 = vector.load %arg16[%c8_119, %c0_120, %c0_121] : memref<9x4x4xbf16, #tpu.memory_space<vmem>>, vector<1x4x4xbf16>
    %166 = vector.shape_cast %165 : vector<1x4x4xbf16> to vector<4x4xbf16>
    %cst_122 = arith.constant dense<0.000000e+00> : vector<4x50xf32>
    %167 = tpu.matmul %166, %164, %cst_122 {dimension_numbers = #tpu.dot_dimension_numbers<[1], [0], [0], [1], [0, 0, 1, 1], [], []>} : vector<4x4xbf16>, vector<4x50xbf16>, vector<4x50xf32> -> vector<4x50xf32>
    %168 = arith.addf %163, %167 : vector<4x50xf32>
    %c0_123 = arith.constant 0 : index
    %c0_124 = arith.constant 0 : index
    %169 = vector.load %arg2[%c0_123, %c0_124] : memref<1x50xf32, #tpu.memory_space<vmem>>, vector<1x50xf32>
    %c0_125 = arith.constant 0 : index
    %c0_126 = arith.constant 0 : index
    %c0_127 = arith.constant 0 : index
    %170 = vector.load %arg25[%c0_125, %c0_126, %c0_127] : memref<2x4x1xf32, #tpu.memory_space<vmem>>, vector<1x4x1xf32>
    %171 = vector.shape_cast %170 : vector<1x4x1xf32> to vector<4x1xf32>
    %c1_128 = arith.constant 1 : index
    %c0_129 = arith.constant 0 : index
    %c0_130 = arith.constant 0 : index
    %172 = vector.load %arg25[%c1_128, %c0_129, %c0_130] : memref<2x4x1xf32, #tpu.memory_space<vmem>>, vector<1x4x1xf32>
    %173 = vector.shape_cast %172 : vector<1x4x1xf32> to vector<4x1xf32>
    %174 = vector.broadcast %169 : vector<1x50xf32> to vector<4x50xf32>
    %175 = arith.mulf %168, %174 : vector<4x50xf32>
    %cst_131 = arith.constant dense<0.000000e+00> : vector<4xf32>
    %176 = vector.multi_reduction <add>, %175, %cst_131 [1] : vector<4x50xf32> to vector<4xf32>
    %177 = vector.shape_cast %176 : vector<4xf32> to vector<4x1xf32>
    %cst_132 = arith.constant 0.055555556 : f32
    %178 = vector.broadcast %cst_132 : f32 to vector<4x1xf32>
    %179 = arith.mulf %177, %178 : vector<4x1xf32>
    %180 = vector.broadcast %179 : vector<4x1xf32> to vector<4x50xf32>
    %181 = arith.subf %168, %180 : vector<4x50xf32>
    %182 = vector.broadcast %169 : vector<1x50xf32> to vector<4x50xf32>
    %183 = arith.mulf %181, %182 : vector<4x50xf32>
    %184 = arith.mulf %183, %183 : vector<4x50xf32>
    %cst_133 = arith.constant dense<0.000000e+00> : vector<4xf32>
    %185 = vector.multi_reduction <add>, %184, %cst_133 [1] : vector<4x50xf32> to vector<4xf32>
    %186 = vector.shape_cast %185 : vector<4xf32> to vector<4x1xf32>
    %cst_134 = arith.constant 0.055555556 : f32
    %187 = vector.broadcast %cst_134 : f32 to vector<4x1xf32>
    %188 = arith.mulf %186, %187 : vector<4x1xf32>
    %189 = vector.broadcast %179 : vector<4x1xf32> to vector<4x50xf32>
    %190 = arith.subf %168, %189 : vector<4x50xf32>
    %cst_135 = arith.constant 9.99999974E-6 : f32
    %191 = vector.broadcast %cst_135 : f32 to vector<4x1xf32>
    %192 = arith.addf %188, %191 : vector<4x1xf32>
    %193 = math.rsqrt %192 : vector<4x1xf32>
    %194 = vector.broadcast %193 : vector<4x1xf32> to vector<4x50xf32>
    %195 = arith.mulf %190, %194 : vector<4x50xf32>
    %196 = vector.broadcast %171 : vector<4x1xf32> to vector<4x50xf32>
    %197 = arith.mulf %195, %196 : vector<4x50xf32>
    %198 = vector.broadcast %173 : vector<4x1xf32> to vector<4x50xf32>
    %199 = arith.addf %197, %198 : vector<4x50xf32>
    %200 = arith.truncf %199 : vector<4x50xf32> to vector<4x50xbf16>
    %c0_136 = arith.constant 0 : index
    %c0_137 = arith.constant 0 : index
    %201 = vector.load %arg10[%c0_136, %c0_137] : memref<50x648xbf16, #tpu.memory_space<vmem>>, vector<50x648xbf16>
    %cst_138 = arith.constant dense<0.000000e+00> : vector<4x648xf32>
    %202 = tpu.matmul %200, %201, %cst_138 {dimension_numbers = #tpu.dot_dimension_numbers<[1], [0], [0], [1], [0, 0, 1, 1], [], []>} : vector<4x50xbf16>, vector<50x648xbf16>, vector<4x648xf32> -> vector<4x648xf32>
    %c0_139 = arith.constant 0 : index
    %c0_140 = arith.constant 0 : index
    %203 = vector.load %arg7[%c0_139, %c0_140] : memref<648x128xbf16, #tpu.memory_space<vmem>>, vector<648x128xbf16>
    %cst_141 = arith.constant dense<0.000000e+00> : vector<4x128xf32>
    %204 = tpu.matmul %41, %203, %cst_141 {dimension_numbers = #tpu.dot_dimension_numbers<[1], [0], [0], [1], [0, 0, 1, 1], [], []>} : vector<4x648xbf16>, vector<648x128xbf16>, vector<4x128xf32> -> vector<4x128xf32>
    %205 = arith.truncf %204 : vector<4x128xf32> to vector<4x128xbf16>
    %c0_142 = arith.constant 0 : index
    %c128_143 = arith.constant 128 : index
    %206 = vector.load %arg33[%c0_142, %c128_143] : memref<4x904xbf16, #tpu.memory_space<vmem>>, vector<4x128xbf16>
    tpu.vector_store %arg33[%c0_142, %c128_143], %205 {strides = array<i32>} : memref<4x904xbf16, #tpu.memory_space<vmem>>, vector<4x128xbf16>,
    %c0_144 = arith.constant 0 : index
    %c119 = arith.constant 119 : index
    %207 = vector.load %arg33[%c0_144, %c119] : memref<4x904xbf16, #tpu.memory_space<vmem>>, vector<4x128xbf16>
    %c0_145 = arith.constant 0 : index
    %c0_146 = arith.constant 0 : index
    %c0_147 = arith.constant 0 : index
    %208 = vector.load %arg17[%c0_145, %c0_146, %c0_147] : memref<9x4x4xbf16, #tpu.memory_space<vmem>>, vector<1x4x4xbf16>
    %209 = vector.shape_cast %208 : vector<1x4x4xbf16> to vector<4x4xbf16>
    %cst_148 = arith.constant dense<0.000000e+00> : vector<4x128xf32>
    %210 = tpu.matmul %209, %207, %cst_148 {dimension_numbers = #tpu.dot_dimension_numbers<[1], [0], [0], [1], [0, 0, 1, 1], [], []>} : vector<4x4xbf16>, vector<4x128xbf16>, vector<4x128xf32> -> vector<4x128xf32>
    %c0_149 = arith.constant 0 : index
    %c120 = arith.constant 120 : index
    %211 = vector.load %arg33[%c0_149, %c120] : memref<4x904xbf16, #tpu.memory_space<vmem>>, vector<4x128xbf16>
    %c1_150 = arith.constant 1 : index
    %c0_151 = arith.constant 0 : index
    %c0_152 = arith.constant 0 : index
    %212 = vector.load %arg17[%c1_150, %c0_151, %c0_152] : memref<9x4x4xbf16, #tpu.memory_space<vmem>>, vector<1x4x4xbf16>
    %213 = vector.shape_cast %212 : vector<1x4x4xbf16> to vector<4x4xbf16>
    %cst_153 = arith.constant dense<0.000000e+00> : vector<4x128xf32>
    %214 = tpu.matmul %213, %211, %cst_153 {dimension_numbers = #tpu.dot_dimension_numbers<[1], [0], [0], [1], [0, 0, 1, 1], [], []>} : vector<4x4xbf16>, vector<4x128xbf16>, vector<4x128xf32> -> vector<4x128xf32>
    %215 = arith.addf %210, %214 : vector<4x128xf32>
    %c0_154 = arith.constant 0 : index
    %c121 = arith.constant 121 : index
    %216 = vector.load %arg33[%c0_154, %c121] : memref<4x904xbf16, #tpu.memory_space<vmem>>, vector<4x128xbf16>
    %c2_155 = arith.constant 2 : index
    %c0_156 = arith.constant 0 : index
    %c0_157 = arith.constant 0 : index
    %217 = vector.load %arg17[%c2_155, %c0_156, %c0_157] : memref<9x4x4xbf16, #tpu.memory_space<vmem>>, vector<1x4x4xbf16>
    %218 = vector.shape_cast %217 : vector<1x4x4xbf16> to vector<4x4xbf16>
    %cst_158 = arith.constant dense<0.000000e+00> : vector<4x128xf32>
    %219 = tpu.matmul %218, %216, %cst_158 {dimension_numbers = #tpu.dot_dimension_numbers<[1], [0], [0], [1], [0, 0, 1, 1], [], []>} : vector<4x4xbf16>, vector<4x128xbf16>, vector<4x128xf32> -> vector<4x128xf32>
    %220 = arith.addf %215, %219 : vector<4x128xf32>
    %c0_159 = arith.constant 0 : index
    %c127_160 = arith.constant 127 : index
    %221 = vector.load %arg33[%c0_159, %c127_160] : memref<4x904xbf16, #tpu.memory_space<vmem>>, vector<4x128xbf16>
    %c3_161 = arith.constant 3 : index
    %c0_162 = arith.constant 0 : index
    %c0_163 = arith.constant 0 : index
    %222 = vector.load %arg17[%c3_161, %c0_162, %c0_163] : memref<9x4x4xbf16, #tpu.memory_space<vmem>>, vector<1x4x4xbf16>
    %223 = vector.shape_cast %222 : vector<1x4x4xbf16> to vector<4x4xbf16>
    %cst_164 = arith.constant dense<0.000000e+00> : vector<4x128xf32>
    %224 = tpu.matmul %223, %221, %cst_164 {dimension_numbers = #tpu.dot_dimension_numbers<[1], [0], [0], [1], [0, 0, 1, 1], [], []>} : vector<4x4xbf16>, vector<4x128xbf16>, vector<4x128xf32> -> vector<4x128xf32>
    %225 = arith.addf %220, %224 : vector<4x128xf32>
    %c0_165 = arith.constant 0 : index
    %c128_166 = arith.constant 128 : index
    %226 = vector.load %arg33[%c0_165, %c128_166] : memref<4x904xbf16, #tpu.memory_space<vmem>>, vector<4x128xbf16>
    %c4_167 = arith.constant 4 : index
    %c0_168 = arith.constant 0 : index
    %c0_169 = arith.constant 0 : index
    %227 = vector.load %arg17[%c4_167, %c0_168, %c0_169] : memref<9x4x4xbf16, #tpu.memory_space<vmem>>, vector<1x4x4xbf16>
    %228 = vector.shape_cast %227 : vector<1x4x4xbf16> to vector<4x4xbf16>
    %cst_170 = arith.constant dense<0.000000e+00> : vector<4x128xf32>
    %229 = tpu.matmul %228, %226, %cst_170 {dimension_numbers = #tpu.dot_dimension_numbers<[1], [0], [0], [1], [0, 0, 1, 1], [], []>} : vector<4x4xbf16>, vector<4x128xbf16>, vector<4x128xf32> -> vector<4x128xf32>
    %230 = arith.addf %225, %229 : vector<4x128xf32>
    %c0_171 = arith.constant 0 : index
    %c129_172 = arith.constant 129 : index
    %231 = vector.load %arg33[%c0_171, %c129_172] : memref<4x904xbf16, #tpu.memory_space<vmem>>, vector<4x128xbf16>
    %c5_173 = arith.constant 5 : index
    %c0_174 = arith.constant 0 : index
    %c0_175 = arith.constant 0 : index
    %232 = vector.load %arg17[%c5_173, %c0_174, %c0_175] : memref<9x4x4xbf16, #tpu.memory_space<vmem>>, vector<1x4x4xbf16>
    %233 = vector.shape_cast %232 : vector<1x4x4xbf16> to vector<4x4xbf16>
    %cst_176 = arith.constant dense<0.000000e+00> : vector<4x128xf32>
    %234 = tpu.matmul %233, %231, %cst_176 {dimension_numbers = #tpu.dot_dimension_numbers<[1], [0], [0], [1], [0, 0, 1, 1], [], []>} : vector<4x4xbf16>, vector<4x128xbf16>, vector<4x128xf32> -> vector<4x128xf32>
    %235 = arith.addf %230, %234 : vector<4x128xf32>
    %c0_177 = arith.constant 0 : index
    %c135 = arith.constant 135 : index
    %236 = vector.load %arg33[%c0_177, %c135] : memref<4x904xbf16, #tpu.memory_space<vmem>>, vector<4x128xbf16>
    %c6_178 = arith.constant 6 : index
    %c0_179 = arith.constant 0 : index
    %c0_180 = arith.constant 0 : index
    %237 = vector.load %arg17[%c6_178, %c0_179, %c0_180] : memref<9x4x4xbf16, #tpu.memory_space<vmem>>, vector<1x4x4xbf16>
    %238 = vector.shape_cast %237 : vector<1x4x4xbf16> to vector<4x4xbf16>
    %cst_181 = arith.constant dense<0.000000e+00> : vector<4x128xf32>
    %239 = tpu.matmul %238, %236, %cst_181 {dimension_numbers = #tpu.dot_dimension_numbers<[1], [0], [0], [1], [0, 0, 1, 1], [], []>} : vector<4x4xbf16>, vector<4x128xbf16>, vector<4x128xf32> -> vector<4x128xf32>
    %240 = arith.addf %235, %239 : vector<4x128xf32>
    %c0_182 = arith.constant 0 : index
    %c136 = arith.constant 136 : index
    %241 = vector.load %arg33[%c0_182, %c136] : memref<4x904xbf16, #tpu.memory_space<vmem>>, vector<4x128xbf16>
    %c7_183 = arith.constant 7 : index
    %c0_184 = arith.constant 0 : index
    %c0_185 = arith.constant 0 : index
    %242 = vector.load %arg17[%c7_183, %c0_184, %c0_185] : memref<9x4x4xbf16, #tpu.memory_space<vmem>>, vector<1x4x4xbf16>
    %243 = vector.shape_cast %242 : vector<1x4x4xbf16> to vector<4x4xbf16>
    %cst_186 = arith.constant dense<0.000000e+00> : vector<4x128xf32>
    %244 = tpu.matmul %243, %241, %cst_186 {dimension_numbers = #tpu.dot_dimension_numbers<[1], [0], [0], [1], [0, 0, 1, 1], [], []>} : vector<4x4xbf16>, vector<4x128xbf16>, vector<4x128xf32> -> vector<4x128xf32>
    %245 = arith.addf %240, %244 : vector<4x128xf32>
    %c0_187 = arith.constant 0 : index
    %c137 = arith.constant 137 : index
    %246 = vector.load %arg33[%c0_187, %c137] : memref<4x904xbf16, #tpu.memory_space<vmem>>, vector<4x128xbf16>
    %c8_188 = arith.constant 8 : index
    %c0_189 = arith.constant 0 : index
    %c0_190 = arith.constant 0 : index
    %247 = vector.load %arg17[%c8_188, %c0_189, %c0_190] : memref<9x4x4xbf16, #tpu.memory_space<vmem>>, vector<1x4x4xbf16>
    %248 = vector.shape_cast %247 : vector<1x4x4xbf16> to vector<4x4xbf16>
    %cst_191 = arith.constant dense<0.000000e+00> : vector<4x128xf32>
    %249 = tpu.matmul %248, %246, %cst_191 {dimension_numbers = #tpu.dot_dimension_numbers<[1], [0], [0], [1], [0, 0, 1, 1], [], []>} : vector<4x4xbf16>, vector<4x128xbf16>, vector<4x128xf32> -> vector<4x128xf32>
    %250 = arith.addf %245, %249 : vector<4x128xf32>
    %c0_192 = arith.constant 0 : index
    %c0_193 = arith.constant 0 : index
    %251 = vector.load %arg3[%c0_192, %c0_193] : memref<1x128xf32, #tpu.memory_space<vmem>>, vector<1x128xf32>
    %c0_194 = arith.constant 0 : index
    %c0_195 = arith.constant 0 : index
    %c0_196 = arith.constant 0 : index
    %252 = vector.load %arg26[%c0_194, %c0_195, %c0_196] : memref<2x4x1xf32, #tpu.memory_space<vmem>>, vector<1x4x1xf32>
    %253 = vector.shape_cast %252 : vector<1x4x1xf32> to vector<4x1xf32>
    %c1_197 = arith.constant 1 : index
    %c0_198 = arith.constant 0 : index
    %c0_199 = arith.constant 0 : index
    %254 = vector.load %arg26[%c1_197, %c0_198, %c0_199] : memref<2x4x1xf32, #tpu.memory_space<vmem>>, vector<1x4x1xf32>
    %255 = vector.shape_cast %254 : vector<1x4x1xf32> to vector<4x1xf32>
    %256 = vector.broadcast %251 : vector<1x128xf32> to vector<4x128xf32>
    %257 = arith.mulf %250, %256 : vector<4x128xf32>
    %cst_200 = arith.constant dense<0.000000e+00> : vector<4xf32>
    %258 = vector.multi_reduction <add>, %257, %cst_200 [1] : vector<4x128xf32> to vector<4xf32>
    %259 = vector.shape_cast %258 : vector<4xf32> to vector<4x1xf32>
    %cst_201 = arith.constant 0.013888889 : f32
    %260 = vector.broadcast %cst_201 : f32 to vector<4x1xf32>
    %261 = arith.mulf %259, %260 : vector<4x1xf32>
    %262 = vector.broadcast %261 : vector<4x1xf32> to vector<4x128xf32>
    %263 = arith.subf %250, %262 : vector<4x128xf32>
    %264 = vector.broadcast %251 : vector<1x128xf32> to vector<4x128xf32>
    %265 = arith.mulf %263, %264 : vector<4x128xf32>
    %266 = arith.mulf %265, %265 : vector<4x128xf32>
    %cst_202 = arith.constant dense<0.000000e+00> : vector<4xf32>
    %267 = vector.multi_reduction <add>, %266, %cst_202 [1] : vector<4x128xf32> to vector<4xf32>
    %268 = vector.shape_cast %267 : vector<4xf32> to vector<4x1xf32>
    %cst_203 = arith.constant 0.013888889 : f32
    %269 = vector.broadcast %cst_203 : f32 to vector<4x1xf32>
    %270 = arith.mulf %268, %269 : vector<4x1xf32>
    %271 = vector.broadcast %261 : vector<4x1xf32> to vector<4x128xf32>
    %272 = arith.subf %250, %271 : vector<4x128xf32>
    %cst_204 = arith.constant 9.99999974E-6 : f32
    %273 = vector.broadcast %cst_204 : f32 to vector<4x1xf32>
    %274 = arith.addf %270, %273 : vector<4x1xf32>
    %275 = math.rsqrt %274 : vector<4x1xf32>
    %276 = vector.broadcast %275 : vector<4x1xf32> to vector<4x128xf32>
    %277 = arith.mulf %272, %276 : vector<4x128xf32>
    %278 = vector.broadcast %253 : vector<4x1xf32> to vector<4x128xf32>
    %279 = arith.mulf %277, %278 : vector<4x128xf32>
    %280 = vector.broadcast %255 : vector<4x1xf32> to vector<4x128xf32>
    %281 = arith.addf %279, %280 : vector<4x128xf32>
    %282 = arith.truncf %281 : vector<4x128xf32> to vector<4x128xbf16>
    %c0_205 = arith.constant 0 : index
    %c0_206 = arith.constant 0 : index
    %283 = vector.load %arg11[%c0_205, %c0_206] : memref<128x648xbf16, #tpu.memory_space<vmem>>, vector<128x648xbf16>
    %cst_207 = arith.constant dense<0.000000e+00> : vector<4x648xf32>
    %284 = tpu.matmul %282, %283, %cst_207 {dimension_numbers = #tpu.dot_dimension_numbers<[1], [0], [0], [1], [0, 0, 1, 1], [], []>} : vector<4x128xbf16>, vector<128x648xbf16>, vector<4x648xf32> -> vector<4x648xf32>
    %c0_208 = arith.constant 0 : index
    %c0_209 = arith.constant 0 : index
    %285 = vector.load %arg8[%c0_208, %c0_209] : memref<648x36xbf16, #tpu.memory_space<vmem>>, vector<648x36xbf16>
    %cst_210 = arith.constant dense<0.000000e+00> : vector<4x36xf32>
    %286 = tpu.matmul %42, %285, %cst_210 {dimension_numbers = #tpu.dot_dimension_numbers<[1], [0], [0], [1], [0, 0, 1, 1], [], []>} : vector<4x648xbf16>, vector<648x36xbf16>, vector<4x36xf32> -> vector<4x36xf32>
    %287 = arith.truncf %286 : vector<4x36xf32> to vector<4x36xbf16>
    %c0_211 = arith.constant 0 : index
    %c128_212 = arith.constant 128 : index
    %288 = vector.load %arg33[%c0_211, %c128_212] : memref<4x904xbf16, #tpu.memory_space<vmem>>, vector<4x36xbf16>
    tpu.vector_store %arg33[%c0_211, %c128_212], %287 {strides = array<i32>} : memref<4x904xbf16, #tpu.memory_space<vmem>>, vector<4x36xbf16>,
    %c0_213 = arith.constant 0 : index
    %c127_214 = arith.constant 127 : index
    %289 = vector.load %arg33[%c0_213, %c127_214] : memref<4x904xbf16, #tpu.memory_space<vmem>>, vector<4x36xbf16>
    %c0_215 = arith.constant 0 : index
    %c0_216 = arith.constant 0 : index
    %c0_217 = arith.constant 0 : index
    %290 = vector.load %arg18[%c0_215, %c0_216, %c0_217] : memref<3x4x4xbf16, #tpu.memory_space<vmem>>, vector<1x4x4xbf16>
    %291 = vector.shape_cast %290 : vector<1x4x4xbf16> to vector<4x4xbf16>
    %cst_218 = arith.constant dense<0.000000e+00> : vector<4x36xf32>
    %292 = tpu.matmul %291, %289, %cst_218 {dimension_numbers = #tpu.dot_dimension_numbers<[1], [0], [0], [1], [0, 0, 1, 1], [], []>} : vector<4x4xbf16>, vector<4x36xbf16>, vector<4x36xf32> -> vector<4x36xf32>
    %c0_219 = arith.constant 0 : index
    %c128_220 = arith.constant 128 : index
    %293 = vector.load %arg33[%c0_219, %c128_220] : memref<4x904xbf16, #tpu.memory_space<vmem>>, vector<4x36xbf16>
    %c1_221 = arith.constant 1 : index
    %c0_222 = arith.constant 0 : index
    %c0_223 = arith.constant 0 : index
    %294 = vector.load %arg18[%c1_221, %c0_222, %c0_223] : memref<3x4x4xbf16, #tpu.memory_space<vmem>>, vector<1x4x4xbf16>
    %295 = vector.shape_cast %294 : vector<1x4x4xbf16> to vector<4x4xbf16>
    %cst_224 = arith.constant dense<0.000000e+00> : vector<4x36xf32>
    %296 = tpu.matmul %295, %293, %cst_224 {dimension_numbers = #tpu.dot_dimension_numbers<[1], [0], [0], [1], [0, 0, 1, 1], [], []>} : vector<4x4xbf16>, vector<4x36xbf16>, vector<4x36xf32> -> vector<4x36xf32>
    %297 = arith.addf %292, %296 : vector<4x36xf32>
    %c0_225 = arith.constant 0 : index
    %c129_226 = arith.constant 129 : index
    %298 = vector.load %arg33[%c0_225, %c129_226] : memref<4x904xbf16, #tpu.memory_space<vmem>>, vector<4x36xbf16>
    %c2_227 = arith.constant 2 : index
    %c0_228 = arith.constant 0 : index
    %c0_229 = arith.constant 0 : index
    %299 = vector.load %arg18[%c2_227, %c0_228, %c0_229] : memref<3x4x4xbf16, #tpu.memory_space<vmem>>, vector<1x4x4xbf16>
    %300 = vector.shape_cast %299 : vector<1x4x4xbf16> to vector<4x4xbf16>
    %cst_230 = arith.constant dense<0.000000e+00> : vector<4x36xf32>
    %301 = tpu.matmul %300, %298, %cst_230 {dimension_numbers = #tpu.dot_dimension_numbers<[1], [0], [0], [1], [0, 0, 1, 1], [], []>} : vector<4x4xbf16>, vector<4x36xbf16>, vector<4x36xf32> -> vector<4x36xf32>
    %302 = arith.addf %297, %301 : vector<4x36xf32>
    %c0_231 = arith.constant 0 : index
    %c0_232 = arith.constant 0 : index
    %303 = vector.load %arg4[%c0_231, %c0_232] : memref<1x36xf32, #tpu.memory_space<vmem>>, vector<1x36xf32>
    %c0_233 = arith.constant 0 : index
    %c0_234 = arith.constant 0 : index
    %c0_235 = arith.constant 0 : index
    %304 = vector.load %arg27[%c0_233, %c0_234, %c0_235] : memref<2x4x1xf32, #tpu.memory_space<vmem>>, vector<1x4x1xf32>
    %305 = vector.shape_cast %304 : vector<1x4x1xf32> to vector<4x1xf32>
    %c1_236 = arith.constant 1 : index
    %c0_237 = arith.constant 0 : index
    %c0_238 = arith.constant 0 : index
    %306 = vector.load %arg27[%c1_236, %c0_237, %c0_238] : memref<2x4x1xf32, #tpu.memory_space<vmem>>, vector<1x4x1xf32>
    %307 = vector.shape_cast %306 : vector<1x4x1xf32> to vector<4x1xf32>
    %308 = vector.broadcast %303 : vector<1x36xf32> to vector<4x36xf32>
    %309 = arith.mulf %302, %308 : vector<4x36xf32>
    %cst_239 = arith.constant dense<0.000000e+00> : vector<4xf32>
    %310 = vector.multi_reduction <add>, %309, %cst_239 [1] : vector<4x36xf32> to vector<4xf32>
    %311 = vector.shape_cast %310 : vector<4xf32> to vector<4x1xf32>
    %cst_240 = arith.constant 3.125000e-02 : f32
    %312 = vector.broadcast %cst_240 : f32 to vector<4x1xf32>
    %313 = arith.mulf %311, %312 : vector<4x1xf32>
    %314 = vector.broadcast %313 : vector<4x1xf32> to vector<4x36xf32>
    %315 = arith.subf %302, %314 : vector<4x36xf32>
    %316 = vector.broadcast %303 : vector<1x36xf32> to vector<4x36xf32>
    %317 = arith.mulf %315, %316 : vector<4x36xf32>
    %318 = arith.mulf %317, %317 : vector<4x36xf32>
    %cst_241 = arith.constant dense<0.000000e+00> : vector<4xf32>
    %319 = vector.multi_reduction <add>, %318, %cst_241 [1] : vector<4x36xf32> to vector<4xf32>
    %320 = vector.shape_cast %319 : vector<4xf32> to vector<4x1xf32>
    %cst_242 = arith.constant 3.125000e-02 : f32
    %321 = vector.broadcast %cst_242 : f32 to vector<4x1xf32>
    %322 = arith.mulf %320, %321 : vector<4x1xf32>
    %323 = vector.broadcast %313 : vector<4x1xf32> to vector<4x36xf32>
    %324 = arith.subf %302, %323 : vector<4x36xf32>
    %cst_243 = arith.constant 9.99999974E-6 : f32
    %325 = vector.broadcast %cst_243 : f32 to vector<4x1xf32>
    %326 = arith.addf %322, %325 : vector<4x1xf32>
    %327 = math.rsqrt %326 : vector<4x1xf32>
    %328 = vector.broadcast %327 : vector<4x1xf32> to vector<4x36xf32>
    %329 = arith.mulf %324, %328 : vector<4x36xf32>
    %330 = vector.broadcast %305 : vector<4x1xf32> to vector<4x36xf32>
    %331 = arith.mulf %329, %330 : vector<4x36xf32>
    %332 = vector.broadcast %307 : vector<4x1xf32> to vector<4x36xf32>
    %333 = arith.addf %331, %332 : vector<4x36xf32>
    %334 = arith.truncf %333 : vector<4x36xf32> to vector<4x36xbf16>
    %c0_244 = arith.constant 0 : index
    %c0_245 = arith.constant 0 : index
    %335 = vector.load %arg12[%c0_244, %c0_245] : memref<36x648xbf16, #tpu.memory_space<vmem>>, vector<36x648xbf16>
    %cst_246 = arith.constant dense<0.000000e+00> : vector<4x648xf32>
    %336 = tpu.matmul %334, %335, %cst_246 {dimension_numbers = #tpu.dot_dimension_numbers<[1], [0], [0], [1], [0, 0, 1, 1], [], []>} : vector<4x36xbf16>, vector<36x648xbf16>, vector<4x648xf32> -> vector<4x648xf32>
    %c0_247 = arith.constant 0 : index
    %c0_248 = arith.constant 0 : index
    %337 = vector.load %arg9[%c0_247, %c0_248] : memref<648x36xbf16, #tpu.memory_space<vmem>>, vector<648x36xbf16>
    %cst_249 = arith.constant dense<0.000000e+00> : vector<4x36xf32>
    %338 = tpu.matmul %42, %337, %cst_249 {dimension_numbers = #tpu.dot_dimension_numbers<[1], [0], [0], [1], [0, 0, 1, 1], [], []>} : vector<4x648xbf16>, vector<648x36xbf16>, vector<4x36xf32> -> vector<4x36xf32>
    %339 = arith.truncf %338 : vector<4x36xf32> to vector<4x36xbf16>
    %c0_250 = arith.constant 0 : index
    %c128_251 = arith.constant 128 : index
    %340 = vector.load %arg33[%c0_250, %c128_251] : memref<4x904xbf16, #tpu.memory_space<vmem>>, vector<4x36xbf16>
    tpu.vector_store %arg33[%c0_250, %c128_251], %339 {strides = array<i32>} : memref<4x904xbf16, #tpu.memory_space<vmem>>, vector<4x36xbf16>,
    %c0_252 = arith.constant 0 : index
    %c127_253 = arith.constant 127 : index
    %341 = vector.load %arg33[%c0_252, %c127_253] : memref<4x904xbf16, #tpu.memory_space<vmem>>, vector<4x36xbf16>
    %c0_254 = arith.constant 0 : index
    %c0_255 = arith.constant 0 : index
    %c0_256 = arith.constant 0 : index
    %342 = vector.load %arg19[%c0_254, %c0_255, %c0_256] : memref<3x4x4xbf16, #tpu.memory_space<vmem>>, vector<1x4x4xbf16>
    %343 = vector.shape_cast %342 : vector<1x4x4xbf16> to vector<4x4xbf16>
    %cst_257 = arith.constant dense<0.000000e+00> : vector<4x36xf32>
    %344 = tpu.matmul %343, %341, %cst_257 {dimension_numbers = #tpu.dot_dimension_numbers<[1], [0], [0], [1], [0, 0, 1, 1], [], []>} : vector<4x4xbf16>, vector<4x36xbf16>, vector<4x36xf32> -> vector<4x36xf32>
    %c0_258 = arith.constant 0 : index
    %c128_259 = arith.constant 128 : index
    %345 = vector.load %arg33[%c0_258, %c128_259] : memref<4x904xbf16, #tpu.memory_space<vmem>>, vector<4x36xbf16>
    %c1_260 = arith.constant 1 : index
    %c0_261 = arith.constant 0 : index
    %c0_262 = arith.constant 0 : index
    %346 = vector.load %arg19[%c1_260, %c0_261, %c0_262] : memref<3x4x4xbf16, #tpu.memory_space<vmem>>, vector<1x4x4xbf16>
    %347 = vector.shape_cast %346 : vector<1x4x4xbf16> to vector<4x4xbf16>
    %cst_263 = arith.constant dense<0.000000e+00> : vector<4x36xf32>
    %348 = tpu.matmul %347, %345, %cst_263 {dimension_numbers = #tpu.dot_dimension_numbers<[1], [0], [0], [1], [0, 0, 1, 1], [], []>} : vector<4x4xbf16>, vector<4x36xbf16>, vector<4x36xf32> -> vector<4x36xf32>
    %349 = arith.addf %344, %348 : vector<4x36xf32>
    %c0_264 = arith.constant 0 : index
    %c129_265 = arith.constant 129 : index
    %350 = vector.load %arg33[%c0_264, %c129_265] : memref<4x904xbf16, #tpu.memory_space<vmem>>, vector<4x36xbf16>
    %c2_266 = arith.constant 2 : index
    %c0_267 = arith.constant 0 : index
    %c0_268 = arith.constant 0 : index
    %351 = vector.load %arg19[%c2_266, %c0_267, %c0_268] : memref<3x4x4xbf16, #tpu.memory_space<vmem>>, vector<1x4x4xbf16>
    %352 = vector.shape_cast %351 : vector<1x4x4xbf16> to vector<4x4xbf16>
    %cst_269 = arith.constant dense<0.000000e+00> : vector<4x36xf32>
    %353 = tpu.matmul %352, %350, %cst_269 {dimension_numbers = #tpu.dot_dimension_numbers<[1], [0], [0], [1], [0, 0, 1, 1], [], []>} : vector<4x4xbf16>, vector<4x36xbf16>, vector<4x36xf32> -> vector<4x36xf32>
    %354 = arith.addf %349, %353 : vector<4x36xf32>
    %c0_270 = arith.constant 0 : index
    %c0_271 = arith.constant 0 : index
    %355 = vector.load %arg5[%c0_270, %c0_271] : memref<1x36xf32, #tpu.memory_space<vmem>>, vector<1x36xf32>
    %c0_272 = arith.constant 0 : index
    %c0_273 = arith.constant 0 : index
    %c0_274 = arith.constant 0 : index
    %356 = vector.load %arg28[%c0_272, %c0_273, %c0_274] : memref<2x4x1xf32, #tpu.memory_space<vmem>>, vector<1x4x1xf32>
    %357 = vector.shape_cast %356 : vector<1x4x1xf32> to vector<4x1xf32>
    %c1_275 = arith.constant 1 : index
    %c0_276 = arith.constant 0 : index
    %c0_277 = arith.constant 0 : index
    %358 = vector.load %arg28[%c1_275, %c0_276, %c0_277] : memref<2x4x1xf32, #tpu.memory_space<vmem>>, vector<1x4x1xf32>
    %359 = vector.shape_cast %358 : vector<1x4x1xf32> to vector<4x1xf32>
    %360 = vector.broadcast %355 : vector<1x36xf32> to vector<4x36xf32>
    %361 = arith.mulf %354, %360 : vector<4x36xf32>
    %cst_278 = arith.constant dense<0.000000e+00> : vector<4xf32>
    %362 = vector.multi_reduction <add>, %361, %cst_278 [1] : vector<4x36xf32> to vector<4xf32>
    %363 = vector.shape_cast %362 : vector<4xf32> to vector<4x1xf32>
    %cst_279 = arith.constant 3.125000e-02 : f32
    %364 = vector.broadcast %cst_279 : f32 to vector<4x1xf32>
    %365 = arith.mulf %363, %364 : vector<4x1xf32>
    %366 = vector.broadcast %365 : vector<4x1xf32> to vector<4x36xf32>
    %367 = arith.subf %354, %366 : vector<4x36xf32>
    %368 = vector.broadcast %355 : vector<1x36xf32> to vector<4x36xf32>
    %369 = arith.mulf %367, %368 : vector<4x36xf32>
    %370 = arith.mulf %369, %369 : vector<4x36xf32>
    %cst_280 = arith.constant dense<0.000000e+00> : vector<4xf32>
    %371 = vector.multi_reduction <add>, %370, %cst_280 [1] : vector<4x36xf32> to vector<4xf32>
    %372 = vector.shape_cast %371 : vector<4xf32> to vector<4x1xf32>
    %cst_281 = arith.constant 3.125000e-02 : f32
    %373 = vector.broadcast %cst_281 : f32 to vector<4x1xf32>
    %374 = arith.mulf %372, %373 : vector<4x1xf32>
    %375 = vector.broadcast %365 : vector<4x1xf32> to vector<4x36xf32>
    %376 = arith.subf %354, %375 : vector<4x36xf32>
    %cst_282 = arith.constant 9.99999974E-6 : f32
    %377 = vector.broadcast %cst_282 : f32 to vector<4x1xf32>
    %378 = arith.addf %374, %377 : vector<4x1xf32>
    %379 = math.rsqrt %378 : vector<4x1xf32>
    %380 = vector.broadcast %379 : vector<4x1xf32> to vector<4x36xf32>
    %381 = arith.mulf %376, %380 : vector<4x36xf32>
    %382 = vector.broadcast %357 : vector<4x1xf32> to vector<4x36xf32>
    %383 = arith.mulf %381, %382 : vector<4x36xf32>
    %384 = vector.broadcast %359 : vector<4x1xf32> to vector<4x36xf32>
    %385 = arith.addf %383, %384 : vector<4x36xf32>
    %386 = arith.truncf %385 : vector<4x36xf32> to vector<4x36xbf16>
    %c0_283 = arith.constant 0 : index
    %c0_284 = arith.constant 0 : index
    %387 = vector.load %arg13[%c0_283, %c0_284] : memref<36x648xbf16, #tpu.memory_space<vmem>>, vector<36x648xbf16>
    %cst_285 = arith.constant dense<0.000000e+00> : vector<4x648xf32>
    %388 = tpu.matmul %386, %387, %cst_285 {dimension_numbers = #tpu.dot_dimension_numbers<[1], [0], [0], [1], [0, 0, 1, 1], [], []>} : vector<4x36xbf16>, vector<36x648xbf16>, vector<4x648xf32> -> vector<4x648xf32>
    %389 = arith.addf %120, %202 : vector<4x648xf32>
    %390 = arith.addf %389, %284 : vector<4x648xf32>
    %cst_286 = arith.constant 0.000000e+00 : f32
    %391 = vector.broadcast %cst_286 : f32 to vector<4x648xf32>
    %392 = arith.maximumf %390, %391 : vector<4x648xf32>
    %393 = vector.broadcast %3 : vector<1x648xf32> to vector<4x648xf32>
    %394 = arith.mulf %392, %393 : vector<4x648xf32>
    %395 = arith.truncf %394 : vector<4x648xf32> to vector<4x648xbf16>
    %c0_287 = arith.constant 0 : index
    %c128_288 = arith.constant 128 : index
    %396 = vector.load %arg33[%c0_287, %c128_288] : memref<4x904xbf16, #tpu.memory_space<vmem>>, vector<4x648xbf16>
    tpu.vector_store %arg33[%c0_287, %c128_288], %395 {strides = array<i32>} : memref<4x904xbf16, #tpu.memory_space<vmem>>, vector<4x648xbf16>,
    %c0_289 = arith.constant 0 : index
    %c109_290 = arith.constant 109 : index
    %397 = vector.load %arg33[%c0_289, %c109_290] : memref<4x904xbf16, #tpu.memory_space<vmem>>, vector<4x648xbf16>
    %c0_291 = arith.constant 0 : index
    %c0_292 = arith.constant 0 : index
    %c0_293 = arith.constant 0 : index
    %398 = vector.load %arg20[%c0_291, %c0_292, %c0_293] : memref<9x4x4xbf16, #tpu.memory_space<vmem>>, vector<1x4x4xbf16>
    %399 = vector.shape_cast %398 : vector<1x4x4xbf16> to vector<4x4xbf16>
    %cst_294 = arith.constant dense<0.000000e+00> : vector<4x648xf32>
    %400 = tpu.matmul %399, %397, %cst_294 {dimension_numbers = #tpu.dot_dimension_numbers<[1], [0], [0], [1], [0, 0, 1, 1], [], []>} : vector<4x4xbf16>, vector<4x648xbf16>, vector<4x648xf32> -> vector<4x648xf32>
    %c0_295 = arith.constant 0 : index
    %c110_296 = arith.constant 110 : index
    %401 = vector.load %arg33[%c0_295, %c110_296] : memref<4x904xbf16, #tpu.memory_space<vmem>>, vector<4x648xbf16>
    %c1_297 = arith.constant 1 : index
    %c0_298 = arith.constant 0 : index
    %c0_299 = arith.constant 0 : index
    %402 = vector.load %arg20[%c1_297, %c0_298, %c0_299] : memref<9x4x4xbf16, #tpu.memory_space<vmem>>, vector<1x4x4xbf16>
    %403 = vector.shape_cast %402 : vector<1x4x4xbf16> to vector<4x4xbf16>
    %cst_300 = arith.constant dense<0.000000e+00> : vector<4x648xf32>
    %404 = tpu.matmul %403, %401, %cst_300 {dimension_numbers = #tpu.dot_dimension_numbers<[1], [0], [0], [1], [0, 0, 1, 1], [], []>} : vector<4x4xbf16>, vector<4x648xbf16>, vector<4x648xf32> -> vector<4x648xf32>
    %405 = arith.addf %400, %404 : vector<4x648xf32>
    %c0_301 = arith.constant 0 : index
    %c111_302 = arith.constant 111 : index
    %406 = vector.load %arg33[%c0_301, %c111_302] : memref<4x904xbf16, #tpu.memory_space<vmem>>, vector<4x648xbf16>
    %c2_303 = arith.constant 2 : index
    %c0_304 = arith.constant 0 : index
    %c0_305 = arith.constant 0 : index
    %407 = vector.load %arg20[%c2_303, %c0_304, %c0_305] : memref<9x4x4xbf16, #tpu.memory_space<vmem>>, vector<1x4x4xbf16>
    %408 = vector.shape_cast %407 : vector<1x4x4xbf16> to vector<4x4xbf16>
    %cst_306 = arith.constant dense<0.000000e+00> : vector<4x648xf32>
    %409 = tpu.matmul %408, %406, %cst_306 {dimension_numbers = #tpu.dot_dimension_numbers<[1], [0], [0], [1], [0, 0, 1, 1], [], []>} : vector<4x4xbf16>, vector<4x648xbf16>, vector<4x648xf32> -> vector<4x648xf32>
    %410 = arith.addf %405, %409 : vector<4x648xf32>
    %c0_307 = arith.constant 0 : index
    %c127_308 = arith.constant 127 : index
    %411 = vector.load %arg33[%c0_307, %c127_308] : memref<4x904xbf16, #tpu.memory_space<vmem>>, vector<4x648xbf16>
    %c3_309 = arith.constant 3 : index
    %c0_310 = arith.constant 0 : index
    %c0_311 = arith.constant 0 : index
    %412 = vector.load %arg20[%c3_309, %c0_310, %c0_311] : memref<9x4x4xbf16, #tpu.memory_space<vmem>>, vector<1x4x4xbf16>
    %413 = vector.shape_cast %412 : vector<1x4x4xbf16> to vector<4x4xbf16>
    %cst_312 = arith.constant dense<0.000000e+00> : vector<4x648xf32>
    %414 = tpu.matmul %413, %411, %cst_312 {dimension_numbers = #tpu.dot_dimension_numbers<[1], [0], [0], [1], [0, 0, 1, 1], [], []>} : vector<4x4xbf16>, vector<4x648xbf16>, vector<4x648xf32> -> vector<4x648xf32>
    %415 = arith.addf %410, %414 : vector<4x648xf32>
    %c0_313 = arith.constant 0 : index
    %c128_314 = arith.constant 128 : index
    %416 = vector.load %arg33[%c0_313, %c128_314] : memref<4x904xbf16, #tpu.memory_space<vmem>>, vector<4x648xbf16>
    %c4_315 = arith.constant 4 : index
    %c0_316 = arith.constant 0 : index
    %c0_317 = arith.constant 0 : index
    %417 = vector.load %arg20[%c4_315, %c0_316, %c0_317] : memref<9x4x4xbf16, #tpu.memory_space<vmem>>, vector<1x4x4xbf16>
    %418 = vector.shape_cast %417 : vector<1x4x4xbf16> to vector<4x4xbf16>
    %cst_318 = arith.constant dense<0.000000e+00> : vector<4x648xf32>
    %419 = tpu.matmul %418, %416, %cst_318 {dimension_numbers = #tpu.dot_dimension_numbers<[1], [0], [0], [1], [0, 0, 1, 1], [], []>} : vector<4x4xbf16>, vector<4x648xbf16>, vector<4x648xf32> -> vector<4x648xf32>
    %420 = arith.addf %415, %419 : vector<4x648xf32>
    %c0_319 = arith.constant 0 : index
    %c129_320 = arith.constant 129 : index
    %421 = vector.load %arg33[%c0_319, %c129_320] : memref<4x904xbf16, #tpu.memory_space<vmem>>, vector<4x648xbf16>
    %c5_321 = arith.constant 5 : index
    %c0_322 = arith.constant 0 : index
    %c0_323 = arith.constant 0 : index
    %422 = vector.load %arg20[%c5_321, %c0_322, %c0_323] : memref<9x4x4xbf16, #tpu.memory_space<vmem>>, vector<1x4x4xbf16>
    %423 = vector.shape_cast %422 : vector<1x4x4xbf16> to vector<4x4xbf16>
    %cst_324 = arith.constant dense<0.000000e+00> : vector<4x648xf32>
    %424 = tpu.matmul %423, %421, %cst_324 {dimension_numbers = #tpu.dot_dimension_numbers<[1], [0], [0], [1], [0, 0, 1, 1], [], []>} : vector<4x4xbf16>, vector<4x648xbf16>, vector<4x648xf32> -> vector<4x648xf32>
    %425 = arith.addf %420, %424 : vector<4x648xf32>
    %c0_325 = arith.constant 0 : index
    %c145_326 = arith.constant 145 : index
    %426 = vector.load %arg33[%c0_325, %c145_326] : memref<4x904xbf16, #tpu.memory_space<vmem>>, vector<4x648xbf16>
    %c6_327 = arith.constant 6 : index
    %c0_328 = arith.constant 0 : index
    %c0_329 = arith.constant 0 : index
    %427 = vector.load %arg20[%c6_327, %c0_328, %c0_329] : memref<9x4x4xbf16, #tpu.memory_space<vmem>>, vector<1x4x4xbf16>
    %428 = vector.shape_cast %427 : vector<1x4x4xbf16> to vector<4x4xbf16>
    %cst_330 = arith.constant dense<0.000000e+00> : vector<4x648xf32>
    %429 = tpu.matmul %428, %426, %cst_330 {dimension_numbers = #tpu.dot_dimension_numbers<[1], [0], [0], [1], [0, 0, 1, 1], [], []>} : vector<4x4xbf16>, vector<4x648xbf16>, vector<4x648xf32> -> vector<4x648xf32>
    %430 = arith.addf %425, %429 : vector<4x648xf32>
    %c0_331 = arith.constant 0 : index
    %c146_332 = arith.constant 146 : index
    %431 = vector.load %arg33[%c0_331, %c146_332] : memref<4x904xbf16, #tpu.memory_space<vmem>>, vector<4x648xbf16>
    %c7_333 = arith.constant 7 : index
    %c0_334 = arith.constant 0 : index
    %c0_335 = arith.constant 0 : index
    %432 = vector.load %arg20[%c7_333, %c0_334, %c0_335] : memref<9x4x4xbf16, #tpu.memory_space<vmem>>, vector<1x4x4xbf16>
    %433 = vector.shape_cast %432 : vector<1x4x4xbf16> to vector<4x4xbf16>
    %cst_336 = arith.constant dense<0.000000e+00> : vector<4x648xf32>
    %434 = tpu.matmul %433, %431, %cst_336 {dimension_numbers = #tpu.dot_dimension_numbers<[1], [0], [0], [1], [0, 0, 1, 1], [], []>} : vector<4x4xbf16>, vector<4x648xbf16>, vector<4x648xf32> -> vector<4x648xf32>
    %435 = arith.addf %430, %434 : vector<4x648xf32>
    %c0_337 = arith.constant 0 : index
    %c147_338 = arith.constant 147 : index
    %436 = vector.load %arg33[%c0_337, %c147_338] : memref<4x904xbf16, #tpu.memory_space<vmem>>, vector<4x648xbf16>
    %c8_339 = arith.constant 8 : index
    %c0_340 = arith.constant 0 : index
    %c0_341 = arith.constant 0 : index
    %437 = vector.load %arg20[%c8_339, %c0_340, %c0_341] : memref<9x4x4xbf16, #tpu.memory_space<vmem>>, vector<1x4x4xbf16>
    %438 = vector.shape_cast %437 : vector<1x4x4xbf16> to vector<4x4xbf16>
    %cst_342 = arith.constant dense<0.000000e+00> : vector<4x648xf32>
    %439 = tpu.matmul %438, %436, %cst_342 {dimension_numbers = #tpu.dot_dimension_numbers<[1], [0], [0], [1], [0, 0, 1, 1], [], []>} : vector<4x4xbf16>, vector<4x648xbf16>, vector<4x648xf32> -> vector<4x648xf32>
    %440 = arith.addf %435, %439 : vector<4x648xf32>
    %c0_343 = arith.constant 0 : index
    %c0_344 = arith.constant 0 : index
    %c0_345 = arith.constant 0 : index
    %441 = vector.load %arg29[%c0_343, %c0_344, %c0_345] : memref<2x4x1xf32, #tpu.memory_space<vmem>>, vector<1x4x1xf32>
    %442 = vector.shape_cast %441 : vector<1x4x1xf32> to vector<4x1xf32>
    %c1_346 = arith.constant 1 : index
    %c0_347 = arith.constant 0 : index
    %c0_348 = arith.constant 0 : index
    %443 = vector.load %arg29[%c1_346, %c0_347, %c0_348] : memref<2x4x1xf32, #tpu.memory_space<vmem>>, vector<1x4x1xf32>
    %444 = vector.shape_cast %443 : vector<1x4x1xf32> to vector<4x1xf32>
    %445 = vector.broadcast %3 : vector<1x648xf32> to vector<4x648xf32>
    %446 = arith.mulf %440, %445 : vector<4x648xf32>
    %cst_349 = arith.constant dense<0.000000e+00> : vector<4xf32>
    %447 = vector.multi_reduction <add>, %446, %cst_349 [1] : vector<4x648xf32> to vector<4xf32>
    %448 = vector.shape_cast %447 : vector<4xf32> to vector<4x1xf32>
    %cst_350 = arith.constant 0.001953125 : f32
    %449 = vector.broadcast %cst_350 : f32 to vector<4x1xf32>
    %450 = arith.mulf %448, %449 : vector<4x1xf32>
    %451 = vector.broadcast %450 : vector<4x1xf32> to vector<4x648xf32>
    %452 = arith.subf %440, %451 : vector<4x648xf32>
    %453 = vector.broadcast %3 : vector<1x648xf32> to vector<4x648xf32>
    %454 = arith.mulf %452, %453 : vector<4x648xf32>
    %455 = arith.mulf %454, %454 : vector<4x648xf32>
    %cst_351 = arith.constant dense<0.000000e+00> : vector<4xf32>
    %456 = vector.multi_reduction <add>, %455, %cst_351 [1] : vector<4x648xf32> to vector<4xf32>
    %457 = vector.shape_cast %456 : vector<4xf32> to vector<4x1xf32>
    %cst_352 = arith.constant 0.001953125 : f32
    %458 = vector.broadcast %cst_352 : f32 to vector<4x1xf32>
    %459 = arith.mulf %457, %458 : vector<4x1xf32>
    %460 = vector.broadcast %450 : vector<4x1xf32> to vector<4x648xf32>
    %461 = arith.subf %440, %460 : vector<4x648xf32>
    %cst_353 = arith.constant 9.99999974E-6 : f32
    %462 = vector.broadcast %cst_353 : f32 to vector<4x1xf32>
    %463 = arith.addf %459, %462 : vector<4x1xf32>
    %464 = math.rsqrt %463 : vector<4x1xf32>
    %465 = vector.broadcast %464 : vector<4x1xf32> to vector<4x648xf32>
    %466 = arith.mulf %461, %465 : vector<4x648xf32>
    %467 = vector.broadcast %442 : vector<4x1xf32> to vector<4x648xf32>
    %468 = arith.mulf %466, %467 : vector<4x648xf32>
    %469 = vector.broadcast %444 : vector<4x1xf32> to vector<4x648xf32>
    %470 = arith.addf %468, %469 : vector<4x648xf32>
    %cst_354 = arith.constant 0.000000e+00 : f32
    %471 = vector.broadcast %cst_354 : f32 to vector<4x648xf32>
    %472 = arith.maximumf %470, %471 : vector<4x648xf32>
    %473 = arith.addf %388, %336 : vector<4x648xf32>
    %cst_355 = arith.constant 0.000000e+00 : f32
    %474 = vector.broadcast %cst_355 : f32 to vector<4x648xf32>
    %475 = arith.maximumf %473, %474 : vector<4x648xf32>
    %476 = vector.broadcast %3 : vector<1x648xf32> to vector<4x648xf32>
    %477 = arith.mulf %475, %476 : vector<4x648xf32>
    %478 = arith.truncf %477 : vector<4x648xf32> to vector<4x648xbf16>
    %c0_356 = arith.constant 0 : index
    %c128_357 = arith.constant 128 : index
    %479 = vector.load %arg33[%c0_356, %c128_357] : memref<4x904xbf16, #tpu.memory_space<vmem>>, vector<4x648xbf16>
    tpu.vector_store %arg33[%c0_356, %c128_357], %478 {strides = array<i32>} : memref<4x904xbf16, #tpu.memory_space<vmem>>, vector<4x648xbf16>,
    %c0_358 = arith.constant 0 : index
    %c109_359 = arith.constant 109 : index
    %480 = vector.load %arg33[%c0_358, %c109_359] : memref<4x904xbf16, #tpu.memory_space<vmem>>, vector<4x648xbf16>
    %c0_360 = arith.constant 0 : index
    %c0_361 = arith.constant 0 : index
    %c0_362 = arith.constant 0 : index
    %481 = vector.load %arg21[%c0_360, %c0_361, %c0_362] : memref<9x4x4xbf16, #tpu.memory_space<vmem>>, vector<1x4x4xbf16>
    %482 = vector.shape_cast %481 : vector<1x4x4xbf16> to vector<4x4xbf16>
    %cst_363 = arith.constant dense<0.000000e+00> : vector<4x648xf32>
    %483 = tpu.matmul %482, %480, %cst_363 {dimension_numbers = #tpu.dot_dimension_numbers<[1], [0], [0], [1], [0, 0, 1, 1], [], []>} : vector<4x4xbf16>, vector<4x648xbf16>, vector<4x648xf32> -> vector<4x648xf32>
    %c0_364 = arith.constant 0 : index
    %c110_365 = arith.constant 110 : index
    %484 = vector.load %arg33[%c0_364, %c110_365] : memref<4x904xbf16, #tpu.memory_space<vmem>>, vector<4x648xbf16>
    %c1_366 = arith.constant 1 : index
    %c0_367 = arith.constant 0 : index
    %c0_368 = arith.constant 0 : index
    %485 = vector.load %arg21[%c1_366, %c0_367, %c0_368] : memref<9x4x4xbf16, #tpu.memory_space<vmem>>, vector<1x4x4xbf16>
    %486 = vector.shape_cast %485 : vector<1x4x4xbf16> to vector<4x4xbf16>
    %cst_369 = arith.constant dense<0.000000e+00> : vector<4x648xf32>
    %487 = tpu.matmul %486, %484, %cst_369 {dimension_numbers = #tpu.dot_dimension_numbers<[1], [0], [0], [1], [0, 0, 1, 1], [], []>} : vector<4x4xbf16>, vector<4x648xbf16>, vector<4x648xf32> -> vector<4x648xf32>
    %488 = arith.addf %483, %487 : vector<4x648xf32>
    %c0_370 = arith.constant 0 : index
    %c111_371 = arith.constant 111 : index
    %489 = vector.load %arg33[%c0_370, %c111_371] : memref<4x904xbf16, #tpu.memory_space<vmem>>, vector<4x648xbf16>
    %c2_372 = arith.constant 2 : index
    %c0_373 = arith.constant 0 : index
    %c0_374 = arith.constant 0 : index
    %490 = vector.load %arg21[%c2_372, %c0_373, %c0_374] : memref<9x4x4xbf16, #tpu.memory_space<vmem>>, vector<1x4x4xbf16>
    %491 = vector.shape_cast %490 : vector<1x4x4xbf16> to vector<4x4xbf16>
    %cst_375 = arith.constant dense<0.000000e+00> : vector<4x648xf32>
    %492 = tpu.matmul %491, %489, %cst_375 {dimension_numbers = #tpu.dot_dimension_numbers<[1], [0], [0], [1], [0, 0, 1, 1], [], []>} : vector<4x4xbf16>, vector<4x648xbf16>, vector<4x648xf32> -> vector<4x648xf32>
    %493 = arith.addf %488, %492 : vector<4x648xf32>
    %c0_376 = arith.constant 0 : index
    %c127_377 = arith.constant 127 : index
    %494 = vector.load %arg33[%c0_376, %c127_377] : memref<4x904xbf16, #tpu.memory_space<vmem>>, vector<4x648xbf16>
    %c3_378 = arith.constant 3 : index
    %c0_379 = arith.constant 0 : index
    %c0_380 = arith.constant 0 : index
    %495 = vector.load %arg21[%c3_378, %c0_379, %c0_380] : memref<9x4x4xbf16, #tpu.memory_space<vmem>>, vector<1x4x4xbf16>
    %496 = vector.shape_cast %495 : vector<1x4x4xbf16> to vector<4x4xbf16>
    %cst_381 = arith.constant dense<0.000000e+00> : vector<4x648xf32>
    %497 = tpu.matmul %496, %494, %cst_381 {dimension_numbers = #tpu.dot_dimension_numbers<[1], [0], [0], [1], [0, 0, 1, 1], [], []>} : vector<4x4xbf16>, vector<4x648xbf16>, vector<4x648xf32> -> vector<4x648xf32>
    %498 = arith.addf %493, %497 : vector<4x648xf32>
    %c0_382 = arith.constant 0 : index
    %c128_383 = arith.constant 128 : index
    %499 = vector.load %arg33[%c0_382, %c128_383] : memref<4x904xbf16, #tpu.memory_space<vmem>>, vector<4x648xbf16>
    %c4_384 = arith.constant 4 : index
    %c0_385 = arith.constant 0 : index
    %c0_386 = arith.constant 0 : index
    %500 = vector.load %arg21[%c4_384, %c0_385, %c0_386] : memref<9x4x4xbf16, #tpu.memory_space<vmem>>, vector<1x4x4xbf16>
    %501 = vector.shape_cast %500 : vector<1x4x4xbf16> to vector<4x4xbf16>
    %cst_387 = arith.constant dense<0.000000e+00> : vector<4x648xf32>
    %502 = tpu.matmul %501, %499, %cst_387 {dimension_numbers = #tpu.dot_dimension_numbers<[1], [0], [0], [1], [0, 0, 1, 1], [], []>} : vector<4x4xbf16>, vector<4x648xbf16>, vector<4x648xf32> -> vector<4x648xf32>
    %503 = arith.addf %498, %502 : vector<4x648xf32>
    %c0_388 = arith.constant 0 : index
    %c129_389 = arith.constant 129 : index
    %504 = vector.load %arg33[%c0_388, %c129_389] : memref<4x904xbf16, #tpu.memory_space<vmem>>, vector<4x648xbf16>
    %c5_390 = arith.constant 5 : index
    %c0_391 = arith.constant 0 : index
    %c0_392 = arith.constant 0 : index
    %505 = vector.load %arg21[%c5_390, %c0_391, %c0_392] : memref<9x4x4xbf16, #tpu.memory_space<vmem>>, vector<1x4x4xbf16>
    %506 = vector.shape_cast %505 : vector<1x4x4xbf16> to vector<4x4xbf16>
    %cst_393 = arith.constant dense<0.000000e+00> : vector<4x648xf32>
    %507 = tpu.matmul %506, %504, %cst_393 {dimension_numbers = #tpu.dot_dimension_numbers<[1], [0], [0], [1], [0, 0, 1, 1], [], []>} : vector<4x4xbf16>, vector<4x648xbf16>, vector<4x648xf32> -> vector<4x648xf32>
    %508 = arith.addf %503, %507 : vector<4x648xf32>
    %c0_394 = arith.constant 0 : index
    %c145_395 = arith.constant 145 : index
    %509 = vector.load %arg33[%c0_394, %c145_395] : memref<4x904xbf16, #tpu.memory_space<vmem>>, vector<4x648xbf16>
    %c6_396 = arith.constant 6 : index
    %c0_397 = arith.constant 0 : index
    %c0_398 = arith.constant 0 : index
    %510 = vector.load %arg21[%c6_396, %c0_397, %c0_398] : memref<9x4x4xbf16, #tpu.memory_space<vmem>>, vector<1x4x4xbf16>
    %511 = vector.shape_cast %510 : vector<1x4x4xbf16> to vector<4x4xbf16>
    %cst_399 = arith.constant dense<0.000000e+00> : vector<4x648xf32>
    %512 = tpu.matmul %511, %509, %cst_399 {dimension_numbers = #tpu.dot_dimension_numbers<[1], [0], [0], [1], [0, 0, 1, 1], [], []>} : vector<4x4xbf16>, vector<4x648xbf16>, vector<4x648xf32> -> vector<4x648xf32>
    %513 = arith.addf %508, %512 : vector<4x648xf32>
    %c0_400 = arith.constant 0 : index
    %c146_401 = arith.constant 146 : index
    %514 = vector.load %arg33[%c0_400, %c146_401] : memref<4x904xbf16, #tpu.memory_space<vmem>>, vector<4x648xbf16>
    %c7_402 = arith.constant 7 : index
    %c0_403 = arith.constant 0 : index
    %c0_404 = arith.constant 0 : index
    %515 = vector.load %arg21[%c7_402, %c0_403, %c0_404] : memref<9x4x4xbf16, #tpu.memory_space<vmem>>, vector<1x4x4xbf16>
    %516 = vector.shape_cast %515 : vector<1x4x4xbf16> to vector<4x4xbf16>
    %cst_405 = arith.constant dense<0.000000e+00> : vector<4x648xf32>
    %517 = tpu.matmul %516, %514, %cst_405 {dimension_numbers = #tpu.dot_dimension_numbers<[1], [0], [0], [1], [0, 0, 1, 1], [], []>} : vector<4x4xbf16>, vector<4x648xbf16>, vector<4x648xf32> -> vector<4x648xf32>
    %518 = arith.addf %513, %517 : vector<4x648xf32>
    %c0_406 = arith.constant 0 : index
    %c147_407 = arith.constant 147 : index
    %519 = vector.load %arg33[%c0_406, %c147_407] : memref<4x904xbf16, #tpu.memory_space<vmem>>, vector<4x648xbf16>
    %c8_408 = arith.constant 8 : index
    %c0_409 = arith.constant 0 : index
    %c0_410 = arith.constant 0 : index
    %520 = vector.load %arg21[%c8_408, %c0_409, %c0_410] : memref<9x4x4xbf16, #tpu.memory_space<vmem>>, vector<1x4x4xbf16>
    %521 = vector.shape_cast %520 : vector<1x4x4xbf16> to vector<4x4xbf16>
    %cst_411 = arith.constant dense<0.000000e+00> : vector<4x648xf32>
    %522 = tpu.matmul %521, %519, %cst_411 {dimension_numbers = #tpu.dot_dimension_numbers<[1], [0], [0], [1], [0, 0, 1, 1], [], []>} : vector<4x4xbf16>, vector<4x648xbf16>, vector<4x648xf32> -> vector<4x648xf32>
    %523 = arith.addf %518, %522 : vector<4x648xf32>
    %c0_412 = arith.constant 0 : index
    %c0_413 = arith.constant 0 : index
    %c0_414 = arith.constant 0 : index
    %524 = vector.load %arg30[%c0_412, %c0_413, %c0_414] : memref<2x4x1xf32, #tpu.memory_space<vmem>>, vector<1x4x1xf32>
    %525 = vector.shape_cast %524 : vector<1x4x1xf32> to vector<4x1xf32>
    %c1_415 = arith.constant 1 : index
    %c0_416 = arith.constant 0 : index
    %c0_417 = arith.constant 0 : index
    %526 = vector.load %arg30[%c1_415, %c0_416, %c0_417] : memref<2x4x1xf32, #tpu.memory_space<vmem>>, vector<1x4x1xf32>
    %527 = vector.shape_cast %526 : vector<1x4x1xf32> to vector<4x1xf32>
    %528 = vector.broadcast %3 : vector<1x648xf32> to vector<4x648xf32>
    %529 = arith.mulf %523, %528 : vector<4x648xf32>
    %cst_418 = arith.constant dense<0.000000e+00> : vector<4xf32>
    %530 = vector.multi_reduction <add>, %529, %cst_418 [1] : vector<4x648xf32> to vector<4xf32>
    %531 = vector.shape_cast %530 : vector<4xf32> to vector<4x1xf32>
    %cst_419 = arith.constant 0.001953125 : f32
    %532 = vector.broadcast %cst_419 : f32 to vector<4x1xf32>
    %533 = arith.mulf %531, %532 : vector<4x1xf32>
    %534 = vector.broadcast %533 : vector<4x1xf32> to vector<4x648xf32>
    %535 = arith.subf %523, %534 : vector<4x648xf32>
    %536 = vector.broadcast %3 : vector<1x648xf32> to vector<4x648xf32>
    %537 = arith.mulf %535, %536 : vector<4x648xf32>
    %538 = arith.mulf %537, %537 : vector<4x648xf32>
    %cst_420 = arith.constant dense<0.000000e+00> : vector<4xf32>
    %539 = vector.multi_reduction <add>, %538, %cst_420 [1] : vector<4x648xf32> to vector<4xf32>
    %540 = vector.shape_cast %539 : vector<4xf32> to vector<4x1xf32>
    %cst_421 = arith.constant 0.001953125 : f32
    %541 = vector.broadcast %cst_421 : f32 to vector<4x1xf32>
    %542 = arith.mulf %540, %541 : vector<4x1xf32>
    %543 = vector.broadcast %533 : vector<4x1xf32> to vector<4x648xf32>
    %544 = arith.subf %523, %543 : vector<4x648xf32>
    %cst_422 = arith.constant 9.99999974E-6 : f32
    %545 = vector.broadcast %cst_422 : f32 to vector<4x1xf32>
    %546 = arith.addf %542, %545 : vector<4x1xf32>
    %547 = math.rsqrt %546 : vector<4x1xf32>
    %548 = vector.broadcast %547 : vector<4x1xf32> to vector<4x648xf32>
    %549 = arith.mulf %544, %548 : vector<4x648xf32>
    %550 = vector.broadcast %525 : vector<4x1xf32> to vector<4x648xf32>
    %551 = arith.mulf %549, %550 : vector<4x648xf32>
    %552 = vector.broadcast %527 : vector<4x1xf32> to vector<4x648xf32>
    %553 = arith.addf %551, %552 : vector<4x648xf32>
    %cst_423 = arith.constant 0.000000e+00 : f32
    %554 = vector.broadcast %cst_423 : f32 to vector<4x648xf32>
    %555 = arith.maximumf %553, %554 : vector<4x648xf32>
    %c0_424 = arith.constant 0 : index
    %c0_425 = arith.constant 0 : index
    %c0_426 = arith.constant 0 : index
    %556 = vector.load %arg22[%c0_424, %c0_425, %c0_426] : memref<2x4x4xbf16, #tpu.memory_space<vmem>>, vector<1x4x4xbf16>
    %557 = vector.shape_cast %556 : vector<1x4x4xbf16> to vector<4x4xbf16>
    %558 = arith.truncf %472 : vector<4x648xf32> to vector<4x648xbf16>
    %cst_427 = arith.constant dense<0.000000e+00> : vector<4x648xf32>
    %559 = tpu.matmul %557, %558, %cst_427 {dimension_numbers = #tpu.dot_dimension_numbers<[1], [0], [0], [1], [0, 0, 1, 1], [], []>} : vector<4x4xbf16>, vector<4x648xbf16>, vector<4x648xf32> -> vector<4x648xf32>
    %c1_428 = arith.constant 1 : index
    %c0_429 = arith.constant 0 : index
    %c0_430 = arith.constant 0 : index
    %560 = vector.load %arg22[%c1_428, %c0_429, %c0_430] : memref<2x4x4xbf16, #tpu.memory_space<vmem>>, vector<1x4x4xbf16>
    %561 = vector.shape_cast %560 : vector<1x4x4xbf16> to vector<4x4xbf16>
    %562 = arith.truncf %555 : vector<4x648xf32> to vector<4x648xbf16>
    %cst_431 = arith.constant dense<0.000000e+00> : vector<4x648xf32>
    %563 = tpu.matmul %561, %562, %cst_431 {dimension_numbers = #tpu.dot_dimension_numbers<[1], [0], [0], [1], [0, 0, 1, 1], [], []>} : vector<4x4xbf16>, vector<4x648xbf16>, vector<4x648xf32> -> vector<4x648xf32>
    %564 = arith.addf %559, %563 : vector<4x648xf32>
    %c0_432 = arith.constant 0 : index
    %c0_433 = arith.constant 0 : index
    %c0_434 = arith.constant 0 : index
    %565 = vector.load %arg31[%c0_432, %c0_433, %c0_434] : memref<2x4x1xf32, #tpu.memory_space<vmem>>, vector<1x4x1xf32>
    %566 = vector.shape_cast %565 : vector<1x4x1xf32> to vector<4x1xf32>
    %c1_435 = arith.constant 1 : index
    %c0_436 = arith.constant 0 : index
    %c0_437 = arith.constant 0 : index
    %567 = vector.load %arg31[%c1_435, %c0_436, %c0_437] : memref<2x4x1xf32, #tpu.memory_space<vmem>>, vector<1x4x1xf32>
    %568 = vector.shape_cast %567 : vector<1x4x1xf32> to vector<4x1xf32>
    %569 = vector.broadcast %3 : vector<1x648xf32> to vector<4x648xf32>
    %570 = arith.mulf %564, %569 : vector<4x648xf32>
    %cst_438 = arith.constant dense<0.000000e+00> : vector<4xf32>
    %571 = vector.multi_reduction <add>, %570, %cst_438 [1] : vector<4x648xf32> to vector<4xf32>
    %572 = vector.shape_cast %571 : vector<4xf32> to vector<4x1xf32>
    %cst_439 = arith.constant 0.001953125 : f32
    %573 = vector.broadcast %cst_439 : f32 to vector<4x1xf32>
    %574 = arith.mulf %572, %573 : vector<4x1xf32>
    %575 = vector.broadcast %574 : vector<4x1xf32> to vector<4x648xf32>
    %576 = arith.subf %564, %575 : vector<4x648xf32>
    %577 = vector.broadcast %3 : vector<1x648xf32> to vector<4x648xf32>
    %578 = arith.mulf %576, %577 : vector<4x648xf32>
    %579 = arith.mulf %578, %578 : vector<4x648xf32>
    %cst_440 = arith.constant dense<0.000000e+00> : vector<4xf32>
    %580 = vector.multi_reduction <add>, %579, %cst_440 [1] : vector<4x648xf32> to vector<4xf32>
    %581 = vector.shape_cast %580 : vector<4xf32> to vector<4x1xf32>
    %cst_441 = arith.constant 0.001953125 : f32
    %582 = vector.broadcast %cst_441 : f32 to vector<4x1xf32>
    %583 = arith.mulf %581, %582 : vector<4x1xf32>
    %584 = vector.broadcast %574 : vector<4x1xf32> to vector<4x648xf32>
    %585 = arith.subf %564, %584 : vector<4x648xf32>
    %cst_442 = arith.constant 9.99999974E-6 : f32
    %586 = vector.broadcast %cst_442 : f32 to vector<4x1xf32>
    %587 = arith.addf %583, %586 : vector<4x1xf32>
    %588 = math.rsqrt %587 : vector<4x1xf32>
    %589 = vector.broadcast %588 : vector<4x1xf32> to vector<4x648xf32>
    %590 = arith.mulf %585, %589 : vector<4x648xf32>
    %591 = vector.broadcast %566 : vector<4x1xf32> to vector<4x648xf32>
    %592 = arith.mulf %590, %591 : vector<4x648xf32>
    %593 = vector.broadcast %568 : vector<4x1xf32> to vector<4x648xf32>
    %594 = arith.addf %592, %593 : vector<4x648xf32>
    %595 = arith.addf %594, %2 : vector<4x648xf32>
    %cst_443 = arith.constant 0.000000e+00 : f32
    %596 = vector.broadcast %cst_443 : f32 to vector<4x648xf32>
    %597 = arith.maximumf %595, %596 : vector<4x648xf32>
    %c0_444 = arith.constant 0 : index
    %c0_445 = arith.constant 0 : index
    %598 = vector.load %arg32[%c0_444, %c0_445] : memref<4x648xf32, #tpu.memory_space<vmem>>, vector<4x648xf32>
    tpu.vector_store %arg32[%c0_444, %c0_445], %597 {strides = array<i32>} : memref<4x648xf32, #tpu.memory_space<vmem>>, vector<4x648xf32>,
    return
  }
}

</mosaic_0001>

<bundles_post_ra>
// kernel: strip_pooling.1
= control target key start
LH: loop header
LB: loop body
LE: loop exit
PB: predicated region body
PF: predicated region fallthrough
CT: control target
= control target key end

     0   :  { %s14068_s6 = smov 1   ;;  %s14069_s10 = smov 2   ;;  %s16167_s0 = inlined_call_operand.smem [shape: u32[33], index: -1, kind: input, shape index: {}] }
   0x1   :  { %s14171_s5 = sld [smem:[%s16167_s0]]   ;;  %s14070_s14 = smov 3  }
   0x2   :  { %s14176_s9 = sld [smem:[%s16167_s0 + %s14068_s6]]   ;;  %s14071_s18 = smov 4  }
   0x3   :  { %s14181_s13 = sld [smem:[%s16167_s0 + %s14069_s10]]   ;;  %s14072_s22 = smov 5  }
   0x4   :  { %s14186_s17 = sld [smem:[%s16167_s0 + %s14070_s14]]   ;;  %s14073_s26 = smov 6  }
   0x5   :  { %s14191_s21 = sld [smem:[%s16167_s0 + %s14071_s18]]   ;;  %s14074_s30 = smov 7  }
   0x6   :  { %s14196_s25 = sld [smem:[%s16167_s0 + %s14072_s22]]   ;;  %s14075_s4 = smov 8  }
   0x7   :  { %16185 = sst [smem:[#allocation72_spill]] %s14171_s5  ;;  %s14076_s10 = smov 9  }
   0x8   :  { %s14201_s29 = sld [smem:[%s16167_s0 + %s14073_s26]]   ;;  %s14077_s15 = smov 10  }
   0x9   :  { %16186 = sst [smem:[#allocation73_spill]] %s14181_s13  ;;  %s14078_s20 = smov 11  }
   0xa   :  { %s14206_s3 = sld [smem:[%s16167_s0 + %s14074_s30]]   ;;  %s14079_s26 = smov 12  }
   0xb   :  { %16187 = sst [smem:[#allocation74_spill]] %s14191_s21  ;;  %s14080_s1 = smov 13  }
   0xc   :  { %s14211_s8 = sld [smem:[%s16167_s0 + %s14075_s4]]   ;;  %s14081_s7 = smov 14  }
   0xd   :  { %s14216_s14 = sld [smem:[%s16167_s0 + %s14076_s10]]   ;;  %s14083_s22 = smov 16  }
   0xe   :  { %16188 = sst [smem:[#allocation75_spill]] %s14201_s29  ;;  %s14084_s28 = smov 17  }
   0xf   :  { %s14221_s19 = sld [smem:[%s16167_s0 + %s14077_s15]]   ;;  %s14082_s15 = smov 15  }
  0x10   :  { %s14226_s24 = sld [smem:[%s16167_s0 + %s14078_s20]]  }
  0x11   :  { %s14231_s30 = sld [smem:[%s16167_s0 + %s14079_s26]]  }
  0x12   :  { %16189 = sst [smem:[#allocation76_spill]] %s14211_s8 }
  0x13   :  { %s14236_s6 = sld [smem:[%s16167_s0 + %s14080_s1]]  }
  0x14   :  { %s14241_s12 = sld [smem:[%s16167_s0 + %s14081_s7]]   ;;  %s14085_s7 = smov 18  }
  0x15   :  { %16190 = sst [smem:[#allocation77_spill]] %s14221_s19 }
  0x16   :  { %s14246_s20 = sld [smem:[%s16167_s0 + %s14082_s15]]   ;;  %s14086_s15 = smov 19  }
  0x17   :  { %16191 = sst [smem:[#allocation78_spill]] %s14231_s30 }
  0x18   :  { %s14251_s27 = sld [smem:[%s16167_s0 + %s14083_s22]]   ;;  %s14087_s22 = smov 20  }
  0x19   :  { %s14256_s4 = sld [smem:[%s16167_s0 + %s14084_s28]]   ;;  %s14088_s28 = smov 21  }
  0x1a   :  { %16192 = sst [smem:[#allocation79_spill]] %s14241_s12 }
  0x1b   :  { %s14261_s12 = sld [smem:[%s16167_s0 + %s14085_s7]]   ;;  %s14089_s7 = smov 22  }
  0x1c   :  { %s14266_s30 = sld [smem:[%s16167_s0 + %s14086_s15]]   ;;  %s14090_s15 = smov 23  }
  0x1d   :  { %s14276_s19 = sld [smem:[%s16167_s0 + %s14088_s28]]   ;;  %s14092_s28 = smov 25  }
  0x1e   :  { %16193 = sst [smem:[#allocation80_spill]] %s14251_s27 }
  0x1f   :  { %s14271_s27 = sld [smem:[%s16167_s0 + %s14087_s22]]   ;;  %s14091_s22 = smov 24  }
  0x20   :  { %s14286_s8 = sld [smem:[%s16167_s0 + %s14090_s15]]   ;;  %s14094_s15 = smov 27  }
  0x21   :  { %16194 = sst [smem:[#allocation81_spill]] %s14261_s12 }
  0x22   :  { %s14281_s12 = sld [smem:[%s16167_s0 + %s14089_s7]]   ;;  %s14093_s7 = smov 26  }
  0x23   :  { %s14296_s29 = sld [smem:[%s16167_s0 + %s14092_s28]]   ;;  %s14096_s28 = smov 29  }
  0x24   :  { %s14306_s21 = sld [smem:[%s16167_s0 + %s14094_s15]]   ;;  %s14098_s15 = smov 31  }
  0x25   :  { %16195 = sst [smem:[#allocation82_spill]] %s14271_s27 }
  0x26   :  { %s14291_s27 = sld [smem:[%s16167_s0 + %s14091_s22]]   ;;  %s14095_s22 = smov 28  }
  0x27   :  { %s14316_s13 = sld [smem:[%s16167_s0 + %s14096_s28]]  }
  0x28   :  { %16196 = sst [smem:[#allocation83_spill]] %s14281_s12 }
  0x29   :  { %s14301_s12 = sld [smem:[%s16167_s0 + %s14093_s7]]   ;;  %s14097_s7 = smov 30  }
  0x2a   :  { %s14326_s5 = sld [smem:[%s16167_s0 + %s14098_s15]]  }
  0x2c   :  { %16197 = sst [smem:[#allocation84_spill]] %s14291_s27 }
  0x2d   :  { %s14311_s27 = sld [smem:[%s16167_s0 + %s14095_s22]]   ;;  %s14099_s22 = smov 32  }
  0x2f   :  { %16198 = sst [smem:[#allocation85_spill]] %s14301_s12 }
  0x30   :  { %s14321_s12 = sld [smem:[%s16167_s0 + %s14097_s7]]  }
  0x33   :  { %16199 = sst [smem:[#allocation86_spill]] %s14311_s27 }
  0x34   :  { %s14331_s27 = sld [smem:[%s16167_s0 + %s14099_s22]]  }
  0x35   :  { %70 = vsyncpa [#allocation4], 0 }
  0x36   :  { %71 = vsyncpa [#allocation7], 0 }
  0x37   :  { %72 = vsyncpa [#allocation10], 0 }
  0x38   :  { %73 = vsyncpa [#allocation13], 0 }
  0x39   :  { %74 = vsyncpa [#allocation16], 0 }
  0x3a   :  { %75 = vsyncpa [#allocation19], 0 }
  0x3b   :  { %76 = vsyncpa [#allocation22], 0 }
  0x3c   :  { %77 = vsyncpa [#allocation25], 0 }
  0x3d   :  { %78 = vsyncpa [#allocation28], 0 }
  0x3e   :  { %79 = vsyncpa [#allocation31], 0 }
  0x3f   :  { %80 = vsyncpa [#allocation34], 0 }
  0x40   :  { %81 = vsyncpa [#allocation37], 0 }
  0x41   :  { %82 = vsyncpa [#allocation40], 0 }
  0x42   :  { %83 = vsyncpa [#allocation43], 0 }
  0x43   :  { %84 = vsyncpa [#allocation46], 0 }
  0x44   :  { %85 = vsyncpa [#allocation49], 0 }
  0x45   :  { %86 = vsyncpa [#allocation52], 0 }
  0x46   :  { %87 = vsyncpa [#allocation5], 0  ;;  %s14100_s0 = smov [#allocation6]   ;;  %s14101_s1 = smov [#allocation9]  }
  0x47   :  { %s104_s28 = sshll.u32 %s14100_s0, 4  ;;  %s124_s2 = sshll.u32 %s14101_s1, 4  ;;  %s105_s28 = int_to_ptr.vmem [resolvable:$true] %s104_s28  ;;  %s125_s2 = int_to_ptr.vmem [resolvable:$true] %s124_s2 }
  0x48   :  { %s13306_s7 = scalar_lea.hbm %s14176_s9, 96 }
  0x49   :  { %p13307_p0 = scmp.ne.s32.totalorder %s14176_s9, %s13306_s7  ;;  %p13310_p1 = scmp.lt.u32.totalorder %s13306_s7, %s14176_s9 }
  0x4b   :  { %p13312_p2 = pnand %p13310_p1, %p13307_p0 }
  0x4d   :  { %13315 = shalt.err (!%p13312_p2)
}
  0x4e   :  { %s13316_s10 = scalar_lea.vmem %s105_s28, 96  ;;  %p13321_p4 = scmp.lt.s32.totalorder %s105_s28, %s105_s28 }
  0x4f   :  { %p13317_p3 = scmp.ne.s32.totalorder %s105_s28, %s13316_s10  ;;  %p13322_p5 = scmp.lt.s32.totalorder %s13316_s10, %s13316_s10 }
  0x51   :  { %p13323_p6 = por %p13322_p5, %p13321_p4 }
  0x53   :  { %p13324_p7 = pnand %p13323_p6, %p13317_p3 }
  0x55   :  { %13327 = shalt.err (!%p13324_p7)
}
  0x56   :  { %107 = dma.hbm_to_vmem [thread:$0]  %s14176_s9, 96, %s105_s28, [#allocation7]  }
  0x57   :  { %s13328_s11 = scalar_lea.hbm %s14186_s17, 16 }
  0x58   :  { %p13329_p8 = scmp.ne.s32.totalorder %s14186_s17, %s13328_s11  ;;  %p13332_p9 = scmp.lt.u32.totalorder %s13328_s11, %s14186_s17 }
  0x5a   :  { %p13334_p10 = pnand %p13332_p9, %p13329_p8 }
  0x5c   :  { %13337 = shalt.err (!%p13334_p10)
}
  0x5d   :  { %s13338_s15 = scalar_lea.vmem %s125_s2, 16  ;;  %s13342_s16 = scalar_lea.vmem %s125_s2, 32 }
  0x5e   :  { %p13339_p11 = scmp.ne.s32.totalorder %s125_s2, %s13338_s15  ;;  %p13343_p12 = scmp.lt.s32.totalorder %s125_s2, %s125_s2 }
  0x5f   :  { %p13344_p13 = scmp.lt.s32.totalorder %s13342_s16, %s13338_s15 }
  0x61   :  { %p13345_p0 = por %p13344_p13, %p13343_p12 }
  0x63   :  { %p13346_p1 = pnand %p13345_p0, %p13339_p11 }
  0x65   :  { %13349 = shalt.err (!%p13346_p1)
}
  0x66   :  { %127 = dma.hbm_to_vmem [thread:$0]  %s14186_s17, 16, %s125_s2, [#allocation10]  }
  0x67   :  { %s14102_s18 = smov [#allocation12]   ;;  %s13350_s22 = scalar_lea.hbm %s14196_s25, 16 }
  0x68   :  { %s144_s9 = sshll.u32 %s14102_s18, 4  ;;  %p13351_p2 = scmp.ne.s32.totalorder %s14196_s25, %s13350_s22  ;;  %s145_s9 = int_to_ptr.vmem [resolvable:$true] %s144_s9 }
  0x69   :  { %p13354_p3 = scmp.lt.u32.totalorder %s13350_s22, %s14196_s25 }
  0x6b   :  { %p13356_p4 = pnand %p13354_p3, %p13351_p2 }
  0x6d   :  { %13359 = shalt.err (!%p13356_p4)
}
  0x6e   :  { %s13360_s23 = scalar_lea.vmem %s145_s9, 16  ;;  %s13364_s26 = scalar_lea.vmem %s145_s9, 32 }
  0x6f   :  { %p13361_p5 = scmp.ne.s32.totalorder %s145_s9, %s13360_s23  ;;  %p13365_p6 = scmp.lt.s32.totalorder %s145_s9, %s145_s9 }
  0x70   :  { %p13366_p7 = scmp.lt.s32.totalorder %s13364_s26, %s13360_s23 }
  0x72   :  { %p13367_p8 = por %p13366_p7, %p13365_p6 }
  0x74   :  { %p13368_p9 = pnand %p13367_p8, %p13361_p5 }
  0x76   :  { %13371 = shalt.err (!%p13368_p9)
}
  0x77   :  { %147 = dma.hbm_to_vmem [thread:$0]  %s14196_s25, 16, %s145_s9, [#allocation13]  }
  0x78   :  { %s14103_s17 = smov [#allocation15]   ;;  %s14104_s28 = smov [#allocation18]  }
  0x79   :  { %s165_s0 = sshll.u32 %s14103_s17, 4  ;;  %s189_s1 = sshll.u32 %s14104_s28, 4  ;;  %s166_s0 = int_to_ptr.vmem [resolvable:$true] %s165_s0  ;;  %s190_s1 = int_to_ptr.vmem [resolvable:$true] %s189_s1 }
  0x7a   :  { %s13372_s2 = scalar_lea.hbm %s14206_s3, 5184 }
  0x7b   :  { %p13373_p10 = scmp.ne.s32.totalorder %s14206_s3, %s13372_s2  ;;  %p13376_p11 = scmp.lt.u32.totalorder %s13372_s2, %s14206_s3 }
  0x7d   :  { %p13378_p12 = pnand %p13376_p11, %p13373_p10 }
  0x7f   :  { %13381 = shalt.err (!%p13378_p12)
}
  0x80   :  { %s13382_s7 = scalar_lea.vmem %s166_s0, 5184  ;;  %p13387_p0 = scmp.lt.s32.totalorder %s166_s0, %s166_s0 }
  0x81   :  { %p13383_p13 = scmp.ne.s32.totalorder %s166_s0, %s13382_s7  ;;  %p13388_p1 = scmp.lt.s32.totalorder %s13382_s7, %s13382_s7 }
  0x83   :  { %p13389_p2 = por %p13388_p1, %p13387_p0 }
  0x85   :  { %p13390_p3 = pnand %p13389_p2, %p13383_p13 }
  0x87   :  { %13393 = shalt.err (!%p13390_p3)
}
  0x88   :  { %s14105_s10 = smov 64   ;;  %s14106_s25 = smov 4  }
  0x89   :  { %171 = dma.hbm_to_vmem [thread:$0]  %s14206_s3, 5184, %s166_s0, [#allocation16], %s14105_s10, %s14105_s10, %s14106_s25  }
  0x8a   :  { %s13394_s11 = scalar_lea.hbm %s14216_s14, 5184 }
  0x8b   :  { %p13395_p4 = scmp.ne.s32.totalorder %s14216_s14, %s13394_s11  ;;  %p13398_p5 = scmp.lt.u32.totalorder %s13394_s11, %s14216_s14 }
  0x8d   :  { %p13400_p6 = pnand %p13398_p5, %p13395_p4 }
  0x8f   :  { %13403 = shalt.err (!%p13400_p6)
}
  0x90   :  { %s13404_s15 = scalar_lea.vmem %s190_s1, 5184  ;;  %p13409_p8 = scmp.lt.s32.totalorder %s190_s1, %s190_s1 }
  0x91   :  { %p13405_p7 = scmp.ne.s32.totalorder %s190_s1, %s13404_s15  ;;  %p13410_p9 = scmp.lt.s32.totalorder %s13404_s15, %s13404_s15 }
  0x93   :  { %p13411_p10 = por %p13410_p9, %p13409_p8 }
  0x95   :  { %p13412_p11 = pnand %p13411_p10, %p13405_p7 }
  0x97   :  { %13415 = shalt.err (!%p13412_p11)
}
  0x98   :  { %195 = dma.hbm_to_vmem [thread:$0]  %s14216_s14, 5184, %s190_s1, [#allocation19], %s14105_s10, %s14105_s10, %s14106_s25  }
  0x99   :  { %s14107_s3 = smov [#allocation21]   ;;  %s14108_s18 = smov [#allocation24]  }
  0x9a   :  { %s213_s16 = sshll.u32 %s14107_s3, 4  ;;  %s237_s9 = sshll.u32 %s14108_s18, 4  ;;  %s214_s16 = int_to_ptr.vmem [resolvable:$true] %s213_s16  ;;  %s238_s9 = int_to_ptr.vmem [resolvable:$true] %s237_s9 }
  0x9b   :  { %s13416_s22 = scalar_lea.hbm %s14226_s24, 6144 }
  0x9c   :  { %p13417_p12 = scmp.ne.s32.totalorder %s14226_s24, %s13416_s22  ;;  %p13420_p13 = scmp.lt.u32.totalorder %s13416_s22, %s14226_s24 }
  0x9e   :  { %p13422_p0 = pnand %p13420_p13, %p13417_p12 }
  0xa0   :  { %13425 = shalt.err (!%p13422_p0)
}
  0xa1   :  { %s13426_s23 = scalar_lea.vmem %s214_s16, 6144  ;;  %p13431_p2 = scmp.lt.s32.totalorder %s214_s16, %s214_s16 }
  0xa2   :  { %p13427_p1 = scmp.ne.s32.totalorder %s214_s16, %s13426_s23  ;;  %p13432_p3 = scmp.lt.s32.totalorder %s13426_s23, %s13426_s23 }
  0xa4   :  { %p13433_p4 = por %p13432_p3, %p13431_p2 }
  0xa6   :  { %p13434_p5 = pnand %p13433_p4, %p13427_p1 }
  0xa8   :  { %13437 = shalt.err (!%p13434_p5)
}
  0xa9   :  { %s14109_s26 = smov 384   ;;  %s14110_s14 = smov 24  }
  0xaa   :  { %219 = dma.hbm_to_vmem [thread:$0]  %s14226_s24, 6144, %s214_s16, [#allocation22], %s14109_s26, %s14109_s26, %s14110_s14  }
  0xab   :  { %s13438_s17 = scalar_lea.hbm %s14236_s6, 1920 }
  0xac   :  { %p13439_p6 = scmp.ne.s32.totalorder %s14236_s6, %s13438_s17  ;;  %p13442_p7 = scmp.lt.u32.totalorder %s13438_s17, %s14236_s6 }
  0xae   :  { %p13444_p8 = pnand %p13442_p7, %p13439_p6 }
  0xb0   :  { %13447 = shalt.err (!%p13444_p8)
}
  0xb1   :  { %s13448_s0 = scalar_lea.vmem %s238_s9, 1920  ;;  %p13453_p10 = scmp.lt.s32.totalorder %s238_s9, %s238_s9 }
  0xb2   :  { %p13449_p9 = scmp.ne.s32.totalorder %s238_s9, %s13448_s0  ;;  %p13454_p11 = scmp.lt.s32.totalorder %s13448_s0, %s13448_s0 }
  0xb4   :  { %p13455_p12 = por %p13454_p11, %p13453_p10 }
  0xb6   :  { %p13456_p13 = pnand %p13455_p12, %p13449_p9 }
  0xb8   :  { %13459 = shalt.err (!%p13456_p13)
}
  0xb9   :  { %243 = dma.hbm_to_vmem [thread:$0]  %s14236_s6, 1920, %s238_s9, [#allocation25], %s14109_s26, %s14109_s26, %s14110_s14  }
  0xba   :  { %s14111_s24 = smov [#allocation27]   ;;  %s13460_s1 = scalar_lea.hbm %s14246_s20, 288 }
  0xbb   :  { %s259_s28 = sshll.u32 %s14111_s24, 4  ;;  %p13461_p0 = scmp.ne.s32.totalorder %s14246_s20, %s13460_s1  ;;  %s260_s28 = int_to_ptr.vmem [resolvable:$true] %s259_s28 }
  0xbc   :  { %p13464_p1 = scmp.lt.u32.totalorder %s13460_s1, %s14246_s20 }
  0xbe   :  { %p13466_p2 = pnand %p13464_p1, %p13461_p0 }
  0xc0   :  { %13469 = shalt.err (!%p13466_p2)
}
  0xc1   :  { %s13470_s2 = scalar_lea.vmem %s260_s28, 288  ;;  %p13475_p4 = scmp.lt.s32.totalorder %s260_s28, %s260_s28 }
  0xc2   :  { %p13471_p3 = scmp.ne.s32.totalorder %s260_s28, %s13470_s2  ;;  %p13476_p5 = scmp.lt.s32.totalorder %s13470_s2, %s13470_s2 }
  0xc4   :  { %p13477_p6 = por %p13476_p5, %p13475_p4 }
  0xc6   :  { %p13478_p7 = pnand %p13477_p6, %p13471_p3 }
  0xc8   :  { %13481 = shalt.err (!%p13478_p7)
}
  0xc9   :  { %s14112_s7 = smov 32   ;;  %s14113_s6 = smov 2  }
  0xca   :  { %265 = dma.hbm_to_vmem [thread:$0]  %s14246_s20, 288, %s260_s28, [#allocation28], %s14112_s7, %s14112_s7, %s14113_s6  }
  0xcb   :  { %s14114_s11 = smov [#allocation30]   ;;  %s14115_s3 = smov [#allocation33]  }
  0xcc   :  { %s283_s15 = sshll.u32 %s14114_s11, 4  ;;  %s307_s16 = sshll.u32 %s14115_s3, 4  ;;  %s284_s15 = int_to_ptr.vmem [resolvable:$true] %s283_s15  ;;  %s14380_s16 = int_to_ptr.vmem [resolvable:$true] %s307_s16 }
  0xcd   :  { %s13482_s18 = scalar_lea.hbm %s14256_s4, 288 }
  0xce   :  { %p13483_p8 = scmp.ne.s32.totalorder %s14256_s4, %s13482_s18  ;;  %p13486_p9 = scmp.lt.u32.totalorder %s13482_s18, %s14256_s4 }
  0xd0   :  { %p13488_p10 = pnand %p13486_p9, %p13483_p8 }
  0xd2   :  { %13491 = shalt.err (!%p13488_p10)
}
  0xd3   :  { %s13492_s9 = scalar_lea.vmem %s284_s15, 288  ;;  %p13497_p12 = scmp.lt.s32.totalorder %s284_s15, %s284_s15 }
  0xd4   :  { %p13493_p11 = scmp.ne.s32.totalorder %s284_s15, %s13492_s9  ;;  %p13498_p13 = scmp.lt.s32.totalorder %s13492_s9, %s13492_s9 }
  0xd6   :  { %p13499_p0 = por %p13498_p13, %p13497_p12 }
  0xd8   :  { %p13500_p1 = pnand %p13499_p0, %p13493_p11 }
  0xda   :  { %13503 = shalt.err (!%p13500_p1)
}
  0xdb   :  { %289 = dma.hbm_to_vmem [thread:$0]  %s14256_s4, 288, %s284_s15, [#allocation31], %s14112_s7, %s14112_s7, %s14113_s6  }
  0xdc   :  { %s13504_s20 = scalar_lea.hbm %s14266_s30, 96 }
  0xdd   :  { %p13505_p2 = scmp.ne.s32.totalorder %s14266_s30, %s13504_s20  ;;  %p13508_p3 = scmp.lt.u32.totalorder %s13504_s20, %s14266_s30 }
  0xdf   :  { %p13510_p4 = pnand %p13508_p3, %p13505_p2 }
  0xe1   :  { %13513 = shalt.err (!%p13510_p4)
}
  0xe2   :  { %s13514_s22 = scalar_lea.vmem %s14380_s16, 96  ;;  %p13519_p6 = scmp.lt.s32.totalorder %s14380_s16, %s14380_s16 }
  0xe3   :  { %p13515_p5 = scmp.ne.s32.totalorder %s14380_s16, %s13514_s22  ;;  %p13520_p7 = scmp.lt.s32.totalorder %s13514_s22, %s13514_s22 }
  0xe5   :  { %p13521_p8 = por %p13520_p7, %p13519_p6 }
  0xe7   :  { %p13522_p9 = pnand %p13521_p8, %p13515_p5 }
  0xe9   :  { %13525 = shalt.err (!%p13522_p9)
}
  0xea   :  { %313 = dma.hbm_to_vmem [thread:$0]  %s14266_s30, 96, %s14380_s16, [#allocation34], %s14112_s7, %s14112_s7, %s14113_s6  }
  0xeb   :  { %s14116_s4 = smov [#allocation36]   ;;  %s14117_s17 = smov [#allocation39]  }
  0xec   :  { %s331_s23 = sshll.u32 %s14116_s4, 4  ;;  %s355_s0 = sshll.u32 %s14117_s17, 4  ;;  %s332_s23 = int_to_ptr.vmem [resolvable:$true] %s331_s23  ;;  %s14401_s0 = int_to_ptr.vmem [resolvable:$true] %s355_s0 }
  0xed   :  { %s13526_s24 = scalar_lea.hbm %s14276_s19, 288 }
  0xee   :  { %p13527_p10 = scmp.ne.s32.totalorder %s14276_s19, %s13526_s24  ;;  %p13530_p11 = scmp.lt.u32.totalorder %s13526_s24, %s14276_s19 }
  0xf0   :  { %p13532_p12 = pnand %p13530_p11, %p13527_p10 }
  0xf2   :  { %13535 = shalt.err (!%p13532_p12)
}
  0xf3   :  { %s13536_s28 = scalar_lea.vmem %s332_s23, 288  ;;  %p13541_p0 = scmp.lt.s32.totalorder %s332_s23, %s332_s23 }
  0xf4   :  { %p13537_p13 = scmp.ne.s32.totalorder %s332_s23, %s13536_s28  ;;  %p13542_p1 = scmp.lt.s32.totalorder %s13536_s28, %s13536_s28 }
  0xf6   :  { %p13543_p2 = por %p13542_p1, %p13541_p0 }
  0xf8   :  { %p13544_p3 = pnand %p13543_p2, %p13537_p13 }
  0xfa   :  { %13547 = shalt.err (!%p13544_p3)
}
  0xfb   :  { %337 = dma.hbm_to_vmem [thread:$0]  %s14276_s19, 288, %s332_s23, [#allocation37], %s14112_s7, %s14112_s7, %s14113_s6  }
  0xfc   :  { %s13548_s30 = scalar_lea.hbm %s14286_s8, 256 }
  0xfd   :  { %p13549_p4 = scmp.ne.s32.totalorder %s14286_s8, %s13548_s30  ;;  %p13552_p5 = scmp.lt.u32.totalorder %s13548_s30, %s14286_s8 }
  0xff   :  { %p13554_p6 = pnand %p13552_p5, %p13549_p4 }
 0x101   :  { %13557 = shalt.err (!%p13554_p6)
}
 0x102   :  { %s13558_s1 = scalar_lea.vmem %s14401_s0, 256  ;;  %p13563_p8 = scmp.lt.s32.totalorder %s14401_s0, %s14401_s0 }
 0x103   :  { %p13559_p7 = scmp.ne.s32.totalorder %s14401_s0, %s13558_s1  ;;  %p13564_p9 = scmp.lt.s32.totalorder %s13558_s1, %s13558_s1 }
 0x105   :  { %p13565_p10 = por %p13564_p9, %p13563_p8 }
 0x107   :  { %p13566_p11 = pnand %p13565_p10, %p13559_p7 }
 0x109   :  { %13569 = shalt.err (!%p13566_p11)
}
 0x10a   :  { %s14118_s2 = smov 128   ;;  %s14119_s19 = smov 8  }
 0x10b   :  { %361 = dma.hbm_to_vmem [thread:$0]  %s14286_s8, 256, %s14401_s0, [#allocation40], %s14118_s2, %s14118_s2, %s14119_s19  }
 0x10c   :  { %s14120_s11 = smov [#allocation42]   ;;  %s14121_s3 = smov [#allocation45]  }
 0x10d   :  { %s379_s15 = sshll.u32 %s14120_s11, 4  ;;  %s403_s16 = sshll.u32 %s14121_s3, 4  ;;  %s380_s15 = int_to_ptr.vmem [resolvable:$true] %s379_s15  ;;  %s14420_s16 = int_to_ptr.vmem [resolvable:$true] %s403_s16 }
 0x10e   :  { %s13570_s18 = scalar_lea.hbm %s14296_s29, 128 }
 0x10f   :  { %p13571_p12 = scmp.ne.s32.totalorder %s14296_s29, %s13570_s18  ;;  %p13574_p13 = scmp.lt.u32.totalorder %s13570_s18, %s14296_s29 }
 0x111   :  { %p13576_p0 = pnand %p13574_p13, %p13571_p12 }
 0x113   :  { %13579 = shalt.err (!%p13576_p0)
}
 0x114   :  { %s13580_s9 = scalar_lea.vmem %s380_s15, 128  ;;  %p13585_p2 = scmp.lt.s32.totalorder %s380_s15, %s380_s15 }
 0x115   :  { %p13581_p1 = scmp.ne.s32.totalorder %s380_s15, %s13580_s9  ;;  %p13586_p3 = scmp.lt.s32.totalorder %s13580_s9, %s13580_s9 }
 0x117   :  { %p13587_p4 = por %p13586_p3, %p13585_p2 }
 0x119   :  { %p13588_p5 = pnand %p13587_p4, %p13581_p1 }
 0x11b   :  { %13591 = shalt.err (!%p13588_p5)
}
 0x11c   :  { %385 = dma.hbm_to_vmem [thread:$0]  %s14296_s29, 128, %s380_s15, [#allocation43], %s14105_s10, %s14105_s10, %s14106_s25  }
 0x11d   :  { %s13592_s8 = scalar_lea.hbm %s14306_s21, 128 }
 0x11e   :  { %p13593_p6 = scmp.ne.s32.totalorder %s14306_s21, %s13592_s8  ;;  %p13596_p7 = scmp.lt.u32.totalorder %s13592_s8, %s14306_s21 }
 0x120   :  { %p13598_p8 = pnand %p13596_p7, %p13593_p6 }
 0x122   :  { %13601 = shalt.err (!%p13598_p8)
}
 0x123   :  { %s13602_s20 = scalar_lea.vmem %s14420_s16, 128  ;;  %p13607_p10 = scmp.lt.s32.totalorder %s14420_s16, %s14420_s16 }
 0x124   :  { %p13603_p9 = scmp.ne.s32.totalorder %s14420_s16, %s13602_s20  ;;  %p13608_p11 = scmp.lt.s32.totalorder %s13602_s20, %s13602_s20 }
 0x126   :  { %p13609_p12 = por %p13608_p11, %p13607_p10 }
 0x128   :  { %p13610_p13 = pnand %p13609_p12, %p13603_p9 }
 0x12a   :  { %13613 = shalt.err (!%p13610_p13)
}
 0x12b   :  { %409 = dma.hbm_to_vmem [thread:$0]  %s14306_s21, 128, %s14420_s16, [#allocation46], %s14105_s10, %s14105_s10, %s14106_s25  }
 0x12c   :  { %s14122_s29 = smov [#allocation48]   ;;  %s14123_s4 = smov [#allocation3]  }
 0x12d   :  { %s427_s22 = sshll.u32 %s14122_s29, 4  ;;  %s94_s23 = sshll.u32 %s14123_s4, 4  ;;  %s428_s22 = int_to_ptr.vmem [resolvable:$true] %s427_s22  ;;  %s95_s23 = int_to_ptr.vmem [resolvable:$true] %s94_s23 }
 0x12e   :  { %s13614_s17 = scalar_lea.hbm %s14316_s13, 128 }
 0x12f   :  { %p13615_p0 = scmp.ne.s32.totalorder %s14316_s13, %s13614_s17  ;;  %p13618_p1 = scmp.lt.u32.totalorder %s13614_s17, %s14316_s13 }
 0x131   :  { %p13620_p2 = pnand %p13618_p1, %p13615_p0 }
 0x133   :  { %13623 = shalt.err (!%p13620_p2)
}
 0x134   :  { %s13624_s0 = scalar_lea.vmem %s428_s22, 128  ;;  %p13629_p4 = scmp.lt.s32.totalorder %s428_s22, %s428_s22 }
 0x135   :  { %p13625_p3 = scmp.ne.s32.totalorder %s428_s22, %s13624_s0  ;;  %p13630_p5 = scmp.lt.s32.totalorder %s13624_s0, %s13624_s0 }
 0x137   :  { %p13631_p6 = por %p13630_p5, %p13629_p4 }
 0x139   :  { %p13632_p7 = pnand %p13631_p6, %p13625_p3 }
 0x13b   :  { %13635 = shalt.err (!%p13632_p7)
}
 0x13c   :  { %s16200_s21 = sld [smem:[#allocation72_spill]] }
 0x13d   :  { %433 = dma.hbm_to_vmem [thread:$0]  %s14316_s13, 128, %s428_s22, [#allocation49], %s14105_s10, %s14105_s10, %s14106_s25  }
 0x142   :  { %s13636_s24 = scalar_lea.hbm %s16200_s21, 384 }
 0x143   :  { %p13637_p8 = scmp.ne.s32.totalorder %s16200_s21, %s13636_s24  ;;  %p13640_p9 = scmp.lt.u32.totalorder %s13636_s24, %s16200_s21 }
 0x145   :  { %p13642_p10 = pnand %p13640_p9, %p13637_p8 }
 0x147   :  { %13645 = shalt.err (!%p13642_p10)
}
 0x148   :  { %s13646_s28 = scalar_lea.vmem %s95_s23, 384  ;;  %p13651_p12 = scmp.lt.s32.totalorder %s95_s23, %s95_s23 }
 0x149   :  { %p13647_p11 = scmp.ne.s32.totalorder %s95_s23, %s13646_s28  ;;  %p13652_p13 = scmp.lt.s32.totalorder %s13646_s28, %s13646_s28 }
 0x14b   :  { %p13653_p0 = por %p13652_p13, %p13651_p12 }
 0x14d   :  { %p13654_p1 = pnand %p13653_p0, %p13647_p11 }
 0x14f   :  { %13657 = shalt.err (!%p13654_p1)
}
 0x150   :  { %s16201_s30 = sld [smem:[#allocation73_spill]]  ;;  %s14124_s1 = smov [#allocation8]  }
 0x151   :  { %97 = dma.hbm_to_vmem [thread:$0]  %s16200_s21, 384, %s95_s23, [#allocation4]  }
 0x152   :  { %s114_s2 = sshll.u32 %s14124_s1, 4  ;;  %s14125_s13 = smov [#allocation11]   ;;  %s115_s2 = int_to_ptr.vmem [resolvable:$true] %s114_s2 }
 0x153   :  { %s134_s11 = sshll.u32 %s14125_s13, 4  ;;  %s135_s11 = int_to_ptr.vmem [resolvable:$true] %s134_s11 }
 0x156   :  { %s13658_s15 = scalar_lea.hbm %s16201_s30, 16 }
 0x157   :  { %p13659_p2 = scmp.ne.s32.totalorder %s16201_s30, %s13658_s15  ;;  %p13662_p3 = scmp.lt.u32.totalorder %s13658_s15, %s16201_s30 }
 0x159   :  { %p13664_p4 = pnand %p13662_p3, %p13659_p2 }
 0x15b   :  { %13667 = shalt.err (!%p13664_p4)
}
 0x15c   :  { %s13668_s3 = scalar_lea.vmem %s115_s2, 16  ;;  %s13672_s16 = scalar_lea.vmem %s115_s2, 32 }
 0x15d   :  { %p13669_p5 = scmp.ne.s32.totalorder %s115_s2, %s13668_s3  ;;  %p13673_p6 = scmp.lt.s32.totalorder %s115_s2, %s115_s2 }
 0x15e   :  { %p13674_p7 = scmp.lt.s32.totalorder %s13672_s16, %s13668_s3 }
 0x160   :  { %p13675_p8 = por %p13674_p7, %p13673_p6 }
 0x162   :  { %p13676_p9 = pnand %p13675_p8, %p13669_p5 }
 0x164   :  { %13679 = shalt.err (!%p13676_p9)
}
 0x165   :  { %s16202_s18 = sld [smem:[#allocation74_spill]] }
 0x166   :  { %117 = dma.hbm_to_vmem [thread:$0]  %s16201_s30, 16, %s115_s2, [#allocation7]  }
 0x16b   :  { %s13680_s9 = scalar_lea.hbm %s16202_s18, 16 }
 0x16c   :  { %p13681_p10 = scmp.ne.s32.totalorder %s16202_s18, %s13680_s9  ;;  %p13684_p11 = scmp.lt.u32.totalorder %s13680_s9, %s16202_s18 }
 0x16e   :  { %p13686_p12 = pnand %p13684_p11, %p13681_p10 }
 0x170   :  { %13689 = shalt.err (!%p13686_p12)
}
 0x171   :  { %s13690_s8 = scalar_lea.vmem %s135_s11, 16  ;;  %s13694_s20 = scalar_lea.vmem %s135_s11, 32 }
 0x172   :  { %p13691_p13 = scmp.ne.s32.totalorder %s135_s11, %s13690_s8  ;;  %p13695_p0 = scmp.lt.s32.totalorder %s135_s11, %s135_s11 }
 0x173   :  { %p13696_p1 = scmp.lt.s32.totalorder %s13694_s20, %s13690_s8 }
 0x175   :  { %p13697_p2 = por %p13696_p1, %p13695_p0 }
 0x177   :  { %p13698_p3 = pnand %p13697_p2, %p13691_p13 }
 0x179   :  { %13701 = shalt.err (!%p13698_p3)
}
 0x17a   :  { %s16203_s29 = sld [smem:[#allocation75_spill]]  ;;  %s14126_s22 = smov [#allocation14]  }
 0x17b   :  { %137 = dma.hbm_to_vmem [thread:$0]  %s16202_s18, 16, %s135_s11, [#allocation10]  }
 0x17c   :  { %s153_s4 = sshll.u32 %s14126_s22, 4  ;;  %s14127_s23 = smov [#allocation17]   ;;  %s154_s4 = int_to_ptr.vmem [resolvable:$true] %s153_s4 }
 0x17d   :  { %s177_s17 = sshll.u32 %s14127_s23, 4  ;;  %s14460_s17 = int_to_ptr.vmem [resolvable:$true] %s177_s17 }
 0x180   :  { %s13702_s0 = scalar_lea.hbm %s16203_s29, 5184 }
 0x181   :  { %p13703_p4 = scmp.ne.s32.totalorder %s16203_s29, %s13702_s0  ;;  %p13706_p5 = scmp.lt.u32.totalorder %s13702_s0, %s16203_s29 }
 0x183   :  { %p13708_p6 = pnand %p13706_p5, %p13703_p4 }
 0x185   :  { %13711 = shalt.err (!%p13708_p6)
}
 0x186   :  { %s13712_s21 = scalar_lea.vmem %s154_s4, 5184  ;;  %p13717_p8 = scmp.lt.s32.totalorder %s154_s4, %s154_s4 }
 0x187   :  { %p13713_p7 = scmp.ne.s32.totalorder %s154_s4, %s13712_s21  ;;  %p13718_p9 = scmp.lt.s32.totalorder %s13712_s21, %s13712_s21 }
 0x189   :  { %p13719_p10 = por %p13718_p9, %p13717_p8 }
 0x18b   :  { %p13720_p11 = pnand %p13719_p10, %p13713_p7 }
 0x18d   :  { %13723 = shalt.err (!%p13720_p11)
}
 0x18e   :  { %s16204_s24 = sld [smem:[#allocation76_spill]] }
 0x18f   :  { %159 = dma.hbm_to_vmem [thread:$0]  %s16203_s29, 5184, %s154_s4, [#allocation13], %s14105_s10, %s14105_s10, %s14106_s25  }
 0x194   :  { %s13724_s28 = scalar_lea.hbm %s16204_s24, 5184 }
 0x195   :  { %p13725_p12 = scmp.ne.s32.totalorder %s16204_s24, %s13724_s28  ;;  %p13728_p13 = scmp.lt.u32.totalorder %s13724_s28, %s16204_s24 }
 0x197   :  { %p13730_p0 = pnand %p13728_p13, %p13725_p12 }
 0x199   :  { %13733 = shalt.err (!%p13730_p0)
}
 0x19a   :  { %s13734_s30 = scalar_lea.vmem %s14460_s17, 5184  ;;  %p13739_p2 = scmp.lt.s32.totalorder %s14460_s17, %s14460_s17 }
 0x19b   :  { %p13735_p1 = scmp.ne.s32.totalorder %s14460_s17, %s13734_s30  ;;  %p13740_p3 = scmp.lt.s32.totalorder %s13734_s30, %s13734_s30 }
 0x19d   :  { %p13741_p4 = por %p13740_p3, %p13739_p2 }
 0x19f   :  { %p13742_p5 = pnand %p13741_p4, %p13735_p1 }
 0x1a1   :  { %13745 = shalt.err (!%p13742_p5)
}
 0x1a2   :  { %s16205_s1 = sld [smem:[#allocation77_spill]]  ;;  %s14128_s2 = smov [#allocation20]  }
 0x1a3   :  { %183 = dma.hbm_to_vmem [thread:$0]  %s16204_s24, 5184, %s14460_s17, [#allocation16], %s14105_s10, %s14105_s10, %s14106_s25  }
 0x1a4   :  { %s201_s13 = sshll.u32 %s14128_s2, 4  ;;  %s14129_s11 = smov [#allocation23]   ;;  %s202_s13 = int_to_ptr.vmem [resolvable:$true] %s201_s13 }
 0x1a5   :  { %s225_s15 = sshll.u32 %s14129_s11, 4  ;;  %s14481_s15 = int_to_ptr.vmem [resolvable:$true] %s225_s15 }
 0x1a8   :  { %s13746_s3 = scalar_lea.hbm %s16205_s1, 2688 }
 0x1a9   :  { %p13747_p6 = scmp.ne.s32.totalorder %s16205_s1, %s13746_s3  ;;  %p13750_p7 = scmp.lt.u32.totalorder %s13746_s3, %s16205_s1 }
 0x1ab   :  { %p13752_p8 = pnand %p13750_p7, %p13747_p6 }
 0x1ad   :  { %13755 = shalt.err (!%p13752_p8)
}
 0x1ae   :  { %s13756_s16 = scalar_lea.vmem %s202_s13, 2688  ;;  %p13761_p10 = scmp.lt.s32.totalorder %s202_s13, %s202_s13 }
 0x1af   :  { %p13757_p9 = scmp.ne.s32.totalorder %s202_s13, %s13756_s16  ;;  %p13762_p11 = scmp.lt.s32.totalorder %s13756_s16, %s13756_s16 }
 0x1b1   :  { %p13763_p12 = por %p13762_p11, %p13761_p10 }
 0x1b3   :  { %p13764_p13 = pnand %p13763_p12, %p13757_p9 }
 0x1b5   :  { %13767 = shalt.err (!%p13764_p13)
}
 0x1b6   :  { %s16206_s18 = sld [smem:[#allocation78_spill]] }
 0x1b7   :  { %207 = dma.hbm_to_vmem [thread:$0]  %s16205_s1, 2688, %s202_s13, [#allocation19], %s14109_s26, %s14109_s26, %s14110_s14  }
 0x1bc   :  { %s13768_s9 = scalar_lea.hbm %s16206_s18, 1920 }
 0x1bd   :  { %p13769_p0 = scmp.ne.s32.totalorder %s16206_s18, %s13768_s9  ;;  %p13772_p1 = scmp.lt.u32.totalorder %s13768_s9, %s16206_s18 }
 0x1bf   :  { %p13774_p2 = pnand %p13772_p1, %p13769_p0 }
 0x1c1   :  { %13777 = shalt.err (!%p13774_p2)
}
 0x1c2   :  { %s13778_s8 = scalar_lea.vmem %s14481_s15, 1920  ;;  %p13783_p4 = scmp.lt.s32.totalorder %s14481_s15, %s14481_s15 }
 0x1c3   :  { %p13779_p3 = scmp.ne.s32.totalorder %s14481_s15, %s13778_s8  ;;  %p13784_p5 = scmp.lt.s32.totalorder %s13778_s8, %s13778_s8 }
 0x1c5   :  { %p13785_p6 = por %p13784_p5, %p13783_p4 }
 0x1c7   :  { %p13786_p7 = pnand %p13785_p6, %p13779_p3 }
 0x1c9   :  { %13789 = shalt.err (!%p13786_p7)
}
 0x1ca   :  { %s16207_s20 = sld [smem:[#allocation79_spill]]  ;;  %s14130_s29 = smov [#allocation26]  }
 0x1cb   :  { %231 = dma.hbm_to_vmem [thread:$0]  %s16206_s18, 1920, %s14481_s15, [#allocation22], %s14109_s26, %s14109_s26, %s14110_s14  }
 0x1cc   :  { %s250_s22 = sshll.u32 %s14130_s29, 4  ;;  %s14131_s4 = smov [#allocation29]   ;;  %s251_s22 = int_to_ptr.vmem [resolvable:$true] %s250_s22 }
 0x1cd   :  { %s271_s23 = sshll.u32 %s14131_s4, 4  ;;  %s14502_s23 = int_to_ptr.vmem [resolvable:$true] %s271_s23 }
 0x1d0   :  { %s13790_s17 = scalar_lea.hbm %s16207_s20, 64 }
 0x1d1   :  { %p13791_p8 = scmp.ne.s32.totalorder %s16207_s20, %s13790_s17  ;;  %p13794_p9 = scmp.lt.u32.totalorder %s13790_s17, %s16207_s20 }
 0x1d3   :  { %p13796_p10 = pnand %p13794_p9, %p13791_p8 }
 0x1d5   :  { %13799 = shalt.err (!%p13796_p10)
}
 0x1d6   :  { %s13800_s0 = scalar_lea.vmem %s251_s22, 64  ;;  %p13805_p12 = scmp.lt.s32.totalorder %s251_s22, %s251_s22 }
 0x1d7   :  { %p13801_p11 = scmp.ne.s32.totalorder %s251_s22, %s13800_s0  ;;  %p13806_p13 = scmp.lt.s32.totalorder %s13800_s0, %s13800_s0 }
 0x1d9   :  { %p13807_p0 = por %p13806_p13, %p13805_p12 }
 0x1db   :  { %p13808_p1 = pnand %p13807_p0, %p13801_p11 }
 0x1dd   :  { %13811 = shalt.err (!%p13808_p1)
}
 0x1de   :  { %s16208_s26 = sld [smem:[#allocation80_spill]] }
 0x1df   :  { %253 = dma.hbm_to_vmem [thread:$0]  %s16207_s20, 64, %s251_s22, [#allocation25]  }
 0x1e4   :  { %s13812_s14 = scalar_lea.hbm %s16208_s26, 288 }
 0x1e5   :  { %p13813_p2 = scmp.ne.s32.totalorder %s16208_s26, %s13812_s14  ;;  %p13816_p3 = scmp.lt.u32.totalorder %s13812_s14, %s16208_s26 }
 0x1e7   :  { %p13818_p4 = pnand %p13816_p3, %p13813_p2 }
 0x1e9   :  { %13821 = shalt.err (!%p13818_p4)
}
 0x1ea   :  { %s13822_s21 = scalar_lea.vmem %s14502_s23, 288  ;;  %p13827_p6 = scmp.lt.s32.totalorder %s14502_s23, %s14502_s23 }
 0x1eb   :  { %p13823_p5 = scmp.ne.s32.totalorder %s14502_s23, %s13822_s21  ;;  %p13828_p7 = scmp.lt.s32.totalorder %s13822_s21, %s13822_s21 }
 0x1ed   :  { %p13829_p8 = por %p13828_p7, %p13827_p6 }
 0x1ef   :  { %p13830_p9 = pnand %p13829_p8, %p13823_p5 }
 0x1f1   :  { %13833 = shalt.err (!%p13830_p9)
}
 0x1f2   :  { %s16209_s24 = sld [smem:[#allocation81_spill]]  ;;  %s14132_s28 = smov [#allocation32]  }
 0x1f3   :  { %277 = dma.hbm_to_vmem [thread:$0]  %s16208_s26, 288, %s14502_s23, [#allocation28], %s14112_s7, %s14112_s7, %s14113_s6  }
 0x1f4   :  { %s295_s30 = sshll.u32 %s14132_s28, 4  ;;  %s14133_s1 = smov [#allocation35]   ;;  %s296_s30 = int_to_ptr.vmem [resolvable:$true] %s295_s30 }
 0x1f5   :  { %s319_s2 = sshll.u32 %s14133_s1, 4  ;;  %s14520_s2 = int_to_ptr.vmem [resolvable:$true] %s319_s2 }
 0x1f8   :  { %s13834_s13 = scalar_lea.hbm %s16209_s24, 96 }
 0x1f9   :  { %p13835_p10 = scmp.ne.s32.totalorder %s16209_s24, %s13834_s13  ;;  %p13838_p11 = scmp.lt.u32.totalorder %s13834_s13, %s16209_s24 }
 0x1fb   :  { %p13840_p12 = pnand %p13838_p11, %p13835_p10 }
 0x1fd   :  { %13843 = shalt.err (!%p13840_p12)
}
 0x1fe   :  { %s13844_s11 = scalar_lea.vmem %s296_s30, 96  ;;  %p13849_p0 = scmp.lt.s32.totalorder %s296_s30, %s296_s30 }
 0x1ff   :  { %p13845_p13 = scmp.ne.s32.totalorder %s296_s30, %s13844_s11  ;;  %p13850_p1 = scmp.lt.s32.totalorder %s13844_s11, %s13844_s11 }
 0x201   :  { %p13851_p2 = por %p13850_p1, %p13849_p0 }
 0x203   :  { %p13852_p3 = pnand %p13851_p2, %p13845_p13 }
 0x205   :  { %13855 = shalt.err (!%p13852_p3)
}
 0x206   :  { %s16210_s15 = sld [smem:[#allocation82_spill]] }
 0x207   :  { %301 = dma.hbm_to_vmem [thread:$0]  %s16209_s24, 96, %s296_s30, [#allocation31], %s14112_s7, %s14112_s7, %s14113_s6  }
 0x20c   :  { %s13856_s3 = scalar_lea.hbm %s16210_s15, 288 }
 0x20d   :  { %p13857_p4 = scmp.ne.s32.totalorder %s16210_s15, %s13856_s3  ;;  %p13860_p5 = scmp.lt.u32.totalorder %s13856_s3, %s16210_s15 }
 0x20f   :  { %p13862_p6 = pnand %p13860_p5, %p13857_p4 }
 0x211   :  { %13865 = shalt.err (!%p13862_p6)
}
 0x212   :  { %s13866_s16 = scalar_lea.vmem %s14520_s2, 288  ;;  %p13871_p8 = scmp.lt.s32.totalorder %s14520_s2, %s14520_s2 }
 0x213   :  { %p13867_p7 = scmp.ne.s32.totalorder %s14520_s2, %s13866_s16  ;;  %p13872_p9 = scmp.lt.s32.totalorder %s13866_s16, %s13866_s16 }
 0x215   :  { %p13873_p10 = por %p13872_p9, %p13871_p8 }
 0x217   :  { %p13874_p11 = pnand %p13873_p10, %p13867_p7 }
 0x219   :  { %13877 = shalt.err (!%p13874_p11)
}
 0x21a   :  { %s16211_s18 = sld [smem:[#allocation83_spill]]  ;;  %s14134_s9 = smov [#allocation38]  }
 0x21b   :  { %325 = dma.hbm_to_vmem [thread:$0]  %s16210_s15, 288, %s14520_s2, [#allocation34], %s14112_s7, %s14112_s7, %s14113_s6  }
 0x21c   :  { %s343_s8 = sshll.u32 %s14134_s9, 4  ;;  %s14135_s20 = smov [#allocation41]   ;;  %s344_s8 = int_to_ptr.vmem [resolvable:$true] %s343_s8 }
 0x21d   :  { %s367_s29 = sshll.u32 %s14135_s20, 4  ;;  %s14541_s29 = int_to_ptr.vmem [resolvable:$true] %s367_s29 }
 0x220   :  { %s13878_s22 = scalar_lea.hbm %s16211_s18, 64 }
 0x221   :  { %p13879_p12 = scmp.ne.s32.totalorder %s16211_s18, %s13878_s22  ;;  %p13882_p13 = scmp.lt.u32.totalorder %s13878_s22, %s16211_s18 }
 0x223   :  { %p13884_p0 = pnand %p13882_p13, %p13879_p12 }
 0x225   :  { %13887 = shalt.err (!%p13884_p0)
}
 0x226   :  { %s13888_s4 = scalar_lea.vmem %s344_s8, 64  ;;  %p13893_p2 = scmp.lt.s32.totalorder %s344_s8, %s344_s8 }
 0x227   :  { %p13889_p1 = scmp.ne.s32.totalorder %s344_s8, %s13888_s4  ;;  %p13894_p3 = scmp.lt.s32.totalorder %s13888_s4, %s13888_s4 }
 0x229   :  { %p13895_p4 = por %p13894_p3, %p13893_p2 }
 0x22b   :  { %p13896_p5 = pnand %p13895_p4, %p13889_p1 }
 0x22d   :  { %13899 = shalt.err (!%p13896_p5)
}
 0x22e   :  { %s16212_s23 = sld [smem:[#allocation84_spill]] }
 0x22f   :  { %349 = dma.hbm_to_vmem [thread:$0]  %s16211_s18, 64, %s344_s8, [#allocation37], %s14112_s7, %s14112_s7, %s14113_s6  }
 0x234   :  { %s13900_s17 = scalar_lea.hbm %s16212_s23, 128 }
 0x235   :  { %p13901_p6 = scmp.ne.s32.totalorder %s16212_s23, %s13900_s17  ;;  %p13904_p7 = scmp.lt.u32.totalorder %s13900_s17, %s16212_s23 }
 0x237   :  { %p13906_p8 = pnand %p13904_p7, %p13901_p6 }
 0x239   :  { %13909 = shalt.err (!%p13906_p8)
}
 0x23a   :  { %s13910_s0 = scalar_lea.vmem %s14541_s29, 128  ;;  %p13915_p10 = scmp.lt.s32.totalorder %s14541_s29, %s14541_s29 }
 0x23b   :  { %p13911_p9 = scmp.ne.s32.totalorder %s14541_s29, %s13910_s0  ;;  %p13916_p11 = scmp.lt.s32.totalorder %s13910_s0, %s13910_s0 }
 0x23d   :  { %p13917_p12 = por %p13916_p11, %p13915_p10 }
 0x23f   :  { %p13918_p13 = pnand %p13917_p12, %p13911_p9 }
 0x241   :  { %13921 = shalt.err (!%p13918_p13)
}
 0x242   :  { %s16213_s7 = sld [smem:[#allocation85_spill]]  ;;  %s14136_s6 = smov [#allocation44]  }
 0x243   :  { %373 = dma.hbm_to_vmem [thread:$0]  %s16212_s23, 128, %s14541_s29, [#allocation40], %s14105_s10, %s14105_s10, %s14106_s25  }
 0x244   :  { %s391_s26 = sshll.u32 %s14136_s6, 4  ;;  %s14137_s14 = smov [#allocation47]   ;;  %s392_s26 = int_to_ptr.vmem [resolvable:$true] %s391_s26 }
 0x245   :  { %s415_s21 = sshll.u32 %s14137_s14, 4  ;;  %s14562_s21 = int_to_ptr.vmem [resolvable:$true] %s415_s21 }
 0x248   :  { %s13922_s24 = scalar_lea.hbm %s16213_s7, 128 }
 0x249   :  { %p13923_p0 = scmp.ne.s32.totalorder %s16213_s7, %s13922_s24  ;;  %p13926_p1 = scmp.lt.u32.totalorder %s13922_s24, %s16213_s7 }
 0x24b   :  { %p13928_p2 = pnand %p13926_p1, %p13923_p0 }
 0x24d   :  { %13931 = shalt.err (!%p13928_p2)
}
 0x24e   :  { %s13932_s28 = scalar_lea.vmem %s392_s26, 128  ;;  %p13937_p4 = scmp.lt.s32.totalorder %s392_s26, %s392_s26 }
 0x24f   :  { %p13933_p3 = scmp.ne.s32.totalorder %s392_s26, %s13932_s28  ;;  %p13938_p5 = scmp.lt.s32.totalorder %s13932_s28, %s13932_s28 }
 0x251   :  { %p13939_p6 = por %p13938_p5, %p13937_p4 }
 0x253   :  { %p13940_p7 = pnand %p13939_p6, %p13933_p3 }
 0x255   :  { %13943 = shalt.err (!%p13940_p7)
}
 0x256   :  { %s16214_s30 = sld [smem:[#allocation86_spill]] }
 0x257   :  { %397 = dma.hbm_to_vmem [thread:$0]  %s16213_s7, 128, %s392_s26, [#allocation43], %s14105_s10, %s14105_s10, %s14106_s25  }
 0x25c   :  { %s13944_s1 = scalar_lea.hbm %s16214_s30, 128 }
 0x25d   :  { %p13945_p8 = scmp.ne.s32.totalorder %s16214_s30, %s13944_s1  ;;  %p13948_p9 = scmp.lt.u32.totalorder %s13944_s1, %s16214_s30 }
 0x25f   :  { %p13950_p10 = pnand %p13948_p9, %p13945_p8 }
 0x261   :  { %13953 = shalt.err (!%p13950_p10)
}
 0x262   :  { %s13954_s2 = scalar_lea.vmem %s14562_s21, 128  ;;  %p13959_p12 = scmp.lt.s32.totalorder %s14562_s21, %s14562_s21 }
 0x263   :  { %p13955_p11 = scmp.ne.s32.totalorder %s14562_s21, %s13954_s2  ;;  %p13960_p13 = scmp.lt.s32.totalorder %s13954_s2, %s13954_s2 }
 0x265   :  { %p13961_p0 = por %p13960_p13, %p13959_p12 }
 0x267   :  { %p13962_p1 = pnand %p13961_p0, %p13955_p11 }
 0x269   :  { %13965 = shalt.err (!%p13962_p1)
}
 0x26a   :  { %421 = dma.hbm_to_vmem [thread:$0]  %s16214_s30, 128, %s14562_s21, [#allocation46], %s14105_s10, %s14105_s10, %s14106_s25  }
 0x26b   :  { %s14138_s13 = smov [#allocation50]   ;;  %s14139_s15 = smov [#allocation51]  }
 0x26c   :  { %s439_s11 = sshll.u32 %s14138_s13, 4  ;;  %s451_s3 = sshll.u32 %s14139_s15, 4  ;;  %s440_s11 = int_to_ptr.vmem [resolvable:$true] %s439_s11  ;;  %s14583_s3 = int_to_ptr.vmem [resolvable:$true] %s451_s3 }
 0x26d   :  { %s13966_s16 = scalar_lea.hbm %s14321_s12, 128 }
 0x26e   :  { %p13967_p2 = scmp.ne.s32.totalorder %s14321_s12, %s13966_s16  ;;  %p13970_p3 = scmp.lt.u32.totalorder %s13966_s16, %s14321_s12 }
 0x270   :  { %p13972_p4 = pnand %p13970_p3, %p13967_p2 }
 0x272   :  { %13975 = shalt.err (!%p13972_p4)
}
 0x273   :  { %s13976_s18 = scalar_lea.vmem %s440_s11, 128  ;;  %p13981_p6 = scmp.lt.s32.totalorder %s440_s11, %s440_s11 }
 0x274   :  { %p13977_p5 = scmp.ne.s32.totalorder %s440_s11, %s13976_s18  ;;  %p13982_p7 = scmp.lt.s32.totalorder %s13976_s18, %s13976_s18 }
 0x276   :  { %p13983_p8 = por %p13982_p7, %p13981_p6 }
 0x278   :  { %p13984_p9 = pnand %p13983_p8, %p13977_p5 }
 0x27a   :  { %13987 = shalt.err (!%p13984_p9)
}
 0x27b   :  { %445 = dma.hbm_to_vmem [thread:$0]  %s14321_s12, 128, %s440_s11, [#allocation49], %s14105_s10, %s14105_s10, %s14106_s25  }
 0x27c   :  { %s13988_s9 = scalar_lea.hbm %s14326_s5, 128 }
 0x27d   :  { %p13989_p10 = scmp.ne.s32.totalorder %s14326_s5, %s13988_s9  ;;  %p13992_p11 = scmp.lt.u32.totalorder %s13988_s9, %s14326_s5 }
 0x27f   :  { %p13994_p12 = pnand %p13992_p11, %p13989_p10 }
 0x281   :  { %13997 = shalt.err (!%p13994_p12)
}
 0x282   :  { %s13998_s8 = scalar_lea.vmem %s14583_s3, 128  ;;  %p14003_p0 = scmp.lt.s32.totalorder %s14583_s3, %s14583_s3 }
 0x283   :  { %p13999_p13 = scmp.ne.s32.totalorder %s14583_s3, %s13998_s8  ;;  %p14004_p1 = scmp.lt.s32.totalorder %s13998_s8, %s13998_s8 }
 0x285   :  { %p14005_p2 = por %p14004_p1, %p14003_p0 }
 0x287   :  { %p14006_p3 = pnand %p14005_p2, %p13999_p13 }
 0x289   :  { %14009 = shalt.err (!%p14006_p3)
}
 0x28a   :  { %457 = dma.hbm_to_vmem [thread:$0]  %s14326_s5, 128, %s14583_s3, [#allocation52], %s14105_s10, %s14105_s10, %s14106_s25  }
 0x28b   :  { %14032 = dma.done.wait [#allocation4], 384  }
 0x28c   :  { %14033 = vsyncadd [#allocation4], 4294966912 }
 0x28d   :  { %14034 = dma.done.wait [#allocation7], 112  }
 0x28e   :  { %14035 = vsyncadd [#allocation7], 4294967184 }
 0x28f   :  { %14036 = dma.done.wait [#allocation10], 32  }
 0x290   :  { %14037 = vsyncadd [#allocation10], 4294967264 }
 0x291   :  { %14038 = dma.done.wait [#allocation13], 5200  }
 0x292   :  { %14039 = vsyncadd [#allocation13], 4294962096 }
 0x293   :  { %14040 = dma.done.wait [#allocation16], 10368  }
 0x294   :  { %14041 = vsyncadd [#allocation16], 4294956928 }
 0x295   :  { %14042 = dma.done.wait [#allocation19], 7872  }
 0x296   :  { %14043 = vsyncadd [#allocation19], 4294959424 }
 0x297   :  { %14044 = dma.done.wait [#allocation22], 8064  }
 0x298   :  { %14045 = vsyncadd [#allocation22], 4294959232 }
 0x299   :  { %14046 = dma.done.wait [#allocation25], 1984  }
 0x29a   :  { %14047 = vsyncadd [#allocation25], 4294965312 }
 0x29b   :  { %14048 = dma.done.wait [#allocation28], 576  }
 0x29c   :  { %14049 = vsyncadd [#allocation28], 4294966720 }
 0x29d   :  { %14050 = dma.done.wait [#allocation31], 384  }
 0x29e   :  { %14051 = vsyncadd [#allocation31], 4294966912 }
 0x29f   :  { %14052 = dma.done.wait [#allocation34], 384  }
 0x2a0   :  { %14053 = vsyncadd [#allocation34], 4294966912 }
 0x2a1   :  { %14054 = dma.done.wait [#allocation37], 352  }
 0x2a2   :  { %14055 = vsyncadd [#allocation37], 4294966944 }
 0x2a3   :  { %14056 = dma.done.wait [#allocation40], 384  }
 0x2a4   :  { %14057 = vsyncadd [#allocation40], 4294966912 }
 0x2a5   :  { %14058 = dma.done.wait [#allocation43], 256  }
 0x2a6   :  { %14059 = vsyncadd [#allocation43], 4294967040 }
 0x2a7   :  { %14060 = dma.done.wait [#allocation46], 256  }
 0x2a8   :  { %14061 = vsyncadd [#allocation46], 4294967040 }
 0x2a9   :  { %14062 = dma.done.wait [#allocation49], 256  }
 0x2aa   :  { %14063 = vsyncadd [#allocation49], 4294967040 }
 0x2ab   :  { %14064 = dma.done.wait [#allocation52], 128  }
 0x2ac   :  { %14065 = vsyncadd [#allocation52], 4294967168  ;;  %v14140_v0 = vmov 0   ;;  %vm556_vm0 = vcmask 1041408   ;;  %v564_v1 = vld [vmem:[#allocation3] sm:$0xff]  ;;  %vm584_vm1 = vcmask 31744   ;;  %v733_v17 = vlaneseq }
 0x2ad   :  { %638 = vmatprep.mubr.bf16.mxu0 %v14140_v0  ;;  %555 = vst [vmem:[#allocation2] sm:$0xff] %v14140_v0  ;;  %12953 = vset.pattern.permute.xlu1 %v14140_v0  ;;  %v565_v2 = vld [vmem:[#allocation3 + $0x8] sm:$0xff]  ;;  %v14604_v3 = vcombine.high %v564_v1, %v564_v1  ;;  %v578_v4 = vpack.c.bf16 %v564_v1, %v564_v1  ;;  %v566_v7 = vld [vmem:[#allocation3 + $0x10] sm:$0xff]  ;;  %v567_v20 = vld [vmem:[#allocation6] sm:$0x3f]  ;;  %vm773_vm2 = vcmask 64512  }
 0x2ae   :  { %1000 = vmatprep.mubr.bf16.mxu1 %v14140_v0  ;;  %12954 = vset.pattern.permute.xlu0 %v14140_v0  ;;  %v14606_v5 = vcombine.high %v565_v2, %v565_v2  ;;  %v580_v6 = vpack.c.bf16 %v565_v2, %v565_v2  ;;  %v14608_v8 = vcombine.high %v566_v7, %v566_v7  ;;  %v568_v14 = vld [vmem:[#allocation26] sm:$0xf]  ;;  %v14625_v18 = vshrl.u32 %v733_v17, 7  ;;  %v729_v56 = vld [vmem:[#allocation39] sm:$0xff]  ;;  %v731_v57 = vld [vmem:[#allocation39 + $0x8] sm:$0xff]  ;;  %s14142_s5 = smov 18  }
 0x2af   :  { %v582_v9 = vpack.c.bf16 %v566_v7, %v566_v7  ;;  %v579_v10 = vpack.c.bf16 %v14604_v3, %v14604_v3  ;;  %v589_v11 = vsel %vm556_vm0, %v578_v4, 0  ;;  %816 = vperm.xlu1 %12953, %v729_v56   ;;  %vm557_vm3 = vcmask 1043458   ;;  %s14143_s12 = smov 17   ;;  %s14144_s10 = smov 19  }
 0x2b0   :  { %v581_v12 = vpack.c.bf16 %v14606_v5, %v14606_v5  ;;  %v595_v13 = vsel %vm556_vm0, %v580_v6, 0  ;;  %v583_v16 = vpack.c.bf16 %v14608_v8, %v14608_v8  ;;  %v735_v19 = vsub.s32 0, %v14625_v18  ;;  %vm558_vm6 = vmor %vm557_vm3, %vm556_vm0  ;;  %s14145_s20 = smov 1   ;;  %s14146_s29 = smov 127  }
 0x2b1   :  { %v601_v15 = vsel %vm556_vm0, %v582_v9, 0  ;;  %11533 = vmatprep.subr.msk.bf16.mxu0 %vm556_vm0, %v579_v10  ;;  %v739_v21 = vsub.s32 1, %v14625_v18  ;;  %v743_v27 = vsub.s32 2, %v14625_v18  ;;  %v747_v30 = vsub.s32 3, %v14625_v18  ;;  %s14147_s22 = smov 111   ;;  %s14148_s4 = smov 110  }
 0x2b2   :  { %607 = vmatpush1.bf16.msra.mxu0 %v589_v11  ;;  %v14629_v22 = vrot.slane %v567_v20, %v735_v19  ;;  %v751_v38 = vsub.s32 4, %v14625_v18  ;;  %v755_v41 = vsub.s32 5, %v14625_v18  ;;  %vm559_vm4 = vcmask 1045508   ;;  %s14149_s23 = smov 109   ;;  %s14152_s17 = smov 5  }
 0x2b3   :  { %11535 = vmatprep.subr.msk.bf16.mxu0 %vm556_vm0, %v581_v12  ;;  %v14631_v23 = vrot.slane %v567_v20, %v739_v21  ;;  %v14637_v33 = vrot.slane %v567_v20, %v743_v27  ;;  %v14639_v34 = vrot.slane %v567_v20, %v747_v30  ;;  %827 = vperm.xlu1 %12953, %v731_v57   ;;  %vm561_vm5 = vcmask 64518   ;;  %vm560_vm7 = vmor %vm559_vm4, %vm558_vm6  ;;  %s14153_s0 = smov 6   ;;  %s14154_s7 = smov 124  }
 0x2b4   :  { %v14645_v45 = vrot.slane %v567_v20, %v751_v38  ;;  %v14647_v46 = vrot.slane %v567_v20, %v755_v41  ;;  %vm562_vm8 = vmor %vm561_vm5, %vm560_vm7  ;;  %vm894_vm9 = vcmask 60418   ;;  %vm941_vm11 = vcmask 146432   ;;  %s14155_s6 = smov 123   ;;  %s14156_s26 = smov 122  }
 0x2b5   :  { %11534 = vmatmul.mubr.msk.bf16.vlgmr.msra.gmra.mrb[0].mxu0 %vm584_vm1, %v568_v14  ;;  %vm14691_vm10 = vmor %vm894_vm9, %vm556_vm0  ;;  %vm1103_vm12 = vcmask 154624   ;;  %vm1296_vm13 = vcmask 138240   ;;  %vm1505_vm14 = vcmask 7168   ;;  %vm1886_vm15 = vcmask 1039360   ;;  %s14158_s14 = smov 9   ;;  %s14159_s21 = smov 121  }
 0x2b6   :  { %648 = vmatpush1.bf16.msra.mxu0 %v595_v13  ;;  %679 = vmatprep.mubr.bf16.mxu0 %v14140_v0  ;;  %vm2085_vm3 = vcmask 908288   ;;  %vm16184_vm4 = vcmask 900096   ;;  %vm16183_vm5 = vcmask 891904   ;;  %vm2648_vm6 = vcmask 1043456   ;;  %s14160_s24 = smov 120   ;;  %s14162_s28 = smov [#allocation53]  }
 0x2b7   :  { %11537 = vmatprep.subr.msk.bf16.mxu0 %vm556_vm0, %v583_v16  ;;  %vm2658_vm7 = vcmask 60416   ;;  %vm14151_vm9 = vmmov 0   ;;  %s11476_s30 = sshll.u32 %s14162_s28, 4  ;;  %s11477_s30 = int_to_ptr.vmem [resolvable:$true] %s11476_s30 }
 0x2b8   :  { %s14010_s1 = scalar_lea.vmem %s11477_s30, 384  ;;  %p14015_p5 = scmp.lt.s32.totalorder %s11477_s30, %s11477_s30 }
 0x2b9   :  { %p14011_p4 = scmp.ne.s32.totalorder %s11477_s30, %s14010_s1  ;;  %p14016_p6 = scmp.lt.s32.totalorder %s14010_s1, %s14010_s1 }
 0x2bb   :  { %p14017_p7 = por %p14016_p6, %p14015_p5 }
 0x2bd   :  { %11536 = vmatmul.mubr.msk.bf16.vlgmr.msra.gmra.mrb[4].mxu0 %vm584_vm1, %v568_v14  ;;  %p14018_p8 = pnand %p14017_p7, %p14011_p4 }
 0x2be   :  { %689 = vmatpush1.bf16.msra.mxu0 %v601_v15  ;;  %720 = vmatprep.mubr.bf16.mxu0 %v14140_v0 }
 0x2c5   :  { %11538 = vmatmul.mubr.msk.bf16.vlgmr.msra.gmra.mrb[8].mxu0 %vm584_vm1, %v568_v14 }
 0x2c6   :  { %1041 = vmatprep.mubr.bf16.mxu0 %v14140_v0 }
 0x32e   :  { %v817_v30 = vpop.permute.xlu1 %816 }
 0x388   :  { %v640_v24 = vpop.f32.mrb[0].mxu0 }
 0x389   :  { %v763_v25 = vmul.f32 %v14629_v22, %v640_v24  ;;  %v642_v26 = vpop.f32.mrb[1].mxu0 }
 0x38a   :  { %v764_v28 = vmul.f32 %v14631_v23, %v642_v26  ;;  %v644_v29 = vpop.f32.mrb[2].mxu0 }
 0x38b   :  { %v645_v31 = vpop.f32.mrb[3].mxu0 }
 0x38c   :  { %v769_v32 = vadd.f32 %v764_v28, %v763_v25 }
 0x390   :  { %v681_v35 = vpop.f32.mrb[4].mxu0 }
 0x391   :  { %v765_v36 = vmul.f32 %v14637_v33, %v681_v35  ;;  %v683_v37 = vpop.f32.mrb[5].mxu0 }
 0x392   :  { %v766_v39 = vmul.f32 %v14639_v34, %v683_v37  ;;  %v685_v40 = vpop.f32.mrb[6].mxu0 }
 0x393   :  { %v770_v42 = vadd.f32 %v769_v32, %v765_v36  ;;  %v686_v43 = vpop.f32.mrb[7].mxu0  ;;  %v14141_v32 = vmov 1983009808  }
 0x395   :  { %v771_v44 = vadd.f32 %v770_v42, %v766_v39 }
 0x398   :  { %v722_v47 = vpop.f32.mrb[8].mxu0 }
 0x399   :  { %v767_v48 = vmul.f32 %v14645_v45, %v722_v47  ;;  %v724_v49 = vpop.f32.mrb[9].mxu0 }
 0x39a   :  { %v768_v50 = vmul.f32 %v14647_v46, %v724_v49  ;;  %v726_v51 = vpop.f32.mrb[10].mxu0 }
 0x39b   :  { %v727_v52 = vpop.f32.mrb[11].mxu0  ;;  %v772_v53 = vadd.f32 %v771_v44, %v767_v48  ;;  %v828_v51 = vpop.permute.xlu1 %827 }
 0x39c   :  { %v774_v54 = vsel %vm773_vm2, %v768_v50, 0.0 }
 0x39d   :  { %v775_v55 = vadd.f32 %v774_v54, %v772_v53 }
 0x39f   :  { %776 = vadd.xlane.f32.xlu0 %v775_v55 }
 0x42c   :  { %v777_v58 = vpop.xlane.xlu0 %776 }
 0x42d   :  { %v778_v59 = vmul.f32 0.001953125, %v777_v58 }
 0x42f   :  { %v779_v60 = vsub.f32 %v640_v24, %v778_v59  ;;  %v780_v61 = vsub.f32 %v642_v26, %v778_v59  ;;  %v781_v62 = vsub.f32 %v681_v35, %v778_v59  ;;  %v782_v63 = vsub.f32 %v683_v37, %v778_v59  ;;  %v14660_v26 = vld [vmem:[#allocation2] sm:$0xff] }
 0x430   :  { %v784_v0 = vsub.f32 %v724_v49, %v778_v59  ;;  %v783_v1 = vsub.f32 %v722_v47, %v778_v59  ;;  %563 = vst.msk [vmem:[#allocation2 + $0x8] sm:$0xff] %vm562_vm8, %v14660_v26  ;;  %v869_v35 = vunpack.c.l.s4 %v14141_v32  ;;  %vm3177_vm8 = vcmask 402432  }
 0x431   :  { %v785_v2 = vmul.f32 %v779_v60, %v14629_v22  ;;  %v786_v4 = vmul.f32 %v780_v61, %v14631_v23  ;;  %v787_v6 = vmul.f32 %v781_v62, %v14637_v33  ;;  %v788_v7 = vmul.f32 %v782_v63, %v14639_v34 }
 0x432   :  { %v790_v11 = vmul.f32 %v784_v0, %v14647_v46  ;;  %v789_v12 = vmul.f32 %v783_v1, %v14645_v45  ;;  %v870_v48 = vunpack.c.0.s8 %v869_v35 }
 0x433   :  { %v791_v9 = vmul.f32 %v785_v2, %v785_v2  ;;  %v792_v10 = vmul.f32 %v786_v4, %v786_v4  ;;  %v793_v13 = vmul.f32 %v787_v6, %v787_v6  ;;  %v794_v15 = vmul.f32 %v788_v7, %v788_v7 }
 0x434   :  { %v796_v17 = vmul.f32 %v790_v11, %v790_v11  ;;  %v795_v19 = vmul.f32 %v789_v12, %v789_v12 }
 0x435   :  { %v797_v14 = vadd.f32 %v792_v10, %v791_v9 }
 0x436   :  { %v801_v24 = vsel %vm773_vm2, %v796_v17, 0.0 }
 0x437   :  { %v798_v16 = vadd.f32 %v797_v14, %v793_v13 }
 0x439   :  { %v799_v20 = vadd.f32 %v798_v16, %v794_v15 }
 0x43b   :  { %v800_v21 = vadd.f32 %v799_v20, %v795_v19 }
 0x43d   :  { %v802_v25 = vadd.f32 %v801_v24, %v800_v21 }
 0x43f   :  { %803 = vadd.xlane.f32.xlu0 %v802_v25 }
 0x4cc   :  { %v804_v27 = vpop.xlane.xlu0 %803 }
 0x4cd   :  { %v805_v28 = vmul.f32 0.001953125, %v804_v27 }
 0x4cf   :  { %v806_v29 = vadd.f32 1e-05, %v805_v28 }
 0x4d1   :  { %13281 = vrsqrt.f32 %v806_v29 }
 0x4db   :  { %v13282_v31 = vpop.eup %13281 }
 0x4dc   :  { %v808_v36 = vmul.f32 %v13282_v31, %v779_v60  ;;  %v809_v37 = vmul.f32 %v13282_v31, %v780_v61  ;;  %v810_v38 = vmul.f32 %v13282_v31, %v781_v62  ;;  %v811_v39 = vmul.f32 %v13282_v31, %v782_v63 }
 0x4dd   :  { %v812_v40 = vmul.f32 %v13282_v31, %v783_v1  ;;  %v813_v41 = vmul.f32 %v13282_v31, %v784_v0  ;;  %v14672_v62 = vsub.s32 %v870_v48, %v14625_v18 }
 0x4de   :  { %v819_v42 = vmul.f32 %v817_v30, %v808_v36  ;;  %v820_v43 = vmul.f32 %v817_v30, %v809_v37  ;;  %v821_v44 = vmul.f32 %v817_v30, %v810_v38  ;;  %v822_v47 = vmul.f32 %v817_v30, %v811_v39 }
 0x4df   :  { %v823_v49 = vmul.f32 %v817_v30, %v812_v40  ;;  %v824_v50 = vmul.f32 %v817_v30, %v813_v41 }
 0x4e0   :  { %v830_v52 = vadd.f32 %v828_v51, %v819_v42  ;;  %v831_v53 = vadd.f32 %v828_v51, %v820_v43  ;;  %v832_v54 = vadd.f32 %v828_v51, %v821_v44  ;;  %v833_v55 = vadd.f32 %v828_v51, %v822_v47 }
 0x4e1   :  { %v834_v56 = vadd.f32 %v828_v51, %v823_v49  ;;  %v835_v57 = vadd.f32 %v828_v51, %v824_v50 }
 0x4e2   :  { %v14663_v58 = vmax.f32 %v830_v52, 0.0  ;;  %v14665_v59 = vmax.f32 %v831_v53, 0.0  ;;  %v14667_v60 = vmax.f32 %v832_v54, 0.0  ;;  %v14669_v61 = vmax.f32 %v833_v55, 0.0  ;;  %v14804_v52 = vld [vmem:[#allocation27 + $0x2] sm:$0x3] }
 0x4e3   :  { %v14674_v63 = vmax.f32 %v834_v56, 0.0  ;;  %v14676_v0 = vmax.f32 %v835_v57, 0.0 }
 0x4e4   :  { %v848_v1 = vmul.f32 %v14663_v58, %v14629_v22  ;;  %v849_v2 = vmul.f32 %v14665_v59, %v14631_v23  ;;  %v850_v4 = vmul.f32 %v14667_v60, %v14637_v33  ;;  %v851_v6 = vmul.f32 %v14669_v61, %v14639_v34 }
 0x4e5   :  { %v852_v18 = vmul.f32 %v14674_v63, %v14645_v45  ;;  %v853_v7 = vmul.f32 %v14676_v0, %v14647_v46 }
 0x4e6   :  { %v11539_v9 = vpack.c.bf16 %v849_v2, %v848_v1  ;;  %v11540_v10 = vpack.c.bf16 %v851_v6, %v850_v4 }
 0x4e7   :  { %v11541_v11 = vpack.c.bf16 %v853_v7, %v852_v18  ;;  %v14823_v18 = vld [vmem:[#allocation27] sm:$0x3] }
 0x4e8   :  { %v874_v13 = vrot.slane %v11539_v9, %v14672_v62  ;;  %v881_v14 = vrot.slane %v11540_v10, %v14672_v62 }
 0x4e9   :  { %v890_v15 = vrot.slane %v11541_v11, %v14672_v62 }
 0x4ea   :  { %v882_v16 = vcombine.low %v874_v13, %v881_v14  ;;  %v13303_v25 = vcombine.low %v881_v14, %v881_v14 }
 0x4eb   :  { %896 = vst.msk [vmem:[#allocation2 + $0xa] sm:$0xf] %vm14691_vm10, %v890_v15 }
 0x4ec   :  { %893 = vst [vmem:[#allocation2 + $0x2] sm:$0xff] %v882_v16  ;;  %v14710_v29 = vrot.slane %v13303_v25, %v14672_v62  ;;  %v14758_v38 = vrot.slane %v882_v16, %v14672_v62 }
 0x4ee   :  { %v14716_v30 = vcombine.high %v14710_v29, %v14710_v29  ;;  %v14772_v40 = vcombine.high %v14758_v38, %v14758_v38 }
 0x4f2   :  { %v14724_v31 = vld.sshfl [vmem:[#allocation2 + $0xa] sm:$0x33 pattern:$0x76325410] }
 0x4f3   :  { %v11542_v17 = vld.sshfl [vmem:[#allocation2 + $0x8] sm:$0x33 pattern:$0x76325410]  ;;  %v897_v19 = vld [vmem:[#allocation2] sm:$0xff]  ;;  %v14765_v39 = vcombine.high %v14724_v31, %v14724_v31 }
 0x4f4   :  { %937 = vrot.lane.b32.xlu1 %v11542_v17, %s14142_s5  ;;  %v904_v20 = vcombine.high %v897_v19, %v897_v19  ;;  %v1453_v27 = vld [vmem:[#allocation2 + $0x8] sm:$0x3f]  ;;  %v911_v32 = vrot.slane %v897_v19, %v14672_v62  ;;  %v928_v36 = vcombine.high %v11542_v17, %v11542_v17 }
 0x4f5   :  { %v1482_v28 = vrot.slane %v1453_v27, %v14672_v62  ;;  %v1475_v41 = vcombine.high %v1453_v27, %v1453_v27 }
 0x4f6   :  { %v918_v21 = vrot.slane %v904_v20, %v14672_v62  ;;  %v919_v35 = vcombine.high %v911_v32, %v911_v32 }
 0x4f7   :  { %v1490_v37 = vcombine.high %v1482_v28, %v1482_v28  ;;  %v1489_v42 = vrot.slane %v1475_v41, %v14672_v62  ;;  %v14866_v41 = vld [vmem:[#allocation27 + $0x6] sm:$0x3] }
 0x4f8   :  { %933 = vrot.lane.b32.xlu0 %v918_v21, %s14142_s5  ;;  %v920_v24 = vcombine.high %v918_v21, %v918_v21 }
 0x4fa   :  { %935 = vrot.lane.b32.xlu1 %v920_v24, %s14142_s5 }
 0x4fc   :  { %1290 = vrot.lane.b32.xlu0 %v920_v24, %s14143_s12 }
 0x4fe   :  { %1095 = vrot.lane.b32.xlu1 %v918_v21, %s14144_s10 }
 0x500   :  { %1495 = vrot.lane.b32.xlu0 %v918_v21, %s14145_s20 }
 0x502   :  { %1097 = vrot.lane.b32.xlu1 %v920_v24, %s14144_s10 }
 0x504   :  { %1499 = vrot.lane.b32.xlu0 %v1482_v28, %s14145_s20 }
 0x506   :  { %1099 = vrot.lane.b32.xlu1 %v11542_v17, %s14144_s10 }
 0x508   :  { %1880 = vrot.lane.b32.xlu0 %v14716_v30, %s14146_s29 }
 0x50a   :  { %1288 = vrot.lane.b32.xlu1 %v918_v21, %s14143_s12  ;;  %v14849_v21 = vld [vmem:[#allocation27 + $0x4] sm:$0x3] }
 0x50c   :  { %2077 = vrot.lane.b32.xlu0 %v14710_v29, %s14147_s22 }
 0x50e   :  { %1292 = vrot.lane.b32.xlu1 %v11542_v17, %s14143_s12 }
 0x510   :  { %2081 = vrot.lane.b32.xlu0 %v14724_v31, %s14147_s22 }
 0x512   :  { %1497 = vrot.lane.b32.xlu1 %v920_v24, %s14145_s20 }
 0x514   :  { %2278 = vrot.lane.b32.xlu0 %v14716_v30, %s14148_s4 }
 0x516   :  { %1878 = vrot.lane.b32.xlu1 %v14710_v29, %s14146_s29 }
 0x518   :  { %2475 = vrot.lane.b32.xlu0 %v14710_v29, %s14149_s23 }
 0x51a   :  { %1882 = vrot.lane.b32.xlu1 %v14724_v31, %s14146_s29 }
 0x51c   :  { %2479 = vrot.lane.b32.xlu0 %v14724_v31, %s14149_s23 }
 0x51e   :  { %2079 = vrot.lane.b32.xlu1 %v14716_v30, %s14147_s22 }
 0x520   :  { %931 = vrot.lane.b32.xlu0 %v919_v35, %s14142_s5 }
 0x522   :  { %2276 = vrot.lane.b32.xlu1 %v14710_v29, %s14148_s4 }
 0x524   :  { %1091 = vrot.lane.b32.xlu0 %v911_v32, %s14144_s10 }
 0x526   :  { %2280 = vrot.lane.b32.xlu1 %v14724_v31, %s14148_s4 }
 0x528   :  { %1101 = vrot.lane.b32.xlu0 %v928_v36, %s14144_s10 }
 0x52a   :  { %2477 = vrot.lane.b32.xlu1 %v14716_v30, %s14149_s23 }
 0x52c   :  { %1286 = vrot.lane.b32.xlu0 %v919_v35, %s14143_s12 }
 0x52e   :  { %929 = vrot.lane.b32.xlu1 %v911_v32, %s14142_s5 }
 0x530   :  { %1491 = vrot.lane.b32.xlu0 %v911_v32, %s14145_s20 }
 0x532   :  { %939 = vrot.lane.b32.xlu1 %v928_v36, %s14142_s5 }
 0x534   :  { %1501 = vrot.lane.b32.xlu0 %v1490_v37, %s14145_s20 }
 0x536   :  { %1093 = vrot.lane.b32.xlu1 %v919_v35, %s14144_s10 }
 0x538   :  { %1874 = vrot.lane.b32.xlu0 %v14758_v38, %s14146_s29 }
 0x53a   :  { %1284 = vrot.lane.b32.xlu1 %v911_v32, %s14143_s12 }
 0x53c   :  { %1884 = vrot.lane.b32.xlu0 %v14765_v39, %s14146_s29 }
 0x53e   :  { %1294 = vrot.lane.b32.xlu1 %v928_v36, %s14143_s12 }
 0x540   :  { %2075 = vrot.lane.b32.xlu0 %v14772_v40, %s14147_s22 }
 0x542   :  { %1493 = vrot.lane.b32.xlu1 %v919_v35, %s14145_s20 }
 0x544   :  { %2272 = vrot.lane.b32.xlu0 %v14758_v38, %s14148_s4 }
 0x546   :  { %1503 = vrot.lane.b32.xlu1 %v1489_v42, %s14145_s20 }
 0x548   :  { %2282 = vrot.lane.b32.xlu0 %v14765_v39, %s14148_s4 }
 0x54a   :  { %1876 = vrot.lane.b32.xlu1 %v14772_v40, %s14146_s29 }
 0x54c   :  { %2473 = vrot.lane.b32.xlu0 %v14772_v40, %s14149_s23 }
 0x54e   :  { %2073 = vrot.lane.b32.xlu1 %v14758_v38, %s14147_s22 }
 0x552   :  { %2083 = vrot.lane.b32.xlu1 %v14765_v39, %s14147_s22 }
 0x556   :  { %2274 = vrot.lane.b32.xlu1 %v14772_v40, %s14148_s4 }
 0x55a   :  { %2471 = vrot.lane.b32.xlu1 %v14758_v38, %s14149_s23 }
 0x55e   :  { %2481 = vrot.lane.b32.xlu1 %v14765_v39, %s14149_s23 }
 0x566   :  { %v14797_v43 = vpop.permute.xlu1 %937 }
 0x56a   :  { %v934_v44 = vpop.permute.xlu0 %933 }
 0x56c   :  { %v936_v47 = vpop.permute.xlu1 %935 }
 0x56d   :  { %v944_v48 = vsel %vm941_vm11, %v934_v44, %v936_v47  ;;  %v945_v49 = vsel %vm941_vm11, %v936_v47, %v14797_v43 }
 0x56e   :  { %v1291_v50 = vpop.permute.xlu0 %1290  ;;  %11545 = vmatprep.subr.msk.bf16.mxu0 %vm556_vm0, %v945_v49  ;;  %v957_v51 = vsel %vm556_vm0, %v944_v48, 0 }
 0x56f   :  { %1010 = vmatpush1.bf16.msra.mxu0 %v957_v51 }
 0x570   :  { %v14806_v53 = vpop.permute.xlu1 %1095 }
 0x572   :  { %v14808_v54 = vpop.permute.xlu0 %1495  ;;  %11546 = vmatmul.mubr.msk.bf16.vlgmr.msra.gmra.mrb[12].mxu0 %vm584_vm1, %v14804_v52 }
 0x573   :  { %1203 = vmatprep.mubr.bf16.mxu0 %v14660_v26 }
 0x574   :  { %v1098_v55 = vpop.permute.xlu1 %1097 }
 0x575   :  { %v1106_v57 = vsel %vm1103_vm12, %v14806_v53, %v1098_v55 }
 0x576   :  { %v14813_v56 = vpop.permute.xlu0 %1499  ;;  %v1119_v6 = vsel %vm556_vm0, %v1106_v57, 0 }
 0x578   :  { %v14817_v1 = vpop.permute.xlu1 %1099 }
 0x579   :  { %v1107_v2 = vsel %vm1103_vm12, %v1098_v55, %v14817_v1 }
 0x57a   :  { %v1881_v4 = vpop.permute.xlu0 %1880  ;;  %11551 = vmatprep.subr.msk.bf16.mxu0 %vm556_vm0, %v1107_v2 }
 0x57b   :  { %1172 = vmatpush1.bf16.msra.mxu0 %v1119_v6 }
 0x57c   :  { %v14825_v7 = vpop.permute.xlu1 %1288 }
 0x57d   :  { %v1299_v10 = vsel %vm1296_vm13, %v14825_v7, %v1291_v50 }
 0x57e   :  { %v14827_v9 = vpop.permute.xlu0 %2077  ;;  %11552 = vmatmul.mubr.msk.bf16.vlgmr.msra.gmra.mrb[12].mxu0 %vm584_vm1, %v14823_v18  ;;  %v1312_v15 = vsel %vm556_vm0, %v1299_v10, 0 }
 0x57f   :  { %1396 = vmatprep.mubr.bf16.mxu0 %v14660_v26 }
 0x580   :  { %v14834_v11 = vpop.permute.xlu1 %1292 }
 0x581   :  { %v1300_v13 = vsel %vm1296_vm13, %v1291_v50, %v14834_v11  ;;  %v14885_v50 = vld [vmem:[#allocation27 + $0x8] sm:$0x3] }
 0x582   :  { %v14838_v14 = vpop.permute.xlu0 %2081  ;;  %11558 = vmatprep.subr.msk.bf16.mxu0 %vm556_vm0, %v1300_v13 }
 0x583   :  { %1365 = vmatpush1.bf16.msra.mxu0 %v1312_v15 }
 0x584   :  { %v1498_v16 = vpop.permute.xlu1 %1497 }
 0x585   :  { %v1509_v17 = vsel %vm1505_vm14, %v1498_v16, %v14813_v56  ;;  %v1508_v20 = vsel %vm1505_vm14, %v14808_v54, %v1498_v16 }
 0x586   :  { %v14844_v19 = vpop.permute.xlu0 %2278  ;;  %11564 = vmatprep.subr.msk.bf16.mxu0 %vm556_vm0, %v1509_v17  ;;  %v1522_v27 = vsel %vm556_vm0, %v1508_v20, 0  ;;  %v14909_v20 = vld [vmem:[#allocation27 + $0xa] sm:$0x3] }
 0x588   :  { %v14851_v24 = vpop.permute.xlu1 %1878 }
 0x589   :  { %v1889_v49 = vsel %vm1886_vm15, %v14851_v24, %v1881_v4 }
 0x58a   :  { %v14853_v25 = vpop.permute.xlu0 %2475  ;;  %11559 = vmatmul.mubr.msk.bf16.vlgmr.msra.gmra.mrb[12].mxu0 %vm584_vm1, %v14849_v21  ;;  %v1902_v55 = vsel %vm556_vm0, %v1889_v49, 0 }
 0x58b   :  { %1575 = vmatpush1.bf16.msra.mxu0 %v1522_v27  ;;  %1606 = vmatprep.mubr.bf16.mxu0 %v14660_v26 }
 0x58c   :  { %11571 = vmatprep.subr.msk.bf16.mxu0 %vm556_vm0, %v14716_v30  ;;  %v14861_v28 = vpop.permute.xlu1 %1882  ;;  %v1703_v30 = vsel %vm556_vm0, %v14710_v29, 0 }
 0x58d   :  { %v1890_v47 = vsel %vm1886_vm15, %v1881_v4, %v14861_v28 }
 0x58e   :  { %v14863_v32 = vpop.permute.xlu0 %2479 }
 0x590   :  { %v2080_v35 = vpop.permute.xlu1 %2079 }
 0x591   :  { %v2089_v2 = vsel %vm2085_vm3, %v2080_v35, %v14838_v14 }
 0x592   :  { %v932_v36 = vpop.permute.xlu0 %931 }
 0x593   :  { %v943_v37 = vsel %vm941_vm11, %v932_v36, %v934_v44 }
 0x594   :  { %11543 = vmatprep.subr.msk.bf16.mxu1 %vm556_vm0, %v943_v37  ;;  %v14869_v42 = vpop.permute.xlu1 %2276 }
 0x596   :  { %11565 = vmatmul.mubr.msk.bf16.vlgmr.msra.gmra.mrb[12].mxu0 %vm584_vm1, %v14866_v41  ;;  %v1092_v13 = vpop.permute.xlu0 %1091 }
 0x597   :  { %1756 = vmatpush1.bf16.msra.mxu0 %v1703_v30  ;;  %1787 = vmatprep.mubr.bf16.mxu0 %v14660_v26 }
 0x598   :  { %11578 = vmatprep.subr.msk.bf16.mxu0 %vm556_vm0, %v1890_v47  ;;  %v14879_v44 = vpop.permute.xlu1 %2280  ;;  %v2287_v47 = vsel %vm16184_vm4, %v14869_v42, %v14844_v19 }
 0x59a   :  { %v1102_v27 = vpop.permute.xlu0 %1101 }
 0x59c   :  { %v14881_v48 = vpop.permute.xlu1 %2477 }
 0x59e   :  { %v1287_v37 = vpop.permute.xlu0 %1286 }
 0x59f   :  { %v1298_v49 = vsel %vm1296_vm13, %v1287_v37, %v14825_v7  ;;  %v2487_v7 = vsel %vm16183_vm5, %v14881_v48, %v14863_v32 }
 0x5a0   :  { %v930_v51 = vpop.permute.xlu1 %929 }
 0x5a1   :  { %v942_v29 = vsel %vm941_vm11, %v930_v51, %v932_v36  ;;  %v14934_v51 = vld [vmem:[#allocation27 + $0xc] sm:$0x3] }
 0x5a2   :  { %11572 = vmatmul.mubr.msk.bf16.vlgmr.msra.gmra.mrb[12].mxu0 %vm584_vm1, %v14885_v50  ;;  %v951_v57 = vsel %vm556_vm0, %v942_v29, 0  ;;  %v2300_v29 = vsel %vm556_vm0, %v2287_v47, 0 }
 0x5a3   :  { %1955 = vmatpush1.bf16.msra.mxu0 %v1902_v55  ;;  %969 = vmatpush1.bf16.msra.mxu1 %v951_v57 }
 0x5a4   :  { %11585 = vmatprep.subr.msk.bf16.mxu0 %vm556_vm0, %v2089_v2  ;;  %v940_v4 = vpop.permute.xlu1 %939  ;;  %1986 = vmatprep.mubr.bf16.mxu0 %v14660_v26  ;;  %v2486_v2 = vsel %vm16183_vm5, %v14853_v25, %v14881_v48 }
 0x5a5   :  { %v946_v6 = vsel %vm941_vm11, %v14797_v43, %v940_v4  ;;  %11547 = vmatprep.subr.msk.bf16.mxu1 %vm556_vm0, %v940_v4  ;;  %v2088_v43 = vsel %vm2085_vm3, %v14827_v9, %v2080_v35  ;;  %v2288_v35 = vsel %vm16184_vm4, %v14844_v19, %v14879_v44 }
 0x5a6   :  { %11544 = vmatmul.mubr.msk.bf16.vlgmr.msra.gmra.mrb[0].mxu1 %vm584_vm1, %v14804_v52  ;;  %v963_v10 = vsel %vm556_vm0, %v946_v6, 0  ;;  %v14957_v6 = vld [vmem:[#allocation27 + $0xe] sm:$0x3] }
 0x5a7   :  { %1051 = vmatpush1.bf16.msra.mxu1 %v963_v10  ;;  %1082 = vmatprep.mubr.bf16.mxu1 %v14660_v26 }
 0x5a8   :  { %v1094_v15 = vpop.permute.xlu1 %1093 }
 0x5a9   :  { %v1105_v16 = vsel %vm1103_vm12, %v1094_v15, %v14806_v53  ;;  %v1104_v17 = vsel %vm1103_vm12, %v1092_v13, %v1094_v15  ;;  %v2101_v53 = vsel %vm556_vm0, %v2088_v43, 0  ;;  %v12960_v13 = vld [vmem:[#allocation14 + $0x40] sm:$0xff]   ;;  %v2499_v15 = vsel %vm556_vm0, %v2486_v2, 0 }
 0x5aa   :  { %11549 = vmatprep.subr.msk.bf16.mxu1 %vm556_vm0, %v1105_v16  ;;  %v1113_v36 = vsel %vm556_vm0, %v1104_v17, 0 }
 0x5ae   :  { %11548 = vmatmul.mubr.msk.bf16.vlgmr.msra.gmra.mrb[4].mxu1 %vm584_vm1, %v14804_v52  ;;  %11579 = vmatmul.mubr.msk.bf16.vlgmr.msra.gmra.mrb[12].mxu0 %vm584_vm1, %v14909_v20  ;;  %v1108_v52 = vsel %vm1103_vm12, %v14817_v1, %v1102_v27  ;;  %v1285_v1 = vpop.permute.xlu1 %1284 }
 0x5af   :  { %1131 = vmatpush1.bf16.msra.mxu1 %v1113_v36  ;;  %2154 = vmatpush1.bf16.msra.mxu0 %v2101_v53  ;;  %v1125_v30 = vsel %vm556_vm0, %v1108_v52, 0  ;;  %v1297_v55 = vsel %vm1296_vm13, %v1285_v1, %v1287_v37  ;;  %v12961_v53 = vld [vmem:[#allocation14] sm:$0xff]   ;;  %v14981_v52 = vpack.c.bf16 %v14665_v59, %v14665_v59  ;;  %v12963_v37 = vld [vmem:[#allocation14 + $0x8] sm:$0xff]   ;;  %v12965_v59 = vld [vmem:[#allocation14 + $0x10] sm:$0xff]  }
 0x5b0   :  { %11553 = vmatprep.subr.msk.bf16.mxu1 %vm556_vm0, %v1102_v27  ;;  %11592 = vmatprep.subr.msk.bf16.mxu0 %vm556_vm0, %v2288_v35  ;;  %v1306_v19 = vsel %vm556_vm0, %v1297_v55, 0  ;;  %v12962_v35 = vld [vmem:[#allocation14 + $0x48] sm:$0xff]   ;;  %v12968_v1 = vld [vmem:[#allocation14 + $0x60] sm:$0xff]  }
 0x5b1   :  { %1162 = vmatprep.mubr.bf16.mxu1 %v14660_v26  ;;  %2185 = vmatprep.mubr.bf16.mxu0 %v14660_v26  ;;  %v12969_v55 = vld [vmem:[#allocation14 + $0x20] sm:$0xff]  }
 0x5b2   :  { %v1295_v57 = vpop.permute.xlu1 %1294 }
 0x5b3   :  { %v1301_v4 = vsel %vm1296_vm13, %v14834_v11, %v1295_v57  ;;  %v1492_v11 = vpop.permute.xlu0 %1491 }
 0x5b6   :  { %11550 = vmatmul.mubr.msk.bf16.vlgmr.msra.gmra.mrb[0].mxu1 %vm584_vm1, %v14823_v18  ;;  %v1494_v10 = vpop.permute.xlu1 %1493 }
 0x5b7   :  { %1213 = vmatpush1.bf16.msra.mxu1 %v1125_v30  ;;  %1244 = vmatprep.mubr.bf16.mxu1 %v14660_v26  ;;  %v1507_v48 = vsel %vm1505_vm14, %v1494_v10, %v14808_v54  ;;  %v1506_v16 = vsel %vm1505_vm14, %v1492_v11, %v1494_v10  ;;  %v1502_v17 = vpop.permute.xlu0 %1501  ;;  %v14975_v54 = vld [vmem:[#allocation27 + $0x10] sm:$0x3]  ;;  %v12964_v30 = vld [vmem:[#allocation14 + $0x50] sm:$0xff]   ;;  %v12978_v11 = vld [vmem:[#allocation14 + $0xc8] sm:$0xff]  }
 0x5b8   :  { %11556 = vmatprep.subr.msk.bf16.mxu1 %vm556_vm0, %v1298_v49  ;;  %v1516_v27 = vsel %vm556_vm0, %v1506_v16, 0  ;;  %v12966_v49 = vld [vmem:[#allocation14 + $0x58] sm:$0xff]   ;;  %v15020_v16 = vpack.c.bf16 %v14669_v61, %v14669_v61 }
 0x5ba   :  { %11586 = vmatmul.mubr.msk.bf16.vlgmr.msra.gmra.mrb[12].mxu0 %vm584_vm1, %v14934_v51  ;;  %v1504_v43 = vpop.permute.xlu1 %1503 }
 0x5bb   :  { %2353 = vmatpush1.bf16.msra.mxu0 %v2300_v29  ;;  %2384 = vmatprep.mubr.bf16.mxu0 %v14660_v26  ;;  %v1511_v36 = vsel %vm1505_vm14, %v1502_v17, %v1504_v43  ;;  %v1697_v29 = vsel %vm556_vm0, %v14758_v38, 0  ;;  %v1709_v38 = vsel %vm556_vm0, %v14724_v31, 0  ;;  %v1875_v2 = vpop.permute.xlu0 %1874  ;;  %v12979_v43 = vld [vmem:[#allocation14 + $0x88] sm:$0xff]  }
 0x5bc   :  { %11599 = vmatprep.subr.msk.bf16.mxu0 %vm556_vm0, %v2487_v7  ;;  %v12971_v7 = vld [vmem:[#allocation14 + $0x28] sm:$0xff]  }
 0x5be   :  { %11554 = vmatmul.mubr.msk.bf16.vlgmr.msra.gmra.mrb[4].mxu1 %vm584_vm1, %v14823_v18  ;;  %v1318_v18 = vsel %vm556_vm0, %v1301_v4, 0  ;;  %v12974_v4 = vld [vmem:[#allocation14 + $0x78] sm:$0xff]  }
 0x5bf   :  { %1324 = vmatpush1.bf16.msra.mxu1 %v1306_v19  ;;  %1355 = vmatprep.mubr.bf16.mxu1 %v14660_v26  ;;  %v1877_v19 = vpop.permute.xlu1 %1876  ;;  %v1885_v31 = vpop.permute.xlu0 %1884 }
 0x5c0   :  { %11560 = vmatprep.subr.msk.bf16.mxu1 %vm556_vm0, %v1295_v57  ;;  %v12972_v57 = vld [vmem:[#allocation14 + $0x70] sm:$0xff]   ;;  %v1887_v10 = vsel %vm1886_vm15, %v1875_v2, %v1877_v19  ;;  %v15061_v2 = vpack.c.bf16 %v14676_v0, %v14676_v0 }
 0x5c6   :  { %11557 = vmatmul.mubr.msk.bf16.vlgmr.msra.gmra.mrb[0].mxu1 %vm584_vm1, %v14849_v21  ;;  %11593 = vmatmul.mubr.msk.bf16.vlgmr.msra.gmra.mrb[12].mxu0 %vm584_vm1, %v14957_v6 }
 0x5c7   :  { %1406 = vmatpush1.bf16.msra.mxu1 %v1318_v18  ;;  %2552 = vmatpush1.bf16.msra.mxu0 %v2499_v15  ;;  %v12976_v18 = vld [vmem:[#allocation14 + $0xc0] sm:$0xff]  }
 0x5c8   :  { %11562 = vmatprep.subr.msk.bf16.mxu1 %vm556_vm0, %v1507_v48  ;;  %1437 = vmatprep.mubr.bf16.mxu1 %v14660_v26  ;;  %v12977_v15 = vld [vmem:[#allocation14 + $0x80] sm:$0xff]   ;;  %v15016_v48 = vpack.c.bf16 %v14663_v58, %v14663_v58  ;;  %v12980_v58 = vld [vmem:[#allocation14 + $0xd0] sm:$0xff]  }
 0x5c9   :  { %2583 = vmatprep.mubr.bf16.mxu0 %v14660_v26  ;;  %12082 = vmatprep.subr.bf16.mxu0 %v12960_v13  ;;  %v12975_v13 = vld [vmem:[#allocation14 + $0x38] sm:$0xff]  }
 0x5ce   :  { %11561 = vmatmul.mubr.msk.bf16.vlgmr.msra.gmra.mrb[4].mxu1 %vm584_vm1, %v14849_v21  ;;  %v1510_v21 = vsel %vm1505_vm14, %v14813_v56, %v1502_v17  ;;  %v12967_v56 = vld [vmem:[#allocation14 + $0x18] sm:$0xff]   ;;  %v2076_v17 = vpop.permute.xlu0 %2075 }
 0x5cf   :  { %1534 = vmatpush1.bf16.msra.mxu1 %v1516_v27  ;;  %1565 = vmatprep.mubr.bf16.mxu1 %v14660_v26  ;;  %v1528_v47 = vsel %vm556_vm0, %v1510_v21, 0  ;;  %v2087_v27 = vsel %vm2085_vm3, %v2076_v17, %v14827_v9  ;;  %v12983_v21 = vld [vmem:[#allocation14 + $0x98] sm:$0xff]   ;;  %v12985_v9 = vld [vmem:[#allocation14 + $0xa0] sm:$0xff]  }
 0x5d0   :  { %11566 = vmatprep.subr.msk.bf16.mxu1 %vm556_vm0, %v1511_v36  ;;  %v12981_v36 = vld [vmem:[#allocation14 + $0x90] sm:$0xff]  }
 0x5d2   :  { %11600 = vmatmul.mubr.msk.bf16.vlgmr.msra.gmra.mrb[12].mxu0 %vm584_vm1, %v14975_v54 }
 0x5d3   :  { %12083 = vmatpush3.bf16.msra.mxu0 %v12961_v53  ;;  %3088 = vmatprep.mubr.bf16.mxu0 %v14981_v52  ;;  %v2074_v53 = vpop.permute.xlu1 %2073 }
 0x5d4   :  { %12084 = vmatprep.subr.bf16.mxu0 %v12962_v35  ;;  %v2086_v35 = vsel %vm2085_vm3, %v2074_v53, %v2076_v17  ;;  %v12999_v17 = vld [vmem:[#allocation14 + $0x138] sm:$0xff]  }
 0x5d6   :  { %11563 = vmatmul.mubr.msk.bf16.vlgmr.msra.gmra.mrb[0].mxu1 %vm584_vm1, %v14866_v41 }
 0x5d7   :  { %1616 = vmatpush1.bf16.msra.mxu1 %v1528_v47  ;;  %12085 = vmatpush3.bf16.msra.mxu0 %v12963_v37  ;;  %v12984_v37 = vld [vmem:[#allocation14 + $0xe0] sm:$0xff]   ;;  %v2084_v47 = vpop.permute.xlu1 %2083 }
 0x5d8   :  { %11569 = vmatprep.subr.msk.bf16.mxu1 %vm556_vm0, %v14772_v40  ;;  %12086 = vmatprep.subr.bf16.mxu0 %v12964_v30  ;;  %v12970_v40 = vld [vmem:[#allocation14 + $0x68] sm:$0xff]   ;;  %v2095_v30 = vsel %vm556_vm0, %v2086_v35, 0 }
 0x5d9   :  { %1647 = vmatprep.mubr.bf16.mxu1 %v14660_v26 }
 0x5db   :  { %12087 = vmatpush3.bf16.msra.mxu0 %v12965_v59  ;;  %v12986_v59 = vld [vmem:[#allocation14 + $0xe8] sm:$0xff]  }
 0x5dc   :  { %12088 = vmatprep.subr.bf16.mxu0 %v12966_v49  ;;  %v2090_v49 = vsel %vm2085_vm3, %v14838_v14, %v2084_v47  ;;  %v12990_v14 = vld [vmem:[#allocation14 + $0xf8] sm:$0xff]  }
 0x5de   :  { %11567 = vmatmul.mubr.msk.bf16.vlgmr.msra.gmra.mrb[4].mxu1 %vm584_vm1, %v14866_v41  ;;  %v12973_v41 = vld [vmem:[#allocation14 + $0x30] sm:$0xff]  }
 0x5df   :  { %1715 = vmatpush1.bf16.msra.mxu1 %v1697_v29  ;;  %12089 = vmatpush3.bf16.msra.mxu0 %v12967_v56  ;;  %v12987_v56 = vld [vmem:[#allocation14 + $0xa8] sm:$0xff]   ;;  %v12988_v29 = vld [vmem:[#allocation14 + $0xf0] sm:$0xff]  }
 0x5e0   :  { %11573 = vmatprep.subr.msk.bf16.mxu1 %vm556_vm0, %v14765_v39  ;;  %12090 = vmatprep.subr.bf16.mxu0 %v12968_v1  ;;  %v1888_v39 = vsel %vm1886_vm15, %v1877_v19, %v14851_v24  ;;  %v1896_v24 = vsel %vm556_vm0, %v1887_v10, 0  ;;  %v2275_v1 = vpop.permute.xlu1 %2274 }
 0x5e1   :  { %1746 = vmatprep.mubr.bf16.mxu1 %v14660_v26 }
 0x5e3   :  { %12091 = vmatpush3.bf16.msra.mxu0 %v12969_v55  ;;  %v2286_v55 = vsel %vm16184_vm4, %v2275_v1, %v14869_v42  ;;  %v12992_v42 = vld [vmem:[#allocation14 + $0x100] sm:$0xff]  }
 0x5e4   :  { %12092 = vmatprep.subr.bf16.mxu0 %v12970_v40  ;;  %v12989_v40 = vld [vmem:[#allocation14 + $0xb0] sm:$0xff]  }
 0x5e6   :  { %11570 = vmatmul.mubr.msk.bf16.vlgmr.msra.gmra.mrb[0].mxu1 %vm584_vm1, %v14885_v50 }
 0x5e7   :  { %1797 = vmatpush1.bf16.msra.mxu1 %v1709_v38  ;;  %12093 = vmatpush3.bf16.msra.mxu0 %v12971_v7  ;;  %v2273_v7 = vpop.permute.xlu0 %2272 }
 0x5e8   :  { %11576 = vmatprep.subr.msk.bf16.mxu1 %vm556_vm0, %v1888_v39  ;;  %12094 = vmatprep.subr.bf16.mxu0 %v12972_v57  ;;  %v2285_v19 = vsel %vm16184_vm4, %v2273_v7, %v2275_v1  ;;  %v12991_v57 = vld [vmem:[#allocation14 + $0xb8] sm:$0xff]  }
 0x5e9   :  { %1828 = vmatprep.mubr.bf16.mxu1 %v14660_v26  ;;  %v2294_v39 = vsel %vm556_vm0, %v2285_v19, 0 }
 0x5eb   :  { %12095 = vmatpush3.bf16.msra.mxu0 %v12973_v41  ;;  %v2283_v38 = vpop.permute.xlu0 %2282  ;;  %v15056_v41 = vpack.c.bf16 %v14667_v60, %v14667_v60 }
 0x5ec   :  { %12096 = vmatprep.subr.bf16.mxu0 %v12974_v4  ;;  %v12993_v4 = vld [vmem:[#allocation14 + $0x108] sm:$0xff]  }
 0x5ee   :  { %11574 = vmatmul.mubr.msk.bf16.vlgmr.msra.gmra.mrb[4].mxu1 %vm584_vm1, %v14885_v50  ;;  %v1891_v50 = vsel %vm1886_vm15, %v14861_v28, %v1885_v31  ;;  %v12982_v28 = vld [vmem:[#allocation14 + $0xd8] sm:$0xff]  }
 0x5ef   :  { %1914 = vmatpush1.bf16.msra.mxu1 %v1896_v24  ;;  %12097 = vmatpush3.bf16.msra.mxu0 %v12975_v13  ;;  %v1908_v61 = vsel %vm556_vm0, %v1891_v50, 0  ;;  %v2474_v60 = vpop.permute.xlu0 %2473  ;;  %v12994_v13 = vld [vmem:[#allocation14 + $0x110] sm:$0xff]   ;;  %v12997_v50 = vld [vmem:[#allocation14 + $0x128] sm:$0xff]  }
 0x5f0   :  { %11580 = vmatprep.subr.msk.bf16.mxu1 %vm556_vm0, %v1885_v31  ;;  %12104 = vmatprep.subr.bf16.mxu0 %v12976_v18  ;;  %v2485_v10 = vsel %vm16183_vm5, %v2474_v60, %v14853_v25  ;;  %v12995_v31 = vld [vmem:[#allocation14 + $0x118] sm:$0xff]  }
 0x5f1   :  { %1945 = vmatprep.mubr.bf16.mxu1 %v14660_v26 }
 0x5f2   :  { %3089 = vmatmul.mubr.bf16.vlgmr.msra.gmra.mrb[16].mxu0 %v15016_v48 }
 0x5f3   :  { %12105 = vmatpush3.bf16.msra.mxu0 %v12977_v15  ;;  %3128 = vmatprep.mubr.bf16.mxu0 %v15020_v16  ;;  %v12996_v15 = vld [vmem:[#allocation14 + $0x120] sm:$0xff]  }
 0x5f4   :  { %12106 = vmatprep.subr.bf16.mxu0 %v12978_v11 }
 0x5f6   :  { %11577 = vmatmul.mubr.msk.bf16.vlgmr.msra.gmra.mrb[0].mxu1 %vm584_vm1, %v14909_v20 }
 0x5f7   :  { %1996 = vmatpush1.bf16.msra.mxu1 %v1908_v61  ;;  %12107 = vmatpush3.bf16.msra.mxu0 %v12979_v43  ;;  %v12998_v43 = vld [vmem:[#allocation14 + $0x130] sm:$0xff]   ;;  %v15101_v61 = vpack.c.bf16 %v14674_v63, %v14674_v63 }
 0x5f8   :  { %11583 = vmatprep.subr.msk.bf16.mxu1 %vm556_vm0, %v2087_v27  ;;  %12108 = vmatprep.subr.bf16.mxu0 %v12980_v58 }
 0x5f9   :  { %2027 = vmatprep.mubr.bf16.mxu1 %v14660_v26 }
 0x5fb   :  { %12109 = vmatpush3.bf16.msra.mxu0 %v12981_v36 }
 0x5fc   :  { %12110 = vmatprep.subr.bf16.mxu0 %v12982_v28 }
 0x5fe   :  { %11581 = vmatmul.mubr.msk.bf16.vlgmr.msra.gmra.mrb[4].mxu1 %vm584_vm1, %v14909_v20  ;;  %v2107_v20 = vsel %vm556_vm0, %v2090_v49, 0 }
 0x5ff   :  { %2113 = vmatpush1.bf16.msra.mxu1 %v2095_v30  ;;  %12111 = vmatpush3.bf16.msra.mxu0 %v12983_v21 }
 0x600   :  { %11587 = vmatprep.subr.msk.bf16.mxu1 %vm556_vm0, %v2084_v47  ;;  %12112 = vmatprep.subr.bf16.mxu0 %v12984_v37 }
 0x601   :  { %2144 = vmatprep.mubr.bf16.mxu1 %v14660_v26 }
 0x603   :  { %12113 = vmatpush3.bf16.msra.mxu0 %v12985_v9 }
 0x604   :  { %12114 = vmatprep.subr.bf16.mxu0 %v12986_v59 }
 0x606   :  { %11584 = vmatmul.mubr.msk.bf16.vlgmr.msra.gmra.mrb[0].mxu1 %vm584_vm1, %v14934_v51 }
 0x607   :  { %2195 = vmatpush1.bf16.msra.mxu1 %v2107_v20  ;;  %12115 = vmatpush3.bf16.msra.mxu0 %v12987_v56 }
 0x608   :  { %11590 = vmatprep.subr.msk.bf16.mxu1 %vm556_vm0, %v2286_v55  ;;  %12116 = vmatprep.subr.bf16.mxu0 %v12988_v29 }
 0x609   :  { %2226 = vmatprep.mubr.bf16.mxu1 %v14660_v26 }
 0x60b   :  { %12117 = vmatpush3.bf16.msra.mxu0 %v12989_v40 }
 0x60c   :  { %12118 = vmatprep.subr.bf16.mxu0 %v12990_v14 }
 0x60e   :  { %11588 = vmatmul.mubr.msk.bf16.vlgmr.msra.gmra.mrb[4].mxu1 %vm584_vm1, %v14934_v51  ;;  %v2289_v51 = vsel %vm16184_vm4, %v14879_v44, %v2283_v38  ;;  %v2472_v44 = vpop.permute.xlu1 %2471  ;;  %vm4607_vm4 = vcmask 56320  }
 0x60f   :  { %2312 = vmatpush1.bf16.msra.mxu1 %v2294_v39  ;;  %12119 = vmatpush3.bf16.msra.mxu0 %v12991_v57  ;;  %v2306_v0 = vsel %vm556_vm0, %v2289_v51, 0  ;;  %v2484_v18 = vsel %vm16183_vm5, %v2472_v44, %v2474_v60 }
 0x610   :  { %11594 = vmatprep.subr.msk.bf16.mxu1 %vm556_vm0, %v2283_v38  ;;  %3136 = vmatprep.subr.bf16.mxu0 %v14660_v26  ;;  %v2493_v24 = vsel %vm556_vm0, %v2484_v18, 0 }
 0x611   :  { %2343 = vmatprep.mubr.bf16.mxu1 %v14660_v26 }
 0x612   :  { %3129 = vmatmul.mubr.bf16.vlgmr.msra.gmra.mrb[20].mxu0 %v15056_v41  ;;  %v2482_v25 = vpop.permute.xlu1 %2481 }
 0x613   :  { %3137 = vmatpush1.bf16.msra.mxu0 %v12992_v42  ;;  %11644 = vmatprep.mubr.msk.bf16.mxu0 %vm773_vm2, %v15061_v2  ;;  %v2488_v11 = vsel %vm16183_vm5, %v14863_v32, %v2482_v25  ;;  %v13000_v32 = vld [vmem:[#allocation14 + $0x140] ss:$0 sps:$4 sm:$0xff]   ;;  %vm3248_vm5 = vcmask 48128  }
 0x614   :  { %3138 = vmatprep.subr.bf16.mxu0 %v14660_v26  ;;  %v3054_v58 = vsel %vm2648_vm6, %v13000_v32, 0 }
 0x616   :  { %11591 = vmatmul.mubr.msk.bf16.vlgmr.msra.gmra.mrb[0].mxu1 %vm584_vm1, %v14957_v6 }
 0x617   :  { %2394 = vmatpush1.bf16.msra.mxu1 %v2306_v0  ;;  %3139 = vmatpush1.bf16.msra.mxu0 %v12993_v4 }
 0x618   :  { %11597 = vmatprep.subr.msk.bf16.mxu1 %vm556_vm0, %v2485_v10  ;;  %3140 = vmatprep.subr.bf16.mxu0 %v14660_v26 }
 0x619   :  { %2425 = vmatprep.mubr.bf16.mxu1 %v14660_v26 }
 0x61b   :  { %3141 = vmatpush1.bf16.msra.mxu0 %v12994_v13 }
 0x61c   :  { %3142 = vmatprep.subr.bf16.mxu0 %v14660_v26 }
 0x61e   :  { %11595 = vmatmul.mubr.msk.bf16.vlgmr.msra.gmra.mrb[4].mxu1 %vm584_vm1, %v14957_v6  ;;  %v2505_v6 = vsel %vm556_vm0, %v2488_v11, 0 }
 0x61f   :  { %2511 = vmatpush1.bf16.msra.mxu1 %v2493_v24  ;;  %3143 = vmatpush1.bf16.msra.mxu0 %v12995_v31 }
 0x620   :  { %11601 = vmatprep.subr.msk.bf16.mxu1 %vm556_vm0, %v2482_v25  ;;  %3144 = vmatprep.subr.bf16.mxu0 %v14660_v26 }
 0x621   :  { %2542 = vmatprep.mubr.bf16.mxu1 %v14660_v26 }
 0x623   :  { %3145 = vmatpush1.bf16.msra.mxu0 %v12996_v15 }
 0x624   :  { %3146 = vmatprep.subr.bf16.mxu0 %v14660_v26 }
 0x626   :  { %11598 = vmatmul.mubr.msk.bf16.vlgmr.msra.gmra.mrb[0].mxu1 %vm584_vm1, %v14975_v54 }
 0x627   :  { %2593 = vmatpush1.bf16.msra.mxu1 %v2505_v6  ;;  %3147 = vmatpush1.bf16.msra.mxu0 %v12997_v50 }
 0x628   :  { %3148 = vmatprep.subr.bf16.mxu0 %v14660_v26  ;;  %2624 = vmatprep.mubr.bf16.mxu1 %v14660_v26 }
 0x62b   :  { %3149 = vmatpush1.bf16.msra.mxu0 %v12998_v43 }
 0x62c   :  { %3150 = vmatprep.subr.bf16.mxu0 %v14660_v26 }
 0x62e   :  { %11602 = vmatmul.mubr.msk.bf16.vlgmr.msra.gmra.mrb[4].mxu1 %vm584_vm1, %v14975_v54 }
 0x62f   :  { %3151 = vmatpush1.bf16.msra.mxu0 %v12999_v17 }
 0x630   :  { %3152 = vmatprep.subr.bf16.mxu0 %v14660_v26 }
 0x633   :  { %3153 = vmatpush1.bf16.msra.mxu0 %v3054_v58 }
 0x636   :  { %3169 = vmatmul.mubr.bf16.vlgmr.msra.gmra.mrb[24].mxu0 %v15101_v61 }
 0x637   :  { %3934 = vmatprep.mubr.bf16.mxu0 %v14660_v26 }
 0x6a5   :  { %v15105_v27 = vpop.f32.mrb[12].mxu0 }
 0x6a6   :  { %v15107_v36 = vpop.f32.mrb[13].mxu0  ;;  %v2644_v55 = vmul.f32 %v15105_v27, %v14637_v33 }
 0x6a7   :  { %v2589_v53 = vpop.f32.mrb[14].mxu0  ;;  %v2645_v57 = vmul.f32 %v15107_v36, %v14639_v34 }
 0x6a8   :  { %v2590_v54 = vpop.f32.mrb[15].mxu0  ;;  %v2652_v42 = vsel %vm2648_vm6, %v2644_v55, 0.0  ;;  %v14150_v53 = vmov 0.0  }
 0x6a9   :  { %v2654_v4 = vsel %vm2648_vm6, %v2645_v57, 0.0  ;;  %12306 = vmatprep.subr.bf16.mxu1 %v14150_v53  ;;  %12308 = vmatprep.mubr.msk.bf16.mxu1 %vm14151_vm9, %v14150_v53 }
 0x6c5   :  { %v12098_v28 = vpop.f32.mrb[16].mxu0 }
 0x6c6   :  { %v12099_v35 = vpop.f32.mrb[17].mxu0 }
 0x6c7   :  { %v12100_v21 = vadd.f32 %v12099_v35, %v12098_v28  ;;  %v12101_v37 = vpop.f32.mrb[18].mxu0 }
 0x6c8   :  { %v12102_v30 = vpop.f32.mrb[19].mxu0 }
 0x6e5   :  { %v12120_v47 = vpop.f32.mrb[20].mxu0 }
 0x6e6   :  { %v12121_v9 = vpop.f32.mrb[21].mxu0 }
 0x6e7   :  { %v12122_v59 = vadd.f32 %v12121_v9, %v12120_v47  ;;  %v12123_v63 = vpop.f32.mrb[22].mxu0 }
 0x6e8   :  { %v12124_v49 = vpop.f32.mrb[23].mxu0  ;;  %v3182_v63 = vld [vmem:[#allocation29 + $0x2] sm:$0x3] }
 0x6e9   :  { %v3131_v56 = vadd.f32 %v12122_v59, %v12100_v21 }
 0x6f9   :  { %v15109_v1 = vpop.f32.mrb[0].mxu1 }
 0x6fa   :  { %v2642_v29 = vmul.f32 %v15109_v1, %v14629_v22  ;;  %v15113_v20 = vpop.f32.mrb[1].mxu1 }
 0x6fb   :  { %v2643_v40 = vmul.f32 %v15113_v20, %v14631_v23  ;;  %v2548_v7 = vpop.f32.mrb[2].mxu1 }
 0x6fc   :  { %v2649_v14 = vsel %vm2648_vm6, %v2642_v29, 0.0  ;;  %v2549_v19 = vpop.f32.mrb[3].mxu1 }
 0x6fd   :  { %v2650_v38 = vsel %vm2648_vm6, %v2643_v40, 0.0  ;;  %v3180_v19 = vld [vmem:[#allocation29] sm:$0x3] }
 0x6fe   :  { %v2651_v39 = vadd.f32 %v2650_v38, %v2649_v14 }
 0x700   :  { %v2653_v51 = vadd.f32 %v2652_v42, %v2651_v39 }
 0x701   :  { %v15125_v60 = vpop.f32.mrb[4].mxu1 }
 0x702   :  { %v2646_v0 = vmul.f32 %v15125_v60, %v14645_v45  ;;  %v15129_v10 = vpop.f32.mrb[5].mxu1  ;;  %v2655_v13 = vadd.f32 %v2654_v4, %v2653_v51  ;;  %v3298_v51 = vld [vmem:[#allocation29 + $0x4] sm:$0x3] }
 0x703   :  { %v2647_v44 = vmul.f32 %v15129_v10, %v14647_v46  ;;  %v2630_v18 = vpop.f32.mrb[6].mxu1 }
 0x704   :  { %v2656_v31 = vsel %vm2648_vm6, %v2646_v0, 0.0  ;;  %v2631_v24 = vpop.f32.mrb[7].mxu1  ;;  %v3363_v0 = vld [vmem:[#allocation29 + $0x6] sm:$0x3]  ;;  %v3427_v18 = vld [vmem:[#allocation29 + $0x8] sm:$0x3] }
 0x705   :  { %v2657_v25 = vadd.f32 %v2656_v31, %v2655_v13  ;;  %v2659_v15 = vsel %vm2658_vm7, %v2647_v44, 0.0 }
 0x707   :  { %v15135_v11 = vadd.f32 %v2659_v15, %v2657_v25  ;;  %v3476_v25 = vld [vmem:[#allocation29 + $0xa] sm:$0x3] }
 0x709   :  { %v3170_v50 = vpop.f32.mrb[24].mxu0 }
 0x70a   :  { %v3171_v6 = vadd.f32 %v3170_v50, %v3131_v56  ;;  %v3172_v43 = vpop.f32.mrb[25].mxu0 }
 0x70b   :  { %v3173_v17 = vpop.f32.mrb[26].mxu0 }
 0x70c   :  { %v3176_v32 = vpack.c.bf16 %v3171_v6, %v3171_v6  ;;  %v3174_v58 = vpop.f32.mrb[27].mxu0  ;;  %v3536_v6 = vld [vmem:[#allocation29 + $0xc] sm:$0x3] }
 0x70d   :  { %v13001_v58 = vld [vmem:[#allocation15 + $0x40] sm:$0xff]  }
 0x70e   :  { %3178 = vst.msk [vmem:[#allocation2 + $0x2] sm:$0x3] %vm3177_vm8, %v3176_v32  ;;  %vm3196_vm8 = vcmask 39936   ;;  %v3596_v32 = vld [vmem:[#allocation29 + $0xe] sm:$0x3] }
 0x715   :  { %v11645_v54 = vld.sshfl [vmem:[#allocation2] sm:$0x33 pattern:$0x76325410] }
 0x716   :  { %3192 = vrot.lane.b32.xlu0 %v11645_v54, %s14152_s17  ;;  %v3191_v28 = vcombine.high %v11645_v54, %v11645_v54  ;;  %v3425_v35 = vld [vmem:[#allocation2 + $0x2] sm:$0x3] }
 0x717   :  { %v3484_v21 = vrot.slane %v3425_v35, %v14672_v62  ;;  %v11654_v37 = vld.sshfl [vmem:[#allocation2 + $0x2] sm:$0x3 pattern:$0x76325410]  ;;  %v3432_v13 = vsel %vm556_vm0, %v3425_v35, 0  ;;  %v13002_v35 = vld [vmem:[#allocation15] sm:$0xff]  }
 0x718   :  { %3194 = vrot.lane.b32.xlu1 %v3191_v28, %s14152_s17 }
 0x71a   :  { %3244 = vrot.lane.b32.xlu0 %v11645_v54, %s14153_s0 }
 0x71c   :  { %3246 = vrot.lane.b32.xlu1 %v3191_v28, %s14153_s0 }
 0x71e   :  { %3308 = vrot.lane.b32.xlu0 %v11645_v54, %s14106_s25 }
 0x720   :  { %3310 = vrot.lane.b32.xlu1 %v3191_v28, %s14106_s25  ;;  %s14157_s25 = smov 7  }
 0x722   :  { %3373 = vrot.lane.b32.xlu0 %v11645_v54, %s14145_s20 }
 0x724   :  { %3375 = vrot.lane.b32.xlu1 %v3191_v28, %s14145_s20  ;;  %v3656_v28 = vld [vmem:[#allocation29 + $0x10] sm:$0x3] }
 0x726   :  { %3485 = vrot.lane.b32.xlu0 %v3484_v21, %s14146_s29  ;;  %v13003_v21 = vld [vmem:[#allocation15 + $0x48] sm:$0xff]  }
 0x728   :  { %3545 = vrot.lane.b32.xlu1 %v11654_v37, %s14154_s7 }
 0x72a   :  { %3605 = vrot.lane.b32.xlu0 %v11654_v37, %s14155_s6 }
 0x72c   :  { %3665 = vrot.lane.b32.xlu1 %v11654_v37, %s14156_s26  ;;  %v13004_v37 = vld [vmem:[#allocation15 + $0x8] sm:$0xff]  }
 0x788   :  { %v3193_v30 = vpop.permute.xlu0 %3192 }
 0x78a   :  { %v3195_v47 = vpop.permute.xlu1 %3194 }
 0x78b   :  { %v3197_v9 = vsel %vm3196_vm8, %v3193_v30, %v3195_v47  ;;  %v13005_v30 = vld [vmem:[#allocation15 + $0x50] sm:$0xff]   ;;  %vm3883_vm8 = vcmask 1040384  }
 0x78c   :  { %v3202_v59 = vsel %vm556_vm0, %v3197_v9, 0  ;;  %v3245_v49 = vpop.permute.xlu0 %3244  ;;  %v13006_v47 = vld [vmem:[#allocation15 + $0x10] sm:$0xff]   ;;  %v13007_v9 = vld [vmem:[#allocation15 + $0x58] sm:$0xff]  }
 0x78d   :  { %12307 = vmatpush3.bf16.msra.mxu1 %v3202_v59  ;;  %v13008_v59 = vld [vmem:[#allocation15 + $0x18] sm:$0xff]  }
 0x78e   :  { %v3247_v56 = vpop.permute.xlu1 %3246  ;;  %12312 = vmatprep.subr.bf16.mxu1 %v14150_v53 }
 0x78f   :  { %v3249_v29 = vsel %vm3248_vm5, %v3245_v49, %v3247_v56  ;;  %v13010_v49 = vld [vmem:[#allocation15 + $0x20] sm:$0xff]   ;;  %v13011_v56 = vld [vmem:[#allocation15 + $0x68] sm:$0xff]   ;;  %vm3725_vm5 = vcmask 404480  }
 0x790   :  { %v3254_v55 = vsel %vm556_vm0, %v3249_v29, 0  ;;  %12309 = vmatmul.mubr.msk.bf16.vlgmr.msra.gmra.mrb[8].mxu1 %vm584_vm1, %v3182_v63  ;;  %v3309_v7 = vpop.permute.xlu0 %3308  ;;  %v13009_v63 = vld [vmem:[#allocation15 + $0x60] sm:$0xff]   ;;  %v13012_v29 = vld [vmem:[#allocation15 + $0x28] sm:$0xff]  }
 0x791   :  { %12313 = vmatpush3.bf16.msra.mxu1 %v3254_v55  ;;  %12314 = vmatprep.mubr.msk.bf16.mxu1 %vm14151_vm9, %v14150_v53  ;;  %v13013_v55 = vld [vmem:[#allocation15 + $0x70] sm:$0xff]  }
 0x792   :  { %12318 = vmatprep.subr.bf16.mxu1 %v14150_v53  ;;  %v3311_v40 = vpop.permute.xlu1 %3310 }
 0x793   :  { %v3313_v14 = vsel %vm584_vm1, %v3309_v7, %v3311_v40  ;;  %v13014_v40 = vld [vmem:[#allocation15 + $0x30] sm:$0xff]   ;;  %v13015_v7 = vld [vmem:[#allocation15 + $0x78] sm:$0xff]  }
 0x794   :  { %v3318_v57 = vsel %vm556_vm0, %v3313_v14, 0  ;;  %v3374_v39 = vpop.permute.xlu0 %3373  ;;  %v13016_v14 = vld [vmem:[#allocation15 + $0x38] sm:$0xff]  }
 0x796   :  { %v3376_v38 = vpop.permute.xlu1 %3375 }
 0x797   :  { %v3377_v42 = vsel %vm1505_vm14, %v3374_v39, %v3376_v38  ;;  %v13019_v38 = vld [vmem:[#allocation17 + $0x48] sm:$0xff]   ;;  %v5566_v39 = vrot.slane %v14981_v52, 2 }
 0x798   :  { %v3382_v4 = vsel %vm556_vm0, %v3377_v42, 0  ;;  %v3486_v44 = vpop.permute.xlu0 %3485  ;;  %v13020_v42 = vld [vmem:[#allocation17 + $0x8] sm:$0xff]  }
 0x799   :  { %v3491_v31 = vsel %vm556_vm0, %v3486_v44, 0  ;;  %v13025_v44 = vld [vmem:[#allocation17 + $0x60] sm:$0xff]  }
 0x79a   :  { %v3546_v24 = vpop.permute.xlu1 %3545 }
 0x79b   :  { %v3551_v15 = vsel %vm556_vm0, %v3546_v24, 0  ;;  %v13028_v24 = vld [vmem:[#allocation17 + $0x28] sm:$0xff]  }
 0x79c   :  { %12315 = vmatmul.mubr.msk.bf16.vlgmr.msra.gmra.mrb[8].mxu1 %vm584_vm1, %v3180_v19  ;;  %v3606_v50 = vpop.permute.xlu0 %3605  ;;  %v13017_v19 = vld [vmem:[#allocation17 + $0x40] sm:$0xff]  }
 0x79d   :  { %12319 = vmatpush3.bf16.msra.mxu1 %v3318_v57  ;;  %12320 = vmatprep.mubr.msk.bf16.mxu1 %vm14151_vm9, %v14150_v53  ;;  %v3611_v43 = vsel %vm556_vm0, %v3606_v50, 0  ;;  %v13018_v57 = vld [vmem:[#allocation17] sm:$0xff]   ;;  %v13031_v50 = vld [vmem:[#allocation17 + $0x78] sm:$0xff]  }
 0x79e   :  { %12324 = vmatprep.subr.bf16.mxu1 %v14150_v53  ;;  %v3666_v17 = vpop.permute.xlu1 %3665 }
 0x79f   :  { %v3671_v54 = vsel %vm556_vm0, %v3666_v17, 0  ;;  %v13034_v17 = vld [vmem:[#allocation17 + $0x80] sm:$0xff]  }
 0x7a8   :  { %12321 = vmatmul.mubr.msk.bf16.vlgmr.msra.gmra.mrb[8].mxu1 %vm584_vm1, %v3298_v51  ;;  %v13021_v51 = vld [vmem:[#allocation17 + $0x50] sm:$0xff]  }
 0x7a9   :  { %12325 = vmatpush3.bf16.msra.mxu1 %v3382_v4  ;;  %12326 = vmatprep.mubr.msk.bf16.mxu1 %vm14151_vm9, %v14150_v53  ;;  %v13022_v4 = vld [vmem:[#allocation17 + $0x10] sm:$0xff]  }
 0x7aa   :  { %12330 = vmatprep.subr.bf16.mxu1 %v14150_v53 }
 0x7b4   :  { %12327 = vmatmul.mubr.msk.bf16.vlgmr.msra.gmra.mrb[8].mxu1 %vm584_vm1, %v3363_v0  ;;  %v13023_v0 = vld [vmem:[#allocation17 + $0x58] sm:$0xff]  }
 0x7b5   :  { %12331 = vmatpush3.bf16.msra.mxu1 %v3432_v13  ;;  %12332 = vmatprep.mubr.msk.bf16.mxu1 %vm14151_vm9, %v14150_v53  ;;  %v13024_v13 = vld [vmem:[#allocation17 + $0x18] sm:$0xff]  }
 0x7b6   :  { %12336 = vmatprep.subr.bf16.mxu1 %v14150_v53 }
 0x7c0   :  { %12333 = vmatmul.mubr.msk.bf16.vlgmr.msra.gmra.mrb[8].mxu1 %vm584_vm1, %v3427_v18  ;;  %v13026_v18 = vld [vmem:[#allocation17 + $0x20] sm:$0xff]  }
 0x7c1   :  { %12337 = vmatpush3.bf16.msra.mxu1 %v3491_v31  ;;  %12338 = vmatprep.mubr.msk.bf16.mxu1 %vm14151_vm9, %v14150_v53  ;;  %v13027_v31 = vld [vmem:[#allocation17 + $0x68] sm:$0xff]  }
 0x7c2   :  { %12342 = vmatprep.subr.bf16.mxu1 %v14150_v53 }
 0x7cc   :  { %12339 = vmatmul.mubr.msk.bf16.vlgmr.msra.gmra.mrb[8].mxu1 %vm584_vm1, %v3476_v25  ;;  %v13029_v25 = vld [vmem:[#allocation17 + $0x70] sm:$0xff]  }
 0x7cd   :  { %12343 = vmatpush3.bf16.msra.mxu1 %v3551_v15  ;;  %12344 = vmatprep.mubr.msk.bf16.mxu1 %vm14151_vm9, %v14150_v53  ;;  %v13030_v15 = vld [vmem:[#allocation17 + $0x30] sm:$0xff]  }
 0x7ce   :  { %12348 = vmatprep.subr.bf16.mxu1 %v14150_v53 }
 0x7d8   :  { %12345 = vmatmul.mubr.msk.bf16.vlgmr.msra.gmra.mrb[8].mxu1 %vm584_vm1, %v3536_v6  ;;  %v13032_v6 = vld [vmem:[#allocation17 + $0x38] sm:$0xff]  }
 0x7d9   :  { %12349 = vmatpush3.bf16.msra.mxu1 %v3611_v43  ;;  %12350 = vmatprep.mubr.msk.bf16.mxu1 %vm14151_vm9, %v14150_v53  ;;  %v13033_v43 = vld [vmem:[#allocation17 + $0xc0] sm:$0xff]  }
 0x7da   :  { %12354 = vmatprep.subr.bf16.mxu1 %v14150_v53 }
 0x7e4   :  { %12351 = vmatmul.mubr.msk.bf16.vlgmr.msra.gmra.mrb[8].mxu1 %vm584_vm1, %v3596_v32  ;;  %v5565_v32 = vrot.slane %v15016_v48, 2 }
 0x7e5   :  { %12355 = vmatpush3.bf16.msra.mxu1 %v3671_v54  ;;  %12356 = vmatprep.mubr.msk.bf16.mxu1 %vm14151_vm9, %v14150_v53  ;;  %v5568_v54 = vrot.slane %v15020_v16, 2 }
 0x7e6   :  { %12144 = vmatprep.subr.bf16.mxu1 %v13001_v58  ;;  %v13035_v58 = vld [vmem:[#allocation17 + $0xc8] sm:$0xff]  }
 0x7f0   :  { %12357 = vmatmul.mubr.msk.bf16.vlgmr.msra.gmra.mrb[8].mxu1 %vm584_vm1, %v3656_v28  ;;  %v13036_v28 = vld [vmem:[#allocation17 + $0x88] sm:$0xff]  }
 0x7f1   :  { %12145 = vmatpush3.bf16.msra.mxu1 %v13002_v35  ;;  %4384 = vmatprep.mubr.bf16.mxu1 %v14981_v52  ;;  %v13037_v35 = vld [vmem:[#allocation17 + $0xd0] sm:$0xff]   ;;  %v13164_v52 = vld [vmem:[#allocation18 + $0x18] sm:$0xff]  }
 0x7f2   :  { %12146 = vmatprep.subr.bf16.mxu1 %v13003_v21  ;;  %v13038_v21 = vld [vmem:[#allocation17 + $0x90] sm:$0xff]  }
 0x7f5   :  { %12147 = vmatpush3.bf16.msra.mxu1 %v13004_v37  ;;  %v13039_v37 = vld [vmem:[#allocation17 + $0xd8] sm:$0xff]  }
 0x7f6   :  { %12148 = vmatprep.subr.bf16.mxu1 %v13005_v30  ;;  %v13040_v30 = vld [vmem:[#allocation17 + $0x98] sm:$0xff]  }
 0x7f9   :  { %12149 = vmatpush3.bf16.msra.mxu1 %v13006_v47  ;;  %v13041_v47 = vld [vmem:[#allocation17 + $0xe0] sm:$0xff]  }
 0x7fa   :  { %12150 = vmatprep.subr.bf16.mxu1 %v13007_v9  ;;  %v13042_v9 = vld [vmem:[#allocation17 + $0xa0] sm:$0xff]  }
 0x7fd   :  { %12151 = vmatpush3.bf16.msra.mxu1 %v13008_v59  ;;  %v13043_v59 = vld [vmem:[#allocation17 + $0xe8] sm:$0xff]  }
 0x7fe   :  { %12152 = vmatprep.subr.bf16.mxu1 %v13009_v63  ;;  %v13044_v63 = vld [vmem:[#allocation17 + $0xa8] sm:$0xff]  }
 0x801   :  { %12153 = vmatpush3.bf16.msra.mxu1 %v13010_v49  ;;  %v13045_v49 = vld [vmem:[#allocation17 + $0xf0] sm:$0xff]  }
 0x802   :  { %12154 = vmatprep.subr.bf16.mxu1 %v13011_v56  ;;  %v13046_v56 = vld [vmem:[#allocation17 + $0xb0] sm:$0xff]  }
 0x805   :  { %12155 = vmatpush3.bf16.msra.mxu1 %v13012_v29  ;;  %v13047_v29 = vld [vmem:[#allocation17 + $0xf8] sm:$0xff]  }
 0x806   :  { %12156 = vmatprep.subr.bf16.mxu1 %v13013_v55  ;;  %v13048_v55 = vld [vmem:[#allocation17 + $0xb8] sm:$0xff]  }
 0x809   :  { %12157 = vmatpush3.bf16.msra.mxu1 %v13014_v40  ;;  %v13049_v40 = vld [vmem:[#allocation17 + $0x100] sm:$0xff]  }
 0x80a   :  { %12158 = vmatprep.subr.bf16.mxu1 %v13015_v7  ;;  %v5567_v7 = vrot.slane %v15056_v41, 2 }
 0x80d   :  { %12159 = vmatpush3.bf16.msra.mxu1 %v13016_v14  ;;  %v5570_v14 = vrot.slane %v15061_v2, 2 }
 0x80e   :  { %12206 = vmatprep.subr.bf16.mxu1 %v13017_v19  ;;  %v13050_v19 = vld [vmem:[#allocation17 + $0x108] sm:$0xff]  }
 0x810   :  { %4385 = vmatmul.mubr.bf16.vlgmr.msra.gmra.mrb[12].mxu1 %v15016_v48  ;;  %v13196_v48 = vld [vmem:[#allocation18 + $0x110] sm:$0xff]  }
 0x811   :  { %12207 = vmatpush3.bf16.msra.mxu1 %v13018_v57  ;;  %5857 = vmatprep.mubr.bf16.mxu1 %v5566_v39  ;;  %v13051_v57 = vld [vmem:[#allocation17 + $0x110] sm:$0xff]  }
 0x812   :  { %12208 = vmatprep.subr.bf16.mxu1 %v13019_v38  ;;  %v13052_v38 = vld [vmem:[#allocation17 + $0x118] sm:$0xff]  }
 0x815   :  { %12209 = vmatpush3.bf16.msra.mxu1 %v13020_v42  ;;  %v13053_v42 = vld [vmem:[#allocation17 + $0x120] sm:$0xff]  }
 0x816   :  { %12210 = vmatprep.subr.bf16.mxu1 %v13021_v51  ;;  %v13054_v51 = vld [vmem:[#allocation17 + $0x128] sm:$0xff]  }
 0x819   :  { %12211 = vmatpush3.bf16.msra.mxu1 %v13022_v4  ;;  %v13055_v4 = vld [vmem:[#allocation17 + $0x130] sm:$0xff]  }
 0x81a   :  { %12212 = vmatprep.subr.bf16.mxu1 %v13023_v0  ;;  %v13056_v0 = vld [vmem:[#allocation17 + $0x138] sm:$0xff]  }
 0x81d   :  { %12213 = vmatpush3.bf16.msra.mxu1 %v13024_v13  ;;  %v13057_v13 = vld [vmem:[#allocation17 + $0x140] ss:$0 sps:$4 sm:$0xff]  }
 0x81e   :  { %12214 = vmatprep.subr.bf16.mxu1 %v13025_v44  ;;  %v5823_v44 = vsel %vm2648_vm6, %v13057_v13, 0 }
 0x821   :  { %12215 = vmatpush3.bf16.msra.mxu1 %v13026_v18  ;;  %v5569_v18 = vrot.slane %v15101_v61, 2 }
 0x822   :  { %12216 = vmatprep.subr.bf16.mxu1 %v13027_v31  ;;  %v11660_v31 = vld [vmem:[#allocation8] ss:$0 sm:$0xff] }
 0x825   :  { %12217 = vmatpush3.bf16.msra.mxu1 %v13028_v24 }
 0x826   :  { %12218 = vmatprep.subr.bf16.mxu1 %v13029_v25 }
 0x829   :  { %12219 = vmatpush3.bf16.msra.mxu1 %v13030_v15 }
 0x82a   :  { %12220 = vmatprep.subr.bf16.mxu1 %v13031_v50 }
 0x82d   :  { %12221 = vmatpush3.bf16.msra.mxu1 %v13032_v6 }
 0x82e   :  { %12228 = vmatprep.subr.bf16.mxu1 %v13033_v43 }
 0x830   :  { %5858 = vmatmul.mubr.bf16.vlgmr.msra.gmra.mrb[16].mxu1 %v5565_v32 }
 0x831   :  { %12229 = vmatpush3.bf16.msra.mxu1 %v13034_v17  ;;  %5897 = vmatprep.mubr.bf16.mxu1 %v5568_v54 }
 0x832   :  { %12230 = vmatprep.subr.bf16.mxu1 %v13035_v58 }
 0x835   :  { %12231 = vmatpush3.bf16.msra.mxu1 %v13036_v28 }
 0x836   :  { %12232 = vmatprep.subr.bf16.mxu1 %v13037_v35 }
 0x839   :  { %12233 = vmatpush3.bf16.msra.mxu1 %v13038_v21 }
 0x83a   :  { %12234 = vmatprep.subr.bf16.mxu1 %v13039_v37  ;;  %v3715_v37 = vld [vmem:[#allocation42] sm:$0xf] }
 0x83d   :  { %12235 = vmatpush3.bf16.msra.mxu1 %v13040_v30 }
 0x83e   :  { %12236 = vmatprep.subr.bf16.mxu1 %v13041_v47 }
 0x841   :  { %12237 = vmatpush3.bf16.msra.mxu1 %v13042_v9 }
 0x842   :  { %12238 = vmatprep.subr.bf16.mxu1 %v13043_v59 }
 0x845   :  { %12239 = vmatpush3.bf16.msra.mxu1 %v13044_v63 }
 0x846   :  { %12240 = vmatprep.subr.bf16.mxu1 %v13045_v49 }
 0x849   :  { %12241 = vmatpush3.bf16.msra.mxu1 %v13046_v56 }
 0x84a   :  { %12242 = vmatprep.subr.bf16.mxu1 %v13047_v29 }
 0x84d   :  { %12243 = vmatpush3.bf16.msra.mxu1 %v13048_v55 }
 0x84e   :  { %5905 = vmatprep.subr.bf16.mxu1 %v14660_v26 }
 0x850   :  { %5898 = vmatmul.mubr.bf16.vlgmr.msra.gmra.mrb[20].mxu1 %v5567_v7 }
 0x851   :  { %5906 = vmatpush1.bf16.msra.mxu1 %v13049_v40  ;;  %11839 = vmatprep.mubr.msk.bf16.mxu1 %vm773_vm2, %v5570_v14 }
 0x852   :  { %5907 = vmatprep.subr.bf16.mxu1 %v14660_v26 }
 0x855   :  { %5908 = vmatpush1.bf16.msra.mxu1 %v13050_v19 }
 0x856   :  { %5909 = vmatprep.subr.bf16.mxu1 %v14660_v26 }
 0x859   :  { %5910 = vmatpush1.bf16.msra.mxu1 %v13051_v57 }
 0x85a   :  { %5911 = vmatprep.subr.bf16.mxu1 %v14660_v26 }
 0x85d   :  { %5912 = vmatpush1.bf16.msra.mxu1 %v13052_v38 }
 0x85e   :  { %5913 = vmatprep.subr.bf16.mxu1 %v14660_v26 }
 0x861   :  { %5914 = vmatpush1.bf16.msra.mxu1 %v13053_v42 }
 0x862   :  { %5915 = vmatprep.subr.bf16.mxu1 %v14660_v26 }
 0x865   :  { %5916 = vmatpush1.bf16.msra.mxu1 %v13054_v51 }
 0x866   :  { %5917 = vmatprep.subr.bf16.mxu1 %v14660_v26 }
 0x869   :  { %5918 = vmatpush1.bf16.msra.mxu1 %v13055_v4 }
 0x86a   :  { %5919 = vmatprep.subr.bf16.mxu1 %v14660_v26 }
 0x86d   :  { %5920 = vmatpush1.bf16.msra.mxu1 %v13056_v0 }
 0x86e   :  { %5921 = vmatprep.subr.bf16.mxu1 %v14660_v26 }
 0x871   :  { %5922 = vmatpush1.bf16.msra.mxu1 %v5823_v44 }
 0x872   :  { %12414 = vmatprep.subr.bf16.mxu1 %v14150_v53 }
 0x874   :  { %5938 = vmatmul.mubr.bf16.vlgmr.msra.gmra.mrb[24].mxu1 %v5569_v18 }
 0x875   :  { %12416 = vmatprep.mubr.msk.bf16.mxu1 %vm14151_vm9, %v14150_v53 }
 0x8c3   :  { %v3707_v24 = vpop.f32.mrb[8].mxu1 }
 0x8c4   :  { %v3724_v25 = vmul.f32 %v11660_v31, %v3707_v24  ;;  %v12358_v15 = vpop.f32.mrb[9].mxu1 }
 0x8c5   :  { %v3710_v50 = vpop.f32.mrb[10].mxu1 }
 0x8c6   :  { %v12359_v6 = vpop.f32.mrb[11].mxu1  ;;  %v3726_v43 = vsel %vm3725_vm5, %v3724_v25, 0.0 }
 0x8c7   :  { %3727 = vadd.xlane.f32.xlu0 %v3726_v43  ;;  %v3717_v6 = vld [vmem:[#allocation42 + $0x4] sm:$0xf] }
 0x8c8   :  { %v13058_v43 = vld [vmem:[#allocation20] ss:$24 sps:$4 sm:$0xff]  }
 0x8dd   :  { %3742 = vperm.xlu0 %12954, %v3715_v37   ;;  %v13064_v37 = vld [vmem:[#allocation20 + $0x60] ss:$24 sps:$4 sm:$0xff]  }
 0x8e3   :  { %v12160_v17 = vpop.f32.mrb[12].mxu1 }
 0x8e4   :  { %v12161_v58 = vpop.f32.mrb[13].mxu1 }
 0x8e5   :  { %v15225_v28 = vadd.f32 %v12161_v58, %v12160_v17  ;;  %v12163_v35 = vpop.f32.mrb[14].mxu1  ;;  %v13060_v17 = vld [vmem:[#allocation20 + $0x4] ss:$24 sps:$4 sm:$0xff]   ;;  %v13063_v58 = vld [vmem:[#allocation20 + $0x34] ss:$24 sps:$4 sm:$0xff]  }
 0x8e6   :  { %v12164_v21 = vpop.f32.mrb[15].mxu1  ;;  %3902 = vmatprep.subr.bf16.mxu0 %v13060_v17  ;;  %v13061_v35 = vld [vmem:[#allocation20 + $0x30] ss:$24 sps:$4 sm:$0xff]  }
 0x8e7   :  { %3903 = vmatpush1.bf16.msra.mxu0 %v13058_v43  ;;  %v13066_v21 = vld [vmem:[#allocation20 + $0x64] ss:$24 sps:$4 sm:$0xff]   ;;  %v13082_v43 = vld [vmem:[#allocation20 + $0x14] ss:$24 sps:$4 sm:$0xff]   ;;  %v13080_v17 = vld [vmem:[#allocation20 + $0x10] ss:$24 sps:$4 sm:$0xff]  }
 0x8e8   :  { %3904 = vmatprep.subr.bf16.mxu0 %v13063_v58  ;;  %v13085_v58 = vld [vmem:[#allocation20 + $0x44] ss:$24 sps:$4 sm:$0xff]  }
 0x8eb   :  { %3905 = vmatpush1.bf16.msra.mxu0 %v13061_v35  ;;  %v13083_v35 = vld [vmem:[#allocation20 + $0x40] ss:$24 sps:$4 sm:$0xff]  }
 0x8ec   :  { %3906 = vmatprep.subr.bf16.mxu0 %v13066_v21  ;;  %v13088_v21 = vld [vmem:[#allocation20 + $0x74] ss:$24 sps:$4 sm:$0xff]  }
 0x8ef   :  { %3907 = vmatpush1.bf16.msra.mxu0 %v13064_v37  ;;  %v3773_v37 = vld [vmem:[#allocation20 + $0xa0] sm:$0x11] }
 0x903   :  { %v12222_v30 = vpop.f32.mrb[16].mxu1 }
 0x904   :  { %v12223_v47 = vpop.f32.mrb[17].mxu1 }
 0x905   :  { %v12224_v9 = vadd.f32 %v12223_v47, %v12222_v30  ;;  %v12225_v59 = vpop.f32.mrb[18].mxu1 }
 0x906   :  { %v12226_v63 = vpop.f32.mrb[19].mxu1 }
 0x923   :  { %v12244_v49 = vpop.f32.mrb[20].mxu1 }
 0x924   :  { %v12245_v56 = vpop.f32.mrb[21].mxu1 }
 0x925   :  { %v12246_v29 = vadd.f32 %v12245_v56, %v12244_v49  ;;  %v12247_v55 = vpop.f32.mrb[22].mxu1 }
 0x926   :  { %v12248_v40 = vpop.f32.mrb[23].mxu1 }
 0x927   :  { %v5900_v19 = vadd.f32 %v12246_v29, %v12224_v9  ;;  %v13071_v9 = vld [vmem:[#allocation20 + $0xc] ss:$24 sps:$4 sm:$0xff]  }
 0x947   :  { %v5939_v57 = vpop.f32.mrb[24].mxu1 }
 0x948   :  { %v15227_v38 = vadd.f32 %v5939_v57, %v5900_v19  ;;  %v5941_v42 = vpop.f32.mrb[25].mxu1 }
 0x949   :  { %v5942_v51 = vpop.f32.mrb[26].mxu1  ;;  %v13069_v42 = vld [vmem:[#allocation20 + $0x8] ss:$24 sps:$4 sm:$0xff]  }
 0x94a   :  { %v5943_v4 = vpop.f32.mrb[27].mxu1 }
 0x94b   :  { %v13074_v4 = vld [vmem:[#allocation20 + $0x3c] ss:$24 sps:$4 sm:$0xff]  }
 0x954   :  { %v3728_v0 = vpop.xlane.xlu0 %3727 }
 0x955   :  { %v3729_v13 = vmul.f32 0.055555556, %v3728_v0  ;;  %v13072_v0 = vld [vmem:[#allocation20 + $0x38] ss:$24 sps:$4 sm:$0xff]  }
 0x957   :  { %v3730_v44 = vsub.f32 %v3707_v24, %v3729_v13  ;;  %v3771_v24 = vld [vmem:[#allocation20 + $0x90] sm:$0x11]  ;;  %v13077_v13 = vld [vmem:[#allocation20 + $0x6c] ss:$24 sps:$4 sm:$0xff]  }
 0x958   :  { %v11679_v30 = vcombine.low %v3771_v24, %v3771_v24 }
 0x959   :  { %v3731_v25 = vmul.f32 %v11660_v31, %v3730_v44  ;;  %v11680_v31 = vcombine.high %v3771_v24, %v3771_v24  ;;  %v13086_v24 = vld [vmem:[#allocation20 + $0x70] ss:$24 sps:$4 sm:$0xff]  }
 0x95a   :  { %v3885_v47 = vsel %vm3883_vm8, %v11679_v30, 0  ;;  %v11683_v30 = vcombine.low %v3773_v37, %v3773_v37 }
 0x95b   :  { %v3732_v15 = vmul.f32 %v3731_v25, %v3731_v25  ;;  %11685 = vmatprep.subr.msk.bf16.mxu0 %vm3883_vm8, %v11680_v31  ;;  %v3772_v25 = vld [vmem:[#allocation20 + $0x98] sm:$0x11]  ;;  %v11684_v31 = vcombine.high %v3773_v37, %v3773_v37 }
 0x95c   :  { %3909 = vmatpush1.bf16.msra.mxu0 %v3885_v47  ;;  %v3743_v29 = vpop.permute.xlu0 %3742  ;;  %v3897_v47 = vsel %vm3883_vm8, %v11683_v30, 0 }
 0x95d   :  { %v3733_v50 = vsel %vm3725_vm5, %v3732_v15, 0.0  ;;  %3943 = vmatprep.subr.bf16.mxu0 %v13071_v9  ;;  %vm3879_vm5 = vcmask 408576   ;;  %v13075_v15 = vld [vmem:[#allocation20 + $0x68] ss:$24 sps:$4 sm:$0xff]   ;;  %v13091_v9 = vld [vmem:[#allocation15 + $0xc0] sm:$0xff]  }
 0x95e   :  { %3734 = vadd.xlane.f32.xlu1 %v3733_v50  ;;  %v11681_v50 = vcombine.low %v3772_v25, %v3772_v25 }
 0x96f   :  { %3748 = vperm.xlu1 %12953, %v3717_v6   ;;  %v3891_v6 = vsel %vm3883_vm8, %v11681_v50, 0  ;;  %v13109_v50 = vld [vmem:[#allocation15 + $0x110] sm:$0xff]  }
 0x9eb   :  { %v3735_v59 = vpop.xlane.xlu1 %3734 }
 0x9ec   :  { %v3736_v63 = vmul.f32 0.055555556, %v3735_v59  ;;  %v13092_v59 = vld [vmem:[#allocation15 + $0x80] sm:$0xff]  }
 0x9ee   :  { %v3737_v49 = vadd.f32 1e-05, %v3736_v63  ;;  %v13093_v63 = vld [vmem:[#allocation15 + $0xc8] sm:$0xff]  }
 0x9ef   :  { %v3749_v19 = vpop.permute.xlu1 %3748 }
 0x9f0   :  { %13283 = vrsqrt.f32 %v3737_v49  ;;  %v13094_v49 = vld [vmem:[#allocation15 + $0x88] sm:$0xff]  }
 0x9fa   :  { %v13284_v56 = vpop.eup %13283 }
 0x9fb   :  { %v3739_v55 = vmul.f32 %v13284_v56, %v3730_v44  ;;  %v11682_v44 = vcombine.high %v3772_v25, %v3772_v25  ;;  %v13095_v56 = vld [vmem:[#allocation15 + $0xd0] sm:$0xff]   ;;  %v13106_v25 = vld [vmem:[#allocation15 + $0xb8] sm:$0xff]  }
 0x9fd   :  { %v3745_v40 = vmul.f32 %v3743_v29, %v3739_v55  ;;  %v13096_v29 = vld [vmem:[#allocation15 + $0x90] sm:$0xff]   ;;  %v13097_v55 = vld [vmem:[#allocation15 + $0xd8] sm:$0xff]  }
 0x9ff   :  { %v3751_v57 = vadd.f32 %v3749_v19, %v3745_v40  ;;  %v13098_v40 = vld [vmem:[#allocation15 + $0x98] sm:$0xff]   ;;  %v13099_v19 = vld [vmem:[#allocation15 + $0xe0] sm:$0xff]  }
 0xa01   :  { %v3752_v51 = vpack.c.bf16 %v3751_v57, %v3751_v57  ;;  %v13100_v57 = vld [vmem:[#allocation15 + $0xa0] sm:$0xff]  }
 0xa03   :  { %11686 = vmatmul.mubr.msk.bf16.vlgmr.msra.gmra.mrb[28].mxu0 %vm3879_vm5, %v3752_v51 }
 0xa04   :  { %3944 = vmatpush1.bf16.msra.mxu0 %v13069_v42  ;;  %3975 = vmatprep.mubr.bf16.mxu0 %v14660_v26  ;;  %v13101_v42 = vld [vmem:[#allocation15 + $0xe8] sm:$0xff]  }
 0xa05   :  { %3945 = vmatprep.subr.bf16.mxu0 %v13074_v4  ;;  %v13103_v4 = vld [vmem:[#allocation15 + $0xf0] sm:$0xff]  }
 0xa08   :  { %3946 = vmatpush1.bf16.msra.mxu0 %v13072_v0  ;;  %v13104_v0 = vld [vmem:[#allocation15 + $0xb0] sm:$0xff]  }
 0xa09   :  { %3947 = vmatprep.subr.bf16.mxu0 %v13077_v13  ;;  %v13105_v13 = vld [vmem:[#allocation15 + $0xf8] sm:$0xff]  }
 0xa0c   :  { %3948 = vmatpush1.bf16.msra.mxu0 %v13075_v15  ;;  %v13107_v15 = vld [vmem:[#allocation15 + $0x100] sm:$0xff]  }
 0xa0d   :  { %11687 = vmatprep.subr.msk.bf16.mxu0 %vm3883_vm8, %v11682_v44  ;;  %v13108_v44 = vld [vmem:[#allocation15 + $0x108] sm:$0xff]  }
 0xa10   :  { %3950 = vmatpush1.bf16.msra.mxu0 %v3891_v6  ;;  %v13110_v6 = vld [vmem:[#allocation15 + $0x118] sm:$0xff]  }
 0xa11   :  { %3984 = vmatprep.subr.bf16.mxu0 %v13082_v43  ;;  %v13111_v43 = vld [vmem:[#allocation15 + $0x120] sm:$0xff]  }
 0xa13   :  { %11688 = vmatmul.mubr.msk.bf16.vlgmr.msra.gmra.mrb[32].mxu0 %vm3879_vm5, %v3752_v51 }
 0xa14   :  { %3985 = vmatpush1.bf16.msra.mxu0 %v13080_v17  ;;  %4016 = vmatprep.mubr.bf16.mxu0 %v14660_v26  ;;  %v13112_v17 = vld [vmem:[#allocation15 + $0x128] sm:$0xff]  }
 0xa15   :  { %3986 = vmatprep.subr.bf16.mxu0 %v13085_v58  ;;  %v13113_v58 = vld [vmem:[#allocation15 + $0x130] sm:$0xff]  }
 0xa18   :  { %3987 = vmatpush1.bf16.msra.mxu0 %v13083_v35  ;;  %v13114_v35 = vld [vmem:[#allocation15 + $0x138] sm:$0xff]  }
 0xa19   :  { %3988 = vmatprep.subr.bf16.mxu0 %v13088_v21  ;;  %v13115_v21 = vld [vmem:[#allocation15 + $0x140] ss:$0 sps:$4 sm:$0xff]  }
 0xa1a   :  { %v4350_v37 = vsel %vm2648_vm6, %v13115_v21, 0 }
 0xa1c   :  { %3989 = vmatpush1.bf16.msra.mxu0 %v13086_v24 }
 0xa1d   :  { %11689 = vmatprep.subr.msk.bf16.mxu0 %vm3883_vm8, %v11684_v31  ;;  %vm5946_vm8 = vcmask 287744  }
 0xa20   :  { %3991 = vmatpush1.bf16.msra.mxu0 %v3897_v47 }
 0xa21   :  { %12166 = vmatprep.subr.bf16.mxu0 %v13091_v9 }
 0xa23   :  { %11690 = vmatmul.mubr.msk.bf16.vlgmr.msra.gmra.mrb[36].mxu0 %vm3879_vm5, %v3752_v51  ;;  %v13102_v51 = vld [vmem:[#allocation15 + $0xa8] sm:$0xff]   ;;  %vm4543_vm5 = vcmask 72704  }
 0xa24   :  { %12167 = vmatpush3.bf16.msra.mxu0 %v13092_v59  ;;  %4424 = vmatprep.mubr.bf16.mxu0 %v15020_v16  ;;  %v13249_v16 = vld [vmem:[#allocation18 + $0xf0] sm:$0xff]  }
 0xa25   :  { %12168 = vmatprep.subr.bf16.mxu0 %v13093_v63 }
 0xa28   :  { %12169 = vmatpush3.bf16.msra.mxu0 %v13094_v49 }
 0xa29   :  { %12170 = vmatprep.subr.bf16.mxu0 %v13095_v56 }
 0xa2c   :  { %12171 = vmatpush3.bf16.msra.mxu0 %v13096_v29 }
 0xa2d   :  { %12172 = vmatprep.subr.bf16.mxu0 %v13097_v55 }
 0xa30   :  { %12173 = vmatpush3.bf16.msra.mxu0 %v13098_v40 }
 0xa31   :  { %12174 = vmatprep.subr.bf16.mxu0 %v13099_v19  ;;  %v5945_v19 = vpack.c.bf16 %v15227_v38, %v15227_v38 }
 0xa34   :  { %12175 = vmatpush3.bf16.msra.mxu0 %v13100_v57 }
 0xa35   :  { %12176 = vmatprep.subr.bf16.mxu0 %v13101_v42 }
 0xa38   :  { %12177 = vmatpush3.bf16.msra.mxu0 %v13102_v51 }
 0xa39   :  { %12178 = vmatprep.subr.bf16.mxu0 %v13103_v4 }
 0xa3c   :  { %12179 = vmatpush3.bf16.msra.mxu0 %v13104_v0 }
 0xa3d   :  { %12180 = vmatprep.subr.bf16.mxu0 %v13105_v13  ;;  %v5952_v13 = vld [vmem:[#allocation32 + $0x2] sm:$0x3] }
 0xa40   :  { %12181 = vmatpush3.bf16.msra.mxu0 %v13106_v25 }
 0xa41   :  { %4432 = vmatprep.subr.bf16.mxu0 %v14660_v26 }
 0xa43   :  { %4425 = vmatmul.mubr.bf16.vlgmr.msra.gmra.mrb[40].mxu0 %v15056_v41 }
 0xa44   :  { %4433 = vmatpush1.bf16.msra.mxu0 %v13107_v15  ;;  %11732 = vmatprep.mubr.msk.bf16.mxu0 %vm773_vm2, %v15061_v2  ;;  %v13197_v2 = vld [vmem:[#allocation21 + $0x70] ss:$24 sps:$4 sm:$0xff]  }
 0xa45   :  { %4434 = vmatprep.subr.bf16.mxu0 %v14660_v26 }
 0xa48   :  { %4435 = vmatpush1.bf16.msra.mxu0 %v13108_v44 }
 0xa49   :  { %4436 = vmatprep.subr.bf16.mxu0 %v14660_v26 }
 0xa4c   :  { %4437 = vmatpush1.bf16.msra.mxu0 %v13109_v50 }
 0xa4d   :  { %4438 = vmatprep.subr.bf16.mxu0 %v14660_v26 }
 0xa50   :  { %4439 = vmatpush1.bf16.msra.mxu0 %v13110_v6 }
 0xa51   :  { %4440 = vmatprep.subr.bf16.mxu0 %v14660_v26 }
 0xa54   :  { %4441 = vmatpush1.bf16.msra.mxu0 %v13111_v43 }
 0xa55   :  { %4442 = vmatprep.subr.bf16.mxu0 %v14660_v26 }
 0xa58   :  { %4443 = vmatpush1.bf16.msra.mxu0 %v13112_v17 }
 0xa59   :  { %4444 = vmatprep.subr.bf16.mxu0 %v14660_v26 }
 0xa5c   :  { %4445 = vmatpush1.bf16.msra.mxu0 %v13113_v58 }
 0xa5d   :  { %4446 = vmatprep.subr.bf16.mxu0 %v14660_v26 }
 0xa60   :  { %4447 = vmatpush1.bf16.msra.mxu0 %v13114_v35  ;;  %v4477_v35 = vld [vmem:[#allocation30 + $0x2] sm:$0x3] }
 0xa61   :  { %4448 = vmatprep.subr.bf16.mxu0 %v14660_v26 }
 0xa64   :  { %4449 = vmatpush1.bf16.msra.mxu0 %v4350_v37 }
 0xa65   :  { %12360 = vmatprep.subr.bf16.mxu0 %v14150_v53 }
 0xa67   :  { %4465 = vmatmul.mubr.bf16.vlgmr.msra.gmra.mrb[44].mxu0 %v15101_v61  ;;  %v6172_v61 = vld [vmem:[#allocation23 + $0x70] sm:$0x33] }
 0xa68   :  { %12362 = vmatprep.mubr.msk.bf16.mxu0 %vm14151_vm9, %v14150_v53 }
 0xb16   :  { %v12182_v24 = vpop.f32.mrb[40].mxu0 }
 0xb17   :  { %v12183_v31 = vpop.f32.mrb[41].mxu0 }
 0xb18   :  { %v12184_v30 = vadd.f32 %v12183_v31, %v12182_v24  ;;  %v12185_v47 = vpop.f32.mrb[42].mxu0 }
 0xb19   :  { %v12186_v9 = vpop.f32.mrb[43].mxu0 }
 0xb1a   :  { %v4427_v59 = vadd.f32 %v12184_v30, %v15225_v28 }
 0xb3a   :  { %v4466_v63 = vpop.f32.mrb[44].mxu0 }
 0xb3b   :  { %v4467_v49 = vadd.f32 %v4466_v63, %v4427_v59  ;;  %v4468_v56 = vpop.f32.mrb[45].mxu0  ;;  %v4475_v63 = vld [vmem:[#allocation30] sm:$0x3] }
 0xb3c   :  { %v4469_v29 = vpop.f32.mrb[46].mxu0 }
 0xb3d   :  { %v4472_v55 = vpack.c.bf16 %v4467_v49, %v4467_v49  ;;  %v4470_v40 = vpop.f32.mrb[47].mxu0 }
 0xb3f   :  { %4473 = vst [vmem:[#allocation2 + $0x2] sm:$0x3] %v4472_v55 }
 0xb46   :  { %v15262_v57 = vld [vmem:[#allocation2 + $0x2] sm:$0x3] }
 0xb47   :  { %v11741_v42 = vld.sshfl [vmem:[#allocation2 + $0x2] sm:$0x33 pattern:$0x76325410] }
 0xb48   :  { %v11733_v51 = vld.sshfl [vmem:[#allocation2] sm:$0x33 pattern:$0x76325410]  ;;  %v4781_v0 = vcombine.high %v11741_v42, %v11741_v42 }
 0xb49   :  { %4487 = vrot.lane.b32.xlu1 %v11733_v51, %s14119_s19  ;;  %v4602_v4 = vcombine.high %v11733_v51, %v11733_v51  ;;  %5947 = vst.msk [vmem:[#allocation2 + $0x2] sm:$0x3] %vm5946_vm8, %v5945_v19 }
 0xb4b   :  { %4605 = vrot.lane.b32.xlu0 %v4602_v4, %s14157_s25 }
 0xb4d   :  { %4489 = vrot.lane.b32.xlu1 %v4602_v4, %s14119_s19  ;;  %s14161_s19 = smov 119  }
 0xb4f   :  { %4670 = vrot.lane.b32.xlu0 %v4602_v4, %s14145_s20 }
 0xb50   :  { %v5950_v28 = vld [vmem:[#allocation2 + $0x2] sm:$0x3] }
 0xb51   :  { %4539 = vrot.lane.b32.xlu1 %v11733_v51, %s14158_s14  ;;  %v5957_v38 = vsel %vm556_vm0, %v5950_v28, 0  ;;  %v11841_v25 = vld.sshfl [vmem:[#allocation2] sm:$0x33 pattern:$0x76325410] }
 0xb52   :  { %12415 = vmatpush3.bf16.msra.mxu1 %v5957_v38  ;;  %v6007_v15 = vcombine.high %v11841_v25, %v11841_v25  ;;  %v11843_v44 = vld.sshfl [vmem:[#allocation2 + $0x2] sm:$0x3 pattern:$0x76325410] }
 0xb53   :  { %4784 = vrot.lane.b32.xlu0 %v4781_v0, %s14146_s29  ;;  %12420 = vmatprep.subr.bf16.mxu1 %v14150_v53 }
 0xb55   :  { %4541 = vrot.lane.b32.xlu1 %v4602_v4, %s14158_s14  ;;  %12417 = vmatmul.mubr.msk.bf16.vlgmr.msra.gmra.mrb[28].mxu1 %vm584_vm1, %v5952_v13 }
 0xb56   :  { %12422 = vmatprep.mubr.msk.bf16.mxu1 %vm14151_vm9, %v14150_v53 }
 0xb57   :  { %4848 = vrot.lane.b32.xlu0 %v4781_v0, %s14159_s21 }
 0xb59   :  { %4603 = vrot.lane.b32.xlu1 %v11733_v51, %s14157_s25 }
 0xb5b   :  { %4913 = vrot.lane.b32.xlu0 %v4781_v0, %s14160_s24 }
 0xb5d   :  { %4668 = vrot.lane.b32.xlu1 %v11733_v51, %s14145_s20  ;;  %v4593_v51 = vld [vmem:[#allocation30 + $0x4] sm:$0x3] }
 0xb5f   :  { %4978 = vrot.lane.b32.xlu0 %v4781_v0, %s14161_s19 }
 0xb61   :  { %4782 = vrot.lane.b32.xlu1 %v11741_v42, %s14146_s29 }
 0xb63   :  { %6010 = vrot.lane.b32.xlu0 %v6007_v15, %s14145_s20 }
 0xb65   :  { %4846 = vrot.lane.b32.xlu1 %v11741_v42, %s14159_s21 }
 0xb69   :  { %4911 = vrot.lane.b32.xlu1 %v11741_v42, %s14160_s24 }
 0xb6d   :  { %4976 = vrot.lane.b32.xlu1 %v11741_v42, %s14161_s19 }
 0xb71   :  { %6008 = vrot.lane.b32.xlu1 %v11841_v25, %s14145_s20 }
 0xb75   :  { %6070 = vrot.lane.b32.xlu1 %v11843_v44, %s14146_s29 }
 0xbbb   :  { %v4488_v50 = vpop.permute.xlu1 %4487 }
 0xbbd   :  { %v4606_v6 = vpop.permute.xlu0 %4605 }
 0xbbf   :  { %v4490_v43 = vpop.permute.xlu1 %4489 }
 0xbc0   :  { %v4492_v17 = vsel %vm773_vm2, %v4488_v50, %v4490_v43  ;;  %v4658_v50 = vld [vmem:[#allocation30 + $0x6] sm:$0x3] }
 0xbc1   :  { %v4497_v58 = vsel %vm556_vm0, %v4492_v17, 0  ;;  %v4671_v37 = vpop.permute.xlu0 %4670 }
 0xbc2   :  { %12361 = vmatpush3.bf16.msra.mxu0 %v4497_v58  ;;  %v4727_v58 = vsel %vm556_vm0, %v15262_v57, 0 }
 0xbc3   :  { %v4540_v21 = vpop.permute.xlu1 %4539  ;;  %12366 = vmatprep.subr.bf16.mxu0 %v14150_v53 }
 0xbc5   :  { %12363 = vmatmul.mubr.msk.bf16.vlgmr.msra.gmra.mrb[48].mxu0 %vm584_vm1, %v4477_v35  ;;  %v4785_v47 = vpop.permute.xlu0 %4784 }
 0xbc6   :  { %12368 = vmatprep.mubr.msk.bf16.mxu0 %vm14151_vm9, %v14150_v53 }
 0xbc7   :  { %v4542_v24 = vpop.permute.xlu1 %4541 }
 0xbc8   :  { %v4544_v31 = vsel %vm4543_vm5, %v4540_v21, %v4542_v24  ;;  %v4722_v21 = vld [vmem:[#allocation30 + $0x8] sm:$0x3]  ;;  %vm4915_vm5 = vcmask 982016  }
 0xbc9   :  { %v4549_v30 = vsel %vm556_vm0, %v4544_v31, 0  ;;  %v4849_v56 = vpop.permute.xlu0 %4848  ;;  %v4772_v31 = vld [vmem:[#allocation30 + $0xa] sm:$0x3] }
 0xbca   :  { %12367 = vmatpush3.bf16.msra.mxu0 %v4549_v30 }
 0xbcb   :  { %v4604_v9 = vpop.permute.xlu1 %4603  ;;  %12372 = vmatprep.subr.bf16.mxu0 %v14150_v53 }
 0xbcc   :  { %v4608_v59 = vsel %vm4607_vm4, %v4604_v9, %v4606_v6  ;;  %v5949_v6 = vld [vmem:[#allocation32] sm:$0x3]  ;;  %vm4850_vm4 = vcmask 990208   ;;  %v4836_v9 = vld [vmem:[#allocation30 + $0xc] sm:$0x3] }
 0xbcd   :  { %v4613_v29 = vsel %vm556_vm0, %v4608_v59, 0  ;;  %v4914_v40 = vpop.permute.xlu0 %4913 }
 0xbcf   :  { %v4669_v49 = vpop.permute.xlu1 %4668 }
 0xbd0   :  { %v4672_v42 = vsel %vm1505_vm14, %v4669_v49, %v4671_v37  ;;  %v6061_v37 = vld [vmem:[#allocation32 + $0x4] sm:$0x3]  ;;  %v4901_v49 = vld [vmem:[#allocation30 + $0xe] sm:$0x3] }
 0xbd1   :  { %12369 = vmatmul.mubr.msk.bf16.vlgmr.msra.gmra.mrb[48].mxu0 %vm584_vm1, %v4475_v63  ;;  %v4677_v28 = vsel %vm556_vm0, %v4672_v42, 0  ;;  %v4979_v38 = vpop.permute.xlu0 %4978 }
 0xbd2   :  { %12373 = vmatpush3.bf16.msra.mxu0 %v4613_v29  ;;  %12374 = vmatprep.mubr.msk.bf16.mxu0 %vm14151_vm9, %v14150_v53  ;;  %v4966_v29 = vld [vmem:[#allocation30 + $0x10] sm:$0x3] }
 0xbd3   :  { %v4783_v55 = vpop.permute.xlu1 %4782  ;;  %12378 = vmatprep.subr.bf16.mxu0 %v14150_v53 }
 0xbd4   :  { %v4786_v35 = vsel %vm1886_vm15, %v4783_v55, %v4785_v47  ;;  %v11845_v55 = vld [vmem:[#allocation11] ss:$0 sm:$0xff] }
 0xbd5   :  { %v6011_v13 = vpop.permute.xlu0 %6010  ;;  %v4791_v24 = vsel %vm556_vm0, %v4786_v35, 0 }
 0xbd7   :  { %v4847_v19 = vpop.permute.xlu1 %4846 }
 0xbd8   :  { %v4851_v57 = vsel %vm4850_vm4, %v4847_v19, %v4849_v56  ;;  %vm4980_vm4 = vcmask 973824  }
 0xbd9   :  { %v4856_v30 = vsel %vm556_vm0, %v4851_v57, 0  ;;  %v13118_v57 = vld [vmem:[#allocation21 + $0x4] ss:$24 sps:$4 sm:$0xff]  }
 0xbdb   :  { %v4912_v4 = vpop.permute.xlu1 %4911 }
 0xbdc   :  { %v4916_v47 = vsel %vm4915_vm5, %v4912_v4, %v4914_v40  ;;  %vm6130_vm5 = vcmask 289792  }
 0xbdd   :  { %12375 = vmatmul.mubr.msk.bf16.vlgmr.msra.gmra.mrb[48].mxu0 %vm584_vm1, %v4593_v51  ;;  %v4921_v59 = vsel %vm556_vm0, %v4916_v47, 0  ;;  %v13124_v47 = vld [vmem:[#allocation21 + $0x64] ss:$24 sps:$4 sm:$0xff]  }
 0xbde   :  { %12379 = vmatpush3.bf16.msra.mxu0 %v4677_v28  ;;  %12380 = vmatprep.mubr.msk.bf16.mxu0 %vm14151_vm9, %v14150_v53 }
 0xbdf   :  { %v4977_v0 = vpop.permute.xlu1 %4976  ;;  %12384 = vmatprep.subr.bf16.mxu0 %v14150_v53 }
 0xbe0   :  { %v4981_v63 = vsel %vm4980_vm4, %v4977_v0, %v4979_v38  ;;  %v5032_v38 = vld [vmem:[#allocation44 + $0x4] sm:$0xf]  ;;  %vm6248_vm4 = vcmask 293888  }
 0xbe1   :  { %v4986_v56 = vsel %vm556_vm0, %v4981_v63, 0  ;;  %v11749_v0 = vld [vmem:[#allocation9] ss:$0 sm:$0xff] }
 0xbe3   :  { %v6009_v25 = vpop.permute.xlu1 %6008 }
 0xbe4   :  { %v6012_v15 = vsel %vm1505_vm14, %v6009_v25, %v6011_v13 }
 0xbe5   :  { %v6017_v44 = vsel %vm556_vm0, %v6012_v15, 0 }
 0xbe6   :  { %12421 = vmatpush3.bf16.msra.mxu1 %v6017_v44 }
 0xbe7   :  { %v6071_v43 = vpop.permute.xlu1 %6070  ;;  %12426 = vmatprep.subr.bf16.mxu1 %v14150_v53 }
 0xbe8   :  { %v6076_v17 = vsel %vm556_vm0, %v6071_v43, 0 }
 0xbe9   :  { %12381 = vmatmul.mubr.msk.bf16.vlgmr.msra.gmra.mrb[48].mxu0 %vm584_vm1, %v4658_v50  ;;  %12423 = vmatmul.mubr.msk.bf16.vlgmr.msra.gmra.mrb[28].mxu1 %vm584_vm1, %v5949_v6 }
 0xbea   :  { %12385 = vmatpush3.bf16.msra.mxu0 %v4727_v58  ;;  %12427 = vmatpush3.bf16.msra.mxu1 %v6076_v17 }
 0xbeb   :  { %12386 = vmatprep.mubr.msk.bf16.mxu0 %vm14151_vm9, %v14150_v53  ;;  %12390 = vmatprep.subr.bf16.mxu0 %v14150_v53 }
 0xbec   :  { %12428 = vmatprep.mubr.msk.bf16.mxu1 %vm14151_vm9, %v14150_v53 }
 0xbf5   :  { %12387 = vmatmul.mubr.msk.bf16.vlgmr.msra.gmra.mrb[48].mxu0 %vm584_vm1, %v4722_v21  ;;  %12429 = vmatmul.mubr.msk.bf16.vlgmr.msra.gmra.mrb[28].mxu1 %vm584_vm1, %v6061_v37 }
 0xbf6   :  { %12391 = vmatpush3.bf16.msra.mxu0 %v4791_v24  ;;  %12392 = vmatprep.mubr.msk.bf16.mxu0 %vm14151_vm9, %v14150_v53  ;;  %v13116_v24 = vld [vmem:[#allocation21] ss:$24 sps:$4 sm:$0xff]  }
 0xbf7   :  { %12396 = vmatprep.subr.bf16.mxu0 %v14150_v53  ;;  %6343 = vmatprep.mubr.bf16.mxu1 %v14660_v26 }
 0xc01   :  { %12393 = vmatmul.mubr.msk.bf16.vlgmr.msra.gmra.mrb[48].mxu0 %vm584_vm1, %v4772_v31  ;;  %v13121_v31 = vld [vmem:[#allocation21 + $0x34] ss:$24 sps:$4 sm:$0xff]  }
 0xc02   :  { %12397 = vmatpush3.bf16.msra.mxu0 %v4856_v30  ;;  %12398 = vmatprep.mubr.msk.bf16.mxu0 %vm14151_vm9, %v14150_v53  ;;  %v13119_v30 = vld [vmem:[#allocation21 + $0x30] ss:$24 sps:$4 sm:$0xff]  }
 0xc03   :  { %12402 = vmatprep.subr.bf16.mxu0 %v14150_v53 }
 0xc0d   :  { %12399 = vmatmul.mubr.msk.bf16.vlgmr.msra.gmra.mrb[48].mxu0 %vm584_vm1, %v4836_v9  ;;  %v13122_v9 = vld [vmem:[#allocation21 + $0x60] ss:$24 sps:$4 sm:$0xff]  }
 0xc0e   :  { %12403 = vmatpush3.bf16.msra.mxu0 %v4921_v59  ;;  %12404 = vmatprep.mubr.msk.bf16.mxu0 %vm14151_vm9, %v14150_v53 }
 0xc0f   :  { %12408 = vmatprep.subr.bf16.mxu0 %v14150_v53 }
 0xc19   :  { %12405 = vmatmul.mubr.msk.bf16.vlgmr.msra.gmra.mrb[48].mxu0 %vm584_vm1, %v4901_v49 }
 0xc1a   :  { %12409 = vmatpush3.bf16.msra.mxu0 %v4986_v56  ;;  %12410 = vmatprep.mubr.msk.bf16.mxu0 %vm14151_vm9, %v14150_v53 }
 0xc1b   :  { %5355 = vmatprep.subr.bf16.mxu0 %v13118_v57  ;;  %v13145_v57 = vld [vmem:[#allocation21 + $0x150] ss:$24 sps:$4 sm:$0xff]  }
 0xc25   :  { %12411 = vmatmul.mubr.msk.bf16.vlgmr.msra.gmra.mrb[48].mxu0 %vm584_vm1, %v4966_v29 }
 0xc26   :  { %5387 = vmatprep.mubr.bf16.mxu0 %v14660_v26  ;;  %5356 = vmatpush1.bf16.msra.mxu0 %v13116_v24  ;;  %v13147_v24 = vld [vmem:[#allocation21 + $0x154] ss:$24 sps:$4 sm:$0xff]  }
 0xc27   :  { %5357 = vmatprep.subr.bf16.mxu0 %v13121_v31  ;;  %v13148_v31 = vld [vmem:[#allocation18 + $0x40] sm:$0xff]  }
 0xc2a   :  { %5358 = vmatpush1.bf16.msra.mxu0 %v13119_v30  ;;  %v13152_v30 = vld [vmem:[#allocation21 + $0xc] ss:$24 sps:$4 sm:$0xff]  }
 0xc2b   :  { %5359 = vmatprep.subr.bf16.mxu0 %v13124_v47 }
 0xc2e   :  { %5360 = vmatpush1.bf16.msra.mxu0 %v13122_v9 }
 0xcc8   :  { %v6112_v40 = vpop.f32.mrb[28].mxu1 }
 0xcc9   :  { %v6129_v19 = vmul.f32 %v11845_v55, %v6112_v40  ;;  %v12430_v42 = vpop.f32.mrb[29].mxu1 }
 0xcca   :  { %v6115_v51 = vpop.f32.mrb[30].mxu1  ;;  %v13128_v42 = vld [vmem:[#allocation21 + $0xc0] ss:$24 sps:$4 sm:$0xff]  }
 0xccb   :  { %v6131_v4 = vsel %vm6130_vm5, %v6129_v19, 0.0  ;;  %v12431_v28 = vpop.f32.mrb[31].mxu1  ;;  %v13125_v19 = vld [vmem:[#allocation21 + $0x90] ss:$24 sps:$4 sm:$0xff]   ;;  %v13130_v51 = vld [vmem:[#allocation21 + $0xc4] ss:$24 sps:$4 sm:$0xff]  }
 0xccc   :  { %6132 = vadd.xlane.f32.xlu1 %v6131_v4  ;;  %v5030_v4 = vld [vmem:[#allocation44] sm:$0xf]  ;;  %v13133_v28 = vld [vmem:[#allocation23 + $0xc] ss:$24 sps:$4 sm:$0xff]  }
 0xccd   :  { %6311 = vmatprep.subr.bf16.mxu1 %v13133_v28 }
 0xcdd   :  { %5062 = vperm.xlu1 %12953, %v5032_v38   ;;  %v13131_v38 = vld [vmem:[#allocation23 + $0x8] ss:$24 sps:$4 sm:$0xff]  }
 0xcde   :  { %6312 = vmatpush1.bf16.msra.mxu1 %v13131_v38 }
 0xcf8   :  { %v5022_v13 = vpop.f32.mrb[48].mxu0 }
 0xcf9   :  { %v5039_v25 = vmul.f32 %v11749_v0, %v5022_v13  ;;  %v12412_v15 = vpop.f32.mrb[49].mxu0 }
 0xcfa   :  { %v5025_v44 = vpop.f32.mrb[50].mxu0  ;;  %v13139_v15 = vld [vmem:[#allocation23 + $0x3c] ss:$24 sps:$4 sm:$0xff]  }
 0xcfb   :  { %v12413_v50 = vpop.f32.mrb[51].mxu0  ;;  %v5040_v6 = vsel %vm2648_vm6, %v5039_v25, 0.0  ;;  %v13136_v25 = vld [vmem:[#allocation21 + $0xf4] ss:$24 sps:$4 sm:$0xff]   ;;  %v13137_v44 = vld [vmem:[#allocation23 + $0x38] ss:$24 sps:$4 sm:$0xff]   ;;  %6313 = vmatprep.subr.bf16.mxu1 %v13139_v15 }
 0xcfc   :  { %5041 = vadd.xlane.f32.xlu0 %v5040_v6  ;;  %v6122_v50 = vld [vmem:[#allocation45 + $0x4] sm:$0xf]  ;;  %v13142_v6 = vld [vmem:[#allocation21 + $0x124] ss:$24 sps:$4 sm:$0xff]   ;;  %6314 = vmatpush1.bf16.msra.mxu1 %v13137_v44  ;;  %v13149_v15 = vld [vmem:[#allocation18] sm:$0xff]  }
 0xd59   :  { %v6133_v43 = vpop.xlane.xlu1 %6132 }
 0xd5a   :  { %v6134_v17 = vmul.f32 0.03125, %v6133_v43  ;;  %v6171_v43 = vld [vmem:[#allocation23 + $0x68] sm:$0x33] }
 0xd5c   :  { %v15337_v58 = vsub.f32 %v6112_v40, %v6134_v17  ;;  %v13127_v40 = vld [vmem:[#allocation21 + $0x94] ss:$24 sps:$4 sm:$0xff]   ;;  %v13140_v17 = vld [vmem:[#allocation21 + $0x120] ss:$24 sps:$4 sm:$0xff]  }
 0xd5d   :  { %5361 = vmatprep.subr.bf16.mxu0 %v13127_v40  ;;  %v5063_v47 = vpop.permute.xlu1 %5062 }
 0xd5e   :  { %v6136_v35 = vmul.f32 %v11845_v55, %v15337_v58  ;;  %5362 = vmatpush1.bf16.msra.mxu0 %v13125_v19 }
 0xd5f   :  { %5363 = vmatprep.subr.bf16.mxu0 %v13130_v51 }
 0xd60   :  { %v6137_v21 = vmul.f32 %v6136_v35, %v6136_v35  ;;  %v11861_v35 = vcombine.high %v6171_v43, %v6171_v43 }
 0xd62   :  { %v6138_v37 = vsel %vm6130_vm5, %v6137_v21, 0.0  ;;  %5364 = vmatpush1.bf16.msra.mxu0 %v13128_v42  ;;  %v11860_v21 = vcombine.low %v6171_v43, %v6171_v43  ;;  %11866 = vmatprep.subr.msk.bf16.mxu1 %vm556_vm0, %v11861_v35  ;;  %v13150_v43 = vld [vmem:[#allocation21 + $0x8] ss:$24 sps:$4 sm:$0xff]  }
 0xd63   :  { %6139 = vadd.xlane.f32.xlu1 %v6138_v37  ;;  %5365 = vmatprep.subr.bf16.mxu0 %v13136_v25  ;;  %v13158_v35 = vld [vmem:[#allocation18 + $0x50] sm:$0xff]  }
 0xd64   :  { %v6259_v37 = vsel %vm556_vm0, %v11860_v21, 0  ;;  %v13155_v21 = vld [vmem:[#allocation21 + $0x38] ss:$24 sps:$4 sm:$0xff]  }
 0xd65   :  { %6316 = vmatpush1.bf16.msra.mxu1 %v6259_v37  ;;  %v13159_v37 = vld [vmem:[#allocation18 + $0x10] sm:$0xff]  }
 0xd66   :  { %12256 = vmatprep.subr.bf16.mxu1 %v13148_v31  ;;  %v13160_v31 = vld [vmem:[#allocation21 + $0x68] ss:$24 sps:$4 sm:$0xff]  }
 0xd89   :  { %v5042_v59 = vpop.xlane.xlu0 %5041 }
 0xd8a   :  { %v5043_v63 = vmul.f32 0.013888889, %v5042_v59 }
 0xd8c   :  { %v15341_v49 = vsub.f32 %v5022_v13, %v5043_v63  ;;  %v6120_v13 = vld [vmem:[#allocation45] sm:$0xf] }
 0xd8e   :  { %v5045_v56 = vmul.f32 %v11749_v0, %v15341_v49  ;;  %v13134_v0 = vld [vmem:[#allocation21 + $0xf0] ss:$24 sps:$4 sm:$0xff]  }
 0xd8f   :  { %5366 = vmatpush1.bf16.msra.mxu0 %v13134_v0 }
 0xd90   :  { %v5046_v29 = vmul.f32 %v5045_v56, %v5045_v56  ;;  %5367 = vmatprep.subr.bf16.mxu0 %v13142_v6 }
 0xd92   :  { %v5047_v55 = vsel %vm2648_vm6, %v5046_v29, 0.0 }
 0xd93   :  { %5048 = vadd.xlane.f32.xlu0 %v5047_v55  ;;  %5368 = vmatpush1.bf16.msra.mxu0 %v13140_v17 }
 0xd94   :  { %5369 = vmatprep.subr.bf16.mxu0 %v13147_v24  ;;  %v13162_v24 = vld [vmem:[#allocation21 + $0x6c] ss:$24 sps:$4 sm:$0xff]  }
 0xd97   :  { %5370 = vmatpush1.bf16.msra.mxu0 %v13145_v57  ;;  %v13163_v57 = vld [vmem:[#allocation18 + $0x58] sm:$0xff]  }
 0xd98   :  { %5396 = vmatprep.subr.bf16.mxu0 %v13152_v30  ;;  %v13168_v30 = vld [vmem:[#allocation18 + $0x60] sm:$0xff]  }
 0xda9   :  { %5056 = vperm.xlu0 %12954, %v5030_v4  }
 0xdad   :  { %6147 = vperm.xlu0 %12954, %v6120_v13  }
 0xdb1   :  { %6153 = vperm.xlu0 %12954, %v6122_v50   ;;  %v13153_v50 = vld [vmem:[#allocation18 + $0x48] sm:$0xff]  }
 0xdf0   :  { %v6140_v9 = vpop.xlane.xlu1 %6139 }
 0xdf1   :  { %v6141_v59 = vmul.f32 0.03125, %v6140_v9  ;;  %v13169_v9 = vld [vmem:[#allocation18 + $0x20] sm:$0xff]  }
 0xdf3   :  { %v6142_v63 = vadd.f32 1e-05, %v6141_v59  ;;  %v13172_v59 = vld [vmem:[#allocation21 + $0xcc] ss:$24 sps:$4 sm:$0xff]  }
 0xdf5   :  { %13285 = vrsqrt.f32 %v6142_v63  ;;  %v13173_v63 = vld [vmem:[#allocation18 + $0x68] sm:$0xff]  }
 0xdff   :  { %v13286_v19 = vpop.eup %13285 }
 0xe00   :  { %v6144_v51 = vmul.f32 %v13286_v19, %v15337_v58  ;;  %v13154_v58 = vld [vmem:[#allocation18 + $0x8] sm:$0xff]   ;;  %v13175_v19 = vld [vmem:[#allocation21 + $0xf8] ss:$24 sps:$4 sm:$0xff]  }
 0xe20   :  { %v5049_v56 = vpop.xlane.xlu0 %5048 }
 0xe21   :  { %v5050_v29 = vmul.f32 0.013888889, %v5049_v56  ;;  %v13170_v56 = vld [vmem:[#allocation21 + $0xc8] ss:$24 sps:$4 sm:$0xff]  }
 0xe23   :  { %v5051_v55 = vadd.f32 1e-05, %v5050_v29  ;;  %v13174_v29 = vld [vmem:[#allocation18 + $0x28] sm:$0xff]  }
 0xe25   :  { %13287 = vrsqrt.f32 %v5051_v55  ;;  %v13177_v55 = vld [vmem:[#allocation21 + $0xfc] ss:$24 sps:$4 sm:$0xff]  }
 0xe28   :  { %v5057_v40 = vpop.permute.xlu0 %5056 }
 0xe2c   :  { %v6148_v42 = vpop.permute.xlu0 %6147 }
 0xe2d   :  { %v6150_v28 = vmul.f32 %v6148_v42, %v6144_v51  ;;  %v13179_v42 = vld [vmem:[#allocation18 + $0x30] sm:$0xff]  }
 0xe2e   :  { %v13182_v51 = vld [vmem:[#allocation21 + $0x12c] ss:$24 sps:$4 sm:$0xff]  }
 0xe2f   :  { %v13288_v4 = vpop.eup %13287 }
 0xe30   :  { %v5053_v38 = vmul.f32 %v13288_v4, %v15341_v49  ;;  %v6154_v13 = vpop.permute.xlu0 %6153  ;;  %v13157_v49 = vld [vmem:[#allocation21 + $0x3c] ss:$24 sps:$4 sm:$0xff]   ;;  %v13183_v4 = vld [vmem:[#allocation18 + $0x78] sm:$0xff]  }
 0xe31   :  { %v6156_v25 = vadd.f32 %v6154_v13, %v6150_v28  ;;  %v13180_v28 = vld [vmem:[#allocation21 + $0x128] ss:$24 sps:$4 sm:$0xff]   ;;  %v13187_v13 = vld [vmem:[#allocation21 + $0x15c] ss:$24 sps:$4 sm:$0xff]  }
 0xe32   :  { %v5059_v0 = vmul.f32 %v5057_v40, %v5053_v38  ;;  %v13178_v40 = vld [vmem:[#allocation18 + $0x70] sm:$0xff]   ;;  %v13184_v38 = vld [vmem:[#allocation18 + $0x38] sm:$0xff]  }
 0xe33   :  { %v15349_v44 = vpack.c.bf16 %v6156_v25, %v6156_v25  ;;  %v13185_v25 = vld [vmem:[#allocation21 + $0x158] ss:$24 sps:$4 sm:$0xff]  }
 0xe34   :  { %v5065_v6 = vadd.f32 %v5063_v47, %v5059_v0  ;;  %v13165_v47 = vld [vmem:[#allocation21 + $0x98] ss:$24 sps:$4 sm:$0xff]  }
 0xe35   :  { %11867 = vmatmul.mubr.msk.bf16.vlgmr.msra.gmra.mrb[32].mxu1 %vm6248_vm4, %v15349_v44  ;;  %v13188_v0 = vld [vmem:[#allocation18 + $0x100] sm:$0xff]  }
 0xe36   :  { %v15353_v17 = vpack.c.bf16 %v5065_v6, %v5065_v6  ;;  %12257 = vmatpush3.bf16.msra.mxu1 %v13149_v15  ;;  %6752 = vmatprep.mubr.bf16.mxu1 %v5566_v39  ;;  %v13167_v39 = vld [vmem:[#allocation21 + $0x9c] ss:$24 sps:$4 sm:$0xff]  }
 0xe37   :  { %12258 = vmatprep.subr.bf16.mxu1 %v13153_v50  ;;  %v13191_v15 = vld [vmem:[#allocation21 + $0x14] ss:$24 sps:$4 sm:$0xff]   ;;  %v13189_v50 = vld [vmem:[#allocation21 + $0x10] ss:$24 sps:$4 sm:$0xff]   ;;  %v13192_v6 = vld [vmem:[#allocation18 + $0x108] sm:$0xff]  }
 0xe38   :  { %5388 = vmatmul.mubr.bf16.vlgmr.msra.gmra.mrb[28].mxu0 %v15353_v17 }
 0xe39   :  { %5397 = vmatpush1.bf16.msra.mxu0 %v13150_v43  ;;  %5428 = vmatprep.mubr.bf16.mxu0 %v14660_v26  ;;  %v13195_v43 = vld [vmem:[#allocation21 + $0x44] ss:$24 sps:$4 sm:$0xff]  }
 0xe3a   :  { %12259 = vmatpush3.bf16.msra.mxu1 %v13154_v58  ;;  %5398 = vmatprep.subr.bf16.mxu0 %v13157_v49  ;;  %v13193_v58 = vld [vmem:[#allocation21 + $0x40] ss:$24 sps:$4 sm:$0xff]   ;;  %v13203_v49 = vld [vmem:[#allocation21 + $0xa4] ss:$24 sps:$4 sm:$0xff]  }
 0xe3b   :  { %12260 = vmatprep.subr.bf16.mxu1 %v13158_v35  ;;  %v13201_v35 = vld [vmem:[#allocation21 + $0xa0] ss:$24 sps:$4 sm:$0xff]  }
 0xe3d   :  { %5399 = vmatpush1.bf16.msra.mxu0 %v13155_v21  ;;  %v13204_v21 = vld [vmem:[#allocation18 + $0x120] sm:$0xff]  }
 0xe3e   :  { %12261 = vmatpush3.bf16.msra.mxu1 %v13159_v37  ;;  %5400 = vmatprep.subr.bf16.mxu0 %v13162_v24  ;;  %v13207_v37 = vld [vmem:[#allocation21 + $0xd4] ss:$24 sps:$4 sm:$0xff]   ;;  %v13205_v24 = vld [vmem:[#allocation21 + $0xd0] ss:$24 sps:$4 sm:$0xff]  }
 0xe3f   :  { %12262 = vmatprep.subr.bf16.mxu1 %v13163_v57  ;;  %v13208_v57 = vld [vmem:[#allocation18 + $0x128] sm:$0xff]  }
 0xe41   :  { %5401 = vmatpush1.bf16.msra.mxu0 %v13160_v31  ;;  %v13211_v31 = vld [vmem:[#allocation21 + $0x104] ss:$24 sps:$4 sm:$0xff]  }
 0xe42   :  { %12263 = vmatpush3.bf16.msra.mxu1 %v13164_v52  ;;  %5402 = vmatprep.subr.bf16.mxu0 %v13167_v39  ;;  %v13209_v52 = vld [vmem:[#allocation21 + $0x100] ss:$24 sps:$4 sm:$0xff]   ;;  %v13212_v39 = vld [vmem:[#allocation18 + $0x130] sm:$0xff]  }
 0xe43   :  { %12264 = vmatprep.subr.bf16.mxu1 %v13168_v30  ;;  %v13215_v30 = vld [vmem:[#allocation21 + $0x134] ss:$24 sps:$4 sm:$0xff]  }
 0xe45   :  { %5403 = vmatpush1.bf16.msra.mxu0 %v13165_v47  ;;  %v13213_v47 = vld [vmem:[#allocation21 + $0x130] ss:$24 sps:$4 sm:$0xff]  }
 0xe46   :  { %12265 = vmatpush3.bf16.msra.mxu1 %v13169_v9  ;;  %5404 = vmatprep.subr.bf16.mxu0 %v13172_v59  ;;  %v13216_v9 = vld [vmem:[#allocation18 + $0x138] sm:$0xff]   ;;  %v13219_v59 = vld [vmem:[#allocation21 + $0x164] ss:$24 sps:$4 sm:$0xff]  }
 0xe47   :  { %12266 = vmatprep.subr.bf16.mxu1 %v13173_v63  ;;  %v13220_v63 = vld [vmem:[#allocation18 + $0x140] ss:$0 sps:$4 sm:$0xff]  }
 0xe49   :  { %5405 = vmatpush1.bf16.msra.mxu0 %v13170_v56  ;;  %v13217_v56 = vld [vmem:[#allocation21 + $0x160] ss:$24 sps:$4 sm:$0xff]  }
 0xe4a   :  { %12267 = vmatpush3.bf16.msra.mxu1 %v13174_v29  ;;  %5406 = vmatprep.subr.bf16.mxu0 %v13177_v55  ;;  %v13223_v29 = vld [vmem:[#allocation23 + $0x4] ss:$24 sps:$4 sm:$0xff]   ;;  %v6718_v55 = vsel %vm2648_vm6, %v13220_v63, 0 }
 0xe4b   :  { %12268 = vmatprep.subr.bf16.mxu1 %v13178_v40  ;;  %v13221_v40 = vld [vmem:[#allocation23] ss:$24 sps:$4 sm:$0xff]  }
 0xe4d   :  { %5407 = vmatpush1.bf16.msra.mxu0 %v13175_v19  ;;  %v13226_v19 = vld [vmem:[#allocation23 + $0x34] ss:$24 sps:$4 sm:$0xff]  }
 0xe4e   :  { %12269 = vmatpush3.bf16.msra.mxu1 %v13179_v42  ;;  %5408 = vmatprep.subr.bf16.mxu0 %v13182_v51  ;;  %v6170_v42 = vld [vmem:[#allocation23 + $0x60] sm:$0x33]  ;;  %v13224_v51 = vld [vmem:[#allocation23 + $0x30] ss:$24 sps:$4 sm:$0xff]  }
 0xe4f   :  { %12270 = vmatprep.subr.bf16.mxu1 %v13183_v4  ;;  %v11859_v4 = vcombine.high %v6170_v42, %v6170_v42 }
 0xe51   :  { %5409 = vmatpush1.bf16.msra.mxu0 %v13180_v28  ;;  %v11858_v28 = vcombine.low %v6170_v42, %v6170_v42 }
 0xe52   :  { %12271 = vmatpush3.bf16.msra.mxu1 %v13184_v38  ;;  %5410 = vmatprep.subr.bf16.mxu0 %v13187_v13  ;;  %v13231_v13 = vld [vmem:[#allocation23 + $0x14] ss:$24 sps:$4 sm:$0xff]  }
 0xe53   :  { %6800 = vmatprep.subr.bf16.mxu1 %v14660_v26  ;;  %v6253_v38 = vsel %vm556_vm0, %v11858_v28, 0 }
 0xe55   :  { %5411 = vmatpush1.bf16.msra.mxu0 %v13185_v25  ;;  %6753 = vmatmul.mubr.bf16.vlgmr.msra.gmra.mrb[36].mxu1 %v5565_v32  ;;  %v13199_v32 = vld [vmem:[#allocation21 + $0x74] ss:$24 sps:$4 sm:$0xff]   ;;  %v13234_v25 = vld [vmem:[#allocation23 + $0x44] ss:$24 sps:$4 sm:$0xff]  }
 0xe56   :  { %6801 = vmatpush1.bf16.msra.mxu1 %v13188_v0  ;;  %11911 = vmatprep.mubr.msk.bf16.mxu1 %vm773_vm2, %v5570_v14  ;;  %v13200_v14 = vld [vmem:[#allocation18 + $0x118] sm:$0xff]   ;;  %v11863_v0 = vcombine.high %v6172_v61, %v6172_v61  ;;  %vm16217_vm2 = vcmask 900096  }
 0xe57   :  { %5437 = vmatprep.subr.bf16.mxu0 %v13191_v15  ;;  %6802 = vmatprep.subr.bf16.mxu1 %v14660_v26  ;;  %v11862_v15 = vcombine.low %v6172_v61, %v6172_v61 }
 0xe58   :  { %5429 = vmatmul.mubr.bf16.vlgmr.msra.gmra.mrb[32].mxu0 %v15353_v17 }
 0xe59   :  { %5438 = vmatpush1.bf16.msra.mxu0 %v13189_v50  ;;  %5469 = vmatprep.mubr.bf16.mxu0 %v14660_v26  ;;  %v6265_v50 = vsel %vm556_vm0, %v11862_v15, 0 }
 0xe5a   :  { %6803 = vmatpush1.bf16.msra.mxu1 %v13192_v6  ;;  %5439 = vmatprep.subr.bf16.mxu0 %v13195_v43  ;;  %v13237_v6 = vld [vmem:[#allocation18 + $0xc0] sm:$0xff]  }
 0xe5b   :  { %6804 = vmatprep.subr.bf16.mxu1 %v14660_v26  ;;  %v13238_v43 = vld [vmem:[#allocation18 + $0x80] sm:$0xff]  }
 0xe5d   :  { %5440 = vmatpush1.bf16.msra.mxu0 %v13193_v58  ;;  %v13239_v58 = vld [vmem:[#allocation18 + $0xc8] sm:$0xff]  }
 0xe5e   :  { %6805 = vmatpush1.bf16.msra.mxu1 %v13196_v48  ;;  %5441 = vmatprep.subr.bf16.mxu0 %v13199_v32  ;;  %v13240_v48 = vld [vmem:[#allocation18 + $0x88] sm:$0xff]   ;;  %v13241_v32 = vld [vmem:[#allocation18 + $0xd0] sm:$0xff]  }
 0xe5f   :  { %6806 = vmatprep.subr.bf16.mxu1 %v14660_v26 }
 0xe61   :  { %5442 = vmatpush1.bf16.msra.mxu0 %v13197_v2  ;;  %v13242_v2 = vld [vmem:[#allocation18 + $0x90] sm:$0xff]  }
 0xe62   :  { %6807 = vmatpush1.bf16.msra.mxu1 %v13200_v14  ;;  %5443 = vmatprep.subr.bf16.mxu0 %v13203_v49  ;;  %v13243_v14 = vld [vmem:[#allocation18 + $0xd8] sm:$0xff]  }
 0xe63   :  { %6808 = vmatprep.subr.bf16.mxu1 %v14660_v26  ;;  %v13244_v49 = vld [vmem:[#allocation18 + $0x98] sm:$0xff]  }
 0xe65   :  { %5444 = vmatpush1.bf16.msra.mxu0 %v13201_v35  ;;  %v13245_v35 = vld [vmem:[#allocation18 + $0xe0] sm:$0xff]  }
 0xe66   :  { %6809 = vmatpush1.bf16.msra.mxu1 %v13204_v21  ;;  %5445 = vmatprep.subr.bf16.mxu0 %v13207_v37  ;;  %v13246_v21 = vld [vmem:[#allocation18 + $0xa0] sm:$0xff]   ;;  %v13247_v37 = vld [vmem:[#allocation18 + $0xe8] sm:$0xff]  }
 0xe67   :  { %6810 = vmatprep.subr.bf16.mxu1 %v14660_v26 }
 0xe69   :  { %5446 = vmatpush1.bf16.msra.mxu0 %v13205_v24  ;;  %v13251_v24 = vld [vmem:[#allocation18 + $0xf8] sm:$0xff]  }
 0xe6a   :  { %6811 = vmatpush1.bf16.msra.mxu1 %v13208_v57  ;;  %5447 = vmatprep.subr.bf16.mxu0 %v13211_v31  ;;  %v13252_v57 = vld [vmem:[#allocation18 + $0xb8] sm:$0xff]  }
 0xe6b   :  { %6812 = vmatprep.subr.bf16.mxu1 %v14660_v26 }
 0xe6d   :  { %5448 = vmatpush1.bf16.msra.mxu0 %v13209_v52 }
 0xe6e   :  { %6813 = vmatpush1.bf16.msra.mxu1 %v13212_v39  ;;  %5449 = vmatprep.subr.bf16.mxu0 %v13215_v30 }
 0xe6f   :  { %6814 = vmatprep.subr.bf16.mxu1 %v14660_v26 }
 0xe71   :  { %5450 = vmatpush1.bf16.msra.mxu0 %v13213_v47 }
 0xe72   :  { %6815 = vmatpush1.bf16.msra.mxu1 %v13216_v9  ;;  %5451 = vmatprep.subr.bf16.mxu0 %v13219_v59 }
 0xe73   :  { %6816 = vmatprep.subr.bf16.mxu1 %v14660_v26 }
 0xe75   :  { %5452 = vmatpush1.bf16.msra.mxu0 %v13217_v56 }
 0xe76   :  { %6817 = vmatpush1.bf16.msra.mxu1 %v6718_v55  ;;  %6270 = vmatprep.subr.bf16.mxu0 %v13223_v29 }
 0xe78   :  { %5470 = vmatmul.mubr.bf16.vlgmr.msra.gmra.mrb[36].mxu0 %v15353_v17  ;;  %v13229_v17 = vld [vmem:[#allocation23 + $0x10] ss:$24 sps:$4 sm:$0xff]  }
 0xe79   :  { %6271 = vmatpush1.bf16.msra.mxu0 %v13221_v40  ;;  %6833 = vmatmul.mubr.bf16.vlgmr.msra.gmra.mrb[40].mxu1 %v5569_v18  ;;  %v13232_v18 = vld [vmem:[#allocation23 + $0x40] ss:$24 sps:$4 sm:$0xff]  }
 0xe7a   :  { %6272 = vmatprep.subr.bf16.mxu0 %v13226_v19  ;;  %6302 = vmatprep.mubr.bf16.mxu0 %v14660_v26 }
 0xe7b   :  { %7274 = vmatprep.mubr.bf16.mxu1 %v14660_v26 }
 0xe7d   :  { %6273 = vmatpush1.bf16.msra.mxu0 %v13224_v51 }
 0xe7e   :  { %11864 = vmatprep.subr.msk.bf16.mxu0 %vm556_vm0, %v11859_v4 }
 0xe81   :  { %6275 = vmatpush1.bf16.msra.mxu0 %v6253_v38 }
 0xe82   :  { %6352 = vmatprep.subr.bf16.mxu0 %v13231_v13 }
 0xe84   :  { %11865 = vmatmul.mubr.msk.bf16.vlgmr.msra.gmra.mrb[52].mxu0 %vm6248_vm4, %v15349_v44 }
 0xe85   :  { %6353 = vmatpush1.bf16.msra.mxu0 %v13229_v17  ;;  %6384 = vmatprep.mubr.bf16.mxu0 %v14660_v26 }
 0xe86   :  { %6354 = vmatprep.subr.bf16.mxu0 %v13234_v25 }
 0xe89   :  { %6355 = vmatpush1.bf16.msra.mxu0 %v13232_v18 }
 0xe8a   :  { %11868 = vmatprep.subr.msk.bf16.mxu0 %vm556_vm0, %v11863_v0 }
 0xe8d   :  { %6357 = vmatpush1.bf16.msra.mxu0 %v6265_v50 }
 0xe8e   :  { %12278 = vmatprep.subr.bf16.mxu0 %v13237_v6 }
 0xe90   :  { %11869 = vmatmul.mubr.msk.bf16.vlgmr.msra.gmra.mrb[56].mxu0 %vm6248_vm4, %v15349_v44  ;;  %v13248_v44 = vld [vmem:[#allocation18 + $0xa8] sm:$0xff]  }
 0xe91   :  { %12279 = vmatpush3.bf16.msra.mxu0 %v13238_v43  ;;  %6792 = vmatprep.mubr.bf16.mxu0 %v5568_v54  ;;  %v13250_v54 = vld [vmem:[#allocation18 + $0xb0] sm:$0xff]  }
 0xe92   :  { %12280 = vmatprep.subr.bf16.mxu0 %v13239_v58 }
 0xe95   :  { %12281 = vmatpush3.bf16.msra.mxu0 %v13240_v48 }
 0xe96   :  { %12282 = vmatprep.subr.bf16.mxu0 %v13241_v32 }
 0xe99   :  { %12283 = vmatpush3.bf16.msra.mxu0 %v13242_v2 }
 0xe9a   :  { %12284 = vmatprep.subr.bf16.mxu0 %v13243_v14 }
 0xe9d   :  { %12285 = vmatpush3.bf16.msra.mxu0 %v13244_v49 }
 0xe9e   :  { %12286 = vmatprep.subr.bf16.mxu0 %v13245_v35  ;;  %v6846_v35 = vld [vmem:[#allocation33 + $0x2] sm:$0x3] }
 0xea1   :  { %12287 = vmatpush3.bf16.msra.mxu0 %v13246_v21 }
 0xea2   :  { %12288 = vmatprep.subr.bf16.mxu0 %v13247_v37 }
 0xea5   :  { %12289 = vmatpush3.bf16.msra.mxu0 %v13248_v44  ;;  %v2641_v44 = vld [vmem:[#allocation41 + $0x4] sm:$0xf] }
 0xea6   :  { %12290 = vmatprep.subr.bf16.mxu0 %v13249_v16 }
 0xea9   :  { %12291 = vmatpush3.bf16.msra.mxu0 %v13250_v54 }
 0xeaa   :  { %12292 = vmatprep.subr.bf16.mxu0 %v13251_v24 }
 0xead   :  { %12293 = vmatpush3.bf16.msra.mxu0 %v13252_v57 }
 0xeae   :  { %12432 = vmatprep.subr.bf16.mxu0 %v14150_v53 }
 0xeb0   :  { %6793 = vmatmul.mubr.bf16.vlgmr.msra.gmra.mrb[60].mxu0 %v5567_v7 }
 0xeb1   :  { %12434 = vmatprep.mubr.msk.bf16.mxu0 %vm14151_vm9, %v14150_v53 }
 0xf0b   :  { %v15397_v31 = vpop.f32.mrb[28].mxu0 }
 0xf0c   :  { %v15399_v52 = vpop.f32.mrb[29].mxu0 }
 0xf0d   :  { %v5393_v39 = vpop.f32.mrb[30].mxu0 }
 0xf0e   :  { %v5394_v30 = vpop.f32.mrb[31].mxu0  ;;  %v6843_v39 = vld [vmem:[#allocation33] sm:$0x3] }
 0xf28   :  { %v12272_v47 = vpop.f32.mrb[36].mxu1 }
 0xf29   :  { %v12273_v9 = vpop.f32.mrb[37].mxu1 }
 0xf2a   :  { %v12274_v59 = vadd.f32 %v12273_v9, %v12272_v47  ;;  %v12275_v63 = vpop.f32.mrb[38].mxu1 }
 0xf2b   :  { %v15401_v56 = vpop.f32.mrb[32].mxu0  ;;  %v12276_v29 = vpop.f32.mrb[39].mxu1 }
 0xf2c   :  { %v15403_v55 = vpop.f32.mrb[33].mxu0 }
 0xf2d   :  { %v5434_v41 = vpop.f32.mrb[34].mxu0 }
 0xf2e   :  { %v5435_v7 = vpop.f32.mrb[35].mxu0 }
 0xf4b   :  { %v15405_v40 = vpop.f32.mrb[36].mxu0 }
 0xf4c   :  { %v15407_v19 = vpop.f32.mrb[37].mxu0  ;;  %v6834_v42 = vpop.f32.mrb[40].mxu1 }
 0xf4d   :  { %v5475_v51 = vpop.f32.mrb[38].mxu0  ;;  %v6836_v4 = vpop.f32.mrb[41].mxu1 }
 0xf4e   :  { %v5476_v28 = vpop.f32.mrb[39].mxu0  ;;  %v6837_v38 = vpop.f32.mrb[42].mxu1 }
 0xf4f   :  { %v6838_v13 = vpop.f32.mrb[43].mxu1 }
 0xf57   :  { %v15409_v17 = vpop.f32.mrb[52].mxu0 }
 0xf58   :  { %v15411_v25 = vpop.f32.mrb[53].mxu0 }
 0xf59   :  { %v6308_v61 = vpop.f32.mrb[54].mxu0 }
 0xf5a   :  { %v6309_v18 = vpop.f32.mrb[55].mxu0 }
 0xf83   :  { %v12294_v0 = vpop.f32.mrb[60].mxu0 }
 0xf84   :  { %v12295_v15 = vpop.f32.mrb[61].mxu0 }
 0xf85   :  { %v12296_v50 = vadd.f32 %v12295_v15, %v12294_v0  ;;  %v12297_v6 = vpop.f32.mrb[62].mxu0 }
 0xf86   :  { %v12298_v43 = vpop.f32.mrb[63].mxu0 }
 0xf87   :  { %v6795_v58 = vadd.f32 %v12296_v50, %v12274_v59 }
 0xf89   :  { %v6835_v48 = vadd.f32 %v6834_v42, %v6795_v58 }
 0xf8b   :  { %v6840_v32 = vpack.c.bf16 %v6835_v48, %v6835_v48 }
 0xf8d   :  { %6841 = vst.msk [vmem:[#allocation2 + $0x2] sm:$0x3] %vm5946_vm8, %v6840_v32  ;;  %vm16219_vm8 = vmmov %vm16217_vm2 }
 0xf94   :  { %v11913_v2 = vld.sshfl [vmem:[#allocation2] sm:$0x33 pattern:$0x76325410] }
 0xf95   :  { %v6844_v14 = vld [vmem:[#allocation2 + $0x2] sm:$0x3]  ;;  %6902 = vrot.lane.b32.xlu0 %v11913_v2, %s14145_s20  ;;  %v6901_v21 = vcombine.high %v11913_v2, %v11913_v2 }
 0xf96   :  { %v6851_v49 = vsel %vm556_vm0, %v6844_v14, 0  ;;  %v11915_v37 = vld.sshfl [vmem:[#allocation2 + $0x2] sm:$0x3 pattern:$0x76325410] }
 0xf97   :  { %12433 = vmatpush3.bf16.msra.mxu0 %v6851_v49  ;;  %v2639_v49 = vld [vmem:[#allocation41] sm:$0xf] }
 0xf98   :  { %12438 = vmatprep.subr.bf16.mxu0 %v14150_v53 }
 0xf99   :  { %6904 = vrot.lane.b32.xlu0 %v6901_v21, %s14145_s20 }
 0xf9a   :  { %12435 = vmatmul.mubr.msk.bf16.vlgmr.msra.gmra.mrb[64].mxu0 %vm584_vm1, %v6846_v35 }
 0xf9b   :  { %12440 = vmatprep.mubr.msk.bf16.mxu0 %vm14151_vm9, %v14150_v53 }
 0xf9d   :  { %6964 = vrot.lane.b32.xlu0 %v11915_v37, %s14146_s29 }
 0xfbc   :  { %2661 = vadd.xlane.f32.xlu0 %v15135_v11  ;;  %v6955_v11 = vld [vmem:[#allocation33 + $0x4] sm:$0x3] }
 0xfd2   :  { %2717 = vperm.xlu0 %12954, %v2641_v44  }
0x1007   :  { %v6903_v16 = vpop.permute.xlu0 %6902 }
0x100b   :  { %v6905_v54 = vpop.permute.xlu0 %6904 }
0x100c   :  { %v6906_v24 = vsel %vm1505_vm14, %v6903_v16, %v6905_v54 }
0x100d   :  { %v6911_v57 = vsel %vm556_vm0, %v6906_v24, 0 }
0x100e   :  { %12439 = vmatpush3.bf16.msra.mxu0 %v6911_v57 }
0x100f   :  { %v6965_v30 = vpop.permute.xlu0 %6964  ;;  %12444 = vmatprep.subr.bf16.mxu0 %v14150_v53 }
0x1010   :  { %v6970_v47 = vsel %vm556_vm0, %v6965_v30, 0 }
0x1011   :  { %12441 = vmatmul.mubr.msk.bf16.vlgmr.msra.gmra.mrb[64].mxu0 %vm584_vm1, %v6843_v39 }
0x1012   :  { %12445 = vmatpush3.bf16.msra.mxu0 %v6970_v47  ;;  %12446 = vmatprep.mubr.msk.bf16.mxu0 %vm14151_vm9, %v14150_v53  ;;  %vm16218_vm9 = vmmov %vm16217_vm2 }
0x101d   :  { %12447 = vmatmul.mubr.msk.bf16.vlgmr.msra.gmra.mrb[64].mxu0 %vm584_vm1, %v6955_v11 }
0x101e   :  { %7233 = vmatprep.mubr.bf16.mxu0 %v14660_v26 }
0x1049   :  { %v2662_v9 = vpop.xlane.xlu0 %2661 }
0x104a   :  { %v2663_v59 = vmul.f32 0.001953125, %v2662_v9 }
0x104c   :  { %v2664_v63 = vsub.f32 %v15109_v1, %v2663_v59  ;;  %v2665_v29 = vsub.f32 %v15113_v20, %v2663_v59  ;;  %v2666_v41 = vsub.f32 %v15105_v27, %v2663_v59  ;;  %v2667_v7 = vsub.f32 %v15107_v36, %v2663_v59 }
0x104d   :  { %v2668_v42 = vsub.f32 %v15125_v60, %v2663_v59  ;;  %v2669_v51 = vsub.f32 %v15129_v10, %v2663_v59 }
0x104e   :  { %v2670_v53 = vmul.f32 %v2664_v63, %v14629_v22  ;;  %v2671_v4 = vmul.f32 %v2665_v29, %v14631_v23  ;;  %v2672_v28 = vmul.f32 %v2666_v41, %v14637_v33  ;;  %v2673_v38 = vmul.f32 %v2667_v7, %v14639_v34 }
0x104f   :  { %v2674_v1 = vmul.f32 %v2668_v42, %v14645_v45  ;;  %v2675_v27 = vmul.f32 %v2669_v51, %v14647_v46 }
0x1050   :  { %v2676_v13 = vmul.f32 %v2670_v53, %v2670_v53  ;;  %v2677_v20 = vmul.f32 %v2671_v4, %v2671_v4  ;;  %v2678_v61 = vmul.f32 %v2672_v28, %v2672_v28  ;;  %v2679_v36 = vmul.f32 %v2673_v38, %v2673_v38 }
0x1051   :  { %v2680_v0 = vmul.f32 %v2674_v1, %v2674_v1  ;;  %v2681_v6 = vmul.f32 %v2675_v27, %v2675_v27 }
0x1052   :  { %v2682_v60 = vsel %vm2648_vm6, %v2676_v13, 0.0  ;;  %v2683_v10 = vsel %vm2648_vm6, %v2677_v20, 0.0  ;;  %v2685_v15 = vsel %vm2648_vm6, %v2678_v61, 0.0  ;;  %v2687_v43 = vsel %vm2648_vm6, %v2679_v36, 0.0  ;;  %v2718_v13 = vpop.permute.xlu0 %2717 }
0x1053   :  { %v2684_v18 = vadd.f32 %v2683_v10, %v2682_v60  ;;  %v2689_v48 = vsel %vm2648_vm6, %v2680_v0, 0.0  ;;  %v2691_v2 = vsel %vm2658_vm7, %v2681_v6, 0.0 }
0x1055   :  { %v2686_v50 = vadd.f32 %v2685_v15, %v2684_v18 }
0x1057   :  { %v2688_v58 = vadd.f32 %v2687_v43, %v2686_v50 }
0x1059   :  { %v2690_v32 = vadd.f32 %v2689_v48, %v2688_v58 }
0x105b   :  { %v2692_v14 = vadd.f32 %v2691_v2, %v2690_v32 }
0x105d   :  { %2693 = vadd.xlane.f32.xlu1 %v2692_v14 }
0x106e   :  { %2706 = vperm.xlu1 %12953, %v2639_v49  }
0x10ea   :  { %v2694_v35 = vpop.xlane.xlu1 %2693 }
0x10eb   :  { %v2695_v21 = vmul.f32 0.001953125, %v2694_v35 }
0x10ed   :  { %v2696_v37 = vadd.f32 1e-05, %v2695_v21 }
0x10ee   :  { %v2707_v53 = vpop.permute.xlu1 %2706 }
0x10ef   :  { %13289 = vrsqrt.f32 %v2696_v37 }
0x10f0   :  { %v15450_v44 = vpop.f32.mrb[64].mxu0 }
0x10f1   :  { %v12448_v16 = vpop.f32.mrb[65].mxu0 }
0x10f2   :  { %v7009_v54 = vpop.f32.mrb[66].mxu0 }
0x10f3   :  { %v12449_v24 = vpop.f32.mrb[67].mxu0 }
0x10f9   :  { %v13290_v57 = vpop.eup %13289 }
0x10fa   :  { %v2698_v39 = vmul.f32 %v13290_v57, %v2664_v63  ;;  %v2699_v30 = vmul.f32 %v13290_v57, %v2665_v29  ;;  %v2700_v47 = vmul.f32 %v13290_v57, %v2666_v41  ;;  %v2701_v11 = vmul.f32 %v13290_v57, %v2667_v7 }
0x10fb   :  { %v2702_v9 = vmul.f32 %v13290_v57, %v2668_v42  ;;  %v2703_v59 = vmul.f32 %v13290_v57, %v2669_v51 }
0x10fc   :  { %v2709_v4 = vmul.f32 %v2707_v53, %v2698_v39  ;;  %v2710_v28 = vmul.f32 %v2707_v53, %v2699_v30  ;;  %v2711_v38 = vmul.f32 %v2707_v53, %v2700_v47  ;;  %v2712_v1 = vmul.f32 %v2707_v53, %v2701_v11 }
0x10fd   :  { %v2713_v20 = vmul.f32 %v2707_v53, %v2702_v9  ;;  %v2714_v61 = vmul.f32 %v2707_v53, %v2703_v59  ;;  %v15484_v59 = vld [vmem:[#allocation12] ss:$0 sm:$0xff] }
0x10fe   :  { %v2720_v27 = vadd.f32 %v2718_v13, %v2709_v4  ;;  %v2721_v36 = vadd.f32 %v2718_v13, %v2710_v28  ;;  %v2722_v60 = vadd.f32 %v2718_v13, %v2711_v38  ;;  %v2723_v10 = vadd.f32 %v2718_v13, %v2712_v1 }
0x10ff   :  { %v2724_v18 = vadd.f32 %v2718_v13, %v2713_v20  ;;  %v2725_v0 = vadd.f32 %v2718_v13, %v2714_v61  ;;  %v7023_v53 = vmul.f32 %v15484_v59, %v15450_v44 }
0x1100   :  { %v12450_v63 = vadd.f32 %v15397_v31, %v2720_v27  ;;  %v12451_v29 = vadd.f32 %v15399_v52, %v2721_v36  ;;  %v12452_v41 = vadd.f32 %v15401_v56, %v2722_v60  ;;  %v12453_v7 = vadd.f32 %v15403_v55, %v2723_v10 }
0x1101   :  { %v12454_v42 = vadd.f32 %v15405_v40, %v2724_v18  ;;  %v12455_v51 = vadd.f32 %v15407_v19, %v2725_v0  ;;  %v7024_v4 = vsel %vm6130_vm5, %v7023_v53, 0.0 }
0x1102   :  { %v7078_v15 = vmax.f32 %v12450_v63, 0.0  ;;  %v7079_v50 = vmax.f32 %v12451_v29, 0.0  ;;  %v7080_v6 = vmax.f32 %v12452_v41, 0.0  ;;  %v7081_v43 = vmax.f32 %v12453_v7, 0.0 }
0x1103   :  { %v7082_v58 = vmax.f32 %v12454_v42, 0.0  ;;  %v7083_v48 = vmax.f32 %v12455_v51, 0.0 }
0x1104   :  { %v7084_v32 = vmul.f32 %v7078_v15, %v14629_v22  ;;  %v7085_v31 = vmul.f32 %v7079_v50, %v14631_v23  ;;  %v7086_v52 = vmul.f32 %v7080_v6, %v14637_v33  ;;  %v7087_v56 = vmul.f32 %v7081_v43, %v14639_v34  ;;  %v7014_v15 = vld [vmem:[#allocation47] sm:$0xf]  ;;  %v7016_v43 = vld [vmem:[#allocation47 + $0x4] sm:$0xf] }
0x1105   :  { %v7088_v55 = vmul.f32 %v7082_v58, %v14645_v45  ;;  %v7089_v40 = vmul.f32 %v7083_v48, %v14647_v46 }
0x1106   :  { %v11918_v2 = vpack.c.bf16 %v7085_v31, %v7084_v32  ;;  %v11919_v19 = vpack.c.bf16 %v7087_v56, %v7086_v52  ;;  %v7135_v52 = vld [vmem:[#allocation35 + $0x2] sm:$0x3] }
0x1107   :  { %v11920_v14 = vpack.c.bf16 %v7089_v40, %v7088_v55 }
0x1108   :  { %v7110_v49 = vrot.slane %v11918_v2, %v14672_v62  ;;  %v7117_v35 = vrot.slane %v11919_v19, %v14672_v62 }
0x1109   :  { %v7126_v21 = vrot.slane %v11920_v14, %v14672_v62 }
0x110a   :  { %v7118_v37 = vcombine.low %v7110_v49, %v7117_v35  ;;  %v13304_v1 = vcombine.low %v7117_v35, %v7117_v35 }
0x110b   :  { %7130 = vst.msk [vmem:[#allocation2 + $0xa] sm:$0xf] %vm14691_vm10, %v7126_v21 }
0x110c   :  { %7129 = vst [vmem:[#allocation2 + $0x2] sm:$0xff] %v7118_v37  ;;  %v15498_v20 = vrot.slane %v13304_v1, %v14672_v62  ;;  %v15510_v27 = vrot.slane %v7118_v37, %v14672_v62 }
0x110e   :  { %v15504_v61 = vcombine.high %v15498_v20, %v15498_v20  ;;  %v15529_v10 = vcombine.high %v15510_v27, %v15510_v27 }
0x1112   :  { %v15519_v60 = vld.sshfl [vmem:[#allocation2 + $0xa] sm:$0x33 pattern:$0x76325410] }
0x1113   :  { %v11921_v16 = vld.sshfl [vmem:[#allocation2 + $0x8] sm:$0x33 pattern:$0x76325410]  ;;  %v7485_v54 = vld [vmem:[#allocation2] sm:$0xff]  ;;  %v15537_v18 = vcombine.high %v15519_v60, %v15519_v60 }
0x1114   :  { %7171 = vrot.lane.b32.xlu1 %v11921_v16, %s14142_s5  ;;  %v7498_v24 = vrot.slane %v7485_v54, %v14672_v62  ;;  %v7689_v39 = vcombine.high %v7485_v54, %v7485_v54  ;;  %v7684_v47 = vld [vmem:[#allocation2 + $0x8] sm:$0x3f]  ;;  %v7162_v9 = vcombine.high %v11921_v16, %v11921_v16 }
0x1115   :  { %v7713_v11 = vrot.slane %v7684_v47, %v14672_v62  ;;  %v7706_v38 = vcombine.high %v7684_v47, %v7684_v47 }
0x1116   :  { %v7506_v57 = vcombine.high %v7498_v24, %v7498_v24  ;;  %v7703_v30 = vrot.slane %v7689_v39, %v14672_v62 }
0x1117   :  { %v7720_v13 = vrot.slane %v7706_v38, %v14672_v62  ;;  %v7721_v36 = vcombine.high %v7713_v11, %v7713_v11 }
0x1118   :  { %7518 = vrot.lane.b32.xlu0 %v7506_v57, %s14143_s12  ;;  %7332 = vrot.lane.b32.xlu1 %v11921_v16, %s14144_s10  ;;  %v7154_v28 = vcombine.high %v7703_v30, %v7703_v30 }
0x111c   :  { %7726 = vrot.lane.b32.xlu0 %v7703_v30, %s14145_s20  ;;  %7163 = vrot.lane.b32.xlu1 %v7498_v24, %s14142_s5 }
0x1120   :  { %7730 = vrot.lane.b32.xlu0 %v7713_v11, %s14145_s20  ;;  %7173 = vrot.lane.b32.xlu1 %v7162_v9, %s14142_s5 }
0x1124   :  { %7324 = vrot.lane.b32.xlu1 %v7498_v24, %s14144_s10 }
0x1128   :  { %7334 = vrot.lane.b32.xlu1 %v7162_v9, %s14144_s10 }
0x112c   :  { %7516 = vrot.lane.b32.xlu1 %v7498_v24, %s14143_s12 }
0x1130   :  { %7165 = vrot.lane.b32.xlu1 %v7506_v57, %s14142_s5 }
0x1134   :  { %7167 = vrot.lane.b32.xlu1 %v7703_v30, %s14142_s5 }
0x1138   :  { %7326 = vrot.lane.b32.xlu1 %v7506_v57, %s14144_s10 }
0x113c   :  { %7328 = vrot.lane.b32.xlu1 %v7703_v30, %s14144_s10 }
0x113f   :  { %7025 = vadd.xlane.f32.xlu0 %v7024_v4 }
0x1140   :  { %7169 = vrot.lane.b32.xlu1 %v7154_v28, %s14142_s5 }
0x1144   :  { %7520 = vrot.lane.b32.xlu1 %v7703_v30, %s14143_s12 }
0x1148   :  { %7524 = vrot.lane.b32.xlu1 %v11921_v16, %s14143_s12 }
0x114c   :  { %7330 = vrot.lane.b32.xlu1 %v7154_v28, %s14144_s10 }
0x1150   :  { %7526 = vrot.lane.b32.xlu1 %v7162_v9, %s14143_s12 }
0x1154   :  { %7722 = vrot.lane.b32.xlu1 %v7498_v24, %s14145_s20  ;;  %v7133_v24 = vld [vmem:[#allocation35] sm:$0x3] }
0x1155   :  { %7734 = vrot.lane.b32.xlu0 %v7720_v13, %s14145_s20 }
0x1158   :  { %7522 = vrot.lane.b32.xlu1 %v7154_v28, %s14143_s12 }
0x1159   :  { %8110 = vrot.lane.b32.xlu0 %v15504_v61, %s14146_s29 }
0x115c   :  { %7724 = vrot.lane.b32.xlu1 %v7506_v57, %s14145_s20 }
0x115d   :  { %8104 = vrot.lane.b32.xlu0 %v15510_v27, %s14146_s29 }
0x1160   :  { %7732 = vrot.lane.b32.xlu1 %v7721_v36, %s14145_s20 }
0x1161   :  { %8306 = vrot.lane.b32.xlu0 %v15498_v20, %s14147_s22 }
0x1164   :  { %7728 = vrot.lane.b32.xlu1 %v7154_v28, %s14145_s20 }
0x1165   :  { %8310 = vrot.lane.b32.xlu0 %v15519_v60, %s14147_s22 }
0x1168   :  { %8108 = vrot.lane.b32.xlu1 %v15498_v20, %s14146_s29 }
0x116c   :  { %8112 = vrot.lane.b32.xlu1 %v15519_v60, %s14146_s29 }
0x1170   :  { %8106 = vrot.lane.b32.xlu1 %v15529_v10, %s14146_s29 }
0x1174   :  { %8308 = vrot.lane.b32.xlu1 %v15504_v61, %s14147_s22 }
0x1178   :  { %8114 = vrot.lane.b32.xlu1 %v15537_v18, %s14146_s29 }
0x117c   :  { %8302 = vrot.lane.b32.xlu1 %v15510_v27, %s14147_s22 }
0x1180   :  { %8304 = vrot.lane.b32.xlu1 %v15529_v10, %s14147_s22 }
0x1184   :  { %8504 = vrot.lane.b32.xlu1 %v15498_v20, %s14148_s4 }
0x1186   :  { %v7172_v0 = vpop.permute.xlu1 %7171 }
0x1188   :  { %8506 = vrot.lane.b32.xlu1 %v15504_v61, %s14148_s4 }
0x118a   :  { %v15549_v63 = vpop.permute.xlu1 %7332  ;;  %v7519_v39 = vpop.permute.xlu0 %7518 }
0x118c   :  { %8508 = vrot.lane.b32.xlu1 %v15519_v60, %s14148_s4 }
0x118e   :  { %v7164_v29 = vpop.permute.xlu1 %7163  ;;  %v7727_v38 = vpop.permute.xlu0 %7726 }
0x1190   :  { %8312 = vrot.lane.b32.xlu1 %v15537_v18, %s14147_s22 }
0x1192   :  { %v7174_v41 = vpop.permute.xlu1 %7173 }
0x1193   :  { %v7179_v31 = vsel %vm941_vm11, %v7172_v0, %v7174_v41 }
0x1194   :  { %8702 = vrot.lane.b32.xlu1 %v15498_v20, %s14149_s23  ;;  %v7196_v55 = vsel %vm556_vm0, %v7179_v31, 0 }
0x1196   :  { %v7325_v7 = vpop.permute.xlu1 %7324 }
0x1198   :  { %8706 = vrot.lane.b32.xlu1 %v15519_v60, %s14149_s23 }
0x119a   :  { %v7335_v42 = vpop.permute.xlu1 %7334 }
0x119b   :  { %v7340_v54 = vsel %vm1103_vm12, %v15549_v63, %v7335_v42 }
0x119c   :  { %8500 = vrot.lane.b32.xlu1 %v15510_v27, %s14148_s4  ;;  %v7357_v30 = vsel %vm556_vm0, %v7340_v54, 0 }
0x119e   :  { %v7517_v51 = vpop.permute.xlu1 %7516 }
0x119f   :  { %v7528_v28 = vsel %vm1296_vm13, %v7517_v51, %v7519_v39 }
0x11a0   :  { %8502 = vrot.lane.b32.xlu1 %v15529_v10, %s14148_s4  ;;  %v7537_v13 = vsel %vm556_vm0, %v7528_v28, 0 }
0x11a2   :  { %v7166_v50 = vpop.permute.xlu1 %7165 }
0x11a3   :  { %v7175_v6 = vsel %vm941_vm11, %v7164_v29, %v7166_v50  ;;  %v7488_v29 = vld [vmem:[#allocation35 + $0x4] sm:$0x3] }
0x11a4   :  { %7040 = vperm.xlu1 %12953, %v7014_v15   ;;  %v7184_v32 = vsel %vm556_vm0, %v7175_v6, 0 }
0x11a6   :  { %v7168_v58 = vpop.permute.xlu1 %7167 }
0x11a7   :  { %v7176_v48 = vsel %vm941_vm11, %v7166_v50, %v7168_v58 }
0x11a8   :  { %11922 = vmatprep.subr.msk.bf16.mxu0 %vm556_vm0, %v7176_v48  ;;  %7046 = vperm.xlu1 %12953, %v7016_v43  }
0x11a9   :  { %7202 = vmatpush1.bf16.msra.mxu0 %v7184_v32 }
0x11aa   :  { %11926 = vmatprep.subr.msk.bf16.mxu0 %vm556_vm0, %v7174_v41  ;;  %v7327_v56 = vpop.permute.xlu1 %7326 }
0x11ab   :  { %v7336_v19 = vsel %vm1103_vm12, %v7325_v7, %v7327_v56 }
0x11ac   :  { %11923 = vmatmul.mubr.msk.bf16.vlgmr.msra.gmra.mrb[68].mxu0 %vm584_vm1, %v7135_v52  ;;  %8510 = vrot.lane.b32.xlu1 %v15537_v18, %s14148_s4  ;;  %v7345_v21 = vsel %vm556_vm0, %v7336_v19, 0 }
0x11ad   :  { %7284 = vmatpush1.bf16.msra.mxu0 %v7196_v55  ;;  %7315 = vmatprep.mubr.bf16.mxu0 %v14660_v26 }
0x11ae   :  { %v7329_v40 = vpop.permute.xlu1 %7328 }
0x11af   :  { %v7337_v2 = vsel %vm1103_vm12, %v7327_v56, %v7329_v40 }
0x11b0   :  { %11928 = vmatprep.subr.msk.bf16.mxu0 %vm556_vm0, %v7337_v2  ;;  %8700 = vrot.lane.b32.xlu1 %v15529_v10, %s14149_s23 }
0x11b2   :  { %v7170_v14 = vpop.permute.xlu1 %7169 }
0x11b3   :  { %v7177_v49 = vsel %vm941_vm11, %v7168_v58, %v7170_v14  ;;  %v7178_v35 = vsel %vm941_vm11, %v7170_v14, %v7172_v0  ;;  %v7731_v0 = vpop.permute.xlu0 %7730 }
0x11b4   :  { %11924 = vmatprep.subr.msk.bf16.mxu1 %vm556_vm0, %v7178_v35  ;;  %11927 = vmatmul.mubr.msk.bf16.vlgmr.msra.gmra.mrb[72].mxu0 %vm584_vm1, %v7135_v52  ;;  %v7190_v37 = vsel %vm556_vm0, %v7177_v49, 0 }
0x11b5   :  { %7363 = vmatpush1.bf16.msra.mxu0 %v7345_v21  ;;  %7243 = vmatpush1.bf16.msra.mxu1 %v7190_v37  ;;  %v7686_v37 = vld [vmem:[#allocation35 + $0x6] sm:$0x3] }
0x11b6   :  { %11932 = vmatprep.subr.msk.bf16.mxu0 %vm556_vm0, %v7335_v42  ;;  %v7521_v16 = vpop.permute.xlu1 %7520  ;;  %7394 = vmatprep.mubr.bf16.mxu0 %v14660_v26 }
0x11b7   :  { %v7529_v47 = vsel %vm1296_vm13, %v7519_v39, %v7521_v16 }
0x11b8   :  { %11925 = vmatmul.mubr.msk.bf16.vlgmr.msra.gmra.mrb[44].mxu1 %vm584_vm1, %v7135_v52 }
0x11b9   :  { %7435 = vmatprep.mubr.bf16.mxu1 %v14660_v26 }
0x11ba   :  { %v7525_v57 = vpop.permute.xlu1 %7524 }
0x11bc   :  { %11929 = vmatmul.mubr.msk.bf16.vlgmr.msra.gmra.mrb[68].mxu0 %vm584_vm1, %v7133_v24 }
0x11bd   :  { %7445 = vmatpush1.bf16.msra.mxu0 %v7357_v30  ;;  %7476 = vmatprep.mubr.bf16.mxu0 %v14660_v26 }
0x11be   :  { %11935 = vmatprep.subr.msk.bf16.mxu0 %vm556_vm0, %v7529_v47  ;;  %v7331_v11 = vpop.permute.xlu1 %7330 }
0x11bf   :  { %v7338_v9 = vsel %vm1103_vm12, %v7329_v40, %v7331_v11  ;;  %v7339_v53 = vsel %vm1103_vm12, %v7331_v11, %v15549_v63 }
0x11c0   :  { %11930 = vmatprep.subr.msk.bf16.mxu1 %vm556_vm0, %v7339_v53  ;;  %v7351_v4 = vsel %vm556_vm0, %v7338_v9, 0 }
0x11c1   :  { %7404 = vmatpush1.bf16.msra.mxu1 %v7351_v4 }
0x11c2   :  { %v7527_v1 = vpop.permute.xlu1 %7526 }
0x11c3   :  { %v7532_v63 = vsel %vm1296_vm13, %v7525_v57, %v7527_v1 }
0x11c4   :  { %11931 = vmatmul.mubr.msk.bf16.vlgmr.msra.gmra.mrb[44].mxu1 %vm584_vm1, %v7133_v24  ;;  %11933 = vmatmul.mubr.msk.bf16.vlgmr.msra.gmra.mrb[72].mxu0 %vm584_vm1, %v7133_v24  ;;  %v7549_v15 = vsel %vm556_vm0, %v7532_v63, 0 }
0x11c5   :  { %7555 = vmatpush1.bf16.msra.mxu0 %v7537_v13  ;;  %7586 = vmatprep.mubr.bf16.mxu0 %v14660_v26  ;;  %v7939_v13 = vsel %vm556_vm0, %v15519_v60, 0 }
0x11c6   :  { %11939 = vmatprep.subr.msk.bf16.mxu0 %vm556_vm0, %v7527_v1  ;;  %v7723_v36 = vpop.permute.xlu1 %7722  ;;  %7627 = vmatprep.mubr.bf16.mxu1 %v14660_v26 }
0x11ca   :  { %v7523_v41 = vpop.permute.xlu1 %7522 }
0x11cb   :  { %v7530_v7 = vsel %vm1296_vm13, %v7521_v16, %v7523_v41  ;;  %v7531_v42 = vsel %vm1296_vm13, %v7523_v41, %v7525_v57  ;;  %v7933_v57 = vsel %vm556_vm0, %v15498_v20, 0  ;;  %v7927_v20 = vsel %vm556_vm0, %v15510_v27, 0  ;;  %v8076_v41 = vld [vmem:[#allocation35 + $0xa] sm:$0x3] }
0x11cc   :  { %v7026_v51 = vpop.xlane.xlu0 %7025  ;;  %11936 = vmatmul.mubr.msk.bf16.vlgmr.msra.gmra.mrb[68].mxu0 %vm584_vm1, %v7488_v29  ;;  %11937 = vmatprep.subr.msk.bf16.mxu1 %vm556_vm0, %v7531_v42  ;;  %v7543_v50 = vsel %vm556_vm0, %v7530_v7, 0 }
0x11cd   :  { %v7027_v6 = vmul.f32 0.03125, %v7026_v51  ;;  %7637 = vmatpush1.bf16.msra.mxu0 %v7549_v15  ;;  %7596 = vmatpush1.bf16.msra.mxu1 %v7543_v50 }
0x11ce   :  { %v7725_v43 = vpop.permute.xlu1 %7724  ;;  %7668 = vmatprep.mubr.bf16.mxu0 %v14660_v26 }
0x11cf   :  { %v15617_v58 = vsub.f32 %v15450_v44, %v7027_v6  ;;  %v7737_v48 = vsel %vm1505_vm14, %v7725_v43, %v7727_v38  ;;  %v7736_v31 = vsel %vm1505_vm14, %v7723_v36, %v7725_v43  ;;  %v8274_v43 = vld [vmem:[#allocation35 + $0xc] sm:$0x3] }
0x11d0   :  { %v7735_v32 = vpop.permute.xlu0 %7734  ;;  %11938 = vmatmul.mubr.msk.bf16.vlgmr.msra.gmra.mrb[44].mxu1 %vm584_vm1, %v7488_v29  ;;  %11941 = vmatprep.subr.msk.bf16.mxu0 %vm556_vm0, %v7737_v48  ;;  %v7746_v2 = vsel %vm556_vm0, %v7736_v31, 0 }
0x11d1   :  { %v7029_v52 = vmul.f32 %v15484_v59, %v15617_v58  ;;  %7836 = vmatprep.mubr.bf16.mxu1 %v14660_v26 }
0x11d2   :  { %v7733_v56 = vpop.permute.xlu1 %7732 }
0x11d3   :  { %v7741_v55 = vsel %vm1505_vm14, %v7733_v56, %v7735_v32  ;;  %v7030_v40 = vmul.f32 %v7029_v52, %v7029_v52  ;;  %v7740_v21 = vsel %vm1505_vm14, %v7731_v0, %v7733_v56 }
0x11d4   :  { %v8111_v44 = vpop.permute.xlu0 %8110  ;;  %11940 = vmatmul.mubr.msk.bf16.vlgmr.msra.gmra.mrb[72].mxu0 %vm584_vm1, %v7488_v29  ;;  %v7758_v24 = vsel %vm556_vm0, %v7740_v21, 0 }
0x11d5   :  { %7764 = vmatpush1.bf16.msra.mxu0 %v7746_v2  ;;  %v7031_v19 = vsel %vm6130_vm5, %v7030_v40, 0.0  ;;  %7795 = vmatprep.mubr.bf16.mxu0 %v14660_v26  ;;  %vm16220_vm5 = vmmov %vm16217_vm2 }
0x11d6   :  { %11945 = vmatprep.subr.msk.bf16.mxu0 %vm556_vm0, %v7741_v55  ;;  %7032 = vadd.xlane.f32.xlu0 %v7031_v19  ;;  %v7729_v59 = vpop.permute.xlu1 %7728  ;;  %v8472_v19 = vld [vmem:[#allocation35 + $0xe] sm:$0x3] }
0x11d7   :  { %v7738_v14 = vsel %vm1505_vm14, %v7727_v38, %v7729_v59  ;;  %v7739_v49 = vsel %vm1505_vm14, %v7729_v59, %v7731_v0 }
0x11d8   :  { %11943 = vmatprep.subr.msk.bf16.mxu1 %vm556_vm0, %v7739_v49  ;;  %v7752_v35 = vsel %vm556_vm0, %v7738_v14, 0  ;;  %v8105_v16 = vpop.permute.xlu0 %8104 }
0x11d9   :  { %7805 = vmatpush1.bf16.msra.mxu1 %v7752_v35 }
0x11da   :  { %11950 = vmatprep.subr.msk.bf16.mxu1 %vm556_vm0, %v15504_v61  ;;  %v8109_v54 = vpop.permute.xlu1 %8108 }
0x11db   :  { %v8118_v9 = vsel %vm1886_vm15, %v8109_v54, %v8111_v44 }
0x11dc   :  { %11942 = vmatmul.mubr.msk.bf16.vlgmr.msra.gmra.mrb[68].mxu0 %vm584_vm1, %v7686_v37  ;;  %11944 = vmatmul.mubr.msk.bf16.vlgmr.msra.gmra.mrb[44].mxu1 %vm584_vm1, %v7686_v37  ;;  %v8307_v47 = vpop.permute.xlu0 %8306  ;;  %v8131_v38 = vsel %vm556_vm0, %v8118_v9, 0 }
0x11dd   :  { %7846 = vmatpush1.bf16.msra.mxu0 %v7758_v24  ;;  %7986 = vmatpush1.bf16.msra.mxu1 %v7933_v57 }
0x11de   :  { %11948 = vmatprep.subr.msk.bf16.mxu0 %vm556_vm0, %v15529_v10  ;;  %v8113_v39 = vpop.permute.xlu1 %8112  ;;  %7877 = vmatprep.mubr.bf16.mxu0 %v14660_v26  ;;  %v7895_v10 = vld [vmem:[#allocation35 + $0x8] sm:$0x3] }
0x11df   :  { %v8119_v30 = vsel %vm1886_vm15, %v8111_v44, %v8113_v39  ;;  %8017 = vmatprep.mubr.bf16.mxu1 %v14660_v26 }
0x11e0   :  { %11957 = vmatprep.subr.msk.bf16.mxu1 %vm556_vm0, %v8119_v30  ;;  %v8311_v53 = vpop.permute.xlu0 %8310 }
0x11e2   :  { %v8107_v11 = vpop.permute.xlu1 %8106 }
0x11e3   :  { %v8117_v36 = vsel %vm1886_vm15, %v8107_v11, %v8109_v54  ;;  %v8116_v63 = vsel %vm1886_vm15, %v8105_v16, %v8107_v11 }
0x11e4   :  { %11946 = vmatmul.mubr.msk.bf16.vlgmr.msra.gmra.mrb[72].mxu0 %vm584_vm1, %v7686_v37  ;;  %v8125_v7 = vsel %vm556_vm0, %v8116_v63, 0  ;;  %v7063_v63 = vld [vmem:[#allocation24 + $0x60] sm:$0x33] }
0x11e5   :  { %7945 = vmatpush1.bf16.msra.mxu0 %v7927_v20  ;;  %7976 = vmatprep.mubr.bf16.mxu0 %v14660_v26 }
0x11e6   :  { %11952 = vmatprep.subr.msk.bf16.mxu0 %vm556_vm0, %v15537_v18  ;;  %v8309_v4 = vpop.permute.xlu1 %8308 }
0x11e7   :  { %v8317_v28 = vsel %vm2085_vm3, %v8309_v4, %v8311_v53 }
0x11e8   :  { %11951 = vmatmul.mubr.msk.bf16.vlgmr.msra.gmra.mrb[44].mxu1 %vm584_vm1, %v7895_v10 }
0x11e9   :  { %8184 = vmatpush1.bf16.msra.mxu1 %v8131_v38  ;;  %8215 = vmatprep.mubr.bf16.mxu1 %v14660_v26  ;;  %v8670_v38 = vld [vmem:[#allocation35 + $0x10] sm:$0x3] }
0x11ea   :  { %11964 = vmatprep.subr.msk.bf16.mxu1 %vm556_vm0, %v8317_v28  ;;  %v8115_v1 = vpop.permute.xlu1 %8114 }
0x11eb   :  { %v8120_v42 = vsel %vm1886_vm15, %v8113_v39, %v8115_v1 }
0x11ec   :  { %8704 = vrot.lane.b32.xlu0 %v15504_v61, %s14149_s23  ;;  %11949 = vmatmul.mubr.msk.bf16.vlgmr.msra.gmra.mrb[68].mxu0 %vm584_vm1, %v7895_v10  ;;  %v8316_v61 = vsel %vm2085_vm3, %v8307_v47, %v8309_v4 }
0x11ed   :  { %8027 = vmatpush1.bf16.msra.mxu0 %v7939_v13  ;;  %8058 = vmatprep.mubr.bf16.mxu0 %v14660_v26  ;;  %v8329_v60 = vsel %vm556_vm0, %v8316_v61, 0 }
0x11ee   :  { %11955 = vmatprep.subr.msk.bf16.mxu0 %vm556_vm0, %v8117_v36  ;;  %v8303_v0 = vpop.permute.xlu1 %8302  ;;  %v13260_v36 = vld [vmem:[#allocation24 + $0x34] ss:$24 sps:$4 sm:$0xff]  }
0x11f0   :  { %8698 = vrot.lane.b32.xlu0 %v15510_v27, %s14149_s23 }
0x11f2   :  { %v8305_v29 = vpop.permute.xlu1 %8304 }
0x11f3   :  { %v8315_v15 = vsel %vm2085_vm3, %v8305_v29, %v8307_v47  ;;  %v8314_v32 = vsel %vm2085_vm3, %v8303_v0, %v8305_v29  ;;  %v13258_v29 = vld [vmem:[#allocation24 + $0x30] ss:$24 sps:$4 sm:$0xff]  }
0x11f4   :  { %8708 = vrot.lane.b32.xlu0 %v15537_v18, %s14149_s23  ;;  %11953 = vmatmul.mubr.msk.bf16.vlgmr.msra.gmra.mrb[72].mxu0 %vm584_vm1, %v7895_v10  ;;  %v8137_v18 = vsel %vm556_vm0, %v8120_v42, 0  ;;  %v8323_v56 = vsel %vm556_vm0, %v8314_v32, 0  ;;  %v13257_v10 = vld [vmem:[#allocation24 + $0x4] ss:$24 sps:$4 sm:$0xff]   ;;  %v13265_v42 = vld [vmem:[#allocation24 + $0x14] ss:$24 sps:$4 sm:$0xff]  }
0x11f5   :  { %8143 = vmatpush1.bf16.msra.mxu0 %v8125_v7  ;;  %11958 = vmatmul.mubr.msk.bf16.vlgmr.msra.gmra.mrb[44].mxu1 %vm584_vm1, %v8076_v41  ;;  %v11995_v7 = vcombine.high %v7063_v63, %v7063_v63 }
0x11f6   :  { %8382 = vmatpush1.bf16.msra.mxu1 %v8329_v60  ;;  %11959 = vmatprep.subr.msk.bf16.mxu0 %vm556_vm0, %v8115_v1  ;;  %v8505_v27 = vpop.permute.xlu1 %8504  ;;  %v13255_v1 = vld [vmem:[#allocation24] ss:$24 sps:$4 sm:$0xff]   ;;  %v11994_v60 = vcombine.low %v7063_v63, %v7063_v63 }
0x11f7   :  { %8174 = vmatprep.mubr.bf16.mxu0 %v14660_v26  ;;  %8413 = vmatprep.mubr.bf16.mxu1 %v14660_v26 }
0x11fa   :  { %v8507_v51 = vpop.permute.xlu1 %8506 }
0x11fb   :  { %v8514_v50 = vsel %vm16217_vm2, %v8505_v27, %v8507_v51 }
0x11fc   :  { %11956 = vmatmul.mubr.msk.bf16.vlgmr.msra.gmra.mrb[68].mxu0 %vm584_vm1, %v8076_v41  ;;  %v8527_v31 = vsel %vm556_vm0, %v8514_v50, 0  ;;  %v9035_v50 = vsel %vm556_vm0, %v11994_v60, 0 }
0x11fd   :  { %8225 = vmatpush1.bf16.msra.mxu0 %v8137_v18  ;;  %8256 = vmatprep.mubr.bf16.mxu0 %v14660_v26 }
0x11fe   :  { %11962 = vmatprep.subr.msk.bf16.mxu0 %vm556_vm0, %v8315_v15  ;;  %v8509_v6 = vpop.permute.xlu1 %8508 }
0x11ff   :  { %v8515_v48 = vsel %vm16218_vm9, %v8507_v51, %v8509_v6  ;;  %vm16221_vm9 = vcmask 891904  }
0x1200   :  { %11971 = vmatprep.subr.msk.bf16.mxu1 %vm556_vm0, %v8515_v48  ;;  %v13263_v48 = vld [vmem:[#allocation24 + $0x10] ss:$24 sps:$4 sm:$0xff]  }
0x1201   :  { %11965 = vmatmul.mubr.msk.bf16.vlgmr.msra.gmra.mrb[44].mxu1 %vm584_vm1, %v8274_v43 }
0x1202   :  { %8580 = vmatpush1.bf16.msra.mxu1 %v8527_v31  ;;  %v8313_v52 = vpop.permute.xlu1 %8312  ;;  %8611 = vmatprep.mubr.bf16.mxu1 %v14660_v26  ;;  %v13271_v31 = vld [vmem:[#allocation24 + $0x44] ss:$24 sps:$4 sm:$0xff]  }
0x1203   :  { %v8318_v40 = vsel %vm2085_vm3, %v8311_v53, %v8313_v52 }
0x1204   :  { %11960 = vmatmul.mubr.msk.bf16.vlgmr.msra.gmra.mrb[72].mxu0 %vm584_vm1, %v8076_v41  ;;  %v8335_v2 = vsel %vm556_vm0, %v8318_v40, 0  ;;  %v13269_v40 = vld [vmem:[#allocation24 + $0x40] ss:$24 sps:$4 sm:$0xff]  }
0x1205   :  { %8341 = vmatpush1.bf16.msra.mxu0 %v8323_v56  ;;  %8372 = vmatprep.mubr.bf16.mxu0 %v14660_v26  ;;  %v7065_v56 = vld [vmem:[#allocation24 + $0x70] sm:$0x33] }
0x1206   :  { %11966 = vmatprep.subr.msk.bf16.mxu0 %vm556_vm0, %v8313_v52  ;;  %v8703_v55 = vpop.permute.xlu1 %8702  ;;  %v13266_v52 = vld [vmem:[#allocation24 + $0x8] ss:$24 sps:$4 sm:$0xff]  }
0x120a   :  { %v8707_v44 = vpop.permute.xlu1 %8706 }
0x120c   :  { %11963 = vmatmul.mubr.msk.bf16.vlgmr.msra.gmra.mrb[68].mxu0 %vm584_vm1, %v8274_v43 }
0x120d   :  { %8423 = vmatpush1.bf16.msra.mxu0 %v8335_v2  ;;  %8454 = vmatprep.mubr.bf16.mxu0 %v14660_v26  ;;  %v11999_v2 = vcombine.high %v7065_v56, %v7065_v56 }
0x120e   :  { %v8501_v59 = vpop.permute.xlu1 %8500  ;;  %11972 = vmatmul.mubr.msk.bf16.vlgmr.msra.gmra.mrb[44].mxu1 %vm584_vm1, %v8472_v19 }
0x120f   :  { %8809 = vmatprep.mubr.bf16.mxu1 %v14660_v26 }
0x1212   :  { %v8503_v14 = vpop.permute.xlu1 %8502 }
0x1213   :  { %v8512_v49 = vsel %vm16219_vm8, %v8501_v59, %v8503_v14  ;;  %v8513_v35 = vsel %vm16220_vm5, %v8503_v14, %v8505_v27  ;;  %vm16222_vm8 = vmmov %vm16221_vm9  ;;  %v13272_v59 = vld [vmem:[#allocation24 + $0x38] ss:$24 sps:$4 sm:$0xff]  }
0x1214   :  { %v8521_v21 = vsel %vm556_vm0, %v8512_v49, 0  ;;  %11969 = vmatprep.subr.msk.bf16.mxu0 %vm556_vm0, %v8513_v35  ;;  %11967 = vmatmul.mubr.msk.bf16.vlgmr.msra.gmra.mrb[72].mxu0 %vm584_vm1, %v8274_v43  ;;  %vm16223_vm5 = vmmov %vm16222_vm8 }
0x1215   :  { %8539 = vmatpush1.bf16.msra.mxu0 %v8521_v21  ;;  %8570 = vmatprep.mubr.bf16.mxu0 %v14660_v26 }
0x121c   :  { %11970 = vmatmul.mubr.msk.bf16.vlgmr.msra.gmra.mrb[68].mxu0 %vm584_vm1, %v8472_v19 }
0x121d   :  { %8652 = vmatprep.mubr.bf16.mxu0 %v14660_v26 }
0x1223   :  { %v7041_v37 = vpop.permute.xlu1 %7040 }
0x1227   :  { %v7047_v16 = vpop.permute.xlu1 %7046 }
0x122b   :  { %v8511_v54 = vpop.permute.xlu1 %8510 }
0x122c   :  { %v8516_v24 = vsel %vm16217_vm2, %v8509_v6, %v8511_v54  ;;  %11973 = vmatprep.subr.msk.bf16.mxu0 %vm556_vm0, %v8511_v54  ;;  %vm16224_vm2 = vmmov %vm16223_vm5  ;;  %v13268_v6 = vld [vmem:[#allocation24 + $0xc] ss:$24 sps:$4 sm:$0xff]  }
0x122d   :  { %v8533_v57 = vsel %vm556_vm0, %v8516_v24, 0 }
0x122e   :  { %8621 = vmatpush1.bf16.msra.mxu0 %v8533_v57 }
0x122f   :  { %v8701_v39 = vpop.permute.xlu1 %8700 }
0x1230   :  { %v8711_v30 = vsel %vm16221_vm9, %v8701_v39, %v8703_v55  ;;  %vm16225_vm9 = vmmov %vm16224_vm2 }
0x1231   :  { %11976 = vmatprep.subr.msk.bf16.mxu0 %vm556_vm0, %v8711_v30  ;;  %11974 = vmatmul.mubr.msk.bf16.vlgmr.msra.gmra.mrb[72].mxu0 %vm584_vm1, %v8472_v19  ;;  %v11998_v19 = vcombine.low %v7065_v56, %v7065_v56 }
0x1232   :  { %8768 = vmatprep.mubr.bf16.mxu0 %v14660_v26 }
0x1233   :  { %v9047_v35 = vsel %vm556_vm0, %v11998_v19, 0 }
0x1263   :  { %v7033_v47 = vpop.xlane.xlu0 %7032 }
0x1264   :  { %v7034_v11 = vmul.f32 0.03125, %v7033_v47 }
0x1266   :  { %v7035_v20 = vadd.f32 1e-05, %v7034_v11 }
0x1267   :  { %v8705_v9 = vpop.permute.xlu0 %8704 }
0x1268   :  { %13291 = vrsqrt.f32 %v7035_v20  ;;  %v8712_v53 = vsel %vm16222_vm8, %v8703_v55, %v8705_v9  ;;  %v8713_v4 = vsel %vm16223_vm5, %v8705_v9, %v8707_v44  ;;  %vm16234_vm8 = vmmov %vm16224_vm2 }
0x1269   :  { %v8725_v28 = vsel %vm556_vm0, %v8712_v53, 0  ;;  %11978 = vmatprep.subr.msk.bf16.mxu1 %vm556_vm0, %v8713_v4  ;;  %vm16235_vm5 = vmmov %vm16224_vm2 }
0x126a   :  { %8778 = vmatpush1.bf16.msra.mxu1 %v8725_v28 }
0x126b   :  { %v8699_v13 = vpop.permute.xlu0 %8698  ;;  %9052 = vmatprep.subr.bf16.mxu1 %v13257_v10 }
0x126c   :  { %v8710_v0 = vsel %vm16224_vm2, %v8699_v13, %v8701_v39 }
0x126d   :  { %v8719_v61 = vsel %vm556_vm0, %v8710_v0, 0  ;;  %11979 = vmatmul.mubr.msk.bf16.vlgmr.msra.gmra.mrb[44].mxu1 %vm584_vm1, %v8670_v38 }
0x126e   :  { %8737 = vmatpush1.bf16.msra.mxu0 %v8719_v61  ;;  %9053 = vmatpush1.bf16.msra.mxu1 %v13255_v1 }
0x126f   :  { %v8709_v41 = vpop.permute.xlu0 %8708  ;;  %9054 = vmatprep.subr.bf16.mxu1 %v13260_v36  ;;  %9084 = vmatprep.mubr.bf16.mxu1 %v14660_v26 }
0x1270   :  { %v8714_v27 = vsel %vm16225_vm9, %v8707_v44, %v8709_v41  ;;  %11980 = vmatprep.subr.msk.bf16.mxu0 %vm556_vm0, %v8709_v41  ;;  %v7064_v44 = vld [vmem:[#allocation24 + $0x68] sm:$0x33] }
0x1271   :  { %v8731_v51 = vsel %vm556_vm0, %v8714_v27, 0  ;;  %11977 = vmatmul.mubr.msk.bf16.vlgmr.msra.gmra.mrb[68].mxu0 %vm584_vm1, %v8670_v38  ;;  %v11997_v14 = vcombine.high %v7064_v44, %v7064_v44  ;;  %v11996_v49 = vcombine.low %v7064_v44, %v7064_v44 }
0x1272   :  { %v13292_v18 = vpop.eup %13291  ;;  %8819 = vmatpush1.bf16.msra.mxu0 %v8731_v51  ;;  %9055 = vmatpush1.bf16.msra.mxu1 %v13258_v29 }
0x1273   :  { %v7037_v15 = vmul.f32 %v13292_v18, %v15617_v58  ;;  %12000 = vmatprep.subr.msk.bf16.mxu1 %vm556_vm0, %v11995_v7  ;;  %8850 = vmatprep.mubr.bf16.mxu0 %v14660_v26  ;;  %v13274_v58 = vld [vmem:[#allocation24 + $0x3c] ss:$24 sps:$4 sm:$0xff]   ;;  %v9041_v21 = vsel %vm556_vm0, %v11996_v49, 0 }
0x1274   :  { %9134 = vmatprep.subr.bf16.mxu0 %v13265_v42 }
0x1275   :  { %v7043_v43 = vmul.f32 %v7041_v37, %v7037_v15 }
0x1276   :  { %9057 = vmatpush1.bf16.msra.mxu1 %v9035_v50 }
0x1277   :  { %9093 = vmatprep.subr.bf16.mxu1 %v13268_v6  ;;  %v7049_v32 = vadd.f32 %v7047_v16, %v7043_v43 }
0x1279   :  { %11981 = vmatmul.mubr.msk.bf16.vlgmr.msra.gmra.mrb[72].mxu0 %vm584_vm1, %v8670_v38  ;;  %v7050_v55 = vpack.c.bf16 %v7049_v32, %v7049_v32 }
0x127a   :  { %9135 = vmatpush1.bf16.msra.mxu0 %v13263_v48  ;;  %9166 = vmatprep.mubr.bf16.mxu0 %v14660_v26 }
0x127b   :  { %12001 = vmatmul.mubr.msk.bf16.vlgmr.msra.gmra.mrb[48].mxu1 %vm6248_vm4, %v7050_v55  ;;  %9136 = vmatprep.subr.bf16.mxu0 %v13271_v31 }
0x127c   :  { %9094 = vmatpush1.bf16.msra.mxu1 %v13266_v52  ;;  %9125 = vmatprep.mubr.bf16.mxu1 %v14660_v26 }
0x127d   :  { %9095 = vmatprep.subr.bf16.mxu1 %v13274_v58 }
0x127e   :  { %9137 = vmatpush1.bf16.msra.mxu0 %v13269_v40 }
0x127f   :  { %12004 = vmatprep.subr.msk.bf16.mxu0 %vm556_vm0, %v11999_v2 }
0x1280   :  { %9096 = vmatpush1.bf16.msra.mxu1 %v13272_v59 }
0x1281   :  { %12002 = vmatprep.subr.msk.bf16.mxu1 %vm556_vm0, %v11997_v14 }
0x1282   :  { %9139 = vmatpush1.bf16.msra.mxu0 %v9047_v35 }
0x1284   :  { %9098 = vmatpush1.bf16.msra.mxu1 %v9041_v21 }
0x1285   :  { %12005 = vmatmul.mubr.msk.bf16.vlgmr.msra.gmra.mrb[56].mxu0 %vm6248_vm4, %v7050_v55 }
0x1286   :  { %11121 = vmatprep.mubr.bf16.mxu0 %v14660_v26 }
0x1287   :  { %12003 = vmatmul.mubr.msk.bf16.vlgmr.msra.gmra.mrb[32].mxu1 %vm6248_vm4, %v7050_v55  ;;  %vm16233_vm4 = vmmov %vm16224_vm2 }
0x1288   :  { %9330 = vmatprep.mubr.bf16.mxu1 %v14660_v26 }
0x1340   :  { %v15749_v37 = vpop.f32.mrb[44].mxu1 }
0x1341   :  { %v15751_v16 = vpop.f32.mrb[45].mxu1  ;;  %v8870_v47 = vmul.f32 %v15749_v37, %v14637_v33 }
0x1342   :  { %v8815_v54 = vpop.f32.mrb[46].mxu1  ;;  %v8871_v53 = vmul.f32 %v15751_v16, %v14639_v34 }
0x1343   :  { %v8816_v24 = vpop.f32.mrb[47].mxu1  ;;  %v8877_v38 = vsel %vm2648_vm6, %v8870_v47, 0.0 }
0x1344   :  { %v15753_v57 = vpop.f32.mrb[68].mxu0  ;;  %v8879_v13 = vsel %vm2648_vm6, %v8871_v53, 0.0 }
0x1345   :  { %v8868_v39 = vmul.f32 %v15753_v57, %v14629_v22  ;;  %v15757_v30 = vpop.f32.mrb[69].mxu0 }
0x1346   :  { %v8869_v11 = vmul.f32 %v15757_v30, %v14631_v23  ;;  %v8774_v20 = vpop.f32.mrb[70].mxu0 }
0x1347   :  { %v8874_v9 = vsel %vm2648_vm6, %v8868_v39, 0.0  ;;  %v8775_v10 = vpop.f32.mrb[71].mxu0 }
0x1348   :  { %v8875_v4 = vsel %vm2648_vm6, %v8869_v11, 0.0 }
0x1349   :  { %v8876_v28 = vadd.f32 %v8875_v4, %v8874_v9 }
0x134b   :  { %v8878_v1 = vadd.f32 %v8877_v38, %v8876_v28 }
0x134c   :  { %v15769_v36 = vpop.f32.mrb[72].mxu0 }
0x134d   :  { %v8872_v0 = vmul.f32 %v15769_v36, %v14645_v45  ;;  %v8880_v63 = vadd.f32 %v8879_v13, %v8878_v1  ;;  %v15773_v61 = vpop.f32.mrb[73].mxu0 }
0x134e   :  { %v8873_v29 = vmul.f32 %v15773_v61, %v14647_v46  ;;  %v8856_v41 = vpop.f32.mrb[74].mxu0  ;;  %v9086_v7 = vpop.f32.mrb[48].mxu1 }
0x134f   :  { %v8881_v60 = vsel %vm2648_vm6, %v8872_v0, 0.0  ;;  %v9087_v27 = vadd.f32 %v9086_v7, %v15409_v17  ;;  %v8857_v42 = vpop.f32.mrb[75].mxu0  ;;  %v9088_v51 = vpop.f32.mrb[49].mxu1 }
0x1350   :  { %v8882_v18 = vadd.f32 %v8881_v60, %v8880_v63  ;;  %v8883_v15 = vsel %vm2658_vm7, %v8873_v29, 0.0  ;;  %v9089_v50 = vadd.f32 %v9088_v51, %v15411_v25  ;;  %v9090_v6 = vpop.f32.mrb[50].mxu1 }
0x1351   :  { %v9175_v43 = vmax.f32 %v9087_v27, 0.0  ;;  %v9091_v48 = vpop.f32.mrb[51].mxu1 }
0x1352   :  { %v9176_v32 = vmax.f32 %v9089_v50, 0.0  ;;  %v15781_v31 = vadd.f32 %v8883_v15, %v8882_v18 }
0x1353   :  { %v9181_v52 = vmul.f32 %v9175_v43, %v14629_v22 }
0x1354   :  { %v9182_v56 = vmul.f32 %v9176_v32, %v14631_v23 }
0x1356   :  { %v12006_v55 = vpack.c.bf16 %v9182_v56, %v9181_v52 }
0x1358   :  { %v9168_v58 = vpop.f32.mrb[56].mxu0  ;;  %v9207_v10 = vrot.slane %v12006_v55, %v14672_v62 }
0x1359   :  { %v9179_v17 = vmax.f32 %v9168_v58, 0.0  ;;  %v9170_v40 = vpop.f32.mrb[57].mxu0 }
0x135a   :  { %v9180_v44 = vmax.f32 %v9170_v40, 0.0  ;;  %v9127_v2 = vpop.f32.mrb[32].mxu1  ;;  %v9172_v19 = vpop.f32.mrb[58].mxu0 }
0x135b   :  { %v9185_v59 = vmul.f32 %v9179_v17, %v14645_v45  ;;  %v9177_v25 = vmax.f32 %v9127_v2, 0.0  ;;  %v9129_v14 = vpop.f32.mrb[33].mxu1  ;;  %v9173_v49 = vpop.f32.mrb[59].mxu0 }
0x135c   :  { %v9186_v35 = vmul.f32 %v9180_v44, %v14647_v46  ;;  %v9178_v21 = vmax.f32 %v9129_v14, 0.0  ;;  %v9131_v54 = vpop.f32.mrb[34].mxu1  ;;  %v9232_v44 = vld [vmem:[#allocation36 + $0x2] sm:$0x3] }
0x135d   :  { %v9183_v24 = vmul.f32 %v9177_v25, %v14637_v33  ;;  %v9132_v39 = vpop.f32.mrb[35].mxu1 }
0x135e   :  { %v12008_v47 = vpack.c.bf16 %v9186_v35, %v9185_v59  ;;  %v9184_v11 = vmul.f32 %v9178_v21, %v14639_v34 }
0x1360   :  { %v9223_v20 = vrot.slane %v12008_v47, %v14672_v62  ;;  %v12007_v9 = vpack.c.bf16 %v9184_v11, %v9183_v24 }
0x1362   :  { %9227 = vst.msk [vmem:[#allocation2 + $0xa] sm:$0xf] %vm14691_vm10, %v9223_v20  ;;  %v9214_v53 = vrot.slane %v12007_v9, %v14672_v62  ;;  %vm16226_vm10 = vcmask 900096  }
0x1364   :  { %v9215_v4 = vcombine.low %v9207_v10, %v9214_v53  ;;  %v13305_v18 = vcombine.low %v9214_v53, %v9214_v53  ;;  %v9230_v10 = vld [vmem:[#allocation36] sm:$0x3]  ;;  %v10962_v53 = vld [vmem:[#allocation50] sm:$0xf] }
0x1366   :  { %9226 = vst [vmem:[#allocation2 + $0x2] sm:$0xff] %v9215_v4  ;;  %v15823_v51 = vrot.slane %v9215_v4, %v14672_v62  ;;  %v15833_v50 = vrot.slane %v13305_v18, %v14672_v62 }
0x1368   :  { %v15830_v15 = vcombine.high %v15823_v51, %v15823_v51  ;;  %v15841_v6 = vcombine.high %v15833_v50, %v15833_v50 }
0x1369   :  { %v15843_v43 = vld.sshfl [vmem:[#allocation2 + $0xa] sm:$0x33 pattern:$0x76325410] }
0x136a   :  { %v15849_v48 = vcombine.high %v15843_v43, %v15843_v43 }
0x136d   :  { %v9228_v28 = vld [vmem:[#allocation2] sm:$0xff]  ;;  %v12009_v12 = vld.sshfl [vmem:[#allocation2 + $0x8] sm:$0x33 pattern:$0x76325410] }
0x136e   :  { %v9242_v38 = vrot.slane %v9228_v28, %v14672_v62  ;;  %v9235_v1 = vcombine.high %v9228_v28, %v9228_v28  ;;  %v9259_v29 = vcombine.high %v12009_v12, %v12009_v12  ;;  %v9781_v41 = vld [vmem:[#allocation2 + $0x8] sm:$0x3f] }
0x136f   :  { %v9810_v7 = vrot.slane %v9781_v41, %v14672_v62  ;;  %v9803_v60 = vcombine.high %v9781_v41, %v9781_v41 }
0x1370   :  { %9260 = vrot.lane.b32.xlu1 %v9242_v38, %s14142_s5  ;;  %v9250_v13 = vcombine.high %v9242_v38, %v9242_v38  ;;  %v9249_v0 = vrot.slane %v9235_v1, %v14672_v62  ;;  %v8865_v1 = vld [vmem:[#allocation48] sm:$0xf] }
0x1371   :  { %v9818_v27 = vcombine.high %v9810_v7, %v9810_v7  ;;  %v9817_v42 = vrot.slane %v9803_v60, %v14672_v62 }
0x1372   :  { %9262 = vrot.lane.b32.xlu0 %v9250_v13, %s14142_s5  ;;  %v9251_v63 = vcombine.high %v9249_v0, %v9249_v0 }
0x1374   :  { %9264 = vrot.lane.b32.xlu1 %v9249_v0, %s14142_s5 }
0x1376   :  { %9266 = vrot.lane.b32.xlu0 %v9251_v63, %s14142_s5 }
0x1378   :  { %9268 = vrot.lane.b32.xlu1 %v12009_v12, %s14142_s5 }
0x137a   :  { %9270 = vrot.lane.b32.xlu0 %v9259_v29, %s14142_s5 }
0x137c   :  { %9421 = vrot.lane.b32.xlu1 %v9242_v38, %s14144_s10 }
0x137e   :  { %9423 = vrot.lane.b32.xlu0 %v9250_v13, %s14144_s10 }
0x1380   :  { %9425 = vrot.lane.b32.xlu1 %v9249_v0, %s14144_s10 }
0x1382   :  { %9427 = vrot.lane.b32.xlu0 %v9251_v63, %s14144_s10 }
0x1384   :  { %9429 = vrot.lane.b32.xlu1 %v12009_v12, %s14144_s10 }
0x1386   :  { %9431 = vrot.lane.b32.xlu0 %v9259_v29, %s14144_s10 }
0x1388   :  { %9613 = vrot.lane.b32.xlu1 %v9242_v38, %s14143_s12 }
0x138a   :  { %9615 = vrot.lane.b32.xlu0 %v9250_v13, %s14143_s12 }
0x138c   :  { %9617 = vrot.lane.b32.xlu1 %v9249_v0, %s14143_s12 }
0x138e   :  { %9619 = vrot.lane.b32.xlu0 %v9251_v63, %s14143_s12 }
0x1390   :  { %9621 = vrot.lane.b32.xlu1 %v12009_v12, %s14143_s12 }
0x1392   :  { %9623 = vrot.lane.b32.xlu0 %v9259_v29, %s14143_s12 }
0x1394   :  { %9819 = vrot.lane.b32.xlu1 %v9242_v38, %s14145_s20 }
0x1396   :  { %9821 = vrot.lane.b32.xlu0 %v9250_v13, %s14145_s20 }
0x1398   :  { %9823 = vrot.lane.b32.xlu1 %v9249_v0, %s14145_s20 }
0x139a   :  { %9825 = vrot.lane.b32.xlu0 %v9251_v63, %s14145_s20  ;;  %v8867_v63 = vld [vmem:[#allocation48 + $0x4] sm:$0xf] }
0x139c   :  { %9827 = vrot.lane.b32.xlu1 %v9810_v7, %s14145_s20 }
0x139e   :  { %9829 = vrot.lane.b32.xlu0 %v9818_v27, %s14145_s20 }
0x13a0   :  { %9831 = vrot.lane.b32.xlu1 %v9817_v42, %s14145_s20 }
0x13a2   :  { %10201 = vrot.lane.b32.xlu0 %v15823_v51, %s14146_s29 }
0x13a4   :  { %10203 = vrot.lane.b32.xlu1 %v15830_v15, %s14146_s29 }
0x13a6   :  { %10205 = vrot.lane.b32.xlu0 %v15833_v50, %s14146_s29 }
0x13a8   :  { %10207 = vrot.lane.b32.xlu1 %v15841_v6, %s14146_s29 }
0x13aa   :  { %10209 = vrot.lane.b32.xlu0 %v15843_v43, %s14146_s29 }
0x13ac   :  { %10211 = vrot.lane.b32.xlu1 %v15849_v48, %s14146_s29 }
0x13ae   :  { %10399 = vrot.lane.b32.xlu0 %v15823_v51, %s14147_s22 }
0x13b0   :  { %10401 = vrot.lane.b32.xlu1 %v15830_v15, %s14147_s22 }
0x13b2   :  { %10403 = vrot.lane.b32.xlu0 %v15833_v50, %s14147_s22 }
0x13b4   :  { %10405 = vrot.lane.b32.xlu1 %v15841_v6, %s14147_s22 }
0x13b6   :  { %10407 = vrot.lane.b32.xlu0 %v15843_v43, %s14147_s22 }
0x13b8   :  { %10409 = vrot.lane.b32.xlu1 %v15849_v48, %s14147_s22 }
0x13ba   :  { %10597 = vrot.lane.b32.xlu0 %v15823_v51, %s14148_s4 }
0x13bc   :  { %10599 = vrot.lane.b32.xlu1 %v15830_v15, %s14148_s4 }
0x13be   :  { %10601 = vrot.lane.b32.xlu0 %v15833_v50, %s14148_s4 }
0x13c0   :  { %10603 = vrot.lane.b32.xlu1 %v15841_v6, %s14148_s4 }
0x13c2   :  { %10605 = vrot.lane.b32.xlu0 %v15843_v43, %s14148_s4 }
0x13c4   :  { %10607 = vrot.lane.b32.xlu1 %v15849_v48, %s14148_s4 }
0x13c6   :  { %10795 = vrot.lane.b32.xlu0 %v15823_v51, %s14149_s23 }
0x13c8   :  { %10797 = vrot.lane.b32.xlu1 %v15830_v15, %s14149_s23 }
0x13ca   :  { %10799 = vrot.lane.b32.xlu0 %v15833_v50, %s14149_s23 }
0x13cc   :  { %10801 = vrot.lane.b32.xlu1 %v15841_v6, %s14149_s23 }
0x13ce   :  { %10803 = vrot.lane.b32.xlu0 %v15843_v43, %s14149_s23 }
0x13d0   :  { %10805 = vrot.lane.b32.xlu1 %v15849_v48, %s14149_s23 }
0x13e2   :  { %v9261_v62 = vpop.permute.xlu1 %9260 }
0x13e4   :  { %v9263_v32 = vpop.permute.xlu0 %9262 }
0x13e5   :  { %v9272_v52 = vsel %vm941_vm11, %v9261_v62, %v9263_v32 }
0x13e6   :  { %v9265_v56 = vpop.permute.xlu1 %9264  ;;  %v9281_v58 = vsel %vm556_vm0, %v9272_v52, 0 }
0x13e7   :  { %v9273_v55 = vsel %vm941_vm11, %v9263_v32, %v9265_v56  ;;  %v9585_v32 = vld [vmem:[#allocation36 + $0x4] sm:$0x3] }
0x13e8   :  { %v9267_v17 = vpop.permute.xlu0 %9266  ;;  %12010 = vmatprep.subr.msk.bf16.mxu1 %vm556_vm0, %v9273_v55 }
0x13e9   :  { %v9274_v40 = vsel %vm941_vm11, %v9265_v56, %v9267_v17  ;;  %9299 = vmatpush1.bf16.msra.mxu1 %v9281_v58 }
0x13ea   :  { %v9269_v2 = vpop.permute.xlu1 %9268  ;;  %v9287_v59 = vsel %vm556_vm0, %v9274_v40, 0 }
0x13eb   :  { %v9275_v19 = vsel %vm941_vm11, %v9267_v17, %v9269_v2 }
0x13ec   :  { %v9271_v25 = vpop.permute.xlu0 %9270  ;;  %12011 = vmatmul.mubr.msk.bf16.vlgmr.msra.gmra.mrb[52].mxu1 %vm584_vm1, %v9232_v44  ;;  %12012 = vmatprep.subr.msk.bf16.mxu1 %vm556_vm0, %v9275_v19 }
0x13ed   :  { %9340 = vmatpush1.bf16.msra.mxu1 %v9287_v59  ;;  %9371 = vmatprep.mubr.bf16.mxu1 %v14660_v26  ;;  %v9276_v49 = vsel %vm941_vm11, %v9269_v2, %v9271_v25  ;;  %vm16227_vm11 = vmmov %vm16226_vm10 }
0x13ee   :  { %12014 = vmatprep.subr.msk.bf16.mxu1 %vm556_vm0, %v9271_v25  ;;  %v9422_v14 = vpop.permute.xlu1 %9421  ;;  %v9293_v24 = vsel %vm556_vm0, %v9276_v49, 0 }
0x13f0   :  { %v9424_v35 = vpop.permute.xlu0 %9423 }
0x13f1   :  { %v9433_v39 = vsel %vm1103_vm12, %v9422_v14, %v9424_v35 }
0x13f2   :  { %v9426_v21 = vpop.permute.xlu1 %9425  ;;  %v9442_v11 = vsel %vm556_vm0, %v9433_v39, 0 }
0x13f3   :  { %v9434_v54 = vsel %vm1103_vm12, %v9424_v35, %v9426_v21 }
0x13f4   :  { %8885 = vadd.xlane.f32.xlu1 %v15781_v31  ;;  %12013 = vmatmul.mubr.msk.bf16.vlgmr.msra.gmra.mrb[56].mxu1 %vm584_vm1, %v9232_v44  ;;  %v9428_v20 = vpop.permute.xlu0 %9427 }
0x13f5   :  { %9381 = vmatpush1.bf16.msra.mxu1 %v9293_v24  ;;  %9412 = vmatprep.mubr.bf16.mxu1 %v14660_v26  ;;  %v9435_v31 = vsel %vm1103_vm12, %v9426_v21, %v9428_v20  ;;  %v9783_v21 = vld [vmem:[#allocation36 + $0x6] sm:$0x3] }
0x13f6   :  { %12016 = vmatprep.subr.msk.bf16.mxu1 %vm556_vm0, %v9434_v54  ;;  %v9430_v47 = vpop.permute.xlu1 %9429  ;;  %v9448_v4 = vsel %vm556_vm0, %v9435_v31, 0  ;;  %v9992_v31 = vld [vmem:[#allocation36 + $0x8] sm:$0x3] }
0x13f7   :  { %v9436_v9 = vsel %vm1103_vm12, %v9428_v20, %v9430_v47 }
0x13f8   :  { %v9432_v38 = vpop.permute.xlu0 %9431 }
0x13f9   :  { %v9437_v13 = vsel %vm1103_vm12, %v9430_v47, %v9432_v38  ;;  %vm16228_vm12 = vmmov %vm16226_vm10 }
0x13fa   :  { %v9614_v28 = vpop.permute.xlu1 %9613  ;;  %v9454_v12 = vsel %vm556_vm0, %v9437_v13, 0  ;;  %v10173_v13 = vld [vmem:[#allocation36 + $0xa] sm:$0x3] }
0x13fc   :  { %12015 = vmatmul.mubr.msk.bf16.vlgmr.msra.gmra.mrb[60].mxu1 %vm584_vm1, %v9232_v44  ;;  %v9616_v29 = vpop.permute.xlu0 %9615 }
0x13fd   :  { %9460 = vmatpush1.bf16.msra.mxu1 %v9442_v11  ;;  %9491 = vmatprep.mubr.bf16.mxu1 %v14660_v26  ;;  %v9625_v7 = vsel %vm1296_vm13, %v9614_v28, %v9616_v29 }
0x13fe   :  { %12018 = vmatprep.subr.msk.bf16.mxu1 %vm556_vm0, %v9436_v9  ;;  %v9618_v0 = vpop.permute.xlu1 %9617  ;;  %v9634_v27 = vsel %vm556_vm0, %v9625_v7, 0  ;;  %v10024_v9 = vsel %vm556_vm0, %v15823_v51, 0 }
0x13ff   :  { %v9626_v41 = vsel %vm1296_vm13, %v9616_v29, %v9618_v0 }
0x1400   :  { %v9620_v42 = vpop.permute.xlu0 %9619 }
0x1401   :  { %v9627_v62 = vsel %vm1296_vm13, %v9618_v0, %v9620_v42 }
0x1402   :  { %v9622_v60 = vpop.permute.xlu1 %9621  ;;  %v9640_v52 = vsel %vm556_vm0, %v9627_v62, 0 }
0x1403   :  { %v9628_v18 = vsel %vm1296_vm13, %v9620_v42, %v9622_v60 }
0x1404   :  { %12017 = vmatmul.mubr.msk.bf16.vlgmr.msra.gmra.mrb[52].mxu1 %vm584_vm1, %v9230_v10  ;;  %v9624_v55 = vpop.permute.xlu0 %9623 }
0x1405   :  { %9501 = vmatpush1.bf16.msra.mxu1 %v9448_v4  ;;  %11027 = vperm.xlu1 %12953, %v10962_v53   ;;  %v9629_v58 = vsel %vm1296_vm13, %v9622_v60, %v9624_v55  ;;  %v10030_v53 = vsel %vm556_vm0, %v15833_v50, 0  ;;  %vm16229_vm13 = vmmov %vm16226_vm10 }
0x1406   :  { %12020 = vmatprep.subr.msk.bf16.mxu1 %vm556_vm0, %v9432_v38  ;;  %9532 = vmatprep.mubr.bf16.mxu1 %v14660_v26  ;;  %v9820_v56 = vpop.permute.xlu1 %9819  ;;  %v9646_v40 = vsel %vm556_vm0, %v9629_v58, 0 }
0x1408   :  { %v9822_v44 = vpop.permute.xlu0 %9821 }
0x1409   :  { %8930 = vperm.xlu1 %12953, %v8865_v1   ;;  %v9833_v19 = vsel %vm1505_vm14, %v9820_v56, %v9822_v44 }
0x140a   :  { %v9824_v17 = vpop.permute.xlu1 %9823  ;;  %v9843_v25 = vsel %vm556_vm0, %v9833_v19, 0 }
0x140b   :  { %v9834_v2 = vsel %vm1505_vm14, %v9822_v44, %v9824_v17 }
0x140c   :  { %12019 = vmatmul.mubr.msk.bf16.vlgmr.msra.gmra.mrb[56].mxu1 %vm584_vm1, %v9230_v10  ;;  %v9826_v14 = vpop.permute.xlu0 %9825 }
0x140d   :  { %9542 = vmatpush1.bf16.msra.mxu1 %v9454_v12  ;;  %8941 = vperm.xlu1 %12953, %v8867_v63   ;;  %v9835_v35 = vsel %vm1505_vm14, %v9824_v17, %v9826_v14 }
0x140e   :  { %12023 = vmatprep.subr.msk.bf16.mxu1 %vm556_vm0, %v9626_v41  ;;  %9573 = vmatprep.mubr.bf16.mxu1 %v14660_v26  ;;  %v9828_v59 = vpop.permute.xlu1 %9827  ;;  %v9849_v24 = vsel %vm556_vm0, %v9835_v35, 0 }
0x140f   :  { %v9836_v49 = vsel %vm1505_vm14, %v9826_v14, %v9828_v59 }
0x1410   :  { %v9830_v39 = vpop.permute.xlu0 %9829 }
0x1411   :  { %v9837_v11 = vsel %vm1505_vm14, %v9828_v59, %v9830_v39 }
0x1412   :  { %v9832_v54 = vpop.permute.xlu1 %9831  ;;  %v9855_v20 = vsel %vm556_vm0, %v9837_v11, 0 }
0x1413   :  { %v9838_v47 = vsel %vm1505_vm14, %v9830_v39, %v9832_v54  ;;  %v10569_v39 = vld [vmem:[#allocation36 + $0xe] sm:$0x3]  ;;  %vm16230_vm14 = vmmov %vm16226_vm10 }
0x1414   :  { %12021 = vmatmul.mubr.msk.bf16.vlgmr.msra.gmra.mrb[60].mxu1 %vm584_vm1, %v9230_v10  ;;  %v10202_v10 = vpop.permute.xlu0 %10201 }
0x1415   :  { %9652 = vmatpush1.bf16.msra.mxu1 %v9634_v27  ;;  %9683 = vmatprep.mubr.bf16.mxu1 %v14660_v26 }
0x1416   :  { %12025 = vmatprep.subr.msk.bf16.mxu1 %vm556_vm0, %v9628_v18 }
0x1418   :  { %v10206_v51 = vpop.permute.xlu0 %10205 }
0x141c   :  { %12024 = vmatmul.mubr.msk.bf16.vlgmr.msra.gmra.mrb[52].mxu1 %vm584_vm1, %v9585_v32  ;;  %v10210_v28 = vpop.permute.xlu0 %10209 }
0x141d   :  { %9693 = vmatpush1.bf16.msra.mxu1 %v9640_v52  ;;  %9724 = vmatprep.mubr.bf16.mxu1 %v14660_v26 }
0x141e   :  { %12027 = vmatprep.subr.msk.bf16.mxu1 %vm556_vm0, %v9624_v55  ;;  %v10371_v55 = vld [vmem:[#allocation36 + $0xc] sm:$0x3] }
0x1420   :  { %v10400_v63 = vpop.permute.xlu0 %10399 }
0x1424   :  { %12026 = vmatmul.mubr.msk.bf16.vlgmr.msra.gmra.mrb[56].mxu1 %vm584_vm1, %v9585_v32  ;;  %v10404_v41 = vpop.permute.xlu0 %10403 }
0x1425   :  { %9734 = vmatpush1.bf16.msra.mxu1 %v9646_v40  ;;  %9765 = vmatprep.mubr.bf16.mxu1 %v14660_v26 }
0x1426   :  { %12029 = vmatprep.subr.msk.bf16.mxu1 %vm556_vm0, %v9834_v2 }
0x1428   :  { %v10408_v18 = vpop.permute.xlu0 %10407 }
0x142c   :  { %12028 = vmatmul.mubr.msk.bf16.vlgmr.msra.gmra.mrb[60].mxu1 %vm584_vm1, %v9585_v32  ;;  %v10598_v17 = vpop.permute.xlu0 %10597 }
0x142d   :  { %9861 = vmatpush1.bf16.msra.mxu1 %v9843_v25  ;;  %9892 = vmatprep.mubr.bf16.mxu1 %v14660_v26 }
0x142e   :  { %12031 = vmatprep.subr.msk.bf16.mxu1 %vm556_vm0, %v9836_v49 }
0x1430   :  { %v10602_v2 = vpop.permute.xlu0 %10601 }
0x1434   :  { %12030 = vmatmul.mubr.msk.bf16.vlgmr.msra.gmra.mrb[52].mxu1 %vm584_vm1, %v9783_v21  ;;  %v10606_v49 = vpop.permute.xlu0 %10605 }
0x1435   :  { %9902 = vmatpush1.bf16.msra.mxu1 %v9849_v24  ;;  %9933 = vmatprep.mubr.bf16.mxu1 %v14660_v26 }
0x1436   :  { %12033 = vmatprep.subr.msk.bf16.mxu1 %vm556_vm0, %v9838_v47 }
0x1438   :  { %v10796_v11 = vpop.permute.xlu0 %10795 }
0x143c   :  { %12032 = vmatmul.mubr.msk.bf16.vlgmr.msra.gmra.mrb[56].mxu1 %vm584_vm1, %v9783_v21 }
0x143d   :  { %9943 = vmatpush1.bf16.msra.mxu1 %v9855_v20  ;;  %9974 = vmatprep.mubr.bf16.mxu1 %v14660_v26 }
0x143e   :  { %12036 = vmatprep.subr.msk.bf16.mxu1 %vm556_vm0, %v15830_v15  ;;  %v10204_v15 = vpop.permute.xlu1 %10203 }
0x143f   :  { %v10214_v4 = vsel %vm1886_vm15, %v10204_v15, %v10206_v51  ;;  %v10213_v50 = vsel %vm1886_vm15, %v10202_v10, %v10204_v15 }
0x1440   :  { %v10222_v38 = vsel %vm556_vm0, %v10213_v50, 0 }
0x1444   :  { %12034 = vmatmul.mubr.msk.bf16.vlgmr.msra.gmra.mrb[60].mxu1 %vm584_vm1, %v9783_v21 }
0x1445   :  { %10042 = vmatpush1.bf16.msra.mxu1 %v10024_v9  ;;  %10073 = vmatprep.mubr.bf16.mxu1 %v14660_v26 }
0x1446   :  { %12038 = vmatprep.subr.msk.bf16.mxu1 %vm556_vm0, %v15841_v6  ;;  %v10036_v6 = vsel %vm556_vm0, %v15843_v43, 0 }
0x144c   :  { %12037 = vmatmul.mubr.msk.bf16.vlgmr.msra.gmra.mrb[52].mxu1 %vm584_vm1, %v9992_v31 }
0x144d   :  { %10083 = vmatpush1.bf16.msra.mxu1 %v10030_v53  ;;  %10114 = vmatprep.mubr.bf16.mxu1 %v14660_v26 }
0x144e   :  { %12040 = vmatprep.subr.msk.bf16.mxu1 %vm556_vm0, %v15849_v48  ;;  %v10208_v48 = vpop.permute.xlu1 %10207 }
0x144f   :  { %v10216_v1 = vsel %vm1886_vm15, %v10208_v48, %v10210_v28  ;;  %v10215_v43 = vsel %vm1886_vm15, %v10206_v51, %v10208_v48  ;;  %v10767_v48 = vld [vmem:[#allocation36 + $0x10] sm:$0x3] }
0x1450   :  { %v10228_v0 = vsel %vm556_vm0, %v10215_v43, 0 }
0x1452   :  { %v10212_v12 = vpop.permute.xlu1 %10211 }
0x1453   :  { %v10217_v29 = vsel %vm1886_vm15, %v10210_v28, %v10212_v12  ;;  %vm16231_vm15 = vmmov %vm16224_vm2 }
0x1454   :  { %12039 = vmatmul.mubr.msk.bf16.vlgmr.msra.gmra.mrb[56].mxu1 %vm584_vm1, %v9992_v31  ;;  %v10234_v7 = vsel %vm556_vm0, %v10217_v29, 0 }
0x1455   :  { %10124 = vmatpush1.bf16.msra.mxu1 %v10036_v6  ;;  %10155 = vmatprep.mubr.bf16.mxu1 %v14660_v26 }
0x1456   :  { %12043 = vmatprep.subr.msk.bf16.mxu1 %vm556_vm0, %v10214_v4  ;;  %v10402_v60 = vpop.permute.xlu1 %10401 }
0x1457   :  { %v10412_v27 = vsel %vm2085_vm3, %v10402_v60, %v10404_v41  ;;  %v10411_v42 = vsel %vm2085_vm3, %v10400_v63, %v10402_v60 }
0x1458   :  { %v10420_v62 = vsel %vm556_vm0, %v10411_v42, 0 }
0x145a   :  { %v10406_v32 = vpop.permute.xlu1 %10405 }
0x145b   :  { %v10414_v52 = vsel %vm2085_vm3, %v10406_v32, %v10408_v18  ;;  %v10413_v56 = vsel %vm2085_vm3, %v10404_v41, %v10406_v32 }
0x145c   :  { %12041 = vmatmul.mubr.msk.bf16.vlgmr.msra.gmra.mrb[60].mxu1 %vm584_vm1, %v9992_v31  ;;  %v10426_v58 = vsel %vm556_vm0, %v10413_v56, 0  ;;  %v10800_v31 = vpop.permute.xlu0 %10799 }
0x145d   :  { %10240 = vmatpush1.bf16.msra.mxu1 %v10222_v38  ;;  %10271 = vmatprep.mubr.bf16.mxu1 %v14660_v26 }
0x145e   :  { %12045 = vmatprep.subr.msk.bf16.mxu1 %vm556_vm0, %v10216_v1  ;;  %v10410_v40 = vpop.permute.xlu1 %10409 }
0x145f   :  { %v10415_v44 = vsel %vm2085_vm3, %v10408_v18, %v10410_v40  ;;  %vm16232_vm3 = vmmov %vm16224_vm2 }
0x1460   :  { %v10432_v19 = vsel %vm556_vm0, %v10415_v44, 0  ;;  %v10804_v6 = vpop.permute.xlu0 %10803 }
0x1462   :  { %v10600_v59 = vpop.permute.xlu1 %10599 }
0x1463   :  { %v10610_v25 = vsel %vm16226_vm10, %v10600_v59, %v10602_v2  ;;  %v10609_v14 = vsel %vm16227_vm11, %v10598_v17, %v10600_v59 }
0x1464   :  { %12044 = vmatmul.mubr.msk.bf16.vlgmr.msra.gmra.mrb[52].mxu1 %vm584_vm1, %v10173_v13  ;;  %v10618_v35 = vsel %vm556_vm0, %v10609_v14, 0 }
0x1465   :  { %10281 = vmatpush1.bf16.msra.mxu1 %v10228_v0  ;;  %10312 = vmatprep.mubr.bf16.mxu1 %v14660_v26 }
0x1466   :  { %12047 = vmatprep.subr.msk.bf16.mxu1 %vm556_vm0, %v10212_v12  ;;  %v10604_v21 = vpop.permute.xlu1 %10603 }
0x1467   :  { %v10612_v54 = vsel %vm16228_vm12, %v10604_v21, %v10606_v49  ;;  %v10611_v24 = vsel %vm16229_vm13, %v10602_v2, %v10604_v21 }
0x1468   :  { %v10624_v47 = vsel %vm556_vm0, %v10611_v24, 0 }
0x146a   :  { %v10608_v20 = vpop.permute.xlu1 %10607 }
0x146b   :  { %v10613_v9 = vsel %vm16230_vm14, %v10606_v49, %v10608_v20 }
0x146c   :  { %12046 = vmatmul.mubr.msk.bf16.vlgmr.msra.gmra.mrb[56].mxu1 %vm584_vm1, %v10173_v13  ;;  %v10630_v10 = vsel %vm556_vm0, %v10613_v9, 0 }
0x146d   :  { %10322 = vmatpush1.bf16.msra.mxu1 %v10234_v7  ;;  %10353 = vmatprep.mubr.bf16.mxu1 %v14660_v26 }
0x146e   :  { %12050 = vmatprep.subr.msk.bf16.mxu1 %vm556_vm0, %v10412_v27  ;;  %v10798_v53 = vpop.permute.xlu1 %10797 }
0x146f   :  { %v10808_v51 = vsel %vm16231_vm15, %v10798_v53, %v10800_v31  ;;  %v10807_v15 = vsel %vm16232_vm3, %v10796_v11, %v10798_v53 }
0x1470   :  { %v10816_v4 = vsel %vm556_vm0, %v10807_v15, 0 }
0x1472   :  { %v10802_v50 = vpop.permute.xlu1 %10801 }
0x1473   :  { %v10810_v28 = vsel %vm16233_vm4, %v10802_v50, %v10804_v6  ;;  %v10809_v38 = vsel %vm16234_vm8, %v10800_v31, %v10802_v50 }
0x1474   :  { %12048 = vmatmul.mubr.msk.bf16.vlgmr.msra.gmra.mrb[60].mxu1 %vm584_vm1, %v10173_v13  ;;  %v10822_v1 = vsel %vm556_vm0, %v10809_v38, 0 }
0x1475   :  { %10438 = vmatpush1.bf16.msra.mxu1 %v10420_v62  ;;  %10469 = vmatprep.mubr.bf16.mxu1 %v14660_v26 }
0x1476   :  { %12052 = vmatprep.subr.msk.bf16.mxu1 %vm556_vm0, %v10414_v52  ;;  %v10806_v43 = vpop.permute.xlu1 %10805 }
0x1477   :  { %v10811_v13 = vsel %vm16235_vm5, %v10804_v6, %v10806_v43 }
0x1478   :  { %v10828_v0 = vsel %vm556_vm0, %v10811_v13, 0 }
0x147c   :  { %12051 = vmatmul.mubr.msk.bf16.vlgmr.msra.gmra.mrb[52].mxu1 %vm584_vm1, %v10371_v55 }
0x147d   :  { %10479 = vmatpush1.bf16.msra.mxu1 %v10426_v58  ;;  %10510 = vmatprep.mubr.bf16.mxu1 %v14660_v26 }
0x147e   :  { %12054 = vmatprep.subr.msk.bf16.mxu1 %vm556_vm0, %v10410_v40 }
0x1481   :  { %v8886_v63 = vpop.xlane.xlu1 %8885 }
0x1482   :  { %v8887_v12 = vmul.f32 0.001953125, %v8886_v63 }
0x1484   :  { %12053 = vmatmul.mubr.msk.bf16.vlgmr.msra.gmra.mrb[56].mxu1 %vm584_vm1, %v10371_v55  ;;  %v16047_v29 = vsub.f32 %v15753_v57, %v8887_v12  ;;  %v16050_v41 = vsub.f32 %v15757_v30, %v8887_v12  ;;  %v16058_v62 = vsub.f32 %v15749_v37, %v8887_v12  ;;  %v16064_v40 = vsub.f32 %v15751_v16, %v8887_v12 }
0x1485   :  { %10520 = vmatpush1.bf16.msra.mxu1 %v10432_v19  ;;  %10551 = vmatprep.mubr.bf16.mxu1 %v14660_v26  ;;  %v16072_v14 = vsub.f32 %v15769_v36, %v8887_v12 }
0x1486   :  { %12057 = vmatprep.subr.msk.bf16.mxu1 %vm556_vm0, %v10610_v25  ;;  %v8894_v7 = vmul.f32 %v16047_v29, %v14629_v22  ;;  %v8895_v60 = vmul.f32 %v16050_v41, %v14631_v23  ;;  %v8896_v44 = vmul.f32 %v16058_v62, %v14637_v33  ;;  %v8897_v49 = vmul.f32 %v16064_v40, %v14639_v34 }
0x1487   :  { %v8898_v36 = vmul.f32 %v16072_v14, %v14645_v45 }
0x1488   :  { %v8900_v56 = vmul.f32 %v8894_v7, %v8894_v7  ;;  %v8903_v9 = vmul.f32 %v8897_v49, %v8897_v49 }
0x1489   :  { %v8904_v50 = vmul.f32 %v8898_v36, %v8898_v36 }
0x148a   :  { %v8906_v37 = vsel %vm2648_vm6, %v8900_v56, 0.0 }
0x148c   :  { %12055 = vmatmul.mubr.msk.bf16.vlgmr.msra.gmra.mrb[60].mxu1 %vm584_vm1, %v10371_v55  ;;  %v8901_v55 = vmul.f32 %v8895_v60, %v8895_v60 }
0x148d   :  { %10636 = vmatpush1.bf16.msra.mxu1 %v10618_v35  ;;  %10667 = vmatprep.mubr.bf16.mxu1 %v14660_v26  ;;  %v8902_v35 = vmul.f32 %v8896_v44, %v8896_v44 }
0x148e   :  { %12059 = vmatprep.subr.msk.bf16.mxu1 %vm556_vm0, %v10612_v54  ;;  %v8907_v2 = vsel %vm2648_vm6, %v8901_v55, 0.0 }
0x148f   :  { %v8908_v54 = vadd.f32 %v8907_v2, %v8906_v37  ;;  %v8909_v31 = vsel %vm2648_vm6, %v8902_v35, 0.0 }
0x1491   :  { %v8910_v53 = vadd.f32 %v8909_v31, %v8908_v54 }
0x1494   :  { %12058 = vmatmul.mubr.msk.bf16.vlgmr.msra.gmra.mrb[52].mxu1 %vm584_vm1, %v10569_v39 }
0x1495   :  { %10677 = vmatpush1.bf16.msra.mxu1 %v10624_v47  ;;  %10708 = vmatprep.mubr.bf16.mxu1 %v14660_v26 }
0x1496   :  { %12061 = vmatprep.subr.msk.bf16.mxu1 %vm556_vm0, %v10608_v20  ;;  %v16080_v20 = vsub.f32 %v15773_v61, %v8887_v12  ;;  %v8913_v12 = vsel %vm2648_vm6, %v8904_v50, 0.0 }
0x149c   :  { %12060 = vmatmul.mubr.msk.bf16.vlgmr.msra.gmra.mrb[56].mxu1 %vm584_vm1, %v10569_v39 }
0x149d   :  { %10718 = vmatpush1.bf16.msra.mxu1 %v10630_v10  ;;  %10749 = vmatprep.mubr.bf16.mxu1 %v14660_v26 }
0x149e   :  { %12064 = vmatprep.subr.msk.bf16.mxu1 %vm556_vm0, %v10808_v51 }
0x14a4   :  { %12062 = vmatmul.mubr.msk.bf16.vlgmr.msra.gmra.mrb[60].mxu1 %vm584_vm1, %v10569_v39 }
0x14a5   :  { %10834 = vmatpush1.bf16.msra.mxu1 %v10816_v4  ;;  %10865 = vmatprep.mubr.bf16.mxu1 %v14660_v26  ;;  %v8899_v4 = vmul.f32 %v16080_v20, %v14647_v46 }
0x14a6   :  { %12066 = vmatprep.subr.msk.bf16.mxu1 %vm556_vm0, %v10810_v28  ;;  %v8911_v28 = vsel %vm2648_vm6, %v8903_v9, 0.0 }
0x14a7   :  { %v8905_v63 = vmul.f32 %v8899_v4, %v8899_v4 }
0x14ac   :  { %12065 = vmatmul.mubr.msk.bf16.vlgmr.msra.gmra.mrb[52].mxu1 %vm584_vm1, %v10767_v48 }
0x14ad   :  { %10875 = vmatpush1.bf16.msra.mxu1 %v10822_v1  ;;  %10906 = vmatprep.mubr.bf16.mxu1 %v14660_v26 }
0x14ae   :  { %12068 = vmatprep.subr.msk.bf16.mxu1 %vm556_vm0, %v10806_v43 }
0x14b4   :  { %12067 = vmatmul.mubr.msk.bf16.vlgmr.msra.gmra.mrb[56].mxu1 %vm584_vm1, %v10767_v48 }
0x14b5   :  { %10916 = vmatpush1.bf16.msra.mxu1 %v10828_v0  ;;  %10947 = vmatprep.mubr.bf16.mxu1 %v14660_v26 }
0x14bc   :  { %12069 = vmatmul.mubr.msk.bf16.vlgmr.msra.gmra.mrb[60].mxu1 %vm584_vm1, %v10767_v48  ;;  %v8912_v48 = vadd.f32 %v8911_v28, %v8910_v53 }
0x14be   :  { %v8914_v60 = vadd.f32 %v8913_v12, %v8912_v48  ;;  %v11028_v12 = vpop.permute.xlu1 %11027 }
0x157f   :  { %v10867_v27 = vpop.f32.mrb[52].mxu1 }
0x1580   :  { %v10965_v42 = vmul.f32 %v10867_v27, %v14629_v22  ;;  %v10869_v18 = vpop.f32.mrb[53].mxu1 }
0x1581   :  { %v10966_v32 = vmul.f32 %v10869_v18, %v14631_v23  ;;  %v10871_v57 = vpop.f32.mrb[54].mxu1 }
0x1582   :  { %v10971_v52 = vsel %vm2648_vm6, %v10965_v42, 0.0  ;;  %v10872_v30 = vpop.f32.mrb[55].mxu1  ;;  %v8915_v42 = vsel %vm2658_vm7, %v8905_v63, 0.0 }
0x1583   :  { %v10972_v58 = vsel %vm2648_vm6, %v10966_v32, 0.0  ;;  %v8916_v32 = vadd.f32 %v8915_v42, %v8914_v60 }
0x1584   :  { %v10973_v17 = vadd.f32 %v10972_v58, %v10971_v52 }
0x1587   :  { %v10908_v19 = vpop.f32.mrb[56].mxu1 }
0x1588   :  { %v10967_v59 = vmul.f32 %v10908_v19, %v14637_v33  ;;  %v10910_v25 = vpop.f32.mrb[57].mxu1 }
0x1589   :  { %v10968_v16 = vmul.f32 %v10910_v25, %v14639_v34  ;;  %v10912_v21 = vpop.f32.mrb[58].mxu1 }
0x158a   :  { %v10974_v24 = vsel %vm2648_vm6, %v10967_v59, 0.0  ;;  %v10913_v39 = vpop.f32.mrb[59].mxu1 }
0x158b   :  { %v10975_v47 = vadd.f32 %v10974_v24, %v10973_v17  ;;  %v10976_v11 = vsel %vm2648_vm6, %v10968_v16, 0.0 }
0x158d   :  { %v10977_v10 = vadd.f32 %v10976_v11, %v10975_v47 }
0x158f   :  { %v10949_v51 = vpop.f32.mrb[60].mxu1 }
0x1590   :  { %v10969_v15 = vmul.f32 %v10949_v51, %v14645_v45  ;;  %v10951_v6 = vpop.f32.mrb[61].mxu1 }
0x1591   :  { %v10970_v61 = vmul.f32 %v10951_v6, %v14647_v46  ;;  %v10953_v38 = vpop.f32.mrb[62].mxu1 }
0x1592   :  { %v10978_v1 = vsel %vm2648_vm6, %v10969_v15, 0.0  ;;  %v10954_v43 = vpop.f32.mrb[63].mxu1 }
0x1593   :  { %v10979_v13 = vadd.f32 %v10978_v1, %v10977_v10  ;;  %v10980_v0 = vsel %vm2658_vm7, %v10970_v61, 0.0 }
0x1595   :  { %v10981_v7 = vadd.f32 %v10980_v0, %v10979_v13 }
0x1597   :  { %10982 = vadd.xlane.f32.xlu0 %v10981_v7 }
0x159b   :  { %8917 = vadd.xlane.f32.xlu0 %v8916_v32 }
0x1624   :  { %v10983_v57 = vpop.xlane.xlu0 %10982 }
0x1625   :  { %v10984_v52 = vmul.f32 0.001953125, %v10983_v57 }
0x1627   :  { %v10985_v30 = vsub.f32 %v10867_v27, %v10984_v52  ;;  %v10986_v56 = vsub.f32 %v10869_v18, %v10984_v52  ;;  %v10987_v55 = vsub.f32 %v10908_v19, %v10984_v52  ;;  %v10988_v58 = vsub.f32 %v10910_v25, %v10984_v52 }
0x1628   :  { %v10989_v17 = vsub.f32 %v10949_v51, %v10984_v52  ;;  %v10990_v44 = vsub.f32 %v10951_v6, %v10984_v52  ;;  %v10964_v6 = vld [vmem:[#allocation50 + $0x4] sm:$0xf]  ;;  %v8918_v4 = vpop.xlane.xlu0 %8917 }
0x1629   :  { %v10991_v37 = vmul.f32 %v10985_v30, %v14629_v22  ;;  %v10992_v2 = vmul.f32 %v10986_v56, %v14631_v23  ;;  %v10993_v59 = vmul.f32 %v10987_v55, %v14637_v33  ;;  %v10994_v49 = vmul.f32 %v10988_v58, %v14639_v34 }
0x162a   :  { %v10995_v35 = vmul.f32 %v10989_v17, %v14645_v45  ;;  %v10996_v27 = vmul.f32 %v10990_v44, %v14647_v46  ;;  %v8919_v50 = vmul.f32 0.001953125, %v8918_v4 }
0x162b   :  { %v10997_v16 = vmul.f32 %v10991_v37, %v10991_v37  ;;  %v10998_v21 = vmul.f32 %v10992_v2, %v10992_v2  ;;  %v10999_v54 = vmul.f32 %v10993_v59, %v10993_v59  ;;  %v11000_v18 = vmul.f32 %v10994_v49, %v10994_v49 }
0x162c   :  { %v11001_v39 = vmul.f32 %v10995_v35, %v10995_v35  ;;  %v11002_v36 = vmul.f32 %v10996_v27, %v10996_v27  ;;  %v8920_v48 = vadd.f32 1e-05, %v8919_v50 }
0x162d   :  { %v11003_v19 = vsel %vm2648_vm6, %v10997_v16, 0.0  ;;  %v11004_v25 = vsel %vm2648_vm6, %v10998_v21, 0.0  ;;  %v11006_v47 = vsel %vm2648_vm6, %v10999_v54, 0.0  ;;  %v11008_v9 = vsel %vm2648_vm6, %v11000_v18, 0.0 }
0x162e   :  { %v11005_v24 = vadd.f32 %v11004_v25, %v11003_v19  ;;  %v11010_v10 = vsel %vm2648_vm6, %v11001_v39, 0.0  ;;  %v11012_v51 = vsel %vm2658_vm7, %v11002_v36, 0.0 }
0x1630   :  { %v11007_v11 = vadd.f32 %v11006_v47, %v11005_v24 }
0x1632   :  { %v11009_v31 = vadd.f32 %v11008_v9, %v11007_v11 }
0x1634   :  { %v11011_v53 = vadd.f32 %v11010_v10, %v11009_v31 }
0x1636   :  { %v11013_v15 = vadd.f32 %v11012_v51, %v11011_v53 }
0x1638   :  { %11014 = vadd.xlane.f32.xlu0 %v11013_v15 }
0x164e   :  { %11038 = vperm.xlu0 %12954, %v10964_v6  }
0x16c5   :  { %v11015_v28 = vpop.xlane.xlu0 %11014 }
0x16c6   :  { %v11016_v61 = vmul.f32 0.001953125, %v11015_v28 }
0x16c8   :  { %v11017_v38 = vadd.f32 1e-05, %v11016_v61 }
0x16ca   :  { %13293 = vrsqrt.f32 %v11017_v38 }
0x16cb   :  { %13295 = vrsqrt.f32 %v8920_v48 }
0x16cd   :  { %v11039_v2 = vpop.permute.xlu0 %11038 }
0x16d4   :  { %v13294_v1 = vpop.eup %13293 }
0x16d5   :  { %v11020_v43 = vmul.f32 %v13294_v1, %v10986_v56  ;;  %v11019_v13 = vmul.f32 %v13294_v1, %v10985_v30  ;;  %v11022_v0 = vmul.f32 %v13294_v1, %v10988_v58  ;;  %v11021_v63 = vmul.f32 %v13294_v1, %v10987_v55  ;;  %v13296_v42 = vpop.eup %13295 }
0x16d6   :  { %v11024_v7 = vmul.f32 %v13294_v1, %v10990_v44  ;;  %v11023_v60 = vmul.f32 %v13294_v1, %v10989_v17  ;;  %v8923_v30 = vmul.f32 %v13296_v42, %v16050_v41  ;;  %v8931_v17 = vpop.permute.xlu1 %8930  ;;  %v8922_v39 = vmul.f32 %v13296_v42, %v16047_v29  ;;  %v11061_v41 = vld [vmem:[#allocation38 + $0x2] sm:$0x3] }
0x16d7   :  { %v11031_v32 = vmul.f32 %v11028_v12, %v11020_v43  ;;  %v11030_v57 = vmul.f32 %v11028_v12, %v11019_v13  ;;  %v11033_v52 = vmul.f32 %v11028_v12, %v11022_v0  ;;  %v11032_v37 = vmul.f32 %v11028_v12, %v11021_v63 }
0x16d8   :  { %v11035_v59 = vmul.f32 %v11028_v12, %v11024_v7  ;;  %v11034_v27 = vmul.f32 %v11028_v12, %v11023_v60  ;;  %v8934_v24 = vmul.f32 %v8931_v17, %v8923_v30  ;;  %v8933_v10 = vmul.f32 %v8931_v17, %v8922_v39 }
0x16d9   :  { %v11042_v49 = vadd.f32 %v11039_v2, %v11031_v32  ;;  %v11041_v35 = vadd.f32 %v11039_v2, %v11030_v57  ;;  %v11044_v16 = vadd.f32 %v11039_v2, %v11033_v52  ;;  %v11043_v21 = vadd.f32 %v11039_v2, %v11032_v37 }
0x16da   :  { %v11046_v54 = vadd.f32 %v11039_v2, %v11035_v59  ;;  %v11045_v25 = vadd.f32 %v11039_v2, %v11034_v27  ;;  %v8942_v31 = vpop.permute.xlu1 %8941  ;;  %v8925_v53 = vmul.f32 %v13296_v42, %v16064_v40  ;;  %v8924_v4 = vmul.f32 %v13296_v42, %v16058_v62 }
0x16db   :  { %v11048_v56 = vmax.f32 %v11042_v49, 0.0  ;;  %v11047_v55 = vmax.f32 %v11041_v35, 0.0  ;;  %v11050_v58 = vmax.f32 %v11044_v16, 0.0  ;;  %v11049_v44 = vmax.f32 %v11043_v21, 0.0 }
0x16dc   :  { %v11052_v9 = vmax.f32 %v11046_v54, 0.0  ;;  %v11051_v15 = vmax.f32 %v11045_v25, 0.0  ;;  %v8945_v6 = vadd.f32 %v8942_v31, %v8934_v24  ;;  %v8944_v61 = vadd.f32 %v8942_v31, %v8933_v10 }
0x16dd   :  { %v11063_v18 = vpack.c.bf16 %v11048_v56, %v11048_v56  ;;  %v11062_v19 = vpack.c.bf16 %v11047_v55, %v11047_v55  ;;  %v11065_v11 = vpack.c.bf16 %v11050_v58, %v11050_v58  ;;  %v11064_v36 = vpack.c.bf16 %v11049_v44, %v11049_v44 }
0x16de   :  { %v11067_v29 = vpack.c.bf16 %v11052_v9, %v11052_v9  ;;  %v11066_v50 = vpack.c.bf16 %v11051_v15, %v11051_v15  ;;  %v8951_v28 = vmax.f32 %v8945_v6, 0.0  ;;  %v8936_v38 = vmul.f32 %v8931_v17, %v8925_v53 }
0x16df   :  { %12070 = vmatprep.subr.msk.bf16.mxu0 %vm556_vm0, %v11063_v18  ;;  %v11072_v47 = vsel %vm556_vm0, %v11062_v19, 0  ;;  %v11078_v51 = vsel %vm556_vm0, %v11064_v36, 0  ;;  %v8935_v48 = vmul.f32 %v8931_v17, %v8924_v4  ;;  %v8927_v40 = vmul.f32 %v13296_v42, %v16080_v20 }
0x16e0   :  { %11090 = vmatpush1.bf16.msra.mxu0 %v11072_v47  ;;  %v11084_v1 = vsel %vm556_vm0, %v11066_v50, 0  ;;  %v11055_v43 = vpack.c.bf16 %v8951_v28, %v8951_v28  ;;  %v8950_v13 = vmax.f32 %v8944_v61, 0.0  ;;  %v8947_v0 = vadd.f32 %v8942_v31, %v8936_v38  ;;  %v11356_v38 = vld [vmem:[#allocation51] sm:$0xf] }
0x16e1   :  { %12072 = vmatprep.subr.msk.bf16.mxu0 %vm556_vm0, %v11065_v11  ;;  %v8926_v62 = vmul.f32 %v13296_v42, %v16072_v14  ;;  %v8946_v7 = vadd.f32 %v8942_v31, %v8935_v48  ;;  %v8938_v60 = vmul.f32 %v8931_v17, %v8927_v40  ;;  %v11053_v42 = vld [vmem:[#allocation38] sm:$0x3] }
0x16e2   :  { %v11054_v63 = vpack.c.bf16 %v8950_v13, %v8950_v13  ;;  %v8953_v12 = vmax.f32 %v8947_v0, 0.0 }
0x16e3   :  { %12071 = vmatmul.mubr.msk.bf16.vlgmr.msra.gmra.mrb[76].mxu0 %vm584_vm1, %v11061_v41  ;;  %v8937_v32 = vmul.f32 %v8931_v17, %v8926_v62  ;;  %v8952_v52 = vmax.f32 %v8946_v7, 0.0  ;;  %v8949_v37 = vadd.f32 %v8942_v31, %v8938_v60 }
0x16e4   :  { %11131 = vmatpush1.bf16.msra.mxu0 %v11078_v51  ;;  %11162 = vmatprep.mubr.bf16.mxu0 %v14660_v26  ;;  %v11216_v20 = vsel %vm556_vm0, %v11054_v63, 0  ;;  %v11057_v57 = vpack.c.bf16 %v8953_v12, %v8953_v12 }
0x16e5   :  { %12074 = vmatprep.subr.msk.bf16.mxu0 %vm556_vm0, %v11067_v29  ;;  %v11056_v2 = vpack.c.bf16 %v8952_v52, %v8952_v52  ;;  %v8955_v59 = vmax.f32 %v8949_v37, 0.0  ;;  %v8948_v14 = vadd.f32 %v8942_v31, %v8937_v32 }
0x16e7   :  { %v11222_v49 = vsel %vm556_vm0, %v11056_v2, 0  ;;  %v11059_v35 = vpack.c.bf16 %v8955_v59, %v8955_v59  ;;  %v8954_v16 = vmax.f32 %v8948_v14, 0.0 }
0x16e9   :  { %v11058_v21 = vpack.c.bf16 %v8954_v16, %v8954_v16 }
0x16eb   :  { %12073 = vmatmul.mubr.msk.bf16.vlgmr.msra.gmra.mrb[80].mxu0 %vm584_vm1, %v11061_v41  ;;  %v11228_v54 = vsel %vm556_vm0, %v11058_v21, 0 }
0x16ec   :  { %11172 = vmatpush1.bf16.msra.mxu0 %v11084_v1  ;;  %11203 = vmatprep.mubr.bf16.mxu0 %v14660_v26 }
0x16ed   :  { %12076 = vmatprep.subr.msk.bf16.mxu0 %vm556_vm0, %v11055_v43 }
0x16f3   :  { %12075 = vmatmul.mubr.msk.bf16.vlgmr.msra.gmra.mrb[84].mxu0 %vm584_vm1, %v11061_v41 }
0x16f4   :  { %11234 = vmatpush1.bf16.msra.mxu0 %v11216_v20  ;;  %11265 = vmatprep.mubr.bf16.mxu0 %v14660_v26 }
0x16f5   :  { %12078 = vmatprep.subr.msk.bf16.mxu0 %vm556_vm0, %v11057_v57 }
0x16fb   :  { %12077 = vmatmul.mubr.msk.bf16.vlgmr.msra.gmra.mrb[76].mxu0 %vm584_vm1, %v11053_v42 }
0x16fc   :  { %11275 = vmatpush1.bf16.msra.mxu0 %v11222_v49  ;;  %11306 = vmatprep.mubr.bf16.mxu0 %v14660_v26 }
0x16fd   :  { %12080 = vmatprep.subr.msk.bf16.mxu0 %vm556_vm0, %v11059_v35  ;;  %vm11467_vm0 = vcmask 64516  }
0x1703   :  { %12079 = vmatmul.mubr.msk.bf16.vlgmr.msra.gmra.mrb[80].mxu0 %vm584_vm1, %v11053_v42 }
0x1704   :  { %11316 = vmatpush1.bf16.msra.mxu0 %v11228_v54  ;;  %11347 = vmatprep.mubr.bf16.mxu0 %v14660_v26 }
0x170b   :  { %12081 = vmatmul.mubr.msk.bf16.vlgmr.msra.gmra.mrb[84].mxu0 %vm584_vm1, %v11053_v42  ;;  %vm11468_vm1 = vmor %vm11467_vm0, %vm2648_vm6 }
0x17ce   :  { %v11267_v27 = vpop.f32.mrb[76].mxu0 }
0x17cf   :  { %v11359_v30 = vmul.f32 %v11267_v27, %v14629_v22  ;;  %v11269_v56 = vpop.f32.mrb[77].mxu0 }
0x17d0   :  { %v11360_v55 = vmul.f32 %v11269_v56, %v14631_v23  ;;  %v11271_v58 = vpop.f32.mrb[78].mxu0 }
0x17d1   :  { %v11365_v44 = vsel %vm2648_vm6, %v11359_v30, 0.0  ;;  %v11272_v17 = vpop.f32.mrb[79].mxu0 }
0x17d2   :  { %v11366_v18 = vsel %vm2648_vm6, %v11360_v55, 0.0 }
0x17d3   :  { %v11367_v19 = vadd.f32 %v11366_v18, %v11365_v44 }
0x17d6   :  { %v11308_v25 = vpop.f32.mrb[80].mxu0 }
0x17d7   :  { %v11361_v24 = vmul.f32 %v11308_v25, %v14637_v33  ;;  %v11310_v39 = vpop.f32.mrb[81].mxu0 }
0x17d8   :  { %v11362_v26 = vmul.f32 %v11310_v39, %v14639_v34  ;;  %v11312_v47 = vpop.f32.mrb[82].mxu0 }
0x17d9   :  { %v11368_v11 = vsel %vm2648_vm6, %v11361_v24, 0.0  ;;  %v11313_v36 = vpop.f32.mrb[83].mxu0 }
0x17da   :  { %v11369_v9 = vadd.f32 %v11368_v11, %v11367_v19  ;;  %v11370_v41 = vsel %vm2648_vm6, %v11362_v26, 0.0 }
0x17dc   :  { %v11371_v31 = vadd.f32 %v11370_v41, %v11369_v9 }
0x17de   :  { %v11349_v10 = vpop.f32.mrb[84].mxu0 }
0x17df   :  { %v11363_v53 = vmul.f32 %v11349_v10, %v14645_v45  ;;  %v11351_v51 = vpop.f32.mrb[85].mxu0 }
0x17e0   :  { %v11364_v29 = vmul.f32 %v11351_v51, %v14647_v46  ;;  %v11353_v15 = vpop.f32.mrb[86].mxu0 }
0x17e1   :  { %v11372_v6 = vsel %vm2648_vm6, %v11363_v53, 0.0  ;;  %v11354_v4 = vpop.f32.mrb[87].mxu0 }
0x17e2   :  { %v11373_v50 = vadd.f32 %v11372_v6, %v11371_v31  ;;  %v11374_v28 = vsel %vm2658_vm7, %v11364_v29, 0.0  ;;  %v13300_v4 = vld [vmem:[#allocation3] sm:$0xff] }
0x17e4   :  { %v11375_v61 = vadd.f32 %v11374_v28, %v11373_v50 }
0x17e6   :  { %11376 = vadd.xlane.f32.xlu0 %v11375_v61  ;;  %v13301_v61 = vld [vmem:[#allocation3 + $0x8] sm:$0xff] }
0x17fc   :  { %11421 = vperm.xlu0 %12954, %v11356_v38  }
0x1873   :  { %v11377_v48 = vpop.xlane.xlu0 %11376 }
0x1874   :  { %v11378_v40 = vmul.f32 0.001953125, %v11377_v48 }
0x1876   :  { %v11379_v1 = vsub.f32 %v11267_v27, %v11378_v40  ;;  %v11380_v43 = vsub.f32 %v11269_v56, %v11378_v40  ;;  %v11381_v13 = vsub.f32 %v11308_v25, %v11378_v40  ;;  %v11382_v0 = vsub.f32 %v11310_v39, %v11378_v40  ;;  %v11358_v27 = vld [vmem:[#allocation51 + $0x4] sm:$0xf] }
0x1877   :  { %v11383_v62 = vsub.f32 %v11349_v10, %v11378_v40  ;;  %v11384_v63 = vsub.f32 %v11351_v51, %v11378_v40  ;;  %v13302_v40 = vld [vmem:[#allocation3 + $0x10] sm:$0xff] }
0x1878   :  { %v11385_v12 = vmul.f32 %v11379_v1, %v14629_v22  ;;  %v11386_v7 = vmul.f32 %v11380_v43, %v14631_v23  ;;  %v11387_v60 = vmul.f32 %v11381_v13, %v14637_v33  ;;  %v11388_v32 = vmul.f32 %v11382_v0, %v14639_v34 }
0x1879   :  { %v11389_v20 = vmul.f32 %v11383_v62, %v14645_v45  ;;  %v11390_v2 = vmul.f32 %v11384_v63, %v14647_v46 }
0x187a   :  { %v11391_v57 = vmul.f32 %v11385_v12, %v11385_v12  ;;  %v11392_v52 = vmul.f32 %v11386_v7, %v11386_v7  ;;  %v11393_v37 = vmul.f32 %v11387_v60, %v11387_v60  ;;  %v11394_v59 = vmul.f32 %v11388_v32, %v11388_v32 }
0x187b   :  { %v11395_v22 = vmul.f32 %v11389_v20, %v11389_v20  ;;  %v11396_v33 = vmul.f32 %v11390_v2, %v11390_v2  ;;  %v11422_v25 = vpop.permute.xlu0 %11421 }
0x187c   :  { %v11397_v14 = vsel %vm2648_vm6, %v11391_v57, 0.0  ;;  %v11398_v42 = vsel %vm2648_vm6, %v11392_v52, 0.0  ;;  %v11400_v23 = vsel %vm2648_vm6, %v11393_v37, 0.0  ;;  %v11402_v34 = vsel %vm2648_vm6, %v11394_v59, 0.0 }
0x187d   :  { %v11399_v49 = vadd.f32 %v11398_v42, %v11397_v14  ;;  %v11404_v45 = vsel %vm2648_vm6, %v11395_v22, 0.0  ;;  %v11406_v54 = vsel %vm2658_vm7, %v11396_v33, 0.0 }
0x187f   :  { %v11401_v35 = vadd.f32 %v11400_v23, %v11399_v49 }
0x1881   :  { %v11403_v16 = vadd.f32 %v11402_v34, %v11401_v35 }
0x1883   :  { %v11405_v21 = vadd.f32 %v11404_v45, %v11403_v16 }
0x1885   :  { %v11407_v46 = vadd.f32 %v11406_v54, %v11405_v21 }
0x1887   :  { %11408 = vadd.xlane.f32.xlu1 %v11407_v46 }
0x1898   :  { %11432 = vperm.xlu1 %12953, %v11358_v27  }
0x1914   :  { %v11409_v30 = vpop.xlane.xlu1 %11408 }
0x1915   :  { %v11410_v56 = vmul.f32 0.001953125, %v11409_v30 }
0x1917   :  { %v11411_v55 = vadd.f32 1e-05, %v11410_v56 }
0x1918   :  { %v11433_v9 = vpop.permute.xlu1 %11432 }
0x1919   :  { %13297 = vrsqrt.f32 %v11411_v55 }
0x1923   :  { %v13298_v58 = vpop.eup %13297 }
0x1924   :  { %v11413_v44 = vmul.f32 %v13298_v58, %v11379_v1  ;;  %v11414_v17 = vmul.f32 %v13298_v58, %v11380_v43  ;;  %v11415_v18 = vmul.f32 %v13298_v58, %v11381_v13  ;;  %v11416_v19 = vmul.f32 %v13298_v58, %v11382_v0 }
0x1925   :  { %v11417_v24 = vmul.f32 %v13298_v58, %v11383_v62  ;;  %v11418_v39 = vmul.f32 %v13298_v58, %v11384_v63 }
0x1926   :  { %v11424_v26 = vmul.f32 %v11422_v25, %v11413_v44  ;;  %v11425_v47 = vmul.f32 %v11422_v25, %v11414_v17  ;;  %v11426_v11 = vmul.f32 %v11422_v25, %v11415_v18  ;;  %v11427_v36 = vmul.f32 %v11422_v25, %v11416_v19 }
0x1927   :  { %v11428_v41 = vmul.f32 %v11422_v25, %v11417_v24  ;;  %v11429_v31 = vmul.f32 %v11422_v25, %v11418_v39 }
0x1928   :  { %v11435_v10 = vadd.f32 %v11433_v9, %v11424_v26  ;;  %v11436_v53 = vadd.f32 %v11433_v9, %v11425_v47  ;;  %v11437_v51 = vadd.f32 %v11433_v9, %v11426_v11  ;;  %v11438_v29 = vadd.f32 %v11433_v9, %v11427_v36 }
0x1929   :  { %v11439_v15 = vadd.f32 %v11433_v9, %v11428_v41  ;;  %v11440_v6 = vadd.f32 %v11433_v9, %v11429_v31 }
0x192a   :  { %v11441_v50 = vadd.f32 %v13300_v4, %v11435_v10  ;;  %v11442_v28 = vadd.f32 %v11436_v53, %v14604_v3  ;;  %v11443_v38 = vadd.f32 %v13301_v61, %v11437_v51  ;;  %v11444_v48 = vadd.f32 %v11438_v29, %v14606_v5 }
0x192b   :  { %v11445_v1 = vadd.f32 %v13302_v40, %v11439_v15  ;;  %v11446_v43 = vadd.f32 %v11440_v6, %v14608_v8 }
0x192c   :  { %v11447_v13 = vmax.f32 %v11441_v50, 0.0  ;;  %v11448_v0 = vmax.f32 %v11442_v28, 0.0  ;;  %v11449_v62 = vmax.f32 %v11443_v38, 0.0  ;;  %v11450_v63 = vmax.f32 %v11444_v48, 0.0 }
0x192d   :  { %v11451_v12 = vmax.f32 %v11445_v1, 0.0  ;;  %v11452_v7 = vmax.f32 %v11446_v43, 0.0 }
0x192e   :  { %v11459_v60 = vcombine.low %v11447_v13, %v11448_v0  ;;  %v11460_v32 = vcombine.low %v11449_v62, %v11450_v63 }
0x192f   :  { %v11461_v3 = vcombine.low %v11451_v12, %v11452_v7 }
0x1930   :  { %11465 = vst [vmem:[#allocation53] sm:$0xff] %v11459_v60  ;;  %11466 = vst [vmem:[#allocation53 + $0x8] sm:$0xff] %v11460_v32 }
0x1931   :  { %11469 = vst.msk [vmem:[#allocation53 + $0x10] sm:$0xff] %vm11468_vm1, %v11461_v3 }
0x1932   :  { %14021 = shalt.err (!%p14018_p8)
}
0x1933   :  { %s14022_s2 = scalar_lea.hbm %s14331_s27, 384 }
0x1934   :  { %p14023_p9 = scmp.ne.s32.totalorder %s14331_s27, %s14022_s2  ;;  %p14026_p10 = scmp.lt.u32.totalorder %s14022_s2, %s14331_s27 }
0x1936   :  { %p14028_p11 = pnand %p14026_p10, %p14023_p9 }
0x1938   :  { %14031 = shalt.err (!%p14028_p11)
}
0x1939   :  { %11479 = dma.vmem_to_hbm [thread:$0]  %s11477_s30, 384, %s14331_s27, [#allocation5]  }
0x193a   :  { %14066 = dma.done.wait [#allocation5], 384  }
0x193b   :  { %14067 = vsyncadd [#allocation5], 4294966912 }
0x193c   :  { %11483 = vsyncpa [#allocation4], 1 }
0x193d   :  { %11484 = vsyncpa [#allocation7], 1 }
0x193e   :  { %11485 = vsyncpa [#allocation10], 1 }
0x193f   :  { %11486 = vsyncpa [#allocation13], 1 }
0x1940   :  { %11487 = vsyncpa [#allocation16], 1 }
0x1941   :  { %11488 = vsyncpa [#allocation19], 1 }
0x1942   :  { %11489 = vsyncpa [#allocation22], 1 }
0x1943   :  { %11490 = vsyncpa [#allocation25], 1 }
0x1944   :  { %11491 = vsyncpa [#allocation28], 1 }
0x1945   :  { %11492 = vsyncpa [#allocation31], 1 }
0x1946   :  { %11493 = vsyncpa [#allocation34], 1 }
0x1947   :  { %11494 = vsyncpa [#allocation37], 1 }
0x1948   :  { %11495 = vsyncpa [#allocation40], 1 }
0x1949   :  { %11496 = vsyncpa [#allocation43], 1 }
0x194a   :  { %11497 = vsyncpa [#allocation46], 1 }
0x194b   :  { %11498 = vsyncpa [#allocation49], 1 }
0x194c   :  { %11499 = vsyncpa [#allocation52], 1 }
0x194d   :  { %11500 = vsyncpa [#allocation5], 1 }

</bundles_post_ra>
